<compile_context>
chip_gen: v5e
topology: v5e:2x2
jax: 0.10.0
libtpu: 0.0.40
codegen_flags: <defaults>
</compile_context>

<pallas_src>
import math

import numpy as np
import jax
import jax.numpy as jnp
from jax import lax
from jax.experimental import pallas as pl
from jax.experimental.pallas import tpu as pltpu

TWO_PI = 2.0 * np.pi


# --------------------------------------------------------------------------
# Deterministic filter construction (mirrors LogPolarTransform.__init__,
# computed in float64 then cast to float32, like the torch DoubleTensor path).
# --------------------------------------------------------------------------
def _unsqueeze_except(arr, ndim, dim):
    """1-D array -> ndim-D with its length on axis `dim` (torch unsqueeze_except)."""
    shape = [1] * ndim
    shape[dim] = -1
    return np.asarray(arr, dtype=np.float64).reshape(shape)


def build_logpolar_filters(tau_min=0.5, tau_max=4.0, buff_max=None, k=10, ntau=8,
                           dt=1, g=0.0, num_angles=4, window_shape='arc',
                           localization='step', gaussian_sharpness=1):
    """Returns (filters, filter_width, padding) with filters shaped
    (num_angles*ntau, fw, fw) in the PyTorch module's channel order (c = angle*ntau + tau)."""
    if buff_max is None:
        buff_max = 3 * tau_max
    c = (tau_max / tau_min) ** (1.0 / (ntau - 1)) - 1
    x = np.arange(dt, buff_max + dt, dt).astype(np.float64)
    y = np.arange(dt, buff_max + dt, dt).astype(np.float64)
    filter_width = len(x)
    padding = filter_width // 2
    c_x = c_y = (buff_max + dt) // 2
    dtheta = TWO_PI / num_angles
    theta = np.arange(num_angles).astype(np.float64) * dtheta - np.pi
    tau_star = tau_min * (1 + c) ** np.arange(ntau).astype(np.float64)

    ndim = 4
    x = _unsqueeze_except(x, ndim, 0)                 # (fw, 1, 1, 1)
    y = _unsqueeze_except(y, ndim, 1)                 # (1, fw, 1, 1)
    centered_x = x - c_x
    centered_y = y - c_y
    theta = _unsqueeze_except(theta, ndim, 2)         # (1, 1, na, 1)
    theta_orth = theta + np.pi / 2
    tau_star = _unsqueeze_except(tau_star, ndim, 3)   # (1, 1, 1, nt)

    a = math.log(k) * k
    b = np.log(np.arange(2, k).astype(np.float64)).sum()
    # (The torch code's unsqueeze_except(A, 4, dim=0) is a no-op on an already-4D tensor.)
    A = 1.0 / tau_star * np.exp(a - b) * tau_star ** g

    if window_shape == 'arc':
        axis_distance = tau_star * dtheta / 2
        tau = np.sqrt(centered_x ** 2 + centered_y ** 2)
        grid_theta = np.arctan2(centered_y, centered_x)
        clockwise_dist = np.abs(theta - grid_theta)
        cclockwise_dist = np.abs(theta - (grid_theta - 2 * np.pi))
        unit_circle_dist = np.minimum(clockwise_dist, cclockwise_dist)
        tau_orth = unit_circle_dist * tau
        tau, tau_orth = np.broadcast_arrays(tau, tau_orth)
    else:  # 'line'
        axis_distance = tau_star * math.tan(dtheta / 2)
        tau = np.cos(theta) * centered_x - np.sin(theta) * centered_y
        tau_orth = np.cos(theta_orth) * centered_x - np.sin(theta_orth) * centered_y

    with np.errstate(divide='ignore', invalid='ignore'):
        if localization == 'gaussian':
            sd = (axis_distance / gaussian_sharpness) ** 2
            gaussian_scale_factor = 1.0 / np.sqrt(np.pi * 2 * sd)
            orthogonal_window = gaussian_scale_factor * np.exp(-tau_orth ** 2 / sd)
        else:  # 'step'
            radius = np.sqrt(centered_x ** 2 + centered_y ** 2)
            orthogonal_window = (np.abs(tau_orth) / (radius / tau_star)) <= axis_distance

        tau = np.where(tau <= 0, 0.0, tau)
        tau_prime = tau / tau_star                                  # (fw, fw, na, nt)
        filters = A * np.exp(np.log(tau_prime) * (k + 1) - k * tau_prime)
        filters = filters * orthogonal_window
        filters = np.where(tau_prime <= 0, 0.0, filters)

    filters = np.transpose(filters, (2, 3, 0, 1))                   # (na, nt, fw, fw)
    filters = filters.reshape(num_angles * ntau, filter_width, filter_width)
    return filters.astype(np.float32), filter_width, padding


# --------------------------------------------------------------------------
# Lowered conv operator: zero padding, stride and the (ntau, num_angles)
# channel reordering are all folded in at build time (host-side, tiny).
# --------------------------------------------------------------------------
def build_lowered_operator(filters_pt, H, W, padding, num_angles, ntau, stride=1):
    """filters_pt: (num_angles*ntau, fw, fw), PyTorch channel order (c = angle*ntau + tau).
    Returns (L, h_out, w_out) with L of shape (H*W, c_out*h_out*w_out), float32, where the
    operator's channel axis is already in (ntau, num_angles) order so the kernel output
    needs only a reshape (no transpose) to match (B, F, ntau, num_angles, H', W')."""
    c_out, fw, fw2 = filters_pt.shape
    assert fw == fw2 and c_out == num_angles * ntau

    # Reorder channels: (na*nt) -> (nt*na), i.e. c' = tau*num_angles + angle.
    f_k = filters_pt.reshape(num_angles, ntau, fw, fw).transpose(1, 0, 2, 3)
    f_k = np.ascontiguousarray(f_k.reshape(c_out, fw, fw), dtype=np.float32)

    h_out = (H + 2 * padding - fw) // stride + 1
    w_out = (W + 2 * padding - fw) // stride + 1

    # op[c, y, x, iy, ix] = weight of input pixel (iy, ix) in output (c, y, x)
    op = np.zeros((c_out, h_out, w_out, H, W), np.float32)
    ys = np.arange(h_out)
    xs = np.arange(w_out)
    for ky in range(fw):
        iy = ys * stride + ky - padding
        my = (iy >= 0) & (iy < H)
        if not my.any():
            continue
        yv, iyv = ys[my], iy[my]
        for kx in range(fw):
            ix = xs * stride + kx - padding
            mx = (ix >= 0) & (ix < W)
            if not mx.any():
                continue
            xv, ixv = xs[mx], ix[mx]
            op[:, yv[:, None], xv[None, :], iyv[:, None], ixv[None, :]] += \
                f_k[:, ky, kx][:, None, None]

    L = np.ascontiguousarray(op.reshape(c_out * h_out * w_out, H * W).T)
    return L, h_out, w_out


# --------------------------------------------------------------------------
# Pallas kernel: one MXU matmul per batch block, single lane-dense f32 store.
# Operands are bf16; accumulation is f32 on the MXU.
# --------------------------------------------------------------------------
def _lp_matmul_kernel(x_ref, l_ref, o_ref):
    # x_ref: (Nb, K) bf16   l_ref: (K, M_pad) bf16   o_ref: (Nb, M_pad) f32
    o_ref[...] = jnp.dot(x_ref[...], l_ref[...],
                         preferred_element_type=jnp.float32)


def _round_up(a, b):
    return -(-a // b) * b


def _batch_block_cap():
    """256-row LHS blocks on v6e/v7x (256-row MXU), 128 on v5e (128-row MXU)."""
    try:
        kind = jax.devices()[0].device_kind.lower()
    except Exception:
        return 256
    if ('v5 lite' in kind) or ('v5e' in kind) or ('v5lite' in kind):
        return 128
    return 256


def _choose_block_n(n, cap):
    """Batch-block size nb (multiple of 8 = sublane tile) and 8-aligned padded batch.
    Prefers nb | n_pad (no extra batch padding), >= 2 grid steps when there is enough
    work (so v7x's two TensorCores both get a share of the 'parallel' axis), nb <= cap."""
    n_pad = _round_up(max(n, 1), 8)
    if n_pad <= 8:
        return n_pad, n_pad
    target = min(cap, max(8, _round_up(n_pad // 2, 8)))   # aim for >= 2 grid steps
    nb = 8
    for cand in range(target, 7, -8):
        if n_pad % cand == 0:
            nb = cand
            break
    return nb, n_pad


def _vmem_limit_bytes(nb, K, M_pad):
    """Scoped-VMEM request: L (budgeted x2 even though we ask for single-buffering),
    double-buffered bf16 x blocks and f32 out blocks, 25% + 2 MiB headroom, kept well
    under v7x's 64 MiB per-TC VMEM."""
    l_bytes = K * M_pad * 2 * 2
    x_bytes = nb * K * 2 * 2
    o_bytes = nb * M_pad * 4 * 2
    need = int((l_bytes + x_bytes + o_bytes) * 1.25) + (2 << 20)
    return max(16 << 20, min(need, 60 << 20))


def log_polar_transform(x, lowered_op, *, num_angles, ntau, h_out, w_out):
    """x: (B, F, H, W) float32; lowered_op: (H*W, c_out*h_out*w_out) float32 (numpy).
    Returns (B, F, ntau, num_angles, h_out, w_out) float32, matching the PyTorch forward."""
    assert x.ndim == 4
    B, F, H, W = x.shape
    N = B * F
    K = H * W
    c_out = num_angles * ntau
    M = c_out * h_out * w_out
    assert lowered_op.shape == (K, M)

    # Lane-pad M to a multiple of 128 with zero columns -> every store is an unmasked,
    # vreg-aligned lane-dense store. Done host-side on the tiny operator.
    M_pad = _round_up(M, 128)
    L_host = np.asarray(lowered_op, np.float32)
    if M_pad != M:
        L_host = np.pad(L_host, ((0, 0), (0, M_pad - M)))
    L = jnp.asarray(L_host, jnp.bfloat16)                 # bf16 operand, f32 accumulate

    x_flat = x.reshape(N, K).astype(jnp.bfloat16)          # metadata reshape + cheap cast

    nb, n_pad = _choose_block_n(N, _batch_block_cap())
    if n_pad != N:
        x_flat = jnp.pad(x_flat, ((0, n_pad - N), (0, 0)))

    out = pl.pallas_call(
        _lp_matmul_kernel,
        out_shape=jax.ShapeDtypeStruct((n_pad, M_pad), jnp.float32),
        grid_spec=pltpu.PrefetchScalarGridSpec(
            num_scalar_prefetch=0,
            grid=(n_pad // nb,),
            in_specs=[
                pl.BlockSpec((nb, K), lambda n: (n, 0)),
                # Constant block index + single-buffered: L stays VMEM-resident, no
                # wasted second buffer (critical on v5e's default limit / v7x's 64 MiB).
                pl.BlockSpec((K, M_pad), lambda n: (0, 0),
                             pipeline_mode=pl.Buffered(1)),
            ],
            out_specs=pl.BlockSpec((nb, M_pad), lambda n: (n, 0)),
        ),
        compiler_params=pltpu.CompilerParams(
            dimension_semantics=("parallel",),
            vmem_limit_bytes=_vmem_limit_bytes(nb, K, M_pad),
        ),
    )(x_flat, L)

    if n_pad != N:
        out = out[:N]
    if M_pad != M:
        out = out[:, :M]
    # Channel order inside M is already (ntau, num_angles, h_out, w_out) -> pure reshape.
    return out.reshape(B, F, ntau, num_angles, h_out, w_out)


if __name__ == "__main__":
    # Small, deterministic configuration (buff_max=12, dt=1 -> 12x12 filters, 32 channels).
    tau_min, tau_max, buff_max = 0.5, 4.0, 12
    k, ntau, dt, g = 10, 8, 1, 0.0
    num_angles = 4

    filters_np, fw, pad = build_logpolar_filters(
        tau_min=tau_min, tau_max=tau_max, buff_max=buff_max, k=k, ntau=ntau,
        dt=dt, g=g, num_angles=num_angles, window_shape='arc', localization='step')

    B, F, H, W = 2, 4, 16, 16
    key = jax.random.PRNGKey(0)
    x = jax.random.normal(key, (B, F, H, W), dtype=jnp.float32)

    L_np, h_out, w_out = build_lowered_operator(
        filters_np, H, W, pad, num_angles, ntau, stride=1)

    out = log_polar_transform(x, L_np, num_angles=num_angles, ntau=ntau,
                              h_out=h_out, w_out=w_out)
    out = jax.block_until_ready(out)
    assert out.shape == (B, F, ntau, num_angles, h_out, w_out), out.shape

    def conv_ref(x_in, filt):
        r = lax.conv_general_dilated(
            x_in.reshape(B * F, 1, H, W), filt[:, None, :, :],
            window_strides=(1, 1), padding=((pad, pad), (pad, pad)),
            dimension_numbers=('NCHW', 'OIHW', 'NCHW'),
            precision=lax.Precision.HIGHEST)
        return r.reshape(B, F, num_angles, ntau, h_out, w_out).transpose(0, 1, 3, 2, 4, 5)

    # (1) Tight check with MATCHED precision: same bf16-rounded operands, f32 compute.
    #     Validates the lowered operator, zero-padding and the baked-in channel reorder
    #     exactly (only accumulation-order differences remain).
    xq = x.astype(jnp.bfloat16).astype(jnp.float32)
    fq = jnp.asarray(filters_np).astype(jnp.bfloat16).astype(jnp.float32)
    ref_matched = conv_ref(xq, fq)
    np.testing.assert_allclose(np.asarray(out), np.asarray(ref_matched),
                               rtol=2e-3, atol=2e-3)

    # (2) Loose check against the pure-f32 module semantics: bounds the intentional
    #     bf16 operand-quantization error of the fast path.
    ref_f32 = conv_ref(x, jnp.asarray(filters_np))
    np.testing.assert_allclose(np.asarray(out), np.asarray(ref_f32),
                               rtol=5e-2, atol=1e-1)

    print("KERNEL_OK")
</pallas_src>

<mosaic_0001>
module attributes {stable_mosaic.version = 11 : i64} {
  func.func @_lp_matmul_kernel(%arg0: i32, %arg1: memref<8x256xbf16, #tpu.memory_space<vmem>>, %arg2: memref<256x9344xbf16, #tpu.memory_space<vmem>>, %arg3: memref<8x9344xf32, #tpu.memory_space<vmem>>) attributes {dimension_semantics = [#tpu.dimension_semantics<parallel>], iteration_bounds = array<i64: 1>, scalar_prefetch = 0 : i64, scratch_operands = 0 : i64, tpu.core_type = #tpu.core_type<tc>, window_params = [{transform_indices = @transform_0, window_bounds = array<i64: 8, 256>}, {pipeline_mode = #tpu.pipeline_mode<synchronous>, transform_indices = @transform_1, window_bounds = array<i64: 256, 9344>}, {transform_indices = @transform_2, window_bounds = array<i64: 8, 9344>}]} {
    %c0 = arith.constant 0 : index
    %c0_0 = arith.constant 0 : index
    %0 = vector.load %arg1[%c0, %c0_0] : memref<8x256xbf16, #tpu.memory_space<vmem>>, vector<8x256xbf16>
    %c0_1 = arith.constant 0 : index
    %c0_2 = arith.constant 0 : index
    %1 = vector.load %arg2[%c0_1, %c0_2] : memref<256x9344xbf16, #tpu.memory_space<vmem>>, vector<256x9344xbf16>
    %cst = arith.constant dense<0.000000e+00> : vector<8x9344xf32>
    %2 = tpu.matmul %0, %1, %cst {dimension_numbers = #tpu.dot_dimension_numbers<[1], [0], [0], [1], [0, 0, 1, 1], [], []>} : vector<8x256xbf16>, vector<256x9344xbf16>, vector<8x9344xf32> -> vector<8x9344xf32>
    %c0_3 = arith.constant 0 : index
    %c0_4 = arith.constant 0 : index
    %3 = vector.load %arg3[%c0_3, %c0_4] : memref<8x9344xf32, #tpu.memory_space<vmem>>, vector<8x9344xf32>
    tpu.vector_store %arg3[%c0_3, %c0_4], %2 {strides = array<i32>} : memref<8x9344xf32, #tpu.memory_space<vmem>>, vector<8x9344xf32>,
    return
  }
  func.func @transform_0(%arg0: i32) -> (i32, i32) {
    %c0_i32 = arith.constant 0 : i32
    %c0_i32_0 = arith.constant 0 : i32
    return %arg0, %c0_i32 : i32, i32
  }
  func.func @transform_1(%arg0: i32) -> (i32, i32) {
    %c0_i32 = arith.constant 0 : i32
    %c0_i32_0 = arith.constant 0 : i32
    %c0_i32_1 = arith.constant 0 : i32
    return %c0_i32, %c0_i32_0 : i32, i32
  }
  func.func @transform_2(%arg0: i32) -> (i32, i32) {
    %c0_i32 = arith.constant 0 : i32
    %c0_i32_0 = arith.constant 0 : i32
    return %arg0, %c0_i32 : i32, i32
  }
}

</mosaic_0001>

<bundles_post_ra>
// kernel: tpu_custom_call.1
= control target key start
LH: loop header
LB: loop body
LE: loop exit
PB: predicated region body
PF: predicated region fallthrough
CT: control target
= control target key end

     0   :  { %7 = vsyncpa [#allocation3], 0  ;;  %s15181_s0 = inlined_call_operand.hbm [shape: bf16[8,256], index: 0, kind: input, shape index: {}]   ;;  %s15182_s1 = inlined_call_operand.hbm [shape: bf16[256,9344], index: 1, kind: input, shape index: {}]   ;;  %s15183_s2 = inlined_call_operand.hbm [shape: f32[8,9344], index: 2, kind: output, shape index: {}]  }
   0x1   :  { %8 = vsyncpa [#allocation6], 0 }
   0x2   :  { %9 = vsyncpa [#allocation4], 0  ;;  %s15_s11 = sshll.u32 %s15181_s0, 4  ;;  %s15002_s12 = smov [#allocation2]   ;;  %s16_s11 = int_to_ptr.hbm [resolvable:$true] %s15_s11 }
   0x3   :  { %s17_s13 = sshll.u32 %s15002_s12, 4  ;;  %s25_s16 = sshll.u32 %s15182_s1, 4  ;;  %s18_s13 = int_to_ptr.vmem [resolvable:$true] %s17_s13  ;;  %s26_s16 = int_to_ptr.hbm [resolvable:$true] %s25_s16 }
   0x4   :  { %20 = dma.hbm_to_vmem [thread:$0]  %s16_s11, 128, %s18_s13, [#allocation3]  }
   0x5   :  { %s15003_s17 = smov [#allocation5]   ;;  %s15004_s19 = smov 4672  }
   0x6   :  { %s27_s18 = sshll.u32 %s15003_s17, 4  ;;  %s15005_s20 = smov 292   ;;  %s28_s18 = int_to_ptr.vmem [resolvable:$true] %s27_s18 }
   0x7   :  { %33 = dma.hbm_to_vmem [thread:$0]  %s26_s16, 149504, %s28_s18, [#allocation6], %s15004_s19, %s15004_s19, %s15005_s20  }
   0x8   :  { %14996 = dma.done.wait [#allocation3], 128  }
   0x9   :  { %14997 = vsyncadd [#allocation3], 4294967168 }
   0xa   :  { %14998 = dma.done.wait [#allocation6], 149504  }
   0xb   :  { %14999 = vsyncadd [#allocation6], 4294817792  ;;  %v11125_v0 = vld [vmem:[#allocation5 + $0xff8] sm:$0xf]  ;;  %v14298_v1 = vld [vmem:[#allocation5 + $0x1118] sm:$0xf0] }
   0xc   :  { %v13461_v2 = vld [vmem:[#allocation5 + $0x2238] sm:$0xf]  ;;  %v11126_v3 = vor.u32 %v14298_v1, %v11125_v0  ;;  %v14882_v4 = vld [vmem:[#allocation5 + $0x2358] sm:$0xf0]  ;;  %v10833_v5 = vld [vmem:[#allocation5 + $0xdb0] sm:$0xf] }
   0xd   :  { %v14225_v6 = vld [vmem:[#allocation5 + $0xed0] sm:$0xf0]  ;;  %v13462_v7 = vor.u32 %v14882_v4, %v13461_v2  ;;  %v13169_v8 = vld [vmem:[#allocation5 + $0x1ff0] sm:$0xf]  ;;  %v10541_v12 = vld [vmem:[#allocation5 + $0xb68] sm:$0xf] }
   0xe   :  { %v14809_v9 = vld [vmem:[#allocation5 + $0x2110] sm:$0xf0]  ;;  %7090 = vmatpush.bf16.msra.mxu0 %v11126_v3  ;;  %v10834_v10 = vor.u32 %v14225_v6, %v10833_v5  ;;  %v14152_v13 = vld [vmem:[#allocation5 + $0xc88] sm:$0xf0]  ;;  %v12877_v14 = vld [vmem:[#allocation5 + $0x1da8] sm:$0xf] }
   0xf   :  { %7103 = vmatpush.bf16.msra.mxu1 %v13462_v7  ;;  %v13170_v11 = vor.u32 %v14809_v9, %v13169_v8  ;;  %v14736_v15 = vld [vmem:[#allocation5 + $0x1ec8] sm:$0xf0]  ;;  %v14262_v16 = vld [vmem:[#allocation5 + $0xffc] sm:$0xf]  ;;  %v11127_v17 = vld [vmem:[#allocation5 + $0x111c] sm:$0xf0]  ;;  %v10542_v21 = vor.u32 %v14152_v13, %v10541_v12 }
  0x10   :  { %v11130_v18 = vor.u32 %v14262_v16, %v11127_v17  ;;  %v14846_v19 = vld [vmem:[#allocation5 + $0x223c] sm:$0xf]  ;;  %v13463_v20 = vld [vmem:[#allocation5 + $0x235c] sm:$0xf0]  ;;  %v14079_v23 = vld [vmem:[#allocation5 + $0xa40] sm:$0xf0]  ;;  %v12878_v25 = vor.u32 %v14736_v15, %v12877_v14 }
  0x11   :  { %v10249_v22 = vld [vmem:[#allocation5 + $0x920] sm:$0xf]  ;;  %v13466_v24 = vor.u32 %v14846_v19, %v13463_v20  ;;  %v14189_v26 = vld [vmem:[#allocation5 + $0xdb4] sm:$0xf]  ;;  %v10835_v27 = vld [vmem:[#allocation5 + $0xed4] sm:$0xf0] }
  0x12   :  { %7091 = vmatpush.bf16.msra.mxu0 %v10834_v10  ;;  %7116 = vmatpush.bf16.msra.mxu2 %v11130_v18  ;;  %v14773_v28 = vld [vmem:[#allocation5 + $0x1ff4] sm:$0xf]  ;;  %v12585_v29 = vld [vmem:[#allocation5 + $0x1b60] sm:$0xf]  ;;  %v14663_v30 = vld [vmem:[#allocation5 + $0x1c80] sm:$0xf0]  ;;  %v10838_v31 = vor.u32 %v14189_v26, %v10835_v27  ;;  %v10250_v35 = vor.u32 %v14079_v23, %v10249_v22 }
  0x13   :  { %7104 = vmatpush.bf16.msra.mxu1 %v13170_v11  ;;  %7129 = vmatpush.bf16.msra.mxu3 %v13466_v24  ;;  %v13171_v32 = vld [vmem:[#allocation5 + $0x2114] sm:$0xf0]  ;;  %v14116_v34 = vld [vmem:[#allocation5 + $0xb6c] sm:$0xf]  ;;  %v10543_v36 = vld [vmem:[#allocation5 + $0xc8c] sm:$0xf0]  ;;  %v12586_v39 = vor.u32 %v14663_v30, %v12585_v29 }
  0x14   :  { %v13174_v33 = vor.u32 %v14773_v28, %v13171_v32  ;;  %v14700_v37 = vld [vmem:[#allocation5 + $0x1dac] sm:$0xf]  ;;  %v12879_v38 = vld [vmem:[#allocation5 + $0x1ecc] sm:$0xf0]  ;;  %v9957_v40 = vld [vmem:[#allocation5 + $0x6d8] sm:$0xf]  ;;  %v10546_v43 = vor.u32 %v14116_v34, %v10543_v36 }
  0x15   :  { %v14006_v41 = vld [vmem:[#allocation5 + $0x7f8] sm:$0xf0]  ;;  %v12293_v42 = vld [vmem:[#allocation5 + $0x1918] sm:$0xf]  ;;  %v12882_v45 = vor.u32 %v14700_v37, %v12879_v38  ;;  %v14043_v46 = vld [vmem:[#allocation5 + $0x924] sm:$0xf] }
  0x16   :  { %7092 = vmatpush.bf16.msra.mxu0 %v10542_v21  ;;  %7117 = vmatpush.bf16.msra.mxu2 %v10838_v31  ;;  %v14590_v44 = vld [vmem:[#allocation5 + $0x1a38] sm:$0xf0]  ;;  %v10251_v47 = vld [vmem:[#allocation5 + $0xa44] sm:$0xf0]  ;;  %v14627_v48 = vld [vmem:[#allocation5 + $0x1b64] sm:$0xf]  ;;  %v9958_v50 = vor.u32 %v14006_v41, %v9957_v40 }
  0x17   :  { %7105 = vmatpush.bf16.msra.mxu1 %v12878_v25  ;;  %7130 = vmatpush.bf16.msra.mxu3 %v13174_v33  ;;  %v12587_v49 = vld [vmem:[#allocation5 + $0x1c84] sm:$0xf0]  ;;  %v12294_v51 = vor.u32 %v14590_v44, %v12293_v42  ;;  %v9665_v52 = vld [vmem:[#allocation5 + $0x490] sm:$0xf]  ;;  %v13933_v53 = vld [vmem:[#allocation5 + $0x5b0] sm:$0xf0]  ;;  %v10254_v55 = vor.u32 %v14043_v46, %v10251_v47 }
  0x18   :  { %v12001_v54 = vld [vmem:[#allocation5 + $0x16d0] sm:$0xf]  ;;  %v14517_v56 = vld [vmem:[#allocation5 + $0x17f0] sm:$0xf0]  ;;  %v12590_v57 = vor.u32 %v14627_v48, %v12587_v49  ;;  %v13970_v58 = vld [vmem:[#allocation5 + $0x6dc] sm:$0xf]  ;;  %v9666_v62 = vor.u32 %v13933_v53, %v9665_v52 }
  0x19   :  { %v9959_v59 = vld [vmem:[#allocation5 + $0x7fc] sm:$0xf0]  ;;  %v14554_v60 = vld [vmem:[#allocation5 + $0x191c] sm:$0xf]  ;;  %v12002_v63 = vor.u32 %v14517_v56, %v12001_v54  ;;  %v9373_v0 = vld [vmem:[#allocation5 + $0x248] sm:$0xf] }
  0x1a   :  { %7093 = vmatpush.bf16.msra.mxu0 %v10250_v35  ;;  %7118 = vmatpush.bf16.msra.mxu2 %v10546_v43  ;;  %v12295_v61 = vld [vmem:[#allocation5 + $0x1a3c] sm:$0xf0]  ;;  %v13860_v1 = vld [vmem:[#allocation5 + $0x368] sm:$0xf0]  ;;  %v11709_v2 = vld [vmem:[#allocation5 + $0x1488] sm:$0xf]  ;;  %v9962_v3 = vor.u32 %v13970_v58, %v9959_v59 }
  0x1b   :  { %7106 = vmatpush.bf16.msra.mxu1 %v12586_v39  ;;  %7131 = vmatpush.bf16.msra.mxu3 %v12882_v45  ;;  %v14444_v4 = vld [vmem:[#allocation5 + $0x15a8] sm:$0xf0]  ;;  %v12298_v5 = vor.u32 %v14554_v60, %v12295_v61  ;;  %v13897_v6 = vld [vmem:[#allocation5 + $0x494] sm:$0xf]  ;;  %v9667_v7 = vld [vmem:[#allocation5 + $0x5b4] sm:$0xf0]  ;;  %v9374_v10 = vor.u32 %v13860_v1, %v9373_v0 }
  0x1c   :  { %v14481_v8 = vld [vmem:[#allocation5 + $0x16d4] sm:$0xf]  ;;  %v12003_v9 = vld [vmem:[#allocation5 + $0x17f4] sm:$0xf0]  ;;  %v9081_v11 = vld [vmem:[#allocation5] sm:$0xf]  ;;  %v11710_v12 = vor.u32 %v14444_v4, %v11709_v2  ;;  %v9670_v16 = vor.u32 %v13897_v6, %v9667_v7 }
  0x1d   :  { %v13787_v13 = vld [vmem:[#allocation5 + $0x120] sm:$0xf0]  ;;  %v11417_v14 = vld [vmem:[#allocation5 + $0x1240] sm:$0xf]  ;;  %v12006_v20 = vor.u32 %v14481_v8, %v12003_v9  ;;  %v13824_v22 = vld [vmem:[#allocation5 + $0x24c] sm:$0xf] }
  0x1e   :  { %7094 = vmatpush.bf16.msra.mxu0 %v9958_v50  ;;  %7119 = vmatpush.bf16.msra.mxu2 %v10254_v55  ;;  %v14371_v15 = vld [vmem:[#allocation5 + $0x1360] sm:$0xf0]  ;;  %v11133_v17 = vld [vmem:[#allocation5 + $0x1000] sm:$0xf]  ;;  %v9375_v23 = vld [vmem:[#allocation5 + $0x36c] sm:$0xf0]  ;;  %v9082_v24 = vor.u32 %v13787_v13, %v9081_v11 }
  0x1f   :  { %7107 = vmatpush.bf16.msra.mxu1 %v12294_v51  ;;  %7132 = vmatpush.bf16.msra.mxu3 %v12590_v57  ;;  %v14299_v18 = vld [vmem:[#allocation5 + $0x1120] sm:$0xf0]  ;;  %v13469_v19 = vld [vmem:[#allocation5 + $0x2240] sm:$0xf]  ;;  %v14408_v25 = vld [vmem:[#allocation5 + $0x148c] sm:$0xf]  ;;  %v11418_v27 = vor.u32 %v14371_v15, %v11417_v14  ;;  %v9378_v34 = vor.u32 %v13824_v22, %v9375_v23 }
  0x20   :  { %v14883_v21 = vld [vmem:[#allocation5 + $0x2360] sm:$0xf0]  ;;  %v11711_v26 = vld [vmem:[#allocation5 + $0x15ac] sm:$0xf0]  ;;  %v11134_v28 = vor.u32 %v14299_v18, %v11133_v17  ;;  %v10841_v29 = vld [vmem:[#allocation5 + $0xdb8] sm:$0xf] }
  0x21   :  { %v13470_v30 = vor.u32 %v14883_v21, %v13469_v19  ;;  %v14226_v31 = vld [vmem:[#allocation5 + $0xed8] sm:$0xf0]  ;;  %v13177_v32 = vld [vmem:[#allocation5 + $0x1ff8] sm:$0xf]  ;;  %v11714_v35 = vor.u32 %v14408_v25, %v11711_v26  ;;  %v13751_v36 = vld [vmem:[#allocation5 + $0x4] sm:$0xf] }
  0x22   :  { %7095 = vmatpush.bf16.msra.mxu0 %v9666_v62  ;;  %7120 = vmatpush.bf16.msra.mxu2 %v9962_v3  ;;  %v14810_v33 = vld [vmem:[#allocation5 + $0x2118] sm:$0xf0]  ;;  %v9083_v37 = vld [vmem:[#allocation5 + $0x124] sm:$0xf0]  ;;  %v14335_v38 = vld [vmem:[#allocation5 + $0x1244] sm:$0xf]  ;;  %v10842_v42 = vor.u32 %v14226_v31, %v10841_v29 }
  0x23   :  { %7108 = vmatpush.bf16.msra.mxu1 %v12002_v63  ;;  %7133 = vmatpush.bf16.msra.mxu3 %v12298_v5  ;;  %v11419_v39 = vld [vmem:[#allocation5 + $0x1364] sm:$0xf0]  ;;  %v14263_v40 = vld [vmem:[#allocation5 + $0x1004] sm:$0xf]  ;;  %v42_v45 = vld [vmem:[#allocation2] sm:$0xff]  ;;  %v13178_v46 = vor.u32 %v14810_v33, %v13177_v32  ;;  %v9086_v49 = vor.u32 %v13751_v36, %v9083_v37  ;;  %s15006_s0 = smov [#allocation7]  }
  0x24   :  { %v11135_v41 = vld [vmem:[#allocation5 + $0x1124] sm:$0xf0]  ;;  %v14847_v43 = vld [vmem:[#allocation5 + $0x2244] sm:$0xf]  ;;  %v10549_v47 = vld [vmem:[#allocation5 + $0xb70] sm:$0xf]  ;;  %v1228_v50 = vunpack.c.l.b16 %v42_v45  ;;  %v1229_v51 = vunpack.c.h.b16 %v42_v45  ;;  %v11422_v54 = vor.u32 %v14335_v38, %v11419_v39 }
  0x25   :  { %v13471_v44 = vld [vmem:[#allocation5 + $0x2364] sm:$0xf0]  ;;  %v14153_v48 = vld [vmem:[#allocation5 + $0xc90] sm:$0xf0]  ;;  %v12885_v52 = vld [vmem:[#allocation5 + $0x1db0] sm:$0xf]  ;;  %v11138_v55 = vor.u32 %v14263_v40, %v11135_v41 }
  0x26   :  { %7096 = vmatpush.bf16.msra.mxu0 %v9374_v10  ;;  %7121 = vmatpush.bf16.msra.mxu2 %v9670_v16  ;;  %v14737_v53 = vld [vmem:[#allocation5 + $0x1ed0] sm:$0xf0]  ;;  %v13474_v56 = vor.u32 %v14847_v43, %v13471_v44  ;;  %v14190_v57 = vld [vmem:[#allocation5 + $0xdbc] sm:$0xf]  ;;  %v10843_v58 = vld [vmem:[#allocation5 + $0xedc] sm:$0xf0]  ;;  %v15028_v59 = vpack.c.b16 %v1228_v50, %v1228_v50  ;;  %v10550_v60 = vor.u32 %v14153_v48, %v10549_v47 }
  0x27   :  { %7109 = vmatpush.bf16.msra.mxu1 %v11710_v12  ;;  %7134 = vmatpush.bf16.msra.mxu3 %v12006_v20  ;;  %v14774_v61 = vld [vmem:[#allocation5 + $0x1ffc] sm:$0xf]  ;;  %v13179_v62 = vld [vmem:[#allocation5 + $0x211c] sm:$0xf0]  ;;  %v15030_v63 = vpack.c.b16 %v1229_v51, %v1229_v51  ;;  %v12886_v0 = vor.u32 %v14737_v53, %v12885_v52  ;;  %v10257_v1 = vld [vmem:[#allocation5 + $0x928] sm:$0xf]  ;;  %v10846_v5 = vor.u32 %v14190_v57, %v10843_v58 }
  0x28   :  { %v14080_v2 = vld [vmem:[#allocation5 + $0xa48] sm:$0xf0]  ;;  %v12593_v3 = vld [vmem:[#allocation5 + $0x1b68] sm:$0xf]  ;;  %v13182_v6 = vor.u32 %v14774_v61, %v13179_v62  ;;  %v14117_v7 = vld [vmem:[#allocation5 + $0xb74] sm:$0xf] }
  0x29   :  { %v14664_v4 = vld [vmem:[#allocation5 + $0x1c88] sm:$0xf0]  ;;  %v10551_v8 = vld [vmem:[#allocation5 + $0xc94] sm:$0xf0]  ;;  %v10258_v9 = vor.u32 %v14080_v2, %v10257_v1  ;;  %v14701_v10 = vld [vmem:[#allocation5 + $0x1db4] sm:$0xf] }
  0x2a   :  { %7097 = vmatpush.bf16.msra.mxu0 %v9082_v24  ;;  %7122 = vmatpush.bf16.msra.mxu2 %v9378_v34  ;;  %v12887_v11 = vld [vmem:[#allocation5 + $0x1ed4] sm:$0xf0]  ;;  %v12594_v12 = vor.u32 %v14664_v4, %v12593_v3  ;;  %v9965_v13 = vld [vmem:[#allocation5 + $0x6e0] sm:$0xf]  ;;  %v14007_v14 = vld [vmem:[#allocation5 + $0x800] sm:$0xf0]  ;;  %v10554_v17 = vor.u32 %v14117_v7, %v10551_v8 }
  0x2b   :  { %7110 = vmatpush.bf16.msra.mxu1 %v11418_v27  ;;  %7135 = vmatpush.bf16.msra.mxu3 %v11714_v35  ;;  %v12301_v15 = vld [vmem:[#allocation5 + $0x1920] sm:$0xf]  ;;  %v14591_v16 = vld [vmem:[#allocation5 + $0x1a40] sm:$0xf0]  ;;  %v12890_v18 = vor.u32 %v14701_v10, %v12887_v11  ;;  %v14044_v19 = vld [vmem:[#allocation5 + $0x92c] sm:$0xf]  ;;  %v9966_v21 = vor.u32 %v14007_v14, %v9965_v13 }
  0x2c   :  { %v10259_v20 = vld [vmem:[#allocation5 + $0xa4c] sm:$0xf0]  ;;  %v14628_v22 = vld [vmem:[#allocation5 + $0x1b6c] sm:$0xf]  ;;  %v12302_v24 = vor.u32 %v14591_v16, %v12301_v15  ;;  %v9673_v25 = vld [vmem:[#allocation5 + $0x498] sm:$0xf] }
  0x2d   :  { %7098 = vmatmul.bf16.vlgmr.msra.gmra.mxu0 %v15028_v59  ;;  %v12595_v23 = vld [vmem:[#allocation5 + $0x1c8c] sm:$0xf0]  ;;  %v13934_v26 = vld [vmem:[#allocation5 + $0x5b8] sm:$0xf0]  ;;  %v12009_v27 = vld [vmem:[#allocation5 + $0x16d8] sm:$0xf]  ;;  %v10262_v29 = vor.u32 %v14044_v19, %v10259_v20 }
  0x2e   :  { %7142 = vmatpush.bf16.msrb.mxu0 %v11134_v28  ;;  %7123 = vmatpush.bf16.msra.mxu2 %v9086_v49  ;;  %v14518_v28 = vld [vmem:[#allocation5 + $0x17f8] sm:$0xf0]  ;;  %v13971_v31 = vld [vmem:[#allocation5 + $0x6e4] sm:$0xf]  ;;  %v9967_v32 = vld [vmem:[#allocation5 + $0x804] sm:$0xf0]  ;;  %v9674_v33 = vor.u32 %v13934_v26, %v9673_v25 }
  0x2f   :  { %7155 = vmatpush.bf16.msrb.mxu1 %v13470_v30  ;;  %7136 = vmatpush.bf16.msra.mxu3 %v11422_v54  ;;  %v12598_v30 = vor.u32 %v14628_v22, %v12595_v23  ;;  %v14555_v34 = vld [vmem:[#allocation5 + $0x1924] sm:$0xf]  ;;  %v12303_v35 = vld [vmem:[#allocation5 + $0x1a44] sm:$0xf0]  ;;  %v12010_v36 = vor.u32 %v14518_v28, %v12009_v27  ;;  %v9381_v37 = vld [vmem:[#allocation5 + $0x250] sm:$0xf]  ;;  %v9970_v41 = vor.u32 %v13971_v31, %v9967_v32 }
  0x30   :  { %7111 = vmatmul.bf16.vlgmr.msra.gmra.mxu1 %v15030_v63  ;;  %v13861_v38 = vld [vmem:[#allocation5 + $0x370] sm:$0xf0]  ;;  %v11717_v39 = vld [vmem:[#allocation5 + $0x1490] sm:$0xf]  ;;  %v13898_v43 = vld [vmem:[#allocation5 + $0x49c] sm:$0xf] }
  0x31   :  { %7124 = vmatmul.bf16.vlgmr.msra.gmra.mxu2 %v15028_v59  ;;  %v14445_v40 = vld [vmem:[#allocation5 + $0x15b0] sm:$0xf0]  ;;  %v9675_v44 = vld [vmem:[#allocation5 + $0x5bc] sm:$0xf0]  ;;  %v9382_v45 = vor.u32 %v13861_v38, %v9381_v37  ;;  %v14482_v47 = vld [vmem:[#allocation5 + $0x16dc] sm:$0xf] }
  0x32   :  { %7143 = vmatpush.bf16.msrb.mxu0 %v10842_v42  ;;  %7168 = vmatpush.bf16.msrb.mxu2 %v11138_v55  ;;  %v12306_v42 = vor.u32 %v14555_v34, %v12303_v35  ;;  %v12011_v48 = vld [vmem:[#allocation5 + $0x17fc] sm:$0xf0]  ;;  %v11718_v49 = vor.u32 %v14445_v40, %v11717_v39  ;;  %v13788_v50 = vld [vmem:[#allocation5 + $0x128] sm:$0xf0]  ;;  %v11425_v51 = vld [vmem:[#allocation5 + $0x1248] sm:$0xf] }
  0x33   :  { %7156 = vmatpush.bf16.msrb.mxu1 %v13178_v46  ;;  %7181 = vmatpush.bf16.msrb.mxu3 %v13474_v56  ;;  %v9089_v46 = vld [vmem:[#allocation5 + $0x8] sm:$0xf]  ;;  %v14372_v52 = vld [vmem:[#allocation5 + $0x1368] sm:$0xf0]  ;;  %v9678_v56 = vor.u32 %v13898_v43, %v9675_v44  ;;  %v12014_v58 = vor.u32 %v14482_v47, %v12011_v48  ;;  %v9383_v61 = vld [vmem:[#allocation5 + $0x374] sm:$0xf0] }
  0x34   :  { %7137 = vmatmul.bf16.vlgmr.msra.gmra.mxu3 %v15030_v63  ;;  %v11141_v53 = vld [vmem:[#allocation5 + $0x1008] sm:$0xf]  ;;  %v14300_v54 = vld [vmem:[#allocation5 + $0x1128] sm:$0xf0]  ;;  %v9090_v62 = vor.u32 %v13788_v50, %v9089_v46  ;;  %v11719_v1 = vld [vmem:[#allocation5 + $0x15b4] sm:$0xf0]  ;;  %v11426_v2 = vor.u32 %v14372_v52, %v11425_v51 }
  0x35   :  { %v13477_v55 = vld [vmem:[#allocation5 + $0x2248] sm:$0xf]  ;;  %v14884_v57 = vld [vmem:[#allocation5 + $0x2368] sm:$0xf0]  ;;  %v11142_v3 = vor.u32 %v14300_v54, %v11141_v53  ;;  %v10849_v4 = vld [vmem:[#allocation5 + $0xdc0] sm:$0xf] }
  0x36   :  { %7144 = vmatpush.bf16.msrb.mxu0 %v10550_v60  ;;  %7169 = vmatpush.bf16.msrb.mxu2 %v10846_v5  ;;  %v13825_v60 = vld [vmem:[#allocation5 + $0x254] sm:$0xf]  ;;  %v13478_v5 = vor.u32 %v14884_v57, %v13477_v55  ;;  %v13185_v7 = vld [vmem:[#allocation5 + $0x2000] sm:$0xf]  ;;  %v14811_v8 = vld [vmem:[#allocation5 + $0x2120] sm:$0xf0] }
  0x37   :  { %7157 = vmatpush.bf16.msrb.mxu1 %v12886_v0  ;;  %7182 = vmatpush.bf16.msrb.mxu3 %v13182_v6  ;;  %v14409_v0 = vld [vmem:[#allocation5 + $0x1494] sm:$0xf]  ;;  %v14227_v6 = vld [vmem:[#allocation5 + $0xee0] sm:$0xf0]  ;;  %v13752_v11 = vld [vmem:[#allocation5 + $0xc] sm:$0xf]  ;;  %v13186_v20 = vor.u32 %v14811_v8, %v13185_v7 }
  0x38   :  { %v11722_v10 = vor.u32 %v14409_v0, %v11719_v1  ;;  %v14336_v13 = vld [vmem:[#allocation5 + $0x124c] sm:$0xf]  ;;  %v11427_v14 = vld [vmem:[#allocation5 + $0x136c] sm:$0xf0]  ;;  %v14154_v22 = vld [vmem:[#allocation5 + $0xc98] sm:$0xf0] }
  0x39   :  { %v14264_v15 = vld [vmem:[#allocation5 + $0x100c] sm:$0xf]  ;;  %v11143_v16 = vld [vmem:[#allocation5 + $0x112c] sm:$0xf0]  ;;  %v14738_v25 = vld [vmem:[#allocation5 + $0x1ed8] sm:$0xf0]  ;;  %v11430_v26 = vor.u32 %v14336_v13, %v11427_v14 }
  0x3a   :  { %7145 = vmatpush.bf16.msrb.mxu0 %v10258_v9  ;;  %7170 = vmatpush.bf16.msrb.mxu2 %v10554_v17  ;;  %v9386_v9 = vor.u32 %v13825_v60, %v9383_v61  ;;  %v10850_v17 = vor.u32 %v14227_v6, %v10849_v4  ;;  %v13479_v19 = vld [vmem:[#allocation5 + $0x236c] sm:$0xf0]  ;;  %v11146_v27 = vor.u32 %v14264_v15, %v11143_v16  ;;  %v14775_v32 = vld [vmem:[#allocation5 + $0x2004] sm:$0xf]  ;;  %v14665_v38 = vld [vmem:[#allocation5 + $0x1c90] sm:$0xf0] }
  0x3b   :  { %7158 = vmatpush.bf16.msrb.mxu1 %v12594_v12  ;;  %7183 = vmatpush.bf16.msrb.mxu3 %v12890_v18  ;;  %v9091_v12 = vld [vmem:[#allocation5 + $0x12c] sm:$0xf0]  ;;  %v14848_v18 = vld [vmem:[#allocation5 + $0x224c] sm:$0xf]  ;;  %v14702_v44 = vld [vmem:[#allocation5 + $0x1dbc] sm:$0xf] }
  0x3c   :  { %v9094_v23 = vor.u32 %v13752_v11, %v9091_v12  ;;  %v13482_v28 = vor.u32 %v14848_v18, %v13479_v19  ;;  %v10265_v35 = vld [vmem:[#allocation5 + $0x930] sm:$0xf]  ;;  %v9973_v47 = vld [vmem:[#allocation5 + $0x6e8] sm:$0xf]  ;;  %v14008_v48 = vld [vmem:[#allocation5 + $0x808] sm:$0xf0] }
  0x3d   :  { %v12601_v37 = vld [vmem:[#allocation5 + $0x1b70] sm:$0xf]  ;;  %v14592_v50 = vld [vmem:[#allocation5 + $0x1a48] sm:$0xf0]  ;;  %v14045_v53 = vld [vmem:[#allocation5 + $0x934] sm:$0xf]  ;;  %v9974_v55 = vor.u32 %v14008_v48, %v9973_v47 }
  0x3e   :  { %7146 = vmatpush.bf16.msrb.mxu0 %v9966_v21  ;;  %7171 = vmatpush.bf16.msrb.mxu2 %v10262_v29  ;;  %v10557_v21 = vld [vmem:[#allocation5 + $0xb78] sm:$0xf]  ;;  %v14191_v29 = vld [vmem:[#allocation5 + $0xdc4] sm:$0xf]  ;;  %v12602_v46 = vor.u32 %v14665_v38, %v12601_v37  ;;  %v9681_v60 = vld [vmem:[#allocation5 + $0x4a0] sm:$0xf] }
  0x3f   :  { %7159 = vmatpush.bf16.msrb.mxu1 %v12302_v24  ;;  %7184 = vmatpush.bf16.msrb.mxu3 %v12598_v30  ;;  %v12893_v24 = vld [vmem:[#allocation5 + $0x1db8] sm:$0xf]  ;;  %v10851_v30 = vld [vmem:[#allocation5 + $0xee4] sm:$0xf0]  ;;  %v10558_v31 = vor.u32 %v14154_v22, %v10557_v21  ;;  %v13935_v61 = vld [vmem:[#allocation5 + $0x5c0] sm:$0xf0] }
  0x40   :  { %v12894_v34 = vor.u32 %v14738_v25, %v12893_v24  ;;  %v10854_v39 = vor.u32 %v14191_v29, %v10851_v30  ;;  %v10267_v54 = vld [vmem:[#allocation5 + $0xa54] sm:$0xf0]  ;;  %v14519_v0 = vld [vmem:[#allocation5 + $0x1800] sm:$0xf0]  ;;  %v9975_v4 = vld [vmem:[#allocation5 + $0x80c] sm:$0xf0] }
  0x41   :  { %v12603_v57 = vld [vmem:[#allocation5 + $0x1c94] sm:$0xf0]  ;;  %v10270_v1 = vor.u32 %v14045_v53, %v10267_v54  ;;  %v14556_v6 = vld [vmem:[#allocation5 + $0x192c] sm:$0xf]  ;;  %v12311_v7 = vld [vmem:[#allocation5 + $0x1a4c] sm:$0xf0] }
  0x42   :  { %7147 = vmatpush.bf16.msrb.mxu0 %v9674_v33  ;;  %7172 = vmatpush.bf16.msrb.mxu2 %v9970_v41  ;;  %v13187_v33 = vld [vmem:[#allocation5 + $0x2124] sm:$0xf0]  ;;  %v14118_v41 = vld [vmem:[#allocation5 + $0xb7c] sm:$0xf]  ;;  %v11725_v11 = vld [vmem:[#allocation5 + $0x1498] sm:$0xf]  ;;  %v12314_v14 = vor.u32 %v14556_v6, %v12311_v7 }
  0x43   :  { %7160 = vmatpush.bf16.msrb.mxu1 %v12010_v36  ;;  %7185 = vmatpush.bf16.msrb.mxu3 %v12306_v42  ;;  %v14081_v36 = vld [vmem:[#allocation5 + $0xa50] sm:$0xf0]  ;;  %v13190_v40 = vor.u32 %v14775_v32, %v13187_v33  ;;  %v10559_v42 = vld [vmem:[#allocation5 + $0xc9c] sm:$0xf0]  ;;  %v14446_v12 = vld [vmem:[#allocation5 + $0x15b8] sm:$0xf0] }
  0x44   :  { %v10266_v43 = vor.u32 %v14081_v36, %v10265_v35  ;;  %v10562_v51 = vor.u32 %v14118_v41, %v10559_v42  ;;  %v13899_v15 = vld [vmem:[#allocation5 + $0x4a4] sm:$0xf]  ;;  %v9683_v16 = vld [vmem:[#allocation5 + $0x5c4] sm:$0xf0]  ;;  %v9097_v18 = vld [vmem:[#allocation5 + $0x10] sm:$0xf]  ;;  %v11726_v21 = vor.u32 %v14446_v12, %v11725_v11 }
  0x45   :  { %v14483_v19 = vld [vmem:[#allocation5 + $0x16e4] sm:$0xf]  ;;  %v13789_v22 = vld [vmem:[#allocation5 + $0x130] sm:$0xf0]  ;;  %v11149_v25 = vld [vmem:[#allocation5 + $0x1010] sm:$0xf] }
  0x46   :  { %7148 = vmatpush.bf16.msrb.mxu0 %v9382_v45  ;;  %7173 = vmatpush.bf16.msrb.mxu2 %v9678_v56  ;;  %v12895_v45 = vld [vmem:[#allocation5 + $0x1edc] sm:$0xf0]  ;;  %v14629_v56 = vld [vmem:[#allocation5 + $0x1b74] sm:$0xf]  ;;  %v9098_v33 = vor.u32 %v13789_v22, %v9097_v18  ;;  %v10857_v38 = vld [vmem:[#allocation5 + $0xdc8] sm:$0xf] }
  0x47   :  { %7161 = vmatpush.bf16.msrb.mxu1 %v11718_v49  ;;  %7186 = vmatpush.bf16.msrb.mxu3 %v12014_v58  ;;  %v12309_v49 = vld [vmem:[#allocation5 + $0x1928] sm:$0xf]  ;;  %v12898_v52 = vor.u32 %v14702_v44, %v12895_v45  ;;  %v14373_v24 = vld [vmem:[#allocation5 + $0x1370] sm:$0xf0]  ;;  %v9391_v32 = vld [vmem:[#allocation5 + $0x37c] sm:$0xf0] }
  0x48   :  { %v12310_v58 = vor.u32 %v14592_v50, %v12309_v49  ;;  %v14885_v29 = vld [vmem:[#allocation5 + $0x2370] sm:$0xf0]  ;;  %v11727_v35 = vld [vmem:[#allocation5 + $0x15bc] sm:$0xf0]  ;;  %v13193_v41 = vld [vmem:[#allocation5 + $0x2008] sm:$0xf] }
  0x49   :  { %v14812_v42 = vld [vmem:[#allocation5 + $0x2128] sm:$0xf0]  ;;  %v13753_v45 = vld [vmem:[#allocation5 + $0x14] sm:$0xf]  ;;  %v11435_v48 = vld [vmem:[#allocation5 + $0x1374] sm:$0xf0] }
  0x4a   :  { %7149 = vmatpush.bf16.msrb.mxu0 %v9090_v62  ;;  %7174 = vmatpush.bf16.msrb.mxu2 %v9386_v9  ;;  %v12017_v62 = vld [vmem:[#allocation5 + $0x16e0] sm:$0xf]  ;;  %v9389_v9 = vld [vmem:[#allocation5 + $0x258] sm:$0xf]  ;;  %v14337_v47 = vld [vmem:[#allocation5 + $0x1254] sm:$0xf]  ;;  %v13194_v54 = vor.u32 %v14812_v42, %v13193_v41 }
  0x4b   :  { %7162 = vmatpush.bf16.msrb.mxu1 %v11426_v2  ;;  %7187 = vmatpush.bf16.msrb.mxu3 %v11722_v10  ;;  %v12606_v2 = vor.u32 %v14629_v56, %v12603_v57  ;;  %v12018_v8 = vor.u32 %v14519_v0, %v12017_v62  ;;  %v13862_v10 = vld [vmem:[#allocation5 + $0x378] sm:$0xf0]  ;;  %v14265_v49 = vld [vmem:[#allocation5 + $0x1014] sm:$0xf]  ;;  %v11151_v50 = vld [vmem:[#allocation5 + $0x1134] sm:$0xf0] }
  0x4c   :  { %v13487_v53 = vld [vmem:[#allocation5 + $0x2374] sm:$0xf0]  ;;  %v14155_v56 = vld [vmem:[#allocation5 + $0xca0] sm:$0xf0]  ;;  %v11154_v62 = vor.u32 %v14265_v49, %v11151_v50  ;;  %v14593_v22 = vld [vmem:[#allocation5 + $0x1a50] sm:$0xf0] }
  0x4d   :  { %7150 = vmatmul.bf16.vlgmr.msrb.gmra.mxu0 %v15028_v59  ;;  %v10273_v7 = vld [vmem:[#allocation5 + $0x938] sm:$0xf]  ;;  %v13900_v49 = vld [vmem:[#allocation5 + $0x4ac] sm:$0xf]  ;;  %v9691_v50 = vld [vmem:[#allocation5 + $0x5cc] sm:$0xf0] }
  0x4e   :  { %7194 = vmatpush.bf16.msra.mxu0 %v11142_v3  ;;  %7163 = vmatmul.bf16.vlgmr.msrb.gmra.mxu1 %v15030_v63  ;;  %v13972_v3 = vld [vmem:[#allocation5 + $0x6ec] sm:$0xf]  ;;  %v12319_v41 = vld [vmem:[#allocation5 + $0x1a54] sm:$0xf0]  ;;  %s9066_s1 = sshll.u32 %s15006_s0, 4  ;;  %s9068_s23 = sshll.u32 %s15183_s2, 4  ;;  %s9067_s1 = int_to_ptr.vmem [resolvable:$true] %s9066_s1  ;;  %s9069_s23 = int_to_ptr.hbm [resolvable:$true] %s9068_s23 }
  0x4f   :  { %7207 = vmatpush.bf16.msra.mxu1 %v13478_v5  ;;  %7175 = vmatpush.bf16.msrb.mxu2 %v9094_v23  ;;  %v9682_v5 = vor.u32 %v13935_v61, %v9681_v60  ;;  %v9978_v13 = vor.u32 %v13972_v3, %v9975_v4  ;;  %v11433_v23 = vld [vmem:[#allocation5 + $0x1250] sm:$0xf]  ;;  %v14739_v60 = vld [vmem:[#allocation5 + $0x1ee0] sm:$0xf0]  ;;  %v11438_v61 = vor.u32 %v14337_v47, %v11435_v48  ;;  %v14776_v4 = vld [vmem:[#allocation5 + $0x200c] sm:$0xf] }
  0x50   :  { %7188 = vmatpush.bf16.msrb.mxu3 %v11430_v26  ;;  %v14301_v26 = vld [vmem:[#allocation5 + $0x1130] sm:$0xf0]  ;;  %v11434_v36 = vor.u32 %v14373_v24, %v11433_v23 }
  0x51   :  { %v11150_v37 = vor.u32 %v14301_v26, %v11149_v25  ;;  %v14046_v25 = vld [vmem:[#allocation5 + $0x93c] sm:$0xf]  ;;  %v10275_v26 = vld [vmem:[#allocation5 + $0xa5c] sm:$0xf0] }
  0x52   :  { %7195 = vmatpush.bf16.msra.mxu0 %v10850_v17  ;;  %7176 = vmatmul.bf16.vlgmr.msrb.gmra.mxu2 %v15028_v59  ;;  %v9390_v17 = vor.u32 %v13862_v10, %v9389_v9  ;;  %v12609_v9 = vld [vmem:[#allocation5 + $0x1b78] sm:$0xf]  ;;  %v14666_v10 = vld [vmem:[#allocation5 + $0x1c98] sm:$0xf0] }
  0x53   :  { %7208 = vmatpush.bf16.msra.mxu1 %v13186_v20  ;;  %7220 = vmatpush.bf16.msra.mxu2 %v11146_v27  ;;  %v12019_v20 = vld [vmem:[#allocation5 + $0x1804] sm:$0xf0]  ;;  %v13485_v27 = vld [vmem:[#allocation5 + $0x2250] sm:$0xf]  ;;  %v12610_v18 = vor.u32 %v14666_v10, %v12609_v9 }
  0x54   :  { %7233 = vmatpush.bf16.msra.mxu3 %v13482_v28  ;;  %v9686_v28 = vor.u32 %v13899_v15, %v9683_v16  ;;  %v12022_v30 = vor.u32 %v14483_v19, %v12019_v20  ;;  %v14703_v16 = vld [vmem:[#allocation5 + $0x1dc4] sm:$0xf]  ;;  %v9981_v19 = vld [vmem:[#allocation5 + $0x6f0] sm:$0xf]  ;;  %v14009_v20 = vld [vmem:[#allocation5 + $0x810] sm:$0xf0] }
  0x55   :  { %7189 = vmatmul.bf16.vlgmr.msrb.gmra.mxu3 %v15030_v63  ;;  %v10865_v10 = vld [vmem:[#allocation5 + $0xdd0] sm:$0xf] }
  0x56   :  { %7196 = vmatpush.bf16.msra.mxu0 %v10558_v31  ;;  %v13826_v31 = vld [vmem:[#allocation5 + $0x25c] sm:$0xf] }
  0x57   :  { %7209 = vmatpush.bf16.msra.mxu1 %v12894_v34  ;;  %7221 = vmatpush.bf16.msra.mxu2 %v10854_v39  ;;  %v14410_v34 = vld [vmem:[#allocation5 + $0x149c] sm:$0xf]  ;;  %v13486_v39 = vor.u32 %v14885_v29, %v13485_v27  ;;  %v9982_v27 = vor.u32 %v14009_v20, %v9981_v19  ;;  %v12611_v29 = vld [vmem:[#allocation5 + $0x1c9c] sm:$0xf0] }
  0x58   :  { %7234 = vmatpush.bf16.msra.mxu3 %v13190_v40  ;;  %v14228_v40 = vld [vmem:[#allocation5 + $0xee8] sm:$0xf0]  ;;  %v11730_v44 = vor.u32 %v14410_v34, %v11727_v35  ;;  %v10278_v35 = vor.u32 %v14046_v25, %v10275_v26  ;;  %v14338_v19 = vld [vmem:[#allocation5 + $0x125c] sm:$0xf]  ;;  %v11443_v20 = vld [vmem:[#allocation5 + $0x137c] sm:$0xf0] }
  0x59   :  { %v14520_v34 = vld [vmem:[#allocation5 + $0x1808] sm:$0xf0]  ;;  %v13495_v25 = vld [vmem:[#allocation5 + $0x237c] sm:$0xf0] }
  0x5a   :  { %7197 = vmatpush.bf16.msra.mxu0 %v10266_v43  ;;  %v9394_v43 = vor.u32 %v13826_v31, %v9391_v32  ;;  %v9689_v31 = vld [vmem:[#allocation5 + $0x4a8] sm:$0xf]  ;;  %v13936_v32 = vld [vmem:[#allocation5 + $0x5c8] sm:$0xf0] }
  0x5b   :  { %7210 = vmatpush.bf16.msra.mxu1 %v12602_v46  ;;  %7222 = vmatpush.bf16.msra.mxu2 %v10562_v51  ;;  %v9099_v46 = vld [vmem:[#allocation5 + $0x134] sm:$0xf0]  ;;  %v10858_v51 = vor.u32 %v14228_v40, %v10857_v38  ;;  %v14557_v40 = vld [vmem:[#allocation5 + $0x1934] sm:$0xf] }
  0x5c   :  { %7235 = vmatpush.bf16.msra.mxu3 %v12898_v52  ;;  %v14849_v52 = vld [vmem:[#allocation5 + $0x2254] sm:$0xf]  ;;  %v9102_v57 = vor.u32 %v13753_v45, %v9099_v46  ;;  %v9983_v38 = vld [vmem:[#allocation5 + $0x814] sm:$0xf0]  ;;  %v11733_v45 = vld [vmem:[#allocation5 + $0x14a0] sm:$0xf]  ;;  %v12322_v48 = vor.u32 %v14557_v40, %v12319_v41 }
  0x5d   :  { %v13490_v0 = vor.u32 %v14849_v52, %v13487_v53  ;;  %v14447_v46 = vld [vmem:[#allocation5 + $0x15c0] sm:$0xf0]  ;;  %v9105_v52 = vld [vmem:[#allocation5 + $0x18] sm:$0xf]  ;;  %v14484_v53 = vld [vmem:[#allocation5 + $0x16ec] sm:$0xf] }
  0x5e   :  { %7198 = vmatpush.bf16.msra.mxu0 %v9974_v55  ;;  %v10565_v55 = vld [vmem:[#allocation5 + $0xb80] sm:$0xf] }
  0x5f   :  { %7211 = vmatpush.bf16.msra.mxu1 %v12310_v58  ;;  %7223 = vmatpush.bf16.msra.mxu2 %v10270_v1  ;;  %v12901_v58 = vld [vmem:[#allocation5 + $0x1dc0] sm:$0xf]  ;;  %v14192_v1 = vld [vmem:[#allocation5 + $0xdcc] sm:$0xf]  ;;  %v10566_v3 = vor.u32 %v14155_v56, %v10565_v55  ;;  %v11734_v55 = vor.u32 %v14447_v46, %v11733_v45  ;;  %v13790_v56 = vld [vmem:[#allocation5 + $0x138] sm:$0xf0] }
  0x60   :  { %7236 = vmatpush.bf16.msra.mxu3 %v12606_v2  ;;  %v10859_v2 = vld [vmem:[#allocation5 + $0xeec] sm:$0xf0]  ;;  %v12902_v6 = vor.u32 %v14739_v60, %v12901_v58  ;;  %v14374_v58 = vld [vmem:[#allocation5 + $0x1378] sm:$0xf0]  ;;  %v11157_v60 = vld [vmem:[#allocation5 + $0x1018] sm:$0xf] }
  0x61   :  { %v10862_v11 = vor.u32 %v14192_v1, %v10859_v2  ;;  %v14886_v1 = vld [vmem:[#allocation5 + $0x2378] sm:$0xf0]  ;;  %v10281_v41 = vld [vmem:[#allocation5 + $0x940] sm:$0xf] }
  0x62   :  { %7199 = vmatpush.bf16.msra.mxu0 %v9682_v5  ;;  %v13195_v5 = vld [vmem:[#allocation5 + $0x212c] sm:$0xf0] }
  0x63   :  { %7212 = vmatpush.bf16.msra.mxu1 %v12018_v8  ;;  %7224 = vmatpush.bf16.msra.mxu2 %v9978_v13  ;;  %v14082_v8 = vld [vmem:[#allocation5 + $0xa58] sm:$0xf0]  ;;  %v13198_v12 = vor.u32 %v14776_v4, %v13195_v5  ;;  %v14119_v13 = vld [vmem:[#allocation5 + $0xb84] sm:$0xf]  ;;  %v9399_v4 = vld [vmem:[#allocation5 + $0x384] sm:$0xf0]  ;;  %v9106_v5 = vor.u32 %v13790_v56, %v9105_v52 }
  0x64   :  { %7237 = vmatpush.bf16.msra.mxu3 %v12314_v14  ;;  %v10567_v14 = vld [vmem:[#allocation5 + $0xca4] sm:$0xf0]  ;;  %v10274_v15 = vor.u32 %v14082_v8, %v10273_v7  ;;  %v14594_v56 = vld [vmem:[#allocation5 + $0x1a58] sm:$0xf0] }
  0x65   :  { %v10570_v23 = vor.u32 %v14119_v13, %v10567_v14  ;;  %v11735_v7 = vld [vmem:[#allocation5 + $0x15c4] sm:$0xf0]  ;;  %v13201_v13 = vld [vmem:[#allocation5 + $0x2010] sm:$0xf]  ;;  %v14813_v14 = vld [vmem:[#allocation5 + $0x2130] sm:$0xf0] }
  0x66   :  { %7200 = vmatpush.bf16.msra.mxu0 %v9390_v17  ;;  %v12903_v17 = vld [vmem:[#allocation5 + $0x1ee4] sm:$0xf0]  ;;  %v13202_v26 = vor.u32 %v14813_v14, %v13201_v13  ;;  %v12327_v13 = vld [vmem:[#allocation5 + $0x1a5c] sm:$0xf0] }
  0x67   :  { %7213 = vmatpush.bf16.msra.mxu1 %v11726_v21  ;;  %7225 = vmatpush.bf16.msra.mxu2 %v9686_v28  ;;  %v12317_v21 = vld [vmem:[#allocation5 + $0x1930] sm:$0xf]  ;;  %v12906_v24 = vor.u32 %v14703_v16, %v12903_v17  ;;  %v14630_v28 = vld [vmem:[#allocation5 + $0x1b7c] sm:$0xf] }
  0x68   :  { %7238 = vmatpush.bf16.msra.mxu3 %v12022_v30  ;;  %v12318_v30 = vor.u32 %v14593_v22, %v12317_v21  ;;  %v13754_v17 = vld [vmem:[#allocation5 + $0x1c] sm:$0xf]  ;;  %v11159_v22 = vld [vmem:[#allocation5 + $0x113c] sm:$0xf0] }
  0x69   :  { %v14266_v21 = vld [vmem:[#allocation5 + $0x101c] sm:$0xf] }
  0x6a   :  { %7201 = vmatpush.bf16.msra.mxu0 %v9098_v33  ;;  %v12025_v33 = vld [vmem:[#allocation5 + $0x16e8] sm:$0xf] }
  0x6b   :  { %7214 = vmatpush.bf16.msra.mxu1 %v11434_v36  ;;  %7226 = vmatpush.bf16.msra.mxu2 %v9394_v43  ;;  %v12614_v36 = vor.u32 %v14630_v28, %v12611_v29  ;;  %v12026_v42 = vor.u32 %v14520_v34, %v12025_v33  ;;  %v9397_v43 = vld [vmem:[#allocation5 + $0x260] sm:$0xf]  ;;  %v14156_v28 = vld [vmem:[#allocation5 + $0xca8] sm:$0xf0]  ;;  %v11162_v33 = vor.u32 %v14266_v21, %v11159_v22  ;;  %v13901_v21 = vld [vmem:[#allocation5 + $0x4b4] sm:$0xf] }
  0x6c   :  { %7239 = vmatpush.bf16.msra.mxu3 %v11730_v44  ;;  %v13863_v44 = vld [vmem:[#allocation5 + $0x380] sm:$0xf0]  ;;  %v9699_v22 = vld [vmem:[#allocation5 + $0x5d4] sm:$0xf0] }
  0x6d   :  { %7202 = vmatmul.bf16.vlgmr.msra.gmra.mxu0 %v15028_v59 }
  0x6e   :  { %7246 = vmatpush.bf16.msrb.mxu0 %v11150_v37  ;;  %7215 = vmatmul.bf16.vlgmr.msra.gmra.mxu1 %v15030_v63  ;;  %v13973_v37 = vld [vmem:[#allocation5 + $0x6f4] sm:$0xf] }
  0x6f   :  { %7259 = vmatpush.bf16.msrb.mxu1 %v13486_v39  ;;  %7227 = vmatpush.bf16.msra.mxu2 %v9102_v57  ;;  %v9690_v39 = vor.u32 %v13936_v32, %v9689_v31  ;;  %v9986_v47 = vor.u32 %v13973_v37, %v9983_v38  ;;  %v11441_v57 = vld [vmem:[#allocation5 + $0x1258] sm:$0xf]  ;;  %v14740_v31 = vld [vmem:[#allocation5 + $0x1ee8] sm:$0xf0]  ;;  %v11446_v32 = vor.u32 %v14338_v19, %v11443_v20  ;;  %v14777_v38 = vld [vmem:[#allocation5 + $0x2014] sm:$0xf] }
  0x70   :  { %7240 = vmatpush.bf16.msra.mxu3 %v11438_v61  ;;  %v14302_v61 = vld [vmem:[#allocation5 + $0x1138] sm:$0xf0]  ;;  %v11442_v8 = vor.u32 %v14374_v58, %v11441_v57 }
  0x71   :  { %v11158_v9 = vor.u32 %v14302_v61, %v11157_v60  ;;  %v14047_v60 = vld [vmem:[#allocation5 + $0x944] sm:$0xf]  ;;  %v10283_v61 = vld [vmem:[#allocation5 + $0xa64] sm:$0xf0] }
  0x72   :  { %7247 = vmatpush.bf16.msrb.mxu0 %v10858_v51  ;;  %7228 = vmatmul.bf16.vlgmr.msra.gmra.mxu2 %v15028_v59  ;;  %v9398_v51 = vor.u32 %v13863_v44, %v9397_v43  ;;  %v12617_v43 = vld [vmem:[#allocation5 + $0x1b80] sm:$0xf]  ;;  %v14667_v44 = vld [vmem:[#allocation5 + $0x1ca0] sm:$0xf0] }
  0x73   :  { %7260 = vmatpush.bf16.msrb.mxu1 %v13194_v54  ;;  %7272 = vmatpush.bf16.msrb.mxu2 %v11154_v62  ;;  %v12027_v54 = vld [vmem:[#allocation5 + $0x180c] sm:$0xf0]  ;;  %v13493_v62 = vld [vmem:[#allocation5 + $0x2258] sm:$0xf]  ;;  %v12618_v52 = vor.u32 %v14667_v44, %v12617_v43 }
  0x74   :  { %7285 = vmatpush.bf16.msrb.mxu3 %v13490_v0  ;;  %v9694_v0 = vor.u32 %v13900_v49, %v9691_v50  ;;  %v12030_v2 = vor.u32 %v14484_v53, %v12027_v54  ;;  %v14704_v50 = vld [vmem:[#allocation5 + $0x1dcc] sm:$0xf]  ;;  %v9989_v53 = vld [vmem:[#allocation5 + $0x6f8] sm:$0xf]  ;;  %v14010_v54 = vld [vmem:[#allocation5 + $0x818] sm:$0xf0] }
  0x75   :  { %7241 = vmatmul.bf16.vlgmr.msra.gmra.mxu3 %v15030_v63  ;;  %v10873_v44 = vld [vmem:[#allocation5 + $0xdd8] sm:$0xf] }
  0x76   :  { %7248 = vmatpush.bf16.msrb.mxu0 %v10566_v3  ;;  %v13827_v3 = vld [vmem:[#allocation5 + $0x264] sm:$0xf] }
  0x77   :  { %7261 = vmatpush.bf16.msrb.mxu1 %v12902_v6  ;;  %7273 = vmatpush.bf16.msrb.mxu2 %v10862_v11  ;;  %v14411_v6 = vld [vmem:[#allocation5 + $0x14a4] sm:$0xf]  ;;  %v13494_v11 = vor.u32 %v14886_v1, %v13493_v62  ;;  %v9990_v62 = vor.u32 %v14010_v54, %v9989_v53  ;;  %v12619_v1 = vld [vmem:[#allocation5 + $0x1ca4] sm:$0xf0] }
  0x78   :  { %7286 = vmatpush.bf16.msrb.mxu3 %v13198_v12  ;;  %v14229_v12 = vld [vmem:[#allocation5 + $0xef0] sm:$0xf0]  ;;  %v11738_v16 = vor.u32 %v14411_v6, %v11735_v7  ;;  %v10286_v7 = vor.u32 %v14047_v60, %v10283_v61  ;;  %v14339_v53 = vld [vmem:[#allocation5 + $0x1264] sm:$0xf]  ;;  %v11451_v54 = vld [vmem:[#allocation5 + $0x1384] sm:$0xf0] }
  0x79   :  { %v14521_v6 = vld [vmem:[#allocation5 + $0x1810] sm:$0xf0]  ;;  %v13503_v60 = vld [vmem:[#allocation5 + $0x2384] sm:$0xf0] }
  0x7a   :  { %7249 = vmatpush.bf16.msrb.mxu0 %v10274_v15  ;;  %v9402_v15 = vor.u32 %v13827_v3, %v9399_v4  ;;  %v9697_v3 = vld [vmem:[#allocation5 + $0x4b0] sm:$0xf]  ;;  %v13937_v4 = vld [vmem:[#allocation5 + $0x5d0] sm:$0xf0] }
  0x7b   :  { %7262 = vmatpush.bf16.msrb.mxu1 %v12610_v18  ;;  %7274 = vmatpush.bf16.msrb.mxu2 %v10570_v23  ;;  %v9107_v18 = vld [vmem:[#allocation5 + $0x13c] sm:$0xf0]  ;;  %v10866_v23 = vor.u32 %v14229_v12, %v10865_v10  ;;  %v14558_v12 = vld [vmem:[#allocation5 + $0x193c] sm:$0xf] }
  0x7c   :  { %7287 = vmatpush.bf16.msrb.mxu3 %v12906_v24  ;;  %v14850_v24 = vld [vmem:[#allocation5 + $0x225c] sm:$0xf]  ;;  %v9110_v29 = vor.u32 %v13754_v17, %v9107_v18  ;;  %v9991_v10 = vld [vmem:[#allocation5 + $0x81c] sm:$0xf0]  ;;  %v11741_v17 = vld [vmem:[#allocation5 + $0x14a8] sm:$0xf]  ;;  %v12330_v20 = vor.u32 %v14558_v12, %v12327_v13 }
  0x7d   :  { %v13498_v34 = vor.u32 %v14850_v24, %v13495_v25  ;;  %v14448_v18 = vld [vmem:[#allocation5 + $0x15c8] sm:$0xf0]  ;;  %v9113_v24 = vld [vmem:[#allocation5 + $0x20] sm:$0xf]  ;;  %v14485_v25 = vld [vmem:[#allocation5 + $0x16f4] sm:$0xf] }
  0x7e   :  { %7250 = vmatpush.bf16.msrb.mxu0 %v9982_v27  ;;  %v10573_v27 = vld [vmem:[#allocation5 + $0xb88] sm:$0xf] }
  0x7f   :  { %7263 = vmatpush.bf16.msrb.mxu1 %v12318_v30  ;;  %7275 = vmatpush.bf16.msrb.mxu2 %v10278_v35  ;;  %v12909_v30 = vld [vmem:[#allocation5 + $0x1dc8] sm:$0xf]  ;;  %v14193_v35 = vld [vmem:[#allocation5 + $0xdd4] sm:$0xf]  ;;  %v10574_v37 = vor.u32 %v14156_v28, %v10573_v27  ;;  %v11742_v27 = vor.u32 %v14448_v18, %v11741_v17  ;;  %v13791_v28 = vld [vmem:[#allocation5 + $0x140] sm:$0xf0] }
  0x80   :  { %7288 = vmatpush.bf16.msrb.mxu3 %v12614_v36  ;;  %v10867_v36 = vld [vmem:[#allocation5 + $0xef4] sm:$0xf0]  ;;  %v12910_v40 = vor.u32 %v14740_v31, %v12909_v30  ;;  %v14375_v30 = vld [vmem:[#allocation5 + $0x1380] sm:$0xf0]  ;;  %v11165_v31 = vld [vmem:[#allocation5 + $0x1020] sm:$0xf] }
  0x81   :  { %v10870_v45 = vor.u32 %v14193_v35, %v10867_v36  ;;  %v14887_v35 = vld [vmem:[#allocation5 + $0x2380] sm:$0xf0]  ;;  %v10289_v13 = vld [vmem:[#allocation5 + $0x948] sm:$0xf] }
  0x82   :  { %7251 = vmatpush.bf16.msrb.mxu0 %v9690_v39  ;;  %v13203_v39 = vld [vmem:[#allocation5 + $0x2134] sm:$0xf0] }
  0x83   :  { %7264 = vmatpush.bf16.msrb.mxu1 %v12026_v42  ;;  %7276 = vmatpush.bf16.msrb.mxu2 %v9986_v47  ;;  %v14083_v42 = vld [vmem:[#allocation5 + $0xa60] sm:$0xf0]  ;;  %v13206_v46 = vor.u32 %v14777_v38, %v13203_v39  ;;  %v14120_v47 = vld [vmem:[#allocation5 + $0xb8c] sm:$0xf]  ;;  %v9407_v38 = vld [vmem:[#allocation5 + $0x38c] sm:$0xf0]  ;;  %v9114_v39 = vor.u32 %v13791_v28, %v9113_v24 }
  0x84   :  { %7289 = vmatpush.bf16.msrb.mxu3 %v12322_v48  ;;  %v10575_v48 = vld [vmem:[#allocation5 + $0xcac] sm:$0xf0]  ;;  %v10282_v49 = vor.u32 %v14083_v42, %v10281_v41  ;;  %v14595_v28 = vld [vmem:[#allocation5 + $0x1a60] sm:$0xf0] }
  0x85   :  { %v10578_v57 = vor.u32 %v14120_v47, %v10575_v48  ;;  %v11743_v41 = vld [vmem:[#allocation5 + $0x15cc] sm:$0xf0]  ;;  %v13209_v47 = vld [vmem:[#allocation5 + $0x2018] sm:$0xf]  ;;  %v14814_v48 = vld [vmem:[#allocation5 + $0x2138] sm:$0xf0] }
  0x86   :  { %7252 = vmatpush.bf16.msrb.mxu0 %v9398_v51  ;;  %v12911_v51 = vld [vmem:[#allocation5 + $0x1eec] sm:$0xf0]  ;;  %v13210_v61 = vor.u32 %v14814_v48, %v13209_v47  ;;  %v14559_v47 = vld [vmem:[#allocation5 + $0x1944] sm:$0xf]  ;;  %v12335_v48 = vld [vmem:[#allocation5 + $0x1a64] sm:$0xf0] }
  0x87   :  { %7265 = vmatpush.bf16.msrb.mxu1 %v11734_v55  ;;  %7277 = vmatpush.bf16.msrb.mxu2 %v9694_v0  ;;  %v12325_v55 = vld [vmem:[#allocation5 + $0x1938] sm:$0xf]  ;;  %v12914_v58 = vor.u32 %v14704_v50, %v12911_v51  ;;  %v14631_v0 = vld [vmem:[#allocation5 + $0x1b84] sm:$0xf] }
  0x88   :  { %7290 = vmatpush.bf16.msrb.mxu3 %v12030_v2  ;;  %v12326_v2 = vor.u32 %v14594_v56, %v12325_v55  ;;  %v13755_v51 = vld [vmem:[#allocation5 + $0x24] sm:$0xf]  ;;  %v11167_v56 = vld [vmem:[#allocation5 + $0x1144] sm:$0xf0] }
  0x89   :  { %v14267_v55 = vld [vmem:[#allocation5 + $0x1024] sm:$0xf] }
  0x8a   :  { %7253 = vmatpush.bf16.msrb.mxu0 %v9106_v5  ;;  %v12033_v5 = vld [vmem:[#allocation5 + $0x16f0] sm:$0xf] }
  0x8b   :  { %7266 = vmatpush.bf16.msrb.mxu1 %v11442_v8  ;;  %7278 = vmatpush.bf16.msrb.mxu2 %v9402_v15  ;;  %v12622_v8 = vor.u32 %v14631_v0, %v12619_v1  ;;  %v12034_v14 = vor.u32 %v14521_v6, %v12033_v5  ;;  %v9405_v15 = vld [vmem:[#allocation5 + $0x268] sm:$0xf]  ;;  %v14157_v0 = vld [vmem:[#allocation5 + $0xcb0] sm:$0xf0]  ;;  %v11170_v5 = vor.u32 %v14267_v55, %v11167_v56 }
  0x8c   :  { %7291 = vmatpush.bf16.msrb.mxu3 %v11738_v16  ;;  %v13864_v16 = vld [vmem:[#allocation5 + $0x388] sm:$0xf0] }
  0x8d   :  { %7254 = vmatmul.bf16.vlgmr.msrb.gmra.mxu0 %v15028_v59 }
  0x8e   :  { %7298 = vmatpush.bf16.msra.mxu0 %v11158_v9  ;;  %7267 = vmatmul.bf16.vlgmr.msrb.gmra.mxu1 %v15030_v63  ;;  %v13974_v9 = vld [vmem:[#allocation5 + $0x6fc] sm:$0xf] }
  0x8f   :  { %7311 = vmatpush.bf16.msra.mxu1 %v13494_v11  ;;  %7279 = vmatpush.bf16.msrb.mxu2 %v9110_v29  ;;  %v9698_v11 = vor.u32 %v13937_v4, %v9697_v3  ;;  %v9994_v19 = vor.u32 %v13974_v9, %v9991_v10  ;;  %v11449_v29 = vld [vmem:[#allocation5 + $0x1260] sm:$0xf]  ;;  %v14741_v3 = vld [vmem:[#allocation5 + $0x1ef0] sm:$0xf0]  ;;  %v11454_v4 = vor.u32 %v14339_v53, %v11451_v54  ;;  %v14778_v10 = vld [vmem:[#allocation5 + $0x201c] sm:$0xf] }
  0x90   :  { %7292 = vmatpush.bf16.msrb.mxu3 %v11446_v32  ;;  %v14303_v32 = vld [vmem:[#allocation5 + $0x1140] sm:$0xf0]  ;;  %v11450_v42 = vor.u32 %v14375_v30, %v11449_v29  ;;  %v11749_v53 = vld [vmem:[#allocation5 + $0x14b0] sm:$0xf]  ;;  %v14449_v54 = vld [vmem:[#allocation5 + $0x15d0] sm:$0xf0] }
  0x91   :  { %v11166_v43 = vor.u32 %v14303_v32, %v11165_v31  ;;  %v14048_v31 = vld [vmem:[#allocation5 + $0x94c] sm:$0xf]  ;;  %v10291_v32 = vld [vmem:[#allocation5 + $0xa6c] sm:$0xf0] }
  0x92   :  { %7299 = vmatpush.bf16.msra.mxu0 %v10866_v23  ;;  %7280 = vmatmul.bf16.vlgmr.msrb.gmra.mxu2 %v15028_v59  ;;  %v9406_v23 = vor.u32 %v13864_v16, %v9405_v15  ;;  %v12625_v15 = vld [vmem:[#allocation5 + $0x1b88] sm:$0xf]  ;;  %v14668_v16 = vld [vmem:[#allocation5 + $0x1ca8] sm:$0xf0] }
  0x93   :  { %7312 = vmatpush.bf16.msra.mxu1 %v13202_v26  ;;  %7324 = vmatpush.bf16.msra.mxu2 %v11162_v33  ;;  %v12035_v26 = vld [vmem:[#allocation5 + $0x1814] sm:$0xf0]  ;;  %v13501_v33 = vld [vmem:[#allocation5 + $0x2260] sm:$0xf]  ;;  %v12626_v24 = vor.u32 %v14668_v16, %v12625_v15  ;;  %v14413_v16 = vld [vmem:[#allocation5 + $0x14b4] sm:$0xf] }
  0x94   :  { %7337 = vmatpush.bf16.msra.mxu3 %v13498_v34  ;;  %v9702_v34 = vor.u32 %v13901_v21, %v9699_v22  ;;  %v12038_v36 = vor.u32 %v14485_v25, %v12035_v26  ;;  %v14705_v22 = vld [vmem:[#allocation5 + $0x1dd4] sm:$0xf]  ;;  %v9997_v25 = vld [vmem:[#allocation5 + $0x700] sm:$0xf]  ;;  %v14011_v26 = vld [vmem:[#allocation5 + $0x820] sm:$0xf0] }
  0x95   :  { %7293 = vmatmul.bf16.vlgmr.msrb.gmra.mxu3 %v15030_v63 }
  0x96   :  { %7300 = vmatpush.bf16.msra.mxu0 %v10574_v37  ;;  %v13828_v37 = vld [vmem:[#allocation5 + $0x26c] sm:$0xf] }
  0x97   :  { %7313 = vmatpush.bf16.msra.mxu1 %v12910_v40  ;;  %7325 = vmatpush.bf16.msra.mxu2 %v10870_v45  ;;  %v14412_v40 = vld [vmem:[#allocation5 + $0x14ac] sm:$0xf]  ;;  %v13502_v45 = vor.u32 %v14887_v35, %v13501_v33  ;;  %v9998_v33 = vor.u32 %v14011_v26, %v9997_v25  ;;  %v12627_v35 = vld [vmem:[#allocation5 + $0x1cac] sm:$0xf0]  ;;  %v14815_v25 = vld [vmem:[#allocation5 + $0x2140] sm:$0xf0] }
  0x98   :  { %7338 = vmatpush.bf16.msra.mxu3 %v13206_v46  ;;  %v14230_v46 = vld [vmem:[#allocation5 + $0xef8] sm:$0xf0]  ;;  %v11746_v50 = vor.u32 %v14412_v40, %v11743_v41  ;;  %v10294_v41 = vor.u32 %v14048_v31, %v10291_v32 }
  0x99   :  { %v14522_v40 = vld [vmem:[#allocation5 + $0x1818] sm:$0xf0] }
  0x9a   :  { %7301 = vmatpush.bf16.msra.mxu0 %v10282_v49  ;;  %v9410_v49 = vor.u32 %v13828_v37, %v9407_v38  ;;  %v9705_v37 = vld [vmem:[#allocation5 + $0x4b8] sm:$0xf]  ;;  %v13938_v38 = vld [vmem:[#allocation5 + $0x5d8] sm:$0xf0] }
  0x9b   :  { %7314 = vmatpush.bf16.msra.mxu1 %v12618_v52  ;;  %7326 = vmatpush.bf16.msra.mxu2 %v10578_v57  ;;  %v9115_v52 = vld [vmem:[#allocation5 + $0x144] sm:$0xf0]  ;;  %v10874_v57 = vor.u32 %v14230_v46, %v10873_v44 }
  0x9c   :  { %7339 = vmatpush.bf16.msra.mxu3 %v12914_v58  ;;  %v14851_v58 = vld [vmem:[#allocation5 + $0x2264] sm:$0xf]  ;;  %v9118_v1 = vor.u32 %v13755_v51, %v9115_v52  ;;  %v9999_v44 = vld [vmem:[#allocation5 + $0x824] sm:$0xf0]  ;;  %v13865_v51 = vld [vmem:[#allocation5 + $0x390] sm:$0xf0] }
  0x9d   :  { %v13506_v6 = vor.u32 %v14851_v58, %v13503_v60  ;;  %v12338_v58 = vor.u32 %v14559_v47, %v12335_v48  ;;  %v13902_v60 = vld [vmem:[#allocation5 + $0x4bc] sm:$0xf] }
  0x9e   :  { %7302 = vmatpush.bf16.msra.mxu0 %v9990_v62  ;;  %v10581_v62 = vld [vmem:[#allocation5 + $0xb90] sm:$0xf] }
  0x9f   :  { %7315 = vmatpush.bf16.msra.mxu1 %v12326_v2  ;;  %7327 = vmatpush.bf16.msra.mxu2 %v10286_v7  ;;  %v12917_v2 = vld [vmem:[#allocation5 + $0x1dd0] sm:$0xf]  ;;  %v14194_v7 = vld [vmem:[#allocation5 + $0xddc] sm:$0xf]  ;;  %v10582_v9 = vor.u32 %v14157_v0, %v10581_v62 }
  0xa0   :  { %7340 = vmatpush.bf16.msra.mxu3 %v12622_v8  ;;  %v10875_v8 = vld [vmem:[#allocation5 + $0xefc] sm:$0xf0]  ;;  %v12918_v12 = vor.u32 %v14741_v3, %v12917_v2  ;;  %v14486_v0 = vld [vmem:[#allocation5 + $0x16fc] sm:$0xf]  ;;  %v11750_v2 = vor.u32 %v14449_v54, %v11749_v53  ;;  %v13792_v3 = vld [vmem:[#allocation5 + $0x148] sm:$0xf0] }
  0xa1   :  { %v10878_v17 = vor.u32 %v14194_v7, %v10875_v8  ;;  %v14304_v7 = vld [vmem:[#allocation5 + $0x1148] sm:$0xf0]  ;;  %v13509_v8 = vld [vmem:[#allocation5 + $0x2268] sm:$0xf] }
  0xa2   :  { %7303 = vmatpush.bf16.msra.mxu0 %v9698_v11  ;;  %v13211_v11 = vld [vmem:[#allocation5 + $0x213c] sm:$0xf0]  ;;  %v13219_v53 = vld [vmem:[#allocation5 + $0x2144] sm:$0xf0] }
  0xa3   :  { %7316 = vmatpush.bf16.msra.mxu1 %v12034_v14  ;;  %7328 = vmatpush.bf16.msra.mxu2 %v9994_v19  ;;  %v14084_v14 = vld [vmem:[#allocation5 + $0xa68] sm:$0xf0]  ;;  %v13214_v18 = vor.u32 %v14778_v10, %v13211_v11  ;;  %v14121_v19 = vld [vmem:[#allocation5 + $0xb94] sm:$0xf] }
  0xa4   :  { %7341 = vmatpush.bf16.msra.mxu3 %v12330_v20  ;;  %v10583_v20 = vld [vmem:[#allocation5 + $0xcb4] sm:$0xf0]  ;;  %v10290_v21 = vor.u32 %v14084_v14, %v10289_v13  ;;  %v14888_v10 = vld [vmem:[#allocation5 + $0x2388] sm:$0xf0] }
  0xa5   :  { %v10586_v29 = vor.u32 %v14121_v19, %v10583_v20  ;;  %v9415_v13 = vld [vmem:[#allocation5 + $0x394] sm:$0xf0]  ;;  %v10881_v20 = vld [vmem:[#allocation5 + $0xde0] sm:$0xf] }
  0xa6   :  { %7304 = vmatpush.bf16.msra.mxu0 %v9406_v23  ;;  %v12919_v23 = vld [vmem:[#allocation5 + $0x1ef4] sm:$0xf0] }
  0xa7   :  { %7317 = vmatpush.bf16.msra.mxu1 %v11742_v27  ;;  %7329 = vmatpush.bf16.msra.mxu2 %v9702_v34  ;;  %v12333_v27 = vld [vmem:[#allocation5 + $0x1940] sm:$0xf]  ;;  %v12922_v30 = vor.u32 %v14705_v22, %v12919_v23  ;;  %v14632_v34 = vld [vmem:[#allocation5 + $0x1b8c] sm:$0xf]  ;;  %v13510_v22 = vor.u32 %v14888_v10, %v13509_v8  ;;  %v14231_v23 = vld [vmem:[#allocation5 + $0xf00] sm:$0xf0] }
  0xa8   :  { %7342 = vmatpush.bf16.msra.mxu3 %v12038_v36  ;;  %v12334_v36 = vor.u32 %v14595_v28, %v12333_v27  ;;  %v13756_v28 = vld [vmem:[#allocation5 + $0x2c] sm:$0xf] }
  0xa9   :  { %v14012_v8 = vld [vmem:[#allocation5 + $0x828] sm:$0xf0] }
  0xaa   :  { %7305 = vmatpush.bf16.msra.mxu0 %v9114_v39  ;;  %v12041_v39 = vld [vmem:[#allocation5 + $0x16f8] sm:$0xf]  ;;  %v7099_v46 = vpop.f32.mrf.mxu0  ;;  %v14596_v10 = vld [vmem:[#allocation5 + $0x1a68] sm:$0xf0] }
  0xab   :  { %7318 = vmatpush.bf16.msra.mxu1 %v11450_v42  ;;  %7330 = vmatpush.bf16.msra.mxu2 %v9410_v49  ;;  %v12630_v42 = vor.u32 %v14632_v34, %v12627_v35  ;;  %v12042_v49 = vor.u32 %v14522_v40, %v12041_v39  ;;  %v14268_v34 = vld [vmem:[#allocation5 + $0x102c] sm:$0xf]  ;;  %v11175_v35 = vld [vmem:[#allocation5 + $0x114c] sm:$0xf0] }
  0xac   :  { %7343 = vmatpush.bf16.msra.mxu3 %v11746_v50  ;;  %v9413_v50 = vld [vmem:[#allocation5 + $0x270] sm:$0xf]  ;;  %v11178_v47 = vor.u32 %v14268_v34, %v11175_v35  ;;  %v9421_v34 = vld [vmem:[#allocation5 + $0x278] sm:$0xf]  ;;  %v13866_v35 = vld [vmem:[#allocation5 + $0x398] sm:$0xf0] }
  0xad   :  { %7306 = vmatmul.bf16.vlgmr.msra.gmra.mxu0 %v15028_v59  ;;  %v7112_v52 = vpop.f32.mrf.mxu1  ;;  %v9414_v62 = vor.u32 %v13865_v51, %v9413_v50  ;;  %v13511_v39 = vld [vmem:[#allocation5 + $0x238c] sm:$0xf0]  ;;  %v10883_v50 = vld [vmem:[#allocation5 + $0xf04] sm:$0xf0] }
  0xae   :  { %7350 = vmatpush.bf16.msrb.mxu0 %v11166_v43  ;;  %7319 = vmatmul.bf16.vlgmr.msra.gmra.mxu1 %v15030_v63  ;;  %v13975_v43 = vld [vmem:[#allocation5 + $0x704] sm:$0xf]  ;;  %v7113_v55 = vadd.f32 %v7112_v52, %v7099_v46 }
  0xaf   :  { %7363 = vmatpush.bf16.msrb.mxu1 %v13502_v45  ;;  %7331 = vmatpush.bf16.msra.mxu2 %v9118_v1  ;;  %v9706_v45 = vor.u32 %v13938_v38, %v9705_v37  ;;  %v10002_v56 = vor.u32 %v13975_v43, %v9999_v44  ;;  %v12043_v1 = vld [vmem:[#allocation5 + $0x181c] sm:$0xf0]  ;;  %v10882_v37 = vor.u32 %v14231_v23, %v10881_v20  ;;  %v14852_v38 = vld [vmem:[#allocation5 + $0x226c] sm:$0xf]  ;;  %v12925_v44 = vld [vmem:[#allocation5 + $0x1dd8] sm:$0xf] }
  0xb0   :  { %7344 = vmatpush.bf16.msra.mxu3 %v11454_v4  ;;  %8988 = vst [vmem:[#allocation7] sm:$0xff] %v7113_v55  ;;  %v11457_v4 = vld [vmem:[#allocation5 + $0x1268] sm:$0xf]  ;;  %v12046_v11 = vor.u32 %v14486_v0, %v12043_v1  ;;  %v13514_v48 = vor.u32 %v14852_v38, %v13511_v39  ;;  %v14779_v52 = vld [vmem:[#allocation5 + $0x2024] sm:$0xf] }
  0xb1   :  { %v10297_v55 = vld [vmem:[#allocation5 + $0x950] sm:$0xf]  ;;  %v13222_v0 = vor.u32 %v14779_v52, %v13219_v53  ;;  %v14122_v1 = vld [vmem:[#allocation5 + $0xb9c] sm:$0xf]  ;;  %v14305_v53 = vld [vmem:[#allocation5 + $0x1150] sm:$0xf0] }
  0xb2   :  { %7351 = vmatpush.bf16.msrb.mxu0 %v10874_v57  ;;  %7332 = vmatmul.bf16.vlgmr.msra.gmra.mxu2 %v15028_v59  ;;  %v9121_v57 = vld [vmem:[#allocation5 + $0x28] sm:$0xf]  ;;  %v7101_v15 = vpop.f32.mrf.mxu0  ;;  %v11181_v52 = vld [vmem:[#allocation5 + $0x1030] sm:$0xf] }
  0xb3   :  { %7364 = vmatpush.bf16.msrb.mxu1 %v13210_v61  ;;  %7376 = vmatpush.bf16.msrb.mxu2 %v11170_v5  ;;  %v9707_v61 = vld [vmem:[#allocation5 + $0x5dc] sm:$0xf0]  ;;  %v14376_v5 = vld [vmem:[#allocation5 + $0x1388] sm:$0xf0]  ;;  %v9122_v14 = vor.u32 %v13792_v3, %v9121_v57  ;;  %v12633_v57 = vld [vmem:[#allocation5 + $0x1b90] sm:$0xf] }
  0xb4   :  { %7389 = vmatpush.bf16.msrb.mxu3 %v13506_v6  ;;  %v11173_v6 = vld [vmem:[#allocation5 + $0x1028] sm:$0xf]  ;;  %v7125_v31 = vpop.f32.mrf.mxu2 }
  0xb5   :  { %7345 = vmatmul.bf16.vlgmr.msra.gmra.mxu3 %v15030_v63  ;;  %v11174_v19 = vor.u32 %v14304_v7, %v11173_v6  ;;  %v10005_v7 = vld [vmem:[#allocation5 + $0x708] sm:$0xf] }
  0xb6   :  { %7352 = vmatpush.bf16.msrb.mxu0 %v10582_v9  ;;  %v9710_v9 = vor.u32 %v13902_v60, %v9707_v61 }
  0xb7   :  { %7365 = vmatpush.bf16.msrb.mxu1 %v12918_v12  ;;  %7377 = vmatpush.bf16.msrb.mxu2 %v10878_v17  ;;  %v13829_v12 = vld [vmem:[#allocation5 + $0x274] sm:$0xf]  ;;  %v11751_v17 = vld [vmem:[#allocation5 + $0x15d4] sm:$0xf0]  ;;  %v7138_v32 = vpop.f32.mrf.mxu3 }
  0xb8   :  { %7390 = vmatpush.bf16.msrb.mxu3 %v13214_v18  ;;  %v11458_v18 = vor.u32 %v14376_v5, %v11457_v4  ;;  %v9418_v26 = vor.u32 %v13829_v12, %v9415_v13  ;;  %v11754_v27 = vor.u32 %v14413_v16, %v11751_v17  ;;  %v14706_v4 = vld [vmem:[#allocation5 + $0x1ddc] sm:$0xf]  ;;  %v12927_v5 = vld [vmem:[#allocation5 + $0x1efc] sm:$0xf0]  ;;  %v14049_v13 = vld [vmem:[#allocation5 + $0x954] sm:$0xf]  ;;  %v10006_v16 = vor.u32 %v14012_v8, %v10005_v7 }
  0xb9   :  { %v12930_v12 = vor.u32 %v14706_v4, %v12927_v5  ;;  %v14633_v17 = vld [vmem:[#allocation5 + $0x1b94] sm:$0xf]  ;;  %v14232_v5 = vld [vmem:[#allocation5 + $0xf08] sm:$0xf0] }
  0xba   :  { %7353 = vmatpush.bf16.msrb.mxu0 %v10290_v21  ;;  %v7114_v21 = vpop.f32.mrf.mxu1  ;;  %v14816_v7 = vld [vmem:[#allocation5 + $0x2148] sm:$0xf0] }
  0xbb   :  { %7366 = vmatpush.bf16.msrb.mxu1 %v12626_v24  ;;  %7378 = vmatpush.bf16.msrb.mxu2 %v10586_v29  ;;  %v13217_v24 = vld [vmem:[#allocation5 + $0x2020] sm:$0xf]  ;;  %v9123_v29 = vld [vmem:[#allocation5 + $0x14c] sm:$0xf0] }
  0xbc   :  { %7391 = vmatpush.bf16.msrb.mxu3 %v12922_v30  ;;  %v14340_v30 = vld [vmem:[#allocation5 + $0x126c] sm:$0xf]  ;;  %v13218_v40 = vor.u32 %v14815_v25, %v13217_v24  ;;  %v9126_v43 = vor.u32 %v13756_v28, %v9123_v29  ;;  %v7127_v61 = vpop.f32.mrf.mxu2  ;;  %v9713_v21 = vld [vmem:[#allocation5 + $0x4c0] sm:$0xf]  ;;  %v14523_v25 = vld [vmem:[#allocation5 + $0x1820] sm:$0xf0] }
  0xbd   :  { %v12049_v24 = vld [vmem:[#allocation5 + $0x1700] sm:$0xf]  ;;  %v13976_v28 = vld [vmem:[#allocation5 + $0x70c] sm:$0xf]  ;;  %v10007_v29 = vld [vmem:[#allocation5 + $0x82c] sm:$0xf0] }
  0xbe   :  { %7354 = vmatpush.bf16.msrb.mxu0 %v9998_v33  ;;  %v11459_v33 = vld [vmem:[#allocation5 + $0x138c] sm:$0xf0]  ;;  %v10010_v38 = vor.u32 %v13976_v28, %v10007_v29 }
  0xbf   :  { %7367 = vmatpush.bf16.msrb.mxu1 %v12334_v36  ;;  %7379 = vmatpush.bf16.msrb.mxu2 %v10294_v41  ;;  %v7139_v36 = vadd.f32 %v7138_v32, %v7125_v31  ;;  %v10589_v41 = vld [vmem:[#allocation5 + $0xb98] sm:$0xf]  ;;  %v11462_v46 = vor.u32 %v14340_v30, %v11459_v33  ;;  %v14560_v31 = vld [vmem:[#allocation5 + $0x194c] sm:$0xf]  ;;  %v12343_v32 = vld [vmem:[#allocation5 + $0x1a6c] sm:$0xf0]  ;;  %v12050_v33 = vor.u32 %v14523_v25, %v12049_v24 }
  0xc0   :  { %7392 = vmatpush.bf16.msrb.mxu3 %v12630_v42  ;;  %v14158_v42 = vld [vmem:[#allocation5 + $0xcb8] sm:$0xf0]  ;;  %v12346_v39 = vor.u32 %v14560_v31, %v12343_v32  ;;  %v14159_v24 = vld [vmem:[#allocation5 + $0xcc0] sm:$0xf0]  ;;  %v14196_v31 = vld [vmem:[#allocation5 + $0xdec] sm:$0xf] }
  0xc1   :  { %8989 = vst [vmem:[#allocation7 + $0x8] sm:$0xff] %v7139_v36  ;;  %v10590_v51 = vor.u32 %v14158_v42, %v10589_v41  ;;  %v11757_v36 = vld [vmem:[#allocation5 + $0x14b8] sm:$0xf]  ;;  %v9715_v41 = vld [vmem:[#allocation5 + $0x5e4] sm:$0xf0] }
  0xc2   :  { %7355 = vmatpush.bf16.msrb.mxu0 %v9706_v45  ;;  %v14742_v45 = vld [vmem:[#allocation5 + $0x1ef8] sm:$0xf0]  ;;  %v10891_v32 = vld [vmem:[#allocation5 + $0xf0c] sm:$0xf0] }
  0xc3   :  { %7368 = vmatpush.bf16.msrb.mxu1 %v12042_v49  ;;  %7380 = vmatpush.bf16.msrb.mxu2 %v10002_v56  ;;  %v14195_v49 = vld [vmem:[#allocation5 + $0xde4] sm:$0xf]  ;;  %v12926_v54 = vor.u32 %v14742_v45, %v12925_v44  ;;  %v14085_v56 = vld [vmem:[#allocation5 + $0xa70] sm:$0xf0]  ;;  %v9129_v44 = vld [vmem:[#allocation5 + $0x30] sm:$0xf] }
  0xc4   :  { %7393 = vmatpush.bf16.msrb.mxu3 %v12338_v58  ;;  %v14669_v58 = vld [vmem:[#allocation5 + $0x1cb0] sm:$0xf0]  ;;  %v10886_v60 = vor.u32 %v14195_v49, %v10883_v50  ;;  %v10298_v3 = vor.u32 %v14085_v56, %v10297_v55  ;;  %v14487_v45 = vld [vmem:[#allocation5 + $0x1704] sm:$0xf]  ;;  %v11465_v50 = vld [vmem:[#allocation5 + $0x1270] sm:$0xf] }
  0xc5   :  { %v12634_v6 = vor.u32 %v14669_v58, %v12633_v57  ;;  %v13793_v49 = vld [vmem:[#allocation5 + $0x150] sm:$0xf0]  ;;  %v13830_v58 = vld [vmem:[#allocation5 + $0x27c] sm:$0xf] }
  0xc6   :  { %7356 = vmatpush.bf16.msrb.mxu0 %v9414_v62  ;;  %v7140_v62 = vpop.f32.mrf.mxu3  ;;  %v14889_v56 = vld [vmem:[#allocation5 + $0x2390] sm:$0xf0]  ;;  %v9130_v61 = vor.u32 %v13793_v49, %v9129_v44  ;;  %v12935_v49 = vld [vmem:[#allocation5 + $0x1f04] sm:$0xf0] }
  0xc7   :  { %7369 = vmatpush.bf16.msrb.mxu1 %v11750_v2  ;;  %7381 = vmatpush.bf16.msrb.mxu2 %v9710_v9  ;;  %v10591_v2 = vld [vmem:[#allocation5 + $0xcbc] sm:$0xf0]  ;;  %v12341_v9 = vld [vmem:[#allocation5 + $0x1948] sm:$0xf]  ;;  %v14414_v62 = vld [vmem:[#allocation5 + $0x14bc] sm:$0xf] }
  0xc8   :  { %7394 = vmatpush.bf16.msrb.mxu3 %v12046_v11  ;;  %v10594_v11 = vor.u32 %v14122_v1, %v10591_v2  ;;  %v12342_v20 = vor.u32 %v14596_v10, %v12341_v9  ;;  %v11182_v2 = vor.u32 %v14305_v53, %v11181_v52  ;;  %v13757_v10 = vld [vmem:[#allocation5 + $0x34] sm:$0xf]  ;;  %v12349_v53 = vld [vmem:[#allocation5 + $0x1950] sm:$0xf] }
  0xc9   :  { %v14013_v52 = vld [vmem:[#allocation5 + $0x830] sm:$0xf0] }
  0xca   :  { %7357 = vmatpush.bf16.msrb.mxu0 %v9122_v14  ;;  %v10299_v14 = vld [vmem:[#allocation5 + $0xa74] sm:$0xf0]  ;;  %v7151_v15 = vpop.f32.mrf.mxu0 }
  0xcb   :  { %7370 = vmatpush.bf16.msrb.mxu1 %v11458_v18  ;;  %7382 = vmatpush.bf16.msrb.mxu2 %v9418_v26  ;;  %v12635_v18 = vld [vmem:[#allocation5 + $0x1cb4] sm:$0xf0]  ;;  %v10302_v26 = vor.u32 %v14049_v13, %v10299_v14 }
  0xcc   :  { %7395 = vmatpush.bf16.msrb.mxu3 %v11754_v27  ;;  %v12638_v27 = vor.u32 %v14633_v17, %v12635_v18  ;;  %v11183_v17 = vld [vmem:[#allocation5 + $0x1154] sm:$0xf0] }
  0xcd   :  { %7358 = vmatmul.bf16.vlgmr.msrb.gmra.mxu0 %v15028_v59 }
  0xce   :  { %7402 = vmatpush.bf16.msra.mxu0 %v11174_v19  ;;  %7371 = vmatmul.bf16.vlgmr.msrb.gmra.mxu1 %v15030_v63  ;;  %v7164_v19 = vpop.f32.mrf.mxu1 }
  0xcf   :  { %7415 = vmatpush.bf16.msra.mxu1 %v13510_v22  ;;  %7383 = vmatpush.bf16.msrb.mxu2 %v9126_v43  ;;  %v13939_v22 = vld [vmem:[#allocation5 + $0x5e0] sm:$0xf0]  ;;  %v7165_v23 = vadd.f32 %v7164_v19, %v7151_v15  ;;  %v9422_v43 = vor.u32 %v13866_v35, %v9421_v34  ;;  %v11467_v15 = vld [vmem:[#allocation5 + $0x1394] sm:$0xf0]  ;;  %v14780_v34 = vld [vmem:[#allocation5 + $0x202c] sm:$0xf] }
  0xd0   :  { %7396 = vmatpush.bf16.msrb.mxu3 %v11462_v46  ;;  %v9714_v30 = vor.u32 %v13939_v22, %v9713_v21  ;;  %v12051_v46 = vld [vmem:[#allocation5 + $0x1824] sm:$0xf0]  ;;  %v13519_v21 = vld [vmem:[#allocation5 + $0x2394] sm:$0xf0]  ;;  %v13227_v35 = vld [vmem:[#allocation5 + $0x214c] sm:$0xf0] }
  0xd1   :  { %8990 = vst [vmem:[#allocation7 + $0x10] sm:$0xff] %v7165_v23  ;;  %v12054_v57 = vor.u32 %v14487_v45, %v12051_v46  ;;  %v10597_v23 = vld [vmem:[#allocation5 + $0xba0] sm:$0xf]  ;;  %v13230_v44 = vor.u32 %v14780_v34, %v13227_v35  ;;  %v14123_v45 = vld [vmem:[#allocation5 + $0xba4] sm:$0xf] }
  0xd2   :  { %7403 = vmatpush.bf16.msra.mxu0 %v10882_v37  ;;  %7384 = vmatmul.bf16.vlgmr.msrb.gmra.mxu2 %v15028_v59  ;;  %v14450_v37 = vld [vmem:[#allocation5 + $0x15d8] sm:$0xf0]  ;;  %v7153_v42 = vpop.f32.mrf.mxu0  ;;  %v10599_v46 = vld [vmem:[#allocation5 + $0xcc4] sm:$0xf0]  ;;  %v11189_v34 = vld [vmem:[#allocation5 + $0x1038] sm:$0xf] }
  0xd3   :  { %7416 = vmatpush.bf16.msra.mxu1 %v13218_v40  ;;  %7428 = vmatpush.bf16.msra.mxu2 %v11178_v47  ;;  %v13903_v40 = vld [vmem:[#allocation5 + $0x4c4] sm:$0xf]  ;;  %v14306_v35 = vld [vmem:[#allocation5 + $0x1158] sm:$0xf0] }
  0xd4   :  { %7441 = vmatpush.bf16.msra.mxu3 %v13514_v48  ;;  %v11758_v48 = vor.u32 %v14450_v37, %v11757_v36  ;;  %v9718_v55 = vor.u32 %v13903_v40, %v9715_v41  ;;  %v10305_v37 = vld [vmem:[#allocation5 + $0x958] sm:$0xf]  ;;  %v14670_v40 = vld [vmem:[#allocation5 + $0x1cb8] sm:$0xf0]  ;;  %v10894_v41 = vor.u32 %v14196_v31, %v10891_v32 }
  0xd5   :  { %7397 = vmatmul.bf16.vlgmr.msrb.gmra.mxu3 %v15030_v63  ;;  %v7177_v13 = vpop.f32.mrf.mxu2  ;;  %v13794_v31 = vld [vmem:[#allocation5 + $0x158] sm:$0xf0]  ;;  %v11473_v32 = vld [vmem:[#allocation5 + $0x1278] sm:$0xf] }
  0xd6   :  { %7404 = vmatpush.bf16.msra.mxu0 %v10590_v51  ;;  %v7166_v47 = vpop.f32.mrf.mxu1  ;;  %v14377_v51 = vld [vmem:[#allocation5 + $0x1390] sm:$0xf0] }
  0xd7   :  { %7417 = vmatpush.bf16.msra.mxu1 %v12926_v54  ;;  %7429 = vmatpush.bf16.msra.mxu2 %v10886_v60  ;;  %v13517_v54 = vld [vmem:[#allocation5 + $0x2270] sm:$0xf]  ;;  %v9423_v60 = vld [vmem:[#allocation5 + $0x39c] sm:$0xf0]  ;;  %v11466_v1 = vor.u32 %v14377_v51, %v11465_v50 }
  0xd8   :  { %7442 = vmatpush.bf16.msra.mxu3 %v13222_v0  ;;  %v11759_v0 = vld [vmem:[#allocation5 + $0x15dc] sm:$0xf0]  ;;  %v13518_v4 = vor.u32 %v14889_v56, %v13517_v54  ;;  %v9426_v8 = vor.u32 %v13830_v58, %v9423_v60  ;;  %v7190_v14 = vpop.f32.mrf.mxu3  ;;  %v10013_v51 = vld [vmem:[#allocation5 + $0x710] sm:$0xf]  ;;  %v14597_v54 = vld [vmem:[#allocation5 + $0x1a70] sm:$0xf0] }
  0xd9   :  { %v11762_v9 = vor.u32 %v14414_v62, %v11759_v0  ;;  %v7191_v18 = vadd.f32 %v7190_v14, %v7177_v13  ;;  %v10307_v58 = vld [vmem:[#allocation5 + $0xa7c] sm:$0xf0]  ;;  %v14634_v62 = vld [vmem:[#allocation5 + $0x1b9c] sm:$0xf]  ;;  %v14561_v13 = vld [vmem:[#allocation5 + $0x1954] sm:$0xf] }
  0xda   :  { %7405 = vmatpush.bf16.msra.mxu0 %v10298_v3  ;;  %v10889_v3 = vld [vmem:[#allocation5 + $0xde8] sm:$0xf]  ;;  %v12643_v0 = vld [vmem:[#allocation5 + $0x1cbc] sm:$0xf0]  ;;  %v12351_v14 = vld [vmem:[#allocation5 + $0x1a74] sm:$0xf0] }
  0xdb   :  { %7418 = vmatpush.bf16.msra.mxu1 %v12634_v6  ;;  %7430 = vmatpush.bf16.msra.mxu2 %v10594_v11  ;;  %v13225_v6 = vld [vmem:[#allocation5 + $0x2028] sm:$0xf]  ;;  %v9131_v11 = vld [vmem:[#allocation5 + $0x154] sm:$0xf0]  ;;  %v10890_v19 = vor.u32 %v14232_v5, %v10889_v3  ;;  %8991 = vst [vmem:[#allocation7 + $0x18] sm:$0xff] %v7191_v18 }
  0xdc   :  { %7443 = vmatpush.bf16.msra.mxu3 %v12930_v12  ;;  %v14341_v12 = vld [vmem:[#allocation5 + $0x1274] sm:$0xf]  ;;  %v13226_v22 = vor.u32 %v14816_v7, %v13225_v6  ;;  %v9134_v25 = vor.u32 %v13757_v10, %v9131_v11  ;;  %v9721_v3 = vld [vmem:[#allocation5 + $0x4c8] sm:$0xf]  ;;  %v14524_v7 = vld [vmem:[#allocation5 + $0x1828] sm:$0xf0] }
  0xdd   :  { %v11470_v28 = vor.u32 %v14341_v12, %v11467_v15  ;;  %v7179_v42 = vpop.f32.mrf.mxu2  ;;  %v12057_v6 = vld [vmem:[#allocation5 + $0x1708] sm:$0xf]  ;;  %v13977_v10 = vld [vmem:[#allocation5 + $0x714] sm:$0xf]  ;;  %v10015_v11 = vld [vmem:[#allocation5 + $0x834] sm:$0xf0] }
  0xde   :  { %7406 = vmatpush.bf16.msra.mxu0 %v10006_v16  ;;  %v14269_v16 = vld [vmem:[#allocation5 + $0x1034] sm:$0xf]  ;;  %v12058_v15 = vor.u32 %v14524_v7, %v12057_v6  ;;  %v11765_v18 = vld [vmem:[#allocation5 + $0x14c0] sm:$0xf]  ;;  %v14160_v6 = vld [vmem:[#allocation5 + $0xcc8] sm:$0xf0] }
  0xdf   :  { %7419 = vmatpush.bf16.msra.mxu1 %v12342_v20  ;;  %7431 = vmatpush.bf16.msra.mxu2 %v10302_v26  ;;  %v14853_v20 = vld [vmem:[#allocation5 + $0x2274] sm:$0xf]  ;;  %v12933_v26 = vld [vmem:[#allocation5 + $0x1de0] sm:$0xf]  ;;  %v11186_v29 = vor.u32 %v14269_v16, %v11183_v17  ;;  %v13867_v17 = vld [vmem:[#allocation5 + $0x3a0] sm:$0xf0] }
  0xe0   :  { %7444 = vmatpush.bf16.msra.mxu3 %v12638_v27  ;;  %v14743_v27 = vld [vmem:[#allocation5 + $0x1f00] sm:$0xf0]  ;;  %v9429_v16 = vld [vmem:[#allocation5 + $0x280] sm:$0xf] }
  0xe1   :  { %v12934_v36 = vor.u32 %v14743_v27, %v12933_v26  ;;  %v9137_v26 = vld [vmem:[#allocation5 + $0x38] sm:$0xf]  ;;  %v14488_v27 = vld [vmem:[#allocation5 + $0x170c] sm:$0xf] }
  0xe2   :  { %7407 = vmatpush.bf16.msra.mxu0 %v9714_v30  ;;  %v13522_v30 = vor.u32 %v14853_v20, %v13519_v21  ;;  %v10018_v20 = vor.u32 %v13977_v10, %v10015_v11  ;;  %v12354_v21 = vor.u32 %v14561_v13, %v12351_v14  ;;  %v9138_v42 = vor.u32 %v13794_v31, %v9137_v26  ;;  %v14197_v13 = vld [vmem:[#allocation5 + $0xdf4] sm:$0xf]  ;;  %v10899_v14 = vld [vmem:[#allocation5 + $0xf14] sm:$0xf0]  ;;  %v12943_v31 = vld [vmem:[#allocation5 + $0x1f0c] sm:$0xf0] }
  0xe3   :  { %7420 = vmatpush.bf16.msra.mxu1 %v12050_v33  ;;  %7432 = vmatpush.bf16.msra.mxu2 %v10010_v38  ;;  %v10598_v33 = vor.u32 %v14159_v24, %v10597_v23  ;;  %v14086_v38 = vld [vmem:[#allocation5 + $0xa78] sm:$0xf0]  ;;  %v9723_v23 = vld [vmem:[#allocation5 + $0x5ec] sm:$0xf0] }
  0xe4   :  { %7445 = vmatpush.bf16.msra.mxu3 %v12346_v39  ;;  %v12641_v39 = vld [vmem:[#allocation5 + $0x1b98] sm:$0xf]  ;;  %v10306_v47 = vor.u32 %v14086_v38, %v10305_v37  ;;  %v14890_v38 = vld [vmem:[#allocation5 + $0x2398] sm:$0xf0] }
  0xe5   :  { %v12642_v50 = vor.u32 %v14670_v40, %v12641_v39  ;;  %v13831_v40 = vld [vmem:[#allocation5 + $0x284] sm:$0xf] }
  0xe6   :  { %7408 = vmatpush.bf16.msra.mxu0 %v9422_v43  ;;  %v7192_v43 = vpop.f32.mrf.mxu3 }
  0xe7   :  { %7421 = vmatpush.bf16.msra.mxu1 %v11758_v48  ;;  %7433 = vmatpush.bf16.msra.mxu2 %v9718_v55  ;;  %v14707_v48 = vld [vmem:[#allocation5 + $0x1de4] sm:$0xf]  ;;  %v10602_v55 = vor.u32 %v14123_v45, %v10599_v46  ;;  %v11190_v46 = vor.u32 %v14306_v35, %v11189_v34  ;;  %v14014_v34 = vld [vmem:[#allocation5 + $0x838] sm:$0xf0]  ;;  %v12357_v35 = vld [vmem:[#allocation5 + $0x1958] sm:$0xf] }
  0xe8   :  { %7446 = vmatpush.bf16.msra.mxu3 %v12054_v57  ;;  %v12938_v56 = vor.u32 %v14707_v48, %v12935_v49  ;;  %v14050_v57 = vld [vmem:[#allocation5 + $0x95c] sm:$0xf]  ;;  %v14415_v43 = vld [vmem:[#allocation5 + $0x14c4] sm:$0xf]  ;;  %v14233_v49 = vld [vmem:[#allocation5 + $0xf10] sm:$0xf0] }
  0xea   :  { %7409 = vmatpush.bf16.msra.mxu0 %v9130_v61  ;;  %v7203_v60 = vpop.f32.mrf.mxu0  ;;  %v10014_v61 = vor.u32 %v14013_v52, %v10013_v51  ;;  %v14817_v51 = vld [vmem:[#allocation5 + $0x2150] sm:$0xf0] }
  0xeb   :  { %7422 = vmatpush.bf16.msra.mxu1 %v11466_v1  ;;  %7434 = vmatpush.bf16.msra.mxu2 %v9426_v8  ;;  %v7216_v1 = vpop.f32.mrf.mxu1  ;;  %v10310_v8 = vor.u32 %v14050_v57, %v10307_v58 }
  0xec   :  { %7447 = vmatpush.bf16.msra.mxu3 %v11762_v9  ;;  %v7217_v5 = vadd.f32 %v7216_v1, %v7203_v60  ;;  %v12646_v9 = vor.u32 %v14634_v62, %v12643_v0  ;;  %v11475_v60 = vld [vmem:[#allocation5 + $0x139c] sm:$0xf0] }
  0xed   :  { %7410 = vmatmul.bf16.vlgmr.msra.gmra.mxu0 %v15028_v59  ;;  %v11191_v62 = vld [vmem:[#allocation5 + $0x115c] sm:$0xf0] }
  0xee   :  { %7454 = vmatpush.bf16.msrb.mxu0 %v11182_v2  ;;  %7423 = vmatmul.bf16.vlgmr.msra.gmra.mxu1 %v15030_v63  ;;  %v12350_v2 = vor.u32 %v14597_v54, %v12349_v53  ;;  %8992 = vst [vmem:[#allocation7 + $0x20] sm:$0xff] %v7217_v5  ;;  %v13758_v54 = vld [vmem:[#allocation5 + $0x3c] sm:$0xf]  ;;  %v10605_v5 = vld [vmem:[#allocation5 + $0xba8] sm:$0xf] }
  0xef   :  { %7467 = vmatpush.bf16.msrb.mxu1 %v13518_v4  ;;  %7435 = vmatpush.bf16.msra.mxu2 %v9134_v25  ;;  %v13940_v4 = vld [vmem:[#allocation5 + $0x5e8] sm:$0xf0]  ;;  %v9430_v25 = vor.u32 %v13867_v17, %v9429_v16  ;;  %v14781_v16 = vld [vmem:[#allocation5 + $0x2034] sm:$0xf]  ;;  %v13235_v17 = vld [vmem:[#allocation5 + $0x2154] sm:$0xf0] }
  0xf0   :  { %7448 = vmatpush.bf16.msra.mxu3 %v11470_v28  ;;  %v9722_v12 = vor.u32 %v13940_v4, %v9721_v3  ;;  %v12059_v28 = vld [vmem:[#allocation5 + $0x182c] sm:$0xf0]  ;;  %v13527_v3 = vld [vmem:[#allocation5 + $0x239c] sm:$0xf0]  ;;  %v13238_v26 = vor.u32 %v14781_v16, %v13235_v17  ;;  %v14307_v17 = vld [vmem:[#allocation5 + $0x1160] sm:$0xf0] }
  0xf1   :  { %v12062_v39 = vor.u32 %v14488_v27, %v12059_v28  ;;  %v14124_v27 = vld [vmem:[#allocation5 + $0xbac] sm:$0xf]  ;;  %v10607_v28 = vld [vmem:[#allocation5 + $0xccc] sm:$0xf0]  ;;  %v11197_v16 = vld [vmem:[#allocation5 + $0x1040] sm:$0xf] }
  0xf2   :  { %7455 = vmatpush.bf16.msrb.mxu0 %v10890_v19  ;;  %7436 = vmatmul.bf16.vlgmr.msra.gmra.mxu2 %v15028_v59  ;;  %v14451_v19 = vld [vmem:[#allocation5 + $0x15e0] sm:$0xf0]  ;;  %v7205_v24 = vpop.f32.mrf.mxu0 }
  0xf3   :  { %7468 = vmatpush.bf16.msrb.mxu1 %v13226_v22  ;;  %7480 = vmatpush.bf16.msrb.mxu2 %v11186_v29  ;;  %v13904_v22 = vld [vmem:[#allocation5 + $0x4cc] sm:$0xf]  ;;  %v7218_v29 = vpop.f32.mrf.mxu1 }
  0xf4   :  { %7493 = vmatpush.bf16.msrb.mxu3 %v13522_v30  ;;  %v11766_v30 = vor.u32 %v14451_v19, %v11765_v18  ;;  %v9726_v37 = vor.u32 %v13904_v22, %v9723_v23  ;;  %v10313_v19 = vld [vmem:[#allocation5 + $0x960] sm:$0xf]  ;;  %v14671_v22 = vld [vmem:[#allocation5 + $0x1cc0] sm:$0xf0]  ;;  %v10902_v23 = vor.u32 %v14197_v13, %v10899_v14 }
  0xf5   :  { %7449 = vmatmul.bf16.vlgmr.msra.gmra.mxu3 %v15030_v63  ;;  %v7229_v57 = vpop.f32.mrf.mxu2  ;;  %v13795_v13 = vld [vmem:[#allocation5 + $0x160] sm:$0xf0]  ;;  %v11481_v14 = vld [vmem:[#allocation5 + $0x1280] sm:$0xf] }
  0xf6   :  { %7456 = vmatpush.bf16.msrb.mxu0 %v10598_v33  ;;  %v14378_v33 = vld [vmem:[#allocation5 + $0x1398] sm:$0xf0] }
  0xf7   :  { %7469 = vmatpush.bf16.msrb.mxu1 %v12934_v36  ;;  %7481 = vmatpush.bf16.msrb.mxu2 %v10894_v41  ;;  %v13525_v36 = vld [vmem:[#allocation5 + $0x2278] sm:$0xf]  ;;  %v9431_v41 = vld [vmem:[#allocation5 + $0x3a4] sm:$0xf0]  ;;  %v11474_v45 = vor.u32 %v14378_v33, %v11473_v32 }
  0xf8   :  { %7494 = vmatpush.bf16.msrb.mxu3 %v13230_v44  ;;  %v11767_v44 = vld [vmem:[#allocation5 + $0x15e4] sm:$0xf0]  ;;  %v13526_v48 = vor.u32 %v14890_v38, %v13525_v36  ;;  %v9434_v52 = vor.u32 %v13831_v40, %v9431_v41  ;;  %v7242_v58 = vpop.f32.mrf.mxu3  ;;  %v10021_v33 = vld [vmem:[#allocation5 + $0x718] sm:$0xf]  ;;  %v14598_v36 = vld [vmem:[#allocation5 + $0x1a78] sm:$0xf0] }
  0xf9   :  { %v11770_v53 = vor.u32 %v14415_v43, %v11767_v44  ;;  %v7243_v0 = vadd.f32 %v7242_v58, %v7229_v57  ;;  %v10315_v40 = vld [vmem:[#allocation5 + $0xa84] sm:$0xf0]  ;;  %v14635_v43 = vld [vmem:[#allocation5 + $0x1ba4] sm:$0xf]  ;;  %v14562_v57 = vld [vmem:[#allocation5 + $0x195c] sm:$0xf] }
  0xfa   :  { %7457 = vmatpush.bf16.msrb.mxu0 %v10306_v47  ;;  %v10897_v47 = vld [vmem:[#allocation5 + $0xdf0] sm:$0xf]  ;;  %v12651_v44 = vld [vmem:[#allocation5 + $0x1cc4] sm:$0xf0]  ;;  %v12359_v58 = vld [vmem:[#allocation5 + $0x1a7c] sm:$0xf0] }
  0xfb   :  { %7470 = vmatpush.bf16.msrb.mxu1 %v12642_v50  ;;  %7482 = vmatpush.bf16.msrb.mxu2 %v10602_v55  ;;  %v13233_v50 = vld [vmem:[#allocation5 + $0x2030] sm:$0xf]  ;;  %v9139_v55 = vld [vmem:[#allocation5 + $0x15c] sm:$0xf0]  ;;  %v10898_v1 = vor.u32 %v14233_v49, %v10897_v47  ;;  %8993 = vst [vmem:[#allocation7 + $0x28] sm:$0xff] %v7243_v0 }
  0xfc   :  { %7495 = vmatpush.bf16.msrb.mxu3 %v12938_v56  ;;  %v14342_v56 = vld [vmem:[#allocation5 + $0x127c] sm:$0xf]  ;;  %v13234_v4 = vor.u32 %v14817_v51, %v13233_v50  ;;  %v9142_v7 = vor.u32 %v13758_v54, %v9139_v55  ;;  %v9729_v47 = vld [vmem:[#allocation5 + $0x4d0] sm:$0xf]  ;;  %v14525_v51 = vld [vmem:[#allocation5 + $0x1830] sm:$0xf0] }
  0xfd   :  { %v11478_v10 = vor.u32 %v14342_v56, %v11475_v60  ;;  %v7231_v24 = vpop.f32.mrf.mxu2  ;;  %v12065_v50 = vld [vmem:[#allocation5 + $0x1710] sm:$0xf]  ;;  %v13978_v54 = vld [vmem:[#allocation5 + $0x71c] sm:$0xf]  ;;  %v10023_v55 = vld [vmem:[#allocation5 + $0x83c] sm:$0xf0] }
  0xfe   :  { %7458 = vmatpush.bf16.msrb.mxu0 %v10014_v61  ;;  %v14270_v61 = vld [vmem:[#allocation5 + $0x103c] sm:$0xf]  ;;  %v12066_v60 = vor.u32 %v14525_v51, %v12065_v50  ;;  %v11773_v0 = vld [vmem:[#allocation5 + $0x14c8] sm:$0xf]  ;;  %v14161_v50 = vld [vmem:[#allocation5 + $0xcd0] sm:$0xf0] }
  0xff   :  { %7471 = vmatpush.bf16.msrb.mxu1 %v12350_v2  ;;  %7483 = vmatpush.bf16.msrb.mxu2 %v10310_v8  ;;  %v14854_v2 = vld [vmem:[#allocation5 + $0x227c] sm:$0xf]  ;;  %v12941_v8 = vld [vmem:[#allocation5 + $0x1de8] sm:$0xf]  ;;  %v11194_v11 = vor.u32 %v14270_v61, %v11191_v62  ;;  %v13868_v62 = vld [vmem:[#allocation5 + $0x3a8] sm:$0xf0] }
 0x100   :  { %7496 = vmatpush.bf16.msrb.mxu3 %v12646_v9  ;;  %v14744_v9 = vld [vmem:[#allocation5 + $0x1f08] sm:$0xf0]  ;;  %v9437_v61 = vld [vmem:[#allocation5 + $0x288] sm:$0xf] }
 0x101   :  { %v12942_v18 = vor.u32 %v14744_v9, %v12941_v8  ;;  %v9145_v8 = vld [vmem:[#allocation5 + $0x40] sm:$0xf]  ;;  %v14489_v9 = vld [vmem:[#allocation5 + $0x1714] sm:$0xf] }
 0x102   :  { %7459 = vmatpush.bf16.msrb.mxu0 %v9722_v12  ;;  %v13530_v12 = vor.u32 %v14854_v2, %v13527_v3  ;;  %v10026_v2 = vor.u32 %v13978_v54, %v10023_v55  ;;  %v12362_v3 = vor.u32 %v14562_v57, %v12359_v58  ;;  %v9146_v24 = vor.u32 %v13795_v13, %v9145_v8  ;;  %v14198_v57 = vld [vmem:[#allocation5 + $0xdfc] sm:$0xf]  ;;  %v10907_v58 = vld [vmem:[#allocation5 + $0xf1c] sm:$0xf0]  ;;  %v12951_v13 = vld [vmem:[#allocation5 + $0x1f14] sm:$0xf0] }
 0x103   :  { %7472 = vmatpush.bf16.msrb.mxu1 %v12058_v15  ;;  %7484 = vmatpush.bf16.msrb.mxu2 %v10018_v20  ;;  %v10606_v15 = vor.u32 %v14160_v6, %v10605_v5  ;;  %v14087_v20 = vld [vmem:[#allocation5 + $0xa80] sm:$0xf0]  ;;  %v9731_v5 = vld [vmem:[#allocation5 + $0x5f4] sm:$0xf0] }
 0x104   :  { %7497 = vmatpush.bf16.msrb.mxu3 %v12354_v21  ;;  %v12649_v21 = vld [vmem:[#allocation5 + $0x1ba0] sm:$0xf]  ;;  %v10314_v29 = vor.u32 %v14087_v20, %v10313_v19  ;;  %v14891_v20 = vld [vmem:[#allocation5 + $0x23a0] sm:$0xf0] }
 0x105   :  { %v12650_v32 = vor.u32 %v14671_v22, %v12649_v21  ;;  %v13832_v22 = vld [vmem:[#allocation5 + $0x28c] sm:$0xf] }
 0x106   :  { %7460 = vmatpush.bf16.msrb.mxu0 %v9430_v25  ;;  %v7244_v25 = vpop.f32.mrf.mxu3 }
 0x107   :  { %7473 = vmatpush.bf16.msrb.mxu1 %v11766_v30  ;;  %7485 = vmatpush.bf16.msrb.mxu2 %v9726_v37  ;;  %v14708_v30 = vld [vmem:[#allocation5 + $0x1dec] sm:$0xf]  ;;  %v10610_v37 = vor.u32 %v14124_v27, %v10607_v28  ;;  %v11198_v28 = vor.u32 %v14307_v17, %v11197_v16  ;;  %v14015_v16 = vld [vmem:[#allocation5 + $0x840] sm:$0xf0]  ;;  %v12365_v17 = vld [vmem:[#allocation5 + $0x1960] sm:$0xf] }
 0x108   :  { %7498 = vmatpush.bf16.msrb.mxu3 %v12062_v39  ;;  %v12946_v38 = vor.u32 %v14708_v30, %v12943_v31  ;;  %v14051_v39 = vld [vmem:[#allocation5 + $0x964] sm:$0xf]  ;;  %v14416_v25 = vld [vmem:[#allocation5 + $0x14cc] sm:$0xf]  ;;  %v14234_v31 = vld [vmem:[#allocation5 + $0xf18] sm:$0xf0] }
 0x10a   :  { %7461 = vmatpush.bf16.msrb.mxu0 %v9138_v42  ;;  %v7255_v41 = vpop.f32.mrf.mxu0  ;;  %v10022_v42 = vor.u32 %v14014_v34, %v10021_v33  ;;  %v14818_v33 = vld [vmem:[#allocation5 + $0x2158] sm:$0xf0] }
 0x10b   :  { %7474 = vmatpush.bf16.msrb.mxu1 %v11474_v45  ;;  %7486 = vmatpush.bf16.msrb.mxu2 %v9434_v52  ;;  %v7268_v45 = vpop.f32.mrf.mxu1  ;;  %v10318_v52 = vor.u32 %v14051_v39, %v10315_v40 }
 0x10c   :  { %7499 = vmatpush.bf16.msrb.mxu3 %v11770_v53  ;;  %v7269_v49 = vadd.f32 %v7268_v45, %v7255_v41  ;;  %v12654_v53 = vor.u32 %v14635_v43, %v12651_v44  ;;  %v11483_v41 = vld [vmem:[#allocation5 + $0x13a4] sm:$0xf0] }
 0x10d   :  { %7462 = vmatmul.bf16.vlgmr.msrb.gmra.mxu0 %v15028_v59  ;;  %v11199_v43 = vld [vmem:[#allocation5 + $0x1164] sm:$0xf0] }
 0x10e   :  { %7506 = vmatpush.bf16.msra.mxu0 %v11190_v46  ;;  %7475 = vmatmul.bf16.vlgmr.msrb.gmra.mxu1 %v15030_v63  ;;  %v12358_v46 = vor.u32 %v14598_v36, %v12357_v35  ;;  %8994 = vst [vmem:[#allocation7 + $0x30] sm:$0xff] %v7269_v49  ;;  %v13759_v36 = vld [vmem:[#allocation5 + $0x44] sm:$0xf]  ;;  %v10613_v49 = vld [vmem:[#allocation5 + $0xbb0] sm:$0xf] }
 0x10f   :  { %7519 = vmatpush.bf16.msra.mxu1 %v13526_v48  ;;  %7487 = vmatpush.bf16.msrb.mxu2 %v9142_v7  ;;  %v13941_v48 = vld [vmem:[#allocation5 + $0x5f0] sm:$0xf0]  ;;  %v9438_v7 = vor.u32 %v13868_v62, %v9437_v61  ;;  %v14782_v61 = vld [vmem:[#allocation5 + $0x203c] sm:$0xf]  ;;  %v13243_v62 = vld [vmem:[#allocation5 + $0x215c] sm:$0xf0] }
 0x110   :  { %7500 = vmatpush.bf16.msrb.mxu3 %v11478_v10  ;;  %v9730_v56 = vor.u32 %v13941_v48, %v9729_v47  ;;  %v12067_v10 = vld [vmem:[#allocation5 + $0x1834] sm:$0xf0]  ;;  %v13535_v47 = vld [vmem:[#allocation5 + $0x23a4] sm:$0xf0]  ;;  %v13246_v8 = vor.u32 %v14782_v61, %v13243_v62  ;;  %v14308_v62 = vld [vmem:[#allocation5 + $0x1168] sm:$0xf0] }
 0x111   :  { %v12070_v21 = vor.u32 %v14489_v9, %v12067_v10  ;;  %v14125_v9 = vld [vmem:[#allocation5 + $0xbb4] sm:$0xf]  ;;  %v10615_v10 = vld [vmem:[#allocation5 + $0xcd4] sm:$0xf0]  ;;  %v11205_v61 = vld [vmem:[#allocation5 + $0x1048] sm:$0xf] }
 0x112   :  { %7507 = vmatpush.bf16.msra.mxu0 %v10898_v1  ;;  %7488 = vmatmul.bf16.vlgmr.msrb.gmra.mxu2 %v15028_v59  ;;  %v14452_v1 = vld [vmem:[#allocation5 + $0x15e8] sm:$0xf0]  ;;  %v7257_v6 = vpop.f32.mrf.mxu0 }
 0x113   :  { %7520 = vmatpush.bf16.msra.mxu1 %v13234_v4  ;;  %7532 = vmatpush.bf16.msra.mxu2 %v11194_v11  ;;  %v13905_v4 = vld [vmem:[#allocation5 + $0x4d4] sm:$0xf]  ;;  %v7270_v11 = vpop.f32.mrf.mxu1 }
 0x114   :  { %7545 = vmatpush.bf16.msra.mxu3 %v13530_v12  ;;  %v11774_v12 = vor.u32 %v14452_v1, %v11773_v0  ;;  %v9734_v19 = vor.u32 %v13905_v4, %v9731_v5  ;;  %v10321_v1 = vld [vmem:[#allocation5 + $0x968] sm:$0xf]  ;;  %v14672_v4 = vld [vmem:[#allocation5 + $0x1cc8] sm:$0xf0]  ;;  %v10910_v5 = vor.u32 %v14198_v57, %v10907_v58 }
 0x115   :  { %7501 = vmatmul.bf16.vlgmr.msrb.gmra.mxu3 %v15030_v63  ;;  %v7281_v39 = vpop.f32.mrf.mxu2  ;;  %v13796_v57 = vld [vmem:[#allocation5 + $0x168] sm:$0xf0]  ;;  %v11489_v58 = vld [vmem:[#allocation5 + $0x1288] sm:$0xf] }
 0x116   :  { %7508 = vmatpush.bf16.msra.mxu0 %v10606_v15  ;;  %v14379_v15 = vld [vmem:[#allocation5 + $0x13a0] sm:$0xf0] }
 0x117   :  { %7521 = vmatpush.bf16.msra.mxu1 %v12942_v18  ;;  %7533 = vmatpush.bf16.msra.mxu2 %v10902_v23  ;;  %v13533_v18 = vld [vmem:[#allocation5 + $0x2280] sm:$0xf]  ;;  %v9439_v23 = vld [vmem:[#allocation5 + $0x3ac] sm:$0xf0]  ;;  %v11482_v27 = vor.u32 %v14379_v15, %v11481_v14 }
 0x118   :  { %7546 = vmatpush.bf16.msra.mxu3 %v13238_v26  ;;  %v11775_v26 = vld [vmem:[#allocation5 + $0x15ec] sm:$0xf0]  ;;  %v13534_v30 = vor.u32 %v14891_v20, %v13533_v18  ;;  %v9442_v34 = vor.u32 %v13832_v22, %v9439_v23  ;;  %v7294_v40 = vpop.f32.mrf.mxu3  ;;  %v10029_v15 = vld [vmem:[#allocation5 + $0x720] sm:$0xf]  ;;  %v14599_v18 = vld [vmem:[#allocation5 + $0x1a80] sm:$0xf0] }
 0x119   :  { %v11778_v35 = vor.u32 %v14416_v25, %v11775_v26  ;;  %v7295_v44 = vadd.f32 %v7294_v40, %v7281_v39  ;;  %v10323_v22 = vld [vmem:[#allocation5 + $0xa8c] sm:$0xf0]  ;;  %v14636_v25 = vld [vmem:[#allocation5 + $0x1bac] sm:$0xf]  ;;  %v14563_v39 = vld [vmem:[#allocation5 + $0x1964] sm:$0xf] }
 0x11a   :  { %7509 = vmatpush.bf16.msra.mxu0 %v10314_v29  ;;  %v10905_v29 = vld [vmem:[#allocation5 + $0xdf8] sm:$0xf]  ;;  %v12659_v26 = vld [vmem:[#allocation5 + $0x1ccc] sm:$0xf0]  ;;  %v12367_v40 = vld [vmem:[#allocation5 + $0x1a84] sm:$0xf0] }
 0x11b   :  { %7522 = vmatpush.bf16.msra.mxu1 %v12650_v32  ;;  %7534 = vmatpush.bf16.msra.mxu2 %v10610_v37  ;;  %v13241_v32 = vld [vmem:[#allocation5 + $0x2038] sm:$0xf]  ;;  %v9147_v37 = vld [vmem:[#allocation5 + $0x164] sm:$0xf0]  ;;  %v10906_v45 = vor.u32 %v14234_v31, %v10905_v29  ;;  %8995 = vst [vmem:[#allocation7 + $0x38] sm:$0xff] %v7295_v44 }
 0x11c   :  { %7547 = vmatpush.bf16.msra.mxu3 %v12946_v38  ;;  %v14343_v38 = vld [vmem:[#allocation5 + $0x1284] sm:$0xf]  ;;  %v13242_v48 = vor.u32 %v14818_v33, %v13241_v32  ;;  %v9150_v51 = vor.u32 %v13759_v36, %v9147_v37  ;;  %v9737_v29 = vld [vmem:[#allocation5 + $0x4d8] sm:$0xf]  ;;  %v14526_v33 = vld [vmem:[#allocation5 + $0x1838] sm:$0xf0] }
 0x11d   :  { %v11486_v54 = vor.u32 %v14343_v38, %v11483_v41  ;;  %v7283_v6 = vpop.f32.mrf.mxu2  ;;  %v12073_v32 = vld [vmem:[#allocation5 + $0x1718] sm:$0xf]  ;;  %v13979_v36 = vld [vmem:[#allocation5 + $0x724] sm:$0xf]  ;;  %v10031_v37 = vld [vmem:[#allocation5 + $0x844] sm:$0xf0] }
 0x11e   :  { %7510 = vmatpush.bf16.msra.mxu0 %v10022_v42  ;;  %v14271_v42 = vld [vmem:[#allocation5 + $0x1044] sm:$0xf]  ;;  %v12074_v41 = vor.u32 %v14526_v33, %v12073_v32  ;;  %v11781_v44 = vld [vmem:[#allocation5 + $0x14d0] sm:$0xf]  ;;  %v14162_v32 = vld [vmem:[#allocation5 + $0xcd8] sm:$0xf0] }
 0x11f   :  { %7523 = vmatpush.bf16.msra.mxu1 %v12358_v46  ;;  %7535 = vmatpush.bf16.msra.mxu2 %v10318_v52  ;;  %v14855_v46 = vld [vmem:[#allocation5 + $0x2284] sm:$0xf]  ;;  %v12949_v52 = vld [vmem:[#allocation5 + $0x1df0] sm:$0xf]  ;;  %v11202_v55 = vor.u32 %v14271_v42, %v11199_v43  ;;  %v13869_v43 = vld [vmem:[#allocation5 + $0x3b0] sm:$0xf0] }
 0x120   :  { %7548 = vmatpush.bf16.msra.mxu3 %v12654_v53  ;;  %v14745_v53 = vld [vmem:[#allocation5 + $0x1f10] sm:$0xf0]  ;;  %v9445_v42 = vld [vmem:[#allocation5 + $0x290] sm:$0xf] }
 0x121   :  { %v12950_v0 = vor.u32 %v14745_v53, %v12949_v52  ;;  %v9153_v52 = vld [vmem:[#allocation5 + $0x48] sm:$0xf]  ;;  %v14490_v53 = vld [vmem:[#allocation5 + $0x171c] sm:$0xf] }
 0x122   :  { %7511 = vmatpush.bf16.msra.mxu0 %v9730_v56  ;;  %v13538_v56 = vor.u32 %v14855_v46, %v13535_v47  ;;  %v10034_v46 = vor.u32 %v13979_v36, %v10031_v37  ;;  %v12370_v47 = vor.u32 %v14563_v39, %v12367_v40  ;;  %v9154_v6 = vor.u32 %v13796_v57, %v9153_v52  ;;  %v14199_v39 = vld [vmem:[#allocation5 + $0xe04] sm:$0xf]  ;;  %v10915_v40 = vld [vmem:[#allocation5 + $0xf24] sm:$0xf0]  ;;  %v12959_v57 = vld [vmem:[#allocation5 + $0x1f1c] sm:$0xf0] }
 0x123   :  { %7524 = vmatpush.bf16.msra.mxu1 %v12066_v60  ;;  %7536 = vmatpush.bf16.msra.mxu2 %v10026_v2  ;;  %v10614_v60 = vor.u32 %v14161_v50, %v10613_v49  ;;  %v14088_v2 = vld [vmem:[#allocation5 + $0xa88] sm:$0xf0]  ;;  %v9739_v49 = vld [vmem:[#allocation5 + $0x5fc] sm:$0xf0] }
 0x124   :  { %7549 = vmatpush.bf16.msra.mxu3 %v12362_v3  ;;  %v12657_v3 = vld [vmem:[#allocation5 + $0x1ba8] sm:$0xf]  ;;  %v10322_v11 = vor.u32 %v14088_v2, %v10321_v1  ;;  %v14892_v2 = vld [vmem:[#allocation5 + $0x23a8] sm:$0xf0] }
 0x125   :  { %v12658_v14 = vor.u32 %v14672_v4, %v12657_v3  ;;  %v13833_v4 = vld [vmem:[#allocation5 + $0x294] sm:$0xf] }
 0x126   :  { %7512 = vmatpush.bf16.msra.mxu0 %v9438_v7  ;;  %v7296_v7 = vpop.f32.mrf.mxu3 }
 0x127   :  { %7525 = vmatpush.bf16.msra.mxu1 %v11774_v12  ;;  %7537 = vmatpush.bf16.msra.mxu2 %v9734_v19  ;;  %v14709_v12 = vld [vmem:[#allocation5 + $0x1df4] sm:$0xf]  ;;  %v10618_v19 = vor.u32 %v14125_v9, %v10615_v10  ;;  %v11206_v10 = vor.u32 %v14308_v62, %v11205_v61  ;;  %v14016_v61 = vld [vmem:[#allocation5 + $0x848] sm:$0xf0]  ;;  %v12373_v62 = vld [vmem:[#allocation5 + $0x1968] sm:$0xf] }
 0x128   :  { %7550 = vmatpush.bf16.msra.mxu3 %v12070_v21  ;;  %v12954_v20 = vor.u32 %v14709_v12, %v12951_v13  ;;  %v14052_v21 = vld [vmem:[#allocation5 + $0x96c] sm:$0xf]  ;;  %v14417_v7 = vld [vmem:[#allocation5 + $0x14d4] sm:$0xf]  ;;  %v14235_v13 = vld [vmem:[#allocation5 + $0xf20] sm:$0xf0] }
 0x12a   :  { %7513 = vmatpush.bf16.msra.mxu0 %v9146_v24  ;;  %v7307_v23 = vpop.f32.mrf.mxu0  ;;  %v10030_v24 = vor.u32 %v14015_v16, %v10029_v15  ;;  %v14819_v15 = vld [vmem:[#allocation5 + $0x2160] sm:$0xf0] }
 0x12b   :  { %7526 = vmatpush.bf16.msra.mxu1 %v11482_v27  ;;  %7538 = vmatpush.bf16.msra.mxu2 %v9442_v34  ;;  %v7320_v27 = vpop.f32.mrf.mxu1  ;;  %v10326_v34 = vor.u32 %v14052_v21, %v10323_v22 }
 0x12c   :  { %7551 = vmatpush.bf16.msra.mxu3 %v11778_v35  ;;  %v7321_v31 = vadd.f32 %v7320_v27, %v7307_v23  ;;  %v12662_v35 = vor.u32 %v14636_v25, %v12659_v26  ;;  %v11491_v23 = vld [vmem:[#allocation5 + $0x13ac] sm:$0xf0] }
 0x12d   :  { %7514 = vmatmul.bf16.vlgmr.msra.gmra.mxu0 %v15028_v59  ;;  %v11207_v25 = vld [vmem:[#allocation5 + $0x116c] sm:$0xf0] }
 0x12e   :  { %7558 = vmatpush.bf16.msrb.mxu0 %v11198_v28  ;;  %7527 = vmatmul.bf16.vlgmr.msra.gmra.mxu1 %v15030_v63  ;;  %v12366_v28 = vor.u32 %v14599_v18, %v12365_v17  ;;  %8996 = vst [vmem:[#allocation7 + $0x40] sm:$0xff] %v7321_v31  ;;  %v13760_v18 = vld [vmem:[#allocation5 + $0x4c] sm:$0xf]  ;;  %v10621_v31 = vld [vmem:[#allocation5 + $0xbb8] sm:$0xf] }
 0x12f   :  { %7571 = vmatpush.bf16.msrb.mxu1 %v13534_v30  ;;  %7539 = vmatpush.bf16.msra.mxu2 %v9150_v51  ;;  %v13942_v30 = vld [vmem:[#allocation5 + $0x5f8] sm:$0xf0]  ;;  %v9446_v51 = vor.u32 %v13869_v43, %v9445_v42  ;;  %v14783_v42 = vld [vmem:[#allocation5 + $0x2044] sm:$0xf]  ;;  %v13251_v43 = vld [vmem:[#allocation5 + $0x2164] sm:$0xf0] }
 0x130   :  { %7552 = vmatpush.bf16.msra.mxu3 %v11486_v54  ;;  %v9738_v38 = vor.u32 %v13942_v30, %v9737_v29  ;;  %v12075_v54 = vld [vmem:[#allocation5 + $0x183c] sm:$0xf0]  ;;  %v13543_v29 = vld [vmem:[#allocation5 + $0x23ac] sm:$0xf0]  ;;  %v13254_v52 = vor.u32 %v14783_v42, %v13251_v43  ;;  %v14309_v43 = vld [vmem:[#allocation5 + $0x1170] sm:$0xf0] }
 0x131   :  { %v12078_v3 = vor.u32 %v14490_v53, %v12075_v54  ;;  %v14126_v53 = vld [vmem:[#allocation5 + $0xbbc] sm:$0xf]  ;;  %v10623_v54 = vld [vmem:[#allocation5 + $0xcdc] sm:$0xf0]  ;;  %v11213_v42 = vld [vmem:[#allocation5 + $0x1050] sm:$0xf] }
 0x132   :  { %7559 = vmatpush.bf16.msrb.mxu0 %v10906_v45  ;;  %7540 = vmatmul.bf16.vlgmr.msra.gmra.mxu2 %v15028_v59  ;;  %v14453_v45 = vld [vmem:[#allocation5 + $0x15f0] sm:$0xf0]  ;;  %v7309_v50 = vpop.f32.mrf.mxu0 }
 0x133   :  { %7572 = vmatpush.bf16.msrb.mxu1 %v13242_v48  ;;  %7584 = vmatpush.bf16.msrb.mxu2 %v11202_v55  ;;  %v13906_v48 = vld [vmem:[#allocation5 + $0x4dc] sm:$0xf]  ;;  %v7322_v55 = vpop.f32.mrf.mxu1 }
 0x134   :  { %7597 = vmatpush.bf16.msrb.mxu3 %v13538_v56  ;;  %v11782_v56 = vor.u32 %v14453_v45, %v11781_v44  ;;  %v9742_v1 = vor.u32 %v13906_v48, %v9739_v49  ;;  %v10329_v45 = vld [vmem:[#allocation5 + $0x970] sm:$0xf]  ;;  %v14673_v48 = vld [vmem:[#allocation5 + $0x1cd0] sm:$0xf0]  ;;  %v10918_v49 = vor.u32 %v14199_v39, %v10915_v40 }
 0x135   :  { %7553 = vmatmul.bf16.vlgmr.msra.gmra.mxu3 %v15030_v63  ;;  %v7333_v21 = vpop.f32.mrf.mxu2  ;;  %v13797_v39 = vld [vmem:[#allocation5 + $0x170] sm:$0xf0]  ;;  %v11497_v40 = vld [vmem:[#allocation5 + $0x1290] sm:$0xf] }
 0x136   :  { %7560 = vmatpush.bf16.msrb.mxu0 %v10614_v60  ;;  %v14380_v60 = vld [vmem:[#allocation5 + $0x13a8] sm:$0xf0] }
 0x137   :  { %7573 = vmatpush.bf16.msrb.mxu1 %v12950_v0  ;;  %7585 = vmatpush.bf16.msrb.mxu2 %v10910_v5  ;;  %v13541_v0 = vld [vmem:[#allocation5 + $0x2288] sm:$0xf]  ;;  %v9447_v5 = vld [vmem:[#allocation5 + $0x3b4] sm:$0xf0]  ;;  %v11490_v9 = vor.u32 %v14380_v60, %v11489_v58 }
 0x138   :  { %7598 = vmatpush.bf16.msrb.mxu3 %v13246_v8  ;;  %v11783_v8 = vld [vmem:[#allocation5 + $0x15f4] sm:$0xf0]  ;;  %v13542_v12 = vor.u32 %v14892_v2, %v13541_v0  ;;  %v9450_v16 = vor.u32 %v13833_v4, %v9447_v5  ;;  %v7346_v22 = vpop.f32.mrf.mxu3  ;;  %v10037_v60 = vld [vmem:[#allocation5 + $0x728] sm:$0xf]  ;;  %v14600_v0 = vld [vmem:[#allocation5 + $0x1a88] sm:$0xf0] }
 0x139   :  { %v11786_v17 = vor.u32 %v14417_v7, %v11783_v8  ;;  %v7347_v26 = vadd.f32 %v7346_v22, %v7333_v21  ;;  %v10331_v4 = vld [vmem:[#allocation5 + $0xa94] sm:$0xf0]  ;;  %v14637_v7 = vld [vmem:[#allocation5 + $0x1bb4] sm:$0xf]  ;;  %v14564_v21 = vld [vmem:[#allocation5 + $0x196c] sm:$0xf] }
 0x13a   :  { %7561 = vmatpush.bf16.msrb.mxu0 %v10322_v11  ;;  %v10913_v11 = vld [vmem:[#allocation5 + $0xe00] sm:$0xf]  ;;  %v12667_v8 = vld [vmem:[#allocation5 + $0x1cd4] sm:$0xf0]  ;;  %v12375_v22 = vld [vmem:[#allocation5 + $0x1a8c] sm:$0xf0] }
 0x13b   :  { %7574 = vmatpush.bf16.msrb.mxu1 %v12658_v14  ;;  %7586 = vmatpush.bf16.msrb.mxu2 %v10618_v19  ;;  %v13249_v14 = vld [vmem:[#allocation5 + $0x2040] sm:$0xf]  ;;  %v9155_v19 = vld [vmem:[#allocation5 + $0x16c] sm:$0xf0]  ;;  %v10914_v27 = vor.u32 %v14235_v13, %v10913_v11  ;;  %8997 = vst [vmem:[#allocation7 + $0x48] sm:$0xff] %v7347_v26 }
 0x13c   :  { %7599 = vmatpush.bf16.msrb.mxu3 %v12954_v20  ;;  %v14344_v20 = vld [vmem:[#allocation5 + $0x128c] sm:$0xf]  ;;  %v13250_v30 = vor.u32 %v14819_v15, %v13249_v14  ;;  %v9158_v33 = vor.u32 %v13760_v18, %v9155_v19  ;;  %v9745_v11 = vld [vmem:[#allocation5 + $0x4e0] sm:$0xf]  ;;  %v14527_v15 = vld [vmem:[#allocation5 + $0x1840] sm:$0xf0] }
 0x13d   :  { %v11494_v36 = vor.u32 %v14344_v20, %v11491_v23  ;;  %v7335_v50 = vpop.f32.mrf.mxu2  ;;  %v12081_v14 = vld [vmem:[#allocation5 + $0x1720] sm:$0xf]  ;;  %v13980_v18 = vld [vmem:[#allocation5 + $0x72c] sm:$0xf]  ;;  %v10039_v19 = vld [vmem:[#allocation5 + $0x84c] sm:$0xf0] }
 0x13e   :  { %7562 = vmatpush.bf16.msrb.mxu0 %v10030_v24  ;;  %v14272_v24 = vld [vmem:[#allocation5 + $0x104c] sm:$0xf]  ;;  %v12082_v23 = vor.u32 %v14527_v15, %v12081_v14  ;;  %v11789_v26 = vld [vmem:[#allocation5 + $0x14d8] sm:$0xf]  ;;  %v14163_v14 = vld [vmem:[#allocation5 + $0xce0] sm:$0xf0] }
 0x13f   :  { %7575 = vmatpush.bf16.msrb.mxu1 %v12366_v28  ;;  %7587 = vmatpush.bf16.msrb.mxu2 %v10326_v34  ;;  %v14856_v28 = vld [vmem:[#allocation5 + $0x228c] sm:$0xf]  ;;  %v12957_v34 = vld [vmem:[#allocation5 + $0x1df8] sm:$0xf]  ;;  %v11210_v37 = vor.u32 %v14272_v24, %v11207_v25  ;;  %v13870_v25 = vld [vmem:[#allocation5 + $0x3b8] sm:$0xf0] }
 0x140   :  { %7600 = vmatpush.bf16.msrb.mxu3 %v12662_v35  ;;  %v14746_v35 = vld [vmem:[#allocation5 + $0x1f18] sm:$0xf0]  ;;  %v9453_v24 = vld [vmem:[#allocation5 + $0x298] sm:$0xf] }
 0x141   :  { %v12958_v44 = vor.u32 %v14746_v35, %v12957_v34  ;;  %v9161_v34 = vld [vmem:[#allocation5 + $0x50] sm:$0xf]  ;;  %v14491_v35 = vld [vmem:[#allocation5 + $0x1724] sm:$0xf] }
 0x142   :  { %7563 = vmatpush.bf16.msrb.mxu0 %v9738_v38  ;;  %v13546_v38 = vor.u32 %v14856_v28, %v13543_v29  ;;  %v10042_v28 = vor.u32 %v13980_v18, %v10039_v19  ;;  %v12378_v29 = vor.u32 %v14564_v21, %v12375_v22  ;;  %v9162_v50 = vor.u32 %v13797_v39, %v9161_v34  ;;  %v14200_v21 = vld [vmem:[#allocation5 + $0xe0c] sm:$0xf]  ;;  %v10923_v22 = vld [vmem:[#allocation5 + $0xf2c] sm:$0xf0]  ;;  %v12967_v39 = vld [vmem:[#allocation5 + $0x1f24] sm:$0xf0] }
 0x143   :  { %7576 = vmatpush.bf16.msrb.mxu1 %v12074_v41  ;;  %7588 = vmatpush.bf16.msrb.mxu2 %v10034_v46  ;;  %v10622_v41 = vor.u32 %v14162_v32, %v10621_v31  ;;  %v14089_v46 = vld [vmem:[#allocation5 + $0xa90] sm:$0xf0]  ;;  %v9747_v31 = vld [vmem:[#allocation5 + $0x604] sm:$0xf0] }
 0x144   :  { %7601 = vmatpush.bf16.msrb.mxu3 %v12370_v47  ;;  %v12665_v47 = vld [vmem:[#allocation5 + $0x1bb0] sm:$0xf]  ;;  %v10330_v55 = vor.u32 %v14089_v46, %v10329_v45  ;;  %v14893_v46 = vld [vmem:[#allocation5 + $0x23b0] sm:$0xf0] }
 0x145   :  { %v12666_v58 = vor.u32 %v14673_v48, %v12665_v47  ;;  %v13834_v48 = vld [vmem:[#allocation5 + $0x29c] sm:$0xf] }
 0x146   :  { %7564 = vmatpush.bf16.msrb.mxu0 %v9446_v51  ;;  %v7348_v51 = vpop.f32.mrf.mxu3 }
 0x147   :  { %7577 = vmatpush.bf16.msrb.mxu1 %v11782_v56  ;;  %7589 = vmatpush.bf16.msrb.mxu2 %v9742_v1  ;;  %v14710_v56 = vld [vmem:[#allocation5 + $0x1dfc] sm:$0xf]  ;;  %v10626_v1 = vor.u32 %v14126_v53, %v10623_v54  ;;  %v11214_v54 = vor.u32 %v14309_v43, %v11213_v42  ;;  %v14017_v42 = vld [vmem:[#allocation5 + $0x850] sm:$0xf0]  ;;  %v12381_v43 = vld [vmem:[#allocation5 + $0x1970] sm:$0xf] }
 0x148   :  { %7602 = vmatpush.bf16.msrb.mxu3 %v12078_v3  ;;  %v12962_v2 = vor.u32 %v14710_v56, %v12959_v57  ;;  %v14053_v3 = vld [vmem:[#allocation5 + $0x974] sm:$0xf]  ;;  %v14418_v51 = vld [vmem:[#allocation5 + $0x14dc] sm:$0xf]  ;;  %v14236_v57 = vld [vmem:[#allocation5 + $0xf28] sm:$0xf0] }
 0x14a   :  { %7565 = vmatpush.bf16.msrb.mxu0 %v9154_v6  ;;  %v7359_v5 = vpop.f32.mrf.mxu0  ;;  %v10038_v6 = vor.u32 %v14016_v61, %v10037_v60  ;;  %v14820_v60 = vld [vmem:[#allocation5 + $0x2168] sm:$0xf0] }
 0x14b   :  { %7578 = vmatpush.bf16.msrb.mxu1 %v11490_v9  ;;  %7590 = vmatpush.bf16.msrb.mxu2 %v9450_v16  ;;  %v7372_v9 = vpop.f32.mrf.mxu1  ;;  %v10334_v16 = vor.u32 %v14053_v3, %v10331_v4 }
 0x14c   :  { %7603 = vmatpush.bf16.msrb.mxu3 %v11786_v17  ;;  %v7373_v13 = vadd.f32 %v7372_v9, %v7359_v5  ;;  %v12670_v17 = vor.u32 %v14637_v7, %v12667_v8  ;;  %v11499_v5 = vld [vmem:[#allocation5 + $0x13b4] sm:$0xf0] }
 0x14d   :  { %7566 = vmatmul.bf16.vlgmr.msrb.gmra.mxu0 %v15028_v59  ;;  %v11215_v7 = vld [vmem:[#allocation5 + $0x1174] sm:$0xf0] }
 0x14e   :  { %7610 = vmatpush.bf16.msra.mxu0 %v11206_v10  ;;  %7579 = vmatmul.bf16.vlgmr.msrb.gmra.mxu1 %v15030_v63  ;;  %v12374_v10 = vor.u32 %v14600_v0, %v12373_v62  ;;  %8998 = vst [vmem:[#allocation7 + $0x50] sm:$0xff] %v7373_v13  ;;  %v13761_v0 = vld [vmem:[#allocation5 + $0x54] sm:$0xf]  ;;  %v10629_v13 = vld [vmem:[#allocation5 + $0xbc0] sm:$0xf] }
 0x14f   :  { %7623 = vmatpush.bf16.msra.mxu1 %v13542_v12  ;;  %7591 = vmatpush.bf16.msrb.mxu2 %v9158_v33  ;;  %v13943_v12 = vld [vmem:[#allocation5 + $0x600] sm:$0xf0]  ;;  %v9454_v33 = vor.u32 %v13870_v25, %v9453_v24  ;;  %v14784_v24 = vld [vmem:[#allocation5 + $0x204c] sm:$0xf]  ;;  %v13259_v25 = vld [vmem:[#allocation5 + $0x216c] sm:$0xf0] }
 0x150   :  { %7604 = vmatpush.bf16.msrb.mxu3 %v11494_v36  ;;  %v9746_v20 = vor.u32 %v13943_v12, %v9745_v11  ;;  %v12083_v36 = vld [vmem:[#allocation5 + $0x1844] sm:$0xf0]  ;;  %v13551_v11 = vld [vmem:[#allocation5 + $0x23b4] sm:$0xf0]  ;;  %v13262_v34 = vor.u32 %v14784_v24, %v13259_v25  ;;  %v14310_v25 = vld [vmem:[#allocation5 + $0x1178] sm:$0xf0] }
 0x151   :  { %v12086_v47 = vor.u32 %v14491_v35, %v12083_v36  ;;  %v14127_v35 = vld [vmem:[#allocation5 + $0xbc4] sm:$0xf]  ;;  %v10631_v36 = vld [vmem:[#allocation5 + $0xce4] sm:$0xf0]  ;;  %v11221_v24 = vld [vmem:[#allocation5 + $0x1058] sm:$0xf] }
 0x152   :  { %7611 = vmatpush.bf16.msra.mxu0 %v10914_v27  ;;  %7592 = vmatmul.bf16.vlgmr.msrb.gmra.mxu2 %v15028_v59  ;;  %v14454_v27 = vld [vmem:[#allocation5 + $0x15f8] sm:$0xf0]  ;;  %v7361_v32 = vpop.f32.mrf.mxu0 }
 0x153   :  { %7624 = vmatpush.bf16.msra.mxu1 %v13250_v30  ;;  %7636 = vmatpush.bf16.msra.mxu2 %v11210_v37  ;;  %v13907_v30 = vld [vmem:[#allocation5 + $0x4e4] sm:$0xf]  ;;  %v7374_v37 = vpop.f32.mrf.mxu1 }
 0x154   :  { %7649 = vmatpush.bf16.msra.mxu3 %v13546_v38  ;;  %v11790_v38 = vor.u32 %v14454_v27, %v11789_v26  ;;  %v9750_v45 = vor.u32 %v13907_v30, %v9747_v31  ;;  %v10337_v27 = vld [vmem:[#allocation5 + $0x978] sm:$0xf]  ;;  %v14674_v30 = vld [vmem:[#allocation5 + $0x1cd8] sm:$0xf0]  ;;  %v10926_v31 = vor.u32 %v14200_v21, %v10923_v22 }
 0x155   :  { %7605 = vmatmul.bf16.vlgmr.msrb.gmra.mxu3 %v15030_v63  ;;  %v7385_v3 = vpop.f32.mrf.mxu2  ;;  %v13798_v21 = vld [vmem:[#allocation5 + $0x178] sm:$0xf0]  ;;  %v11505_v22 = vld [vmem:[#allocation5 + $0x1298] sm:$0xf] }
 0x156   :  { %7612 = vmatpush.bf16.msra.mxu0 %v10622_v41  ;;  %v14381_v41 = vld [vmem:[#allocation5 + $0x13b0] sm:$0xf0] }
 0x157   :  { %7625 = vmatpush.bf16.msra.mxu1 %v12958_v44  ;;  %7637 = vmatpush.bf16.msra.mxu2 %v10918_v49  ;;  %v13549_v44 = vld [vmem:[#allocation5 + $0x2290] sm:$0xf]  ;;  %v9455_v49 = vld [vmem:[#allocation5 + $0x3bc] sm:$0xf0]  ;;  %v11498_v53 = vor.u32 %v14381_v41, %v11497_v40 }
 0x158   :  { %7650 = vmatpush.bf16.msra.mxu3 %v13254_v52  ;;  %v11791_v52 = vld [vmem:[#allocation5 + $0x15fc] sm:$0xf0]  ;;  %v13550_v56 = vor.u32 %v14893_v46, %v13549_v44  ;;  %v9458_v61 = vor.u32 %v13834_v48, %v9455_v49  ;;  %v7398_v4 = vpop.f32.mrf.mxu3  ;;  %v10045_v41 = vld [vmem:[#allocation5 + $0x730] sm:$0xf]  ;;  %v14601_v44 = vld [vmem:[#allocation5 + $0x1a90] sm:$0xf0] }
 0x159   :  { %v11794_v62 = vor.u32 %v14418_v51, %v11791_v52  ;;  %v7399_v8 = vadd.f32 %v7398_v4, %v7385_v3  ;;  %v10339_v48 = vld [vmem:[#allocation5 + $0xa9c] sm:$0xf0]  ;;  %v14638_v51 = vld [vmem:[#allocation5 + $0x1bbc] sm:$0xf]  ;;  %v14565_v3 = vld [vmem:[#allocation5 + $0x1974] sm:$0xf] }
 0x15a   :  { %7613 = vmatpush.bf16.msra.mxu0 %v10330_v55  ;;  %v10921_v55 = vld [vmem:[#allocation5 + $0xe08] sm:$0xf]  ;;  %v12675_v52 = vld [vmem:[#allocation5 + $0x1cdc] sm:$0xf0]  ;;  %v12383_v4 = vld [vmem:[#allocation5 + $0x1a94] sm:$0xf0] }
 0x15b   :  { %7626 = vmatpush.bf16.msra.mxu1 %v12666_v58  ;;  %7638 = vmatpush.bf16.msra.mxu2 %v10626_v1  ;;  %v13257_v58 = vld [vmem:[#allocation5 + $0x2048] sm:$0xf]  ;;  %v9163_v1 = vld [vmem:[#allocation5 + $0x174] sm:$0xf0]  ;;  %v10922_v9 = vor.u32 %v14236_v57, %v10921_v55  ;;  %8999 = vst [vmem:[#allocation7 + $0x58] sm:$0xff] %v7399_v8 }
 0x15c   :  { %7651 = vmatpush.bf16.msra.mxu3 %v12962_v2  ;;  %v14345_v2 = vld [vmem:[#allocation5 + $0x1294] sm:$0xf]  ;;  %v13258_v12 = vor.u32 %v14820_v60, %v13257_v58  ;;  %v9166_v15 = vor.u32 %v13761_v0, %v9163_v1  ;;  %v9753_v55 = vld [vmem:[#allocation5 + $0x4e8] sm:$0xf]  ;;  %v14528_v60 = vld [vmem:[#allocation5 + $0x1848] sm:$0xf0] }
 0x15d   :  { %v11502_v18 = vor.u32 %v14345_v2, %v11499_v5  ;;  %v7387_v32 = vpop.f32.mrf.mxu2  ;;  %v12089_v58 = vld [vmem:[#allocation5 + $0x1728] sm:$0xf]  ;;  %v13981_v0 = vld [vmem:[#allocation5 + $0x734] sm:$0xf]  ;;  %v10047_v1 = vld [vmem:[#allocation5 + $0x854] sm:$0xf0] }
 0x15e   :  { %7614 = vmatpush.bf16.msra.mxu0 %v10038_v6  ;;  %v14273_v6 = vld [vmem:[#allocation5 + $0x1054] sm:$0xf]  ;;  %v12090_v5 = vor.u32 %v14528_v60, %v12089_v58  ;;  %v11797_v8 = vld [vmem:[#allocation5 + $0x14e0] sm:$0xf]  ;;  %v14164_v58 = vld [vmem:[#allocation5 + $0xce8] sm:$0xf0] }
 0x15f   :  { %7627 = vmatpush.bf16.msra.mxu1 %v12374_v10  ;;  %7639 = vmatpush.bf16.msra.mxu2 %v10334_v16  ;;  %v14857_v10 = vld [vmem:[#allocation5 + $0x2294] sm:$0xf]  ;;  %v12965_v16 = vld [vmem:[#allocation5 + $0x1e00] sm:$0xf]  ;;  %v11218_v19 = vor.u32 %v14273_v6, %v11215_v7  ;;  %v13871_v7 = vld [vmem:[#allocation5 + $0x3c0] sm:$0xf0] }
 0x160   :  { %7652 = vmatpush.bf16.msra.mxu3 %v12670_v17  ;;  %v14747_v17 = vld [vmem:[#allocation5 + $0x1f20] sm:$0xf0]  ;;  %v9461_v6 = vld [vmem:[#allocation5 + $0x2a0] sm:$0xf] }
 0x161   :  { %v12966_v26 = vor.u32 %v14747_v17, %v12965_v16  ;;  %v9169_v16 = vld [vmem:[#allocation5 + $0x58] sm:$0xf]  ;;  %v14492_v17 = vld [vmem:[#allocation5 + $0x172c] sm:$0xf] }
 0x162   :  { %7615 = vmatpush.bf16.msra.mxu0 %v9746_v20  ;;  %v13554_v20 = vor.u32 %v14857_v10, %v13551_v11  ;;  %v10050_v10 = vor.u32 %v13981_v0, %v10047_v1  ;;  %v12386_v11 = vor.u32 %v14565_v3, %v12383_v4  ;;  %v9170_v32 = vor.u32 %v13798_v21, %v9169_v16  ;;  %v14201_v3 = vld [vmem:[#allocation5 + $0xe14] sm:$0xf]  ;;  %v10931_v4 = vld [vmem:[#allocation5 + $0xf34] sm:$0xf0]  ;;  %v12975_v21 = vld [vmem:[#allocation5 + $0x1f2c] sm:$0xf0] }
 0x163   :  { %7628 = vmatpush.bf16.msra.mxu1 %v12082_v23  ;;  %7640 = vmatpush.bf16.msra.mxu2 %v10042_v28  ;;  %v10630_v23 = vor.u32 %v14163_v14, %v10629_v13  ;;  %v14090_v28 = vld [vmem:[#allocation5 + $0xa98] sm:$0xf0]  ;;  %v9755_v13 = vld [vmem:[#allocation5 + $0x60c] sm:$0xf0] }
 0x164   :  { %7653 = vmatpush.bf16.msra.mxu3 %v12378_v29  ;;  %v12673_v29 = vld [vmem:[#allocation5 + $0x1bb8] sm:$0xf]  ;;  %v10338_v37 = vor.u32 %v14090_v28, %v10337_v27  ;;  %v14894_v28 = vld [vmem:[#allocation5 + $0x23b8] sm:$0xf0] }
 0x165   :  { %v12674_v40 = vor.u32 %v14674_v30, %v12673_v29  ;;  %v13835_v30 = vld [vmem:[#allocation5 + $0x2a4] sm:$0xf] }
 0x166   :  { %7616 = vmatpush.bf16.msra.mxu0 %v9454_v33  ;;  %v7400_v33 = vpop.f32.mrf.mxu3 }
 0x167   :  { %7629 = vmatpush.bf16.msra.mxu1 %v11790_v38  ;;  %7641 = vmatpush.bf16.msra.mxu2 %v9750_v45  ;;  %v14711_v38 = vld [vmem:[#allocation5 + $0x1e04] sm:$0xf]  ;;  %v10634_v45 = vor.u32 %v14127_v35, %v10631_v36  ;;  %v11222_v36 = vor.u32 %v14310_v25, %v11221_v24  ;;  %v14018_v24 = vld [vmem:[#allocation5 + $0x858] sm:$0xf0]  ;;  %v12389_v25 = vld [vmem:[#allocation5 + $0x1978] sm:$0xf] }
 0x168   :  { %7654 = vmatpush.bf16.msra.mxu3 %v12086_v47  ;;  %v12970_v46 = vor.u32 %v14711_v38, %v12967_v39  ;;  %v14054_v47 = vld [vmem:[#allocation5 + $0x97c] sm:$0xf]  ;;  %v14419_v33 = vld [vmem:[#allocation5 + $0x14e4] sm:$0xf]  ;;  %v14237_v39 = vld [vmem:[#allocation5 + $0xf30] sm:$0xf0] }
 0x16a   :  { %7617 = vmatpush.bf16.msra.mxu0 %v9162_v50  ;;  %v7411_v49 = vpop.f32.mrf.mxu0  ;;  %v10046_v50 = vor.u32 %v14017_v42, %v10045_v41  ;;  %v14821_v41 = vld [vmem:[#allocation5 + $0x2170] sm:$0xf0] }
 0x16b   :  { %7630 = vmatpush.bf16.msra.mxu1 %v11498_v53  ;;  %7642 = vmatpush.bf16.msra.mxu2 %v9458_v61  ;;  %v7424_v53 = vpop.f32.mrf.mxu1  ;;  %v10342_v61 = vor.u32 %v14054_v47, %v10339_v48 }
 0x16c   :  { %7655 = vmatpush.bf16.msra.mxu3 %v11794_v62  ;;  %v7425_v57 = vadd.f32 %v7424_v53, %v7411_v49  ;;  %v12678_v62 = vor.u32 %v14638_v51, %v12675_v52  ;;  %v11507_v49 = vld [vmem:[#allocation5 + $0x13bc] sm:$0xf0] }
 0x16d   :  { %7618 = vmatmul.bf16.vlgmr.msra.gmra.mxu0 %v15028_v59  ;;  %v11223_v51 = vld [vmem:[#allocation5 + $0x117c] sm:$0xf0] }
 0x16e   :  { %7662 = vmatpush.bf16.msrb.mxu0 %v11214_v54  ;;  %7631 = vmatmul.bf16.vlgmr.msra.gmra.mxu1 %v15030_v63  ;;  %v12382_v54 = vor.u32 %v14601_v44, %v12381_v43  ;;  %9000 = vst [vmem:[#allocation7 + $0x60] sm:$0xff] %v7425_v57  ;;  %v13762_v44 = vld [vmem:[#allocation5 + $0x5c] sm:$0xf]  ;;  %v10637_v57 = vld [vmem:[#allocation5 + $0xbc8] sm:$0xf] }
 0x16f   :  { %7675 = vmatpush.bf16.msrb.mxu1 %v13550_v56  ;;  %7643 = vmatpush.bf16.msra.mxu2 %v9166_v15  ;;  %v13944_v56 = vld [vmem:[#allocation5 + $0x608] sm:$0xf0]  ;;  %v9462_v15 = vor.u32 %v13871_v7, %v9461_v6  ;;  %v14785_v6 = vld [vmem:[#allocation5 + $0x2054] sm:$0xf]  ;;  %v13267_v7 = vld [vmem:[#allocation5 + $0x2174] sm:$0xf0] }
 0x170   :  { %7656 = vmatpush.bf16.msra.mxu3 %v11502_v18  ;;  %v9754_v2 = vor.u32 %v13944_v56, %v9753_v55  ;;  %v12091_v18 = vld [vmem:[#allocation5 + $0x184c] sm:$0xf0]  ;;  %v13559_v55 = vld [vmem:[#allocation5 + $0x23bc] sm:$0xf0]  ;;  %v13270_v16 = vor.u32 %v14785_v6, %v13267_v7  ;;  %v14311_v7 = vld [vmem:[#allocation5 + $0x1180] sm:$0xf0] }
 0x171   :  { %v12094_v29 = vor.u32 %v14492_v17, %v12091_v18  ;;  %v14128_v17 = vld [vmem:[#allocation5 + $0xbcc] sm:$0xf]  ;;  %v10639_v18 = vld [vmem:[#allocation5 + $0xcec] sm:$0xf0]  ;;  %v11229_v6 = vld [vmem:[#allocation5 + $0x1060] sm:$0xf] }
 0x172   :  { %7663 = vmatpush.bf16.msrb.mxu0 %v10922_v9  ;;  %7644 = vmatmul.bf16.vlgmr.msra.gmra.mxu2 %v15028_v59  ;;  %v14455_v9 = vld [vmem:[#allocation5 + $0x1600] sm:$0xf0]  ;;  %v7413_v14 = vpop.f32.mrf.mxu0 }
 0x173   :  { %7676 = vmatpush.bf16.msrb.mxu1 %v13258_v12  ;;  %7688 = vmatpush.bf16.msrb.mxu2 %v11218_v19  ;;  %v13908_v12 = vld [vmem:[#allocation5 + $0x4ec] sm:$0xf]  ;;  %v7426_v19 = vpop.f32.mrf.mxu1 }
 0x174   :  { %7701 = vmatpush.bf16.msrb.mxu3 %v13554_v20  ;;  %v11798_v20 = vor.u32 %v14455_v9, %v11797_v8  ;;  %v9758_v27 = vor.u32 %v13908_v12, %v9755_v13  ;;  %v10345_v9 = vld [vmem:[#allocation5 + $0x980] sm:$0xf]  ;;  %v14675_v12 = vld [vmem:[#allocation5 + $0x1ce0] sm:$0xf0]  ;;  %v10934_v13 = vor.u32 %v14201_v3, %v10931_v4 }
 0x175   :  { %7657 = vmatmul.bf16.vlgmr.msra.gmra.mxu3 %v15030_v63  ;;  %v7437_v47 = vpop.f32.mrf.mxu2  ;;  %v13799_v3 = vld [vmem:[#allocation5 + $0x180] sm:$0xf0]  ;;  %v11513_v4 = vld [vmem:[#allocation5 + $0x12a0] sm:$0xf] }
 0x176   :  { %7664 = vmatpush.bf16.msrb.mxu0 %v10630_v23  ;;  %v14382_v23 = vld [vmem:[#allocation5 + $0x13b8] sm:$0xf0] }
 0x177   :  { %7677 = vmatpush.bf16.msrb.mxu1 %v12966_v26  ;;  %7689 = vmatpush.bf16.msrb.mxu2 %v10926_v31  ;;  %v13557_v26 = vld [vmem:[#allocation5 + $0x2298] sm:$0xf]  ;;  %v9463_v31 = vld [vmem:[#allocation5 + $0x3c4] sm:$0xf0]  ;;  %v11506_v35 = vor.u32 %v14382_v23, %v11505_v22 }
 0x178   :  { %7702 = vmatpush.bf16.msrb.mxu3 %v13262_v34  ;;  %v11799_v34 = vld [vmem:[#allocation5 + $0x1604] sm:$0xf0]  ;;  %v13558_v38 = vor.u32 %v14894_v28, %v13557_v26  ;;  %v9466_v42 = vor.u32 %v13835_v30, %v9463_v31  ;;  %v7450_v48 = vpop.f32.mrf.mxu3  ;;  %v10053_v23 = vld [vmem:[#allocation5 + $0x738] sm:$0xf]  ;;  %v14602_v26 = vld [vmem:[#allocation5 + $0x1a98] sm:$0xf0] }
 0x179   :  { %v11802_v43 = vor.u32 %v14419_v33, %v11799_v34  ;;  %v7451_v52 = vadd.f32 %v7450_v48, %v7437_v47  ;;  %v10347_v30 = vld [vmem:[#allocation5 + $0xaa4] sm:$0xf0]  ;;  %v14639_v33 = vld [vmem:[#allocation5 + $0x1bc4] sm:$0xf]  ;;  %v14566_v47 = vld [vmem:[#allocation5 + $0x197c] sm:$0xf] }
 0x17a   :  { %7665 = vmatpush.bf16.msrb.mxu0 %v10338_v37  ;;  %v10929_v37 = vld [vmem:[#allocation5 + $0xe10] sm:$0xf]  ;;  %v12683_v34 = vld [vmem:[#allocation5 + $0x1ce4] sm:$0xf0]  ;;  %v12391_v48 = vld [vmem:[#allocation5 + $0x1a9c] sm:$0xf0] }
 0x17b   :  { %7678 = vmatpush.bf16.msrb.mxu1 %v12674_v40  ;;  %7690 = vmatpush.bf16.msrb.mxu2 %v10634_v45  ;;  %v13265_v40 = vld [vmem:[#allocation5 + $0x2050] sm:$0xf]  ;;  %v9171_v45 = vld [vmem:[#allocation5 + $0x17c] sm:$0xf0]  ;;  %v10930_v53 = vor.u32 %v14237_v39, %v10929_v37  ;;  %9001 = vst [vmem:[#allocation7 + $0x68] sm:$0xff] %v7451_v52 }
 0x17c   :  { %7703 = vmatpush.bf16.msrb.mxu3 %v12970_v46  ;;  %v14346_v46 = vld [vmem:[#allocation5 + $0x129c] sm:$0xf]  ;;  %v13266_v56 = vor.u32 %v14821_v41, %v13265_v40  ;;  %v9174_v60 = vor.u32 %v13762_v44, %v9171_v45  ;;  %v9761_v37 = vld [vmem:[#allocation5 + $0x4f0] sm:$0xf]  ;;  %v14529_v41 = vld [vmem:[#allocation5 + $0x1850] sm:$0xf0] }
 0x17d   :  { %v11510_v0 = vor.u32 %v14346_v46, %v11507_v49  ;;  %v7439_v14 = vpop.f32.mrf.mxu2  ;;  %v12097_v40 = vld [vmem:[#allocation5 + $0x1730] sm:$0xf]  ;;  %v13982_v44 = vld [vmem:[#allocation5 + $0x73c] sm:$0xf]  ;;  %v10055_v45 = vld [vmem:[#allocation5 + $0x85c] sm:$0xf0] }
 0x17e   :  { %7666 = vmatpush.bf16.msrb.mxu0 %v10046_v50  ;;  %v14274_v50 = vld [vmem:[#allocation5 + $0x105c] sm:$0xf]  ;;  %v12098_v49 = vor.u32 %v14529_v41, %v12097_v40  ;;  %v11805_v52 = vld [vmem:[#allocation5 + $0x14e8] sm:$0xf]  ;;  %v14165_v40 = vld [vmem:[#allocation5 + $0xcf0] sm:$0xf0] }
 0x17f   :  { %7679 = vmatpush.bf16.msrb.mxu1 %v12382_v54  ;;  %7691 = vmatpush.bf16.msrb.mxu2 %v10342_v61  ;;  %v14858_v54 = vld [vmem:[#allocation5 + $0x229c] sm:$0xf]  ;;  %v12973_v61 = vld [vmem:[#allocation5 + $0x1e08] sm:$0xf]  ;;  %v11226_v1 = vor.u32 %v14274_v50, %v11223_v51  ;;  %v13872_v51 = vld [vmem:[#allocation5 + $0x3c8] sm:$0xf0] }
 0x180   :  { %7704 = vmatpush.bf16.msrb.mxu3 %v12678_v62  ;;  %v14748_v62 = vld [vmem:[#allocation5 + $0x1f28] sm:$0xf0]  ;;  %v9469_v50 = vld [vmem:[#allocation5 + $0x2a8] sm:$0xf] }
 0x181   :  { %v12974_v8 = vor.u32 %v14748_v62, %v12973_v61  ;;  %v9177_v61 = vld [vmem:[#allocation5 + $0x60] sm:$0xf]  ;;  %v14493_v62 = vld [vmem:[#allocation5 + $0x1734] sm:$0xf] }
 0x182   :  { %7667 = vmatpush.bf16.msrb.mxu0 %v9754_v2  ;;  %v13562_v2 = vor.u32 %v14858_v54, %v13559_v55  ;;  %v10058_v54 = vor.u32 %v13982_v44, %v10055_v45  ;;  %v12394_v55 = vor.u32 %v14566_v47, %v12391_v48  ;;  %v9178_v14 = vor.u32 %v13799_v3, %v9177_v61  ;;  %v14202_v47 = vld [vmem:[#allocation5 + $0xe1c] sm:$0xf]  ;;  %v10939_v48 = vld [vmem:[#allocation5 + $0xf3c] sm:$0xf0]  ;;  %v12983_v3 = vld [vmem:[#allocation5 + $0x1f34] sm:$0xf0] }
 0x183   :  { %7680 = vmatpush.bf16.msrb.mxu1 %v12090_v5  ;;  %7692 = vmatpush.bf16.msrb.mxu2 %v10050_v10  ;;  %v10638_v5 = vor.u32 %v14164_v58, %v10637_v57  ;;  %v14091_v10 = vld [vmem:[#allocation5 + $0xaa0] sm:$0xf0]  ;;  %v9763_v57 = vld [vmem:[#allocation5 + $0x614] sm:$0xf0] }
 0x184   :  { %7705 = vmatpush.bf16.msrb.mxu3 %v12386_v11  ;;  %v12681_v11 = vld [vmem:[#allocation5 + $0x1bc0] sm:$0xf]  ;;  %v10346_v19 = vor.u32 %v14091_v10, %v10345_v9  ;;  %v14895_v10 = vld [vmem:[#allocation5 + $0x23c0] sm:$0xf0] }
 0x185   :  { %v12682_v22 = vor.u32 %v14675_v12, %v12681_v11  ;;  %v13836_v12 = vld [vmem:[#allocation5 + $0x2ac] sm:$0xf] }
 0x186   :  { %7668 = vmatpush.bf16.msrb.mxu0 %v9462_v15  ;;  %v7452_v15 = vpop.f32.mrf.mxu3 }
 0x187   :  { %7681 = vmatpush.bf16.msrb.mxu1 %v11798_v20  ;;  %7693 = vmatpush.bf16.msrb.mxu2 %v9758_v27  ;;  %v14712_v20 = vld [vmem:[#allocation5 + $0x1e0c] sm:$0xf]  ;;  %v10642_v27 = vor.u32 %v14128_v17, %v10639_v18  ;;  %v11230_v18 = vor.u32 %v14311_v7, %v11229_v6  ;;  %v14019_v6 = vld [vmem:[#allocation5 + $0x860] sm:$0xf0]  ;;  %v12397_v7 = vld [vmem:[#allocation5 + $0x1980] sm:$0xf] }
 0x188   :  { %7706 = vmatpush.bf16.msrb.mxu3 %v12094_v29  ;;  %v12978_v28 = vor.u32 %v14712_v20, %v12975_v21  ;;  %v14055_v29 = vld [vmem:[#allocation5 + $0x984] sm:$0xf]  ;;  %v14420_v15 = vld [vmem:[#allocation5 + $0x14ec] sm:$0xf]  ;;  %v14238_v21 = vld [vmem:[#allocation5 + $0xf38] sm:$0xf0] }
 0x18a   :  { %7669 = vmatpush.bf16.msrb.mxu0 %v9170_v32  ;;  %v7463_v31 = vpop.f32.mrf.mxu0  ;;  %v10054_v32 = vor.u32 %v14018_v24, %v10053_v23  ;;  %v14822_v23 = vld [vmem:[#allocation5 + $0x2178] sm:$0xf0] }
 0x18b   :  { %7682 = vmatpush.bf16.msrb.mxu1 %v11506_v35  ;;  %7694 = vmatpush.bf16.msrb.mxu2 %v9466_v42  ;;  %v7476_v35 = vpop.f32.mrf.mxu1  ;;  %v10350_v42 = vor.u32 %v14055_v29, %v10347_v30 }
 0x18c   :  { %7707 = vmatpush.bf16.msrb.mxu3 %v11802_v43  ;;  %v7477_v39 = vadd.f32 %v7476_v35, %v7463_v31  ;;  %v12686_v43 = vor.u32 %v14639_v33, %v12683_v34  ;;  %v11515_v31 = vld [vmem:[#allocation5 + $0x13c4] sm:$0xf0] }
 0x18d   :  { %7670 = vmatmul.bf16.vlgmr.msrb.gmra.mxu0 %v15028_v59  ;;  %v11231_v33 = vld [vmem:[#allocation5 + $0x1184] sm:$0xf0] }
 0x18e   :  { %7714 = vmatpush.bf16.msra.mxu0 %v11222_v36  ;;  %7683 = vmatmul.bf16.vlgmr.msrb.gmra.mxu1 %v15030_v63  ;;  %v12390_v36 = vor.u32 %v14602_v26, %v12389_v25  ;;  %9002 = vst [vmem:[#allocation7 + $0x70] sm:$0xff] %v7477_v39  ;;  %v13763_v26 = vld [vmem:[#allocation5 + $0x64] sm:$0xf]  ;;  %v10645_v39 = vld [vmem:[#allocation5 + $0xbd0] sm:$0xf] }
 0x18f   :  { %7727 = vmatpush.bf16.msra.mxu1 %v13558_v38  ;;  %7695 = vmatpush.bf16.msrb.mxu2 %v9174_v60  ;;  %v13945_v38 = vld [vmem:[#allocation5 + $0x610] sm:$0xf0]  ;;  %v9470_v60 = vor.u32 %v13872_v51, %v9469_v50  ;;  %v14786_v50 = vld [vmem:[#allocation5 + $0x205c] sm:$0xf]  ;;  %v13275_v51 = vld [vmem:[#allocation5 + $0x217c] sm:$0xf0] }
 0x190   :  { %7708 = vmatpush.bf16.msrb.mxu3 %v11510_v0  ;;  %v9762_v46 = vor.u32 %v13945_v38, %v9761_v37  ;;  %v12099_v0 = vld [vmem:[#allocation5 + $0x1854] sm:$0xf0]  ;;  %v13567_v37 = vld [vmem:[#allocation5 + $0x23c4] sm:$0xf0]  ;;  %v13278_v61 = vor.u32 %v14786_v50, %v13275_v51  ;;  %v14312_v51 = vld [vmem:[#allocation5 + $0x1188] sm:$0xf0] }
 0x191   :  { %v12102_v11 = vor.u32 %v14493_v62, %v12099_v0  ;;  %v14129_v62 = vld [vmem:[#allocation5 + $0xbd4] sm:$0xf]  ;;  %v10647_v0 = vld [vmem:[#allocation5 + $0xcf4] sm:$0xf0]  ;;  %v11237_v50 = vld [vmem:[#allocation5 + $0x1068] sm:$0xf] }
 0x192   :  { %7715 = vmatpush.bf16.msra.mxu0 %v10930_v53  ;;  %7696 = vmatmul.bf16.vlgmr.msrb.gmra.mxu2 %v15028_v59  ;;  %v14456_v53 = vld [vmem:[#allocation5 + $0x1608] sm:$0xf0]  ;;  %v7465_v58 = vpop.f32.mrf.mxu0 }
 0x193   :  { %7728 = vmatpush.bf16.msra.mxu1 %v13266_v56  ;;  %7740 = vmatpush.bf16.msra.mxu2 %v11226_v1  ;;  %v13909_v56 = vld [vmem:[#allocation5 + $0x4f4] sm:$0xf]  ;;  %v7478_v1 = vpop.f32.mrf.mxu1 }
 0x194   :  { %7753 = vmatpush.bf16.msra.mxu3 %v13562_v2  ;;  %v11806_v2 = vor.u32 %v14456_v53, %v11805_v52  ;;  %v9766_v9 = vor.u32 %v13909_v56, %v9763_v57  ;;  %v10353_v53 = vld [vmem:[#allocation5 + $0x988] sm:$0xf]  ;;  %v14676_v56 = vld [vmem:[#allocation5 + $0x1ce8] sm:$0xf0]  ;;  %v10942_v57 = vor.u32 %v14202_v47, %v10939_v48 }
 0x195   :  { %7709 = vmatmul.bf16.vlgmr.msrb.gmra.mxu3 %v15030_v63  ;;  %v7489_v29 = vpop.f32.mrf.mxu2  ;;  %v13800_v47 = vld [vmem:[#allocation5 + $0x188] sm:$0xf0]  ;;  %v11521_v48 = vld [vmem:[#allocation5 + $0x12a8] sm:$0xf] }
 0x196   :  { %7716 = vmatpush.bf16.msra.mxu0 %v10638_v5  ;;  %v14383_v5 = vld [vmem:[#allocation5 + $0x13c0] sm:$0xf0] }
 0x197   :  { %7729 = vmatpush.bf16.msra.mxu1 %v12974_v8  ;;  %7741 = vmatpush.bf16.msra.mxu2 %v10934_v13  ;;  %v13565_v8 = vld [vmem:[#allocation5 + $0x22a0] sm:$0xf]  ;;  %v9471_v13 = vld [vmem:[#allocation5 + $0x3cc] sm:$0xf0]  ;;  %v11514_v17 = vor.u32 %v14383_v5, %v11513_v4 }
 0x198   :  { %7754 = vmatpush.bf16.msra.mxu3 %v13270_v16  ;;  %v11807_v16 = vld [vmem:[#allocation5 + $0x160c] sm:$0xf0]  ;;  %v13566_v20 = vor.u32 %v14895_v10, %v13565_v8  ;;  %v9474_v24 = vor.u32 %v13836_v12, %v9471_v13  ;;  %v7502_v30 = vpop.f32.mrf.mxu3  ;;  %v10061_v5 = vld [vmem:[#allocation5 + $0x740] sm:$0xf]  ;;  %v14603_v8 = vld [vmem:[#allocation5 + $0x1aa0] sm:$0xf0] }
 0x199   :  { %v11810_v25 = vor.u32 %v14420_v15, %v11807_v16  ;;  %v7503_v34 = vadd.f32 %v7502_v30, %v7489_v29  ;;  %v10355_v12 = vld [vmem:[#allocation5 + $0xaac] sm:$0xf0]  ;;  %v14640_v15 = vld [vmem:[#allocation5 + $0x1bcc] sm:$0xf]  ;;  %v14567_v29 = vld [vmem:[#allocation5 + $0x1984] sm:$0xf] }
 0x19a   :  { %7717 = vmatpush.bf16.msra.mxu0 %v10346_v19  ;;  %v10937_v19 = vld [vmem:[#allocation5 + $0xe18] sm:$0xf]  ;;  %v12691_v16 = vld [vmem:[#allocation5 + $0x1cec] sm:$0xf0]  ;;  %v12399_v30 = vld [vmem:[#allocation5 + $0x1aa4] sm:$0xf0] }
 0x19b   :  { %7730 = vmatpush.bf16.msra.mxu1 %v12682_v22  ;;  %7742 = vmatpush.bf16.msra.mxu2 %v10642_v27  ;;  %v13273_v22 = vld [vmem:[#allocation5 + $0x2058] sm:$0xf]  ;;  %v9179_v27 = vld [vmem:[#allocation5 + $0x184] sm:$0xf0]  ;;  %v10938_v35 = vor.u32 %v14238_v21, %v10937_v19  ;;  %9003 = vst [vmem:[#allocation7 + $0x78] sm:$0xff] %v7503_v34 }
 0x19c   :  { %7755 = vmatpush.bf16.msra.mxu3 %v12978_v28  ;;  %v14347_v28 = vld [vmem:[#allocation5 + $0x12a4] sm:$0xf]  ;;  %v13274_v38 = vor.u32 %v14822_v23, %v13273_v22  ;;  %v9182_v41 = vor.u32 %v13763_v26, %v9179_v27  ;;  %v9769_v19 = vld [vmem:[#allocation5 + $0x4f8] sm:$0xf]  ;;  %v14530_v23 = vld [vmem:[#allocation5 + $0x1858] sm:$0xf0] }
 0x19d   :  { %v11518_v44 = vor.u32 %v14347_v28, %v11515_v31  ;;  %v7491_v58 = vpop.f32.mrf.mxu2  ;;  %v12105_v22 = vld [vmem:[#allocation5 + $0x1738] sm:$0xf]  ;;  %v13983_v26 = vld [vmem:[#allocation5 + $0x744] sm:$0xf]  ;;  %v10063_v27 = vld [vmem:[#allocation5 + $0x864] sm:$0xf0] }
 0x19e   :  { %7718 = vmatpush.bf16.msra.mxu0 %v10054_v32  ;;  %v14275_v32 = vld [vmem:[#allocation5 + $0x1064] sm:$0xf]  ;;  %v12106_v31 = vor.u32 %v14530_v23, %v12105_v22  ;;  %v11813_v34 = vld [vmem:[#allocation5 + $0x14f0] sm:$0xf]  ;;  %v14166_v22 = vld [vmem:[#allocation5 + $0xcf8] sm:$0xf0] }
 0x19f   :  { %7731 = vmatpush.bf16.msra.mxu1 %v12390_v36  ;;  %7743 = vmatpush.bf16.msra.mxu2 %v10350_v42  ;;  %v14859_v36 = vld [vmem:[#allocation5 + $0x22a4] sm:$0xf]  ;;  %v12981_v42 = vld [vmem:[#allocation5 + $0x1e10] sm:$0xf]  ;;  %v11234_v45 = vor.u32 %v14275_v32, %v11231_v33  ;;  %v13873_v33 = vld [vmem:[#allocation5 + $0x3d0] sm:$0xf0] }
 0x1a0   :  { %7756 = vmatpush.bf16.msra.mxu3 %v12686_v43  ;;  %v14749_v43 = vld [vmem:[#allocation5 + $0x1f30] sm:$0xf0]  ;;  %v9477_v32 = vld [vmem:[#allocation5 + $0x2b0] sm:$0xf] }
 0x1a1   :  { %v12982_v52 = vor.u32 %v14749_v43, %v12981_v42  ;;  %v9185_v42 = vld [vmem:[#allocation5 + $0x68] sm:$0xf]  ;;  %v14494_v43 = vld [vmem:[#allocation5 + $0x173c] sm:$0xf] }
 0x1a2   :  { %7719 = vmatpush.bf16.msra.mxu0 %v9762_v46  ;;  %v13570_v46 = vor.u32 %v14859_v36, %v13567_v37  ;;  %v10066_v36 = vor.u32 %v13983_v26, %v10063_v27  ;;  %v12402_v37 = vor.u32 %v14567_v29, %v12399_v30  ;;  %v9186_v58 = vor.u32 %v13800_v47, %v9185_v42  ;;  %v14203_v29 = vld [vmem:[#allocation5 + $0xe24] sm:$0xf]  ;;  %v10947_v30 = vld [vmem:[#allocation5 + $0xf44] sm:$0xf0]  ;;  %v12991_v47 = vld [vmem:[#allocation5 + $0x1f3c] sm:$0xf0] }
 0x1a3   :  { %7732 = vmatpush.bf16.msra.mxu1 %v12098_v49  ;;  %7744 = vmatpush.bf16.msra.mxu2 %v10058_v54  ;;  %v10646_v49 = vor.u32 %v14165_v40, %v10645_v39  ;;  %v14092_v54 = vld [vmem:[#allocation5 + $0xaa8] sm:$0xf0]  ;;  %v9771_v39 = vld [vmem:[#allocation5 + $0x61c] sm:$0xf0] }
 0x1a4   :  { %7757 = vmatpush.bf16.msra.mxu3 %v12394_v55  ;;  %v12689_v55 = vld [vmem:[#allocation5 + $0x1bc8] sm:$0xf]  ;;  %v10354_v1 = vor.u32 %v14092_v54, %v10353_v53  ;;  %v14896_v54 = vld [vmem:[#allocation5 + $0x23c8] sm:$0xf0] }
 0x1a5   :  { %v12690_v4 = vor.u32 %v14676_v56, %v12689_v55  ;;  %v13837_v56 = vld [vmem:[#allocation5 + $0x2b4] sm:$0xf] }
 0x1a6   :  { %7720 = vmatpush.bf16.msra.mxu0 %v9470_v60  ;;  %v7504_v60 = vpop.f32.mrf.mxu3 }
 0x1a7   :  { %7733 = vmatpush.bf16.msra.mxu1 %v11806_v2  ;;  %7745 = vmatpush.bf16.msra.mxu2 %v9766_v9  ;;  %v14713_v2 = vld [vmem:[#allocation5 + $0x1e14] sm:$0xf]  ;;  %v10650_v9 = vor.u32 %v14129_v62, %v10647_v0  ;;  %v11238_v0 = vor.u32 %v14312_v51, %v11237_v50  ;;  %v14020_v50 = vld [vmem:[#allocation5 + $0x868] sm:$0xf0]  ;;  %v12405_v51 = vld [vmem:[#allocation5 + $0x1988] sm:$0xf] }
 0x1a8   :  { %7758 = vmatpush.bf16.msra.mxu3 %v12102_v11  ;;  %v12986_v10 = vor.u32 %v14713_v2, %v12983_v3  ;;  %v14056_v11 = vld [vmem:[#allocation5 + $0x98c] sm:$0xf]  ;;  %v14421_v60 = vld [vmem:[#allocation5 + $0x14f4] sm:$0xf]  ;;  %v14239_v3 = vld [vmem:[#allocation5 + $0xf40] sm:$0xf0] }
 0x1aa   :  { %7721 = vmatpush.bf16.msra.mxu0 %v9178_v14  ;;  %v7515_v13 = vpop.f32.mrf.mxu0  ;;  %v10062_v14 = vor.u32 %v14019_v6, %v10061_v5  ;;  %v14823_v5 = vld [vmem:[#allocation5 + $0x2180] sm:$0xf0] }
 0x1ab   :  { %7734 = vmatpush.bf16.msra.mxu1 %v11514_v17  ;;  %7746 = vmatpush.bf16.msra.mxu2 %v9474_v24  ;;  %v7528_v17 = vpop.f32.mrf.mxu1  ;;  %v10358_v24 = vor.u32 %v14056_v11, %v10355_v12 }
 0x1ac   :  { %7759 = vmatpush.bf16.msra.mxu3 %v11810_v25  ;;  %v7529_v21 = vadd.f32 %v7528_v17, %v7515_v13  ;;  %v12694_v25 = vor.u32 %v14640_v15, %v12691_v16  ;;  %v11523_v13 = vld [vmem:[#allocation5 + $0x13cc] sm:$0xf0] }
 0x1ad   :  { %7722 = vmatmul.bf16.vlgmr.msra.gmra.mxu0 %v15028_v59  ;;  %v11239_v15 = vld [vmem:[#allocation5 + $0x118c] sm:$0xf0] }
 0x1ae   :  { %7766 = vmatpush.bf16.msrb.mxu0 %v11230_v18  ;;  %7735 = vmatmul.bf16.vlgmr.msra.gmra.mxu1 %v15030_v63  ;;  %v12398_v18 = vor.u32 %v14603_v8, %v12397_v7  ;;  %9004 = vst [vmem:[#allocation7 + $0x80] sm:$0xff] %v7529_v21  ;;  %v13764_v8 = vld [vmem:[#allocation5 + $0x6c] sm:$0xf]  ;;  %v10653_v21 = vld [vmem:[#allocation5 + $0xbd8] sm:$0xf] }
 0x1af   :  { %7779 = vmatpush.bf16.msrb.mxu1 %v13566_v20  ;;  %7747 = vmatpush.bf16.msra.mxu2 %v9182_v41  ;;  %v13946_v20 = vld [vmem:[#allocation5 + $0x618] sm:$0xf0]  ;;  %v9478_v41 = vor.u32 %v13873_v33, %v9477_v32  ;;  %v14787_v32 = vld [vmem:[#allocation5 + $0x2064] sm:$0xf]  ;;  %v13283_v33 = vld [vmem:[#allocation5 + $0x2184] sm:$0xf0] }
 0x1b0   :  { %7760 = vmatpush.bf16.msra.mxu3 %v11518_v44  ;;  %v9770_v28 = vor.u32 %v13946_v20, %v9769_v19  ;;  %v12107_v44 = vld [vmem:[#allocation5 + $0x185c] sm:$0xf0]  ;;  %v13575_v19 = vld [vmem:[#allocation5 + $0x23cc] sm:$0xf0]  ;;  %v13286_v42 = vor.u32 %v14787_v32, %v13283_v33  ;;  %v14313_v33 = vld [vmem:[#allocation5 + $0x1190] sm:$0xf0] }
 0x1b1   :  { %v12110_v55 = vor.u32 %v14494_v43, %v12107_v44  ;;  %v14130_v43 = vld [vmem:[#allocation5 + $0xbdc] sm:$0xf]  ;;  %v10655_v44 = vld [vmem:[#allocation5 + $0xcfc] sm:$0xf0]  ;;  %v11245_v32 = vld [vmem:[#allocation5 + $0x1070] sm:$0xf] }
 0x1b2   :  { %7767 = vmatpush.bf16.msrb.mxu0 %v10938_v35  ;;  %7748 = vmatmul.bf16.vlgmr.msra.gmra.mxu2 %v15028_v59  ;;  %v14457_v35 = vld [vmem:[#allocation5 + $0x1610] sm:$0xf0]  ;;  %v7517_v40 = vpop.f32.mrf.mxu0 }
 0x1b3   :  { %7780 = vmatpush.bf16.msrb.mxu1 %v13274_v38  ;;  %7792 = vmatpush.bf16.msrb.mxu2 %v11234_v45  ;;  %v13910_v38 = vld [vmem:[#allocation5 + $0x4fc] sm:$0xf]  ;;  %v7530_v45 = vpop.f32.mrf.mxu1 }
 0x1b4   :  { %7805 = vmatpush.bf16.msrb.mxu3 %v13570_v46  ;;  %v11814_v46 = vor.u32 %v14457_v35, %v11813_v34  ;;  %v9774_v53 = vor.u32 %v13910_v38, %v9771_v39  ;;  %v10361_v35 = vld [vmem:[#allocation5 + $0x990] sm:$0xf]  ;;  %v14677_v38 = vld [vmem:[#allocation5 + $0x1cf0] sm:$0xf0]  ;;  %v10950_v39 = vor.u32 %v14203_v29, %v10947_v30 }
 0x1b5   :  { %7761 = vmatmul.bf16.vlgmr.msra.gmra.mxu3 %v15030_v63  ;;  %v7541_v11 = vpop.f32.mrf.mxu2  ;;  %v13801_v29 = vld [vmem:[#allocation5 + $0x190] sm:$0xf0]  ;;  %v11529_v30 = vld [vmem:[#allocation5 + $0x12b0] sm:$0xf] }
 0x1b6   :  { %7768 = vmatpush.bf16.msrb.mxu0 %v10646_v49  ;;  %v14384_v49 = vld [vmem:[#allocation5 + $0x13c8] sm:$0xf0] }
 0x1b7   :  { %7781 = vmatpush.bf16.msrb.mxu1 %v12982_v52  ;;  %7793 = vmatpush.bf16.msrb.mxu2 %v10942_v57  ;;  %v13573_v52 = vld [vmem:[#allocation5 + $0x22a8] sm:$0xf]  ;;  %v9479_v57 = vld [vmem:[#allocation5 + $0x3d4] sm:$0xf0]  ;;  %v11522_v62 = vor.u32 %v14384_v49, %v11521_v48 }
 0x1b8   :  { %7806 = vmatpush.bf16.msrb.mxu3 %v13278_v61  ;;  %v11815_v61 = vld [vmem:[#allocation5 + $0x1614] sm:$0xf0]  ;;  %v13574_v2 = vor.u32 %v14896_v54, %v13573_v52  ;;  %v9482_v6 = vor.u32 %v13837_v56, %v9479_v57  ;;  %v7554_v12 = vpop.f32.mrf.mxu3  ;;  %v10069_v49 = vld [vmem:[#allocation5 + $0x748] sm:$0xf]  ;;  %v14604_v52 = vld [vmem:[#allocation5 + $0x1aa8] sm:$0xf0] }
 0x1b9   :  { %v11818_v7 = vor.u32 %v14421_v60, %v11815_v61  ;;  %v7555_v16 = vadd.f32 %v7554_v12, %v7541_v11  ;;  %v10363_v56 = vld [vmem:[#allocation5 + $0xab4] sm:$0xf0]  ;;  %v14641_v60 = vld [vmem:[#allocation5 + $0x1bd4] sm:$0xf]  ;;  %v14568_v11 = vld [vmem:[#allocation5 + $0x198c] sm:$0xf] }
 0x1ba   :  { %7769 = vmatpush.bf16.msrb.mxu0 %v10354_v1  ;;  %v10945_v1 = vld [vmem:[#allocation5 + $0xe20] sm:$0xf]  ;;  %v12699_v61 = vld [vmem:[#allocation5 + $0x1cf4] sm:$0xf0]  ;;  %v12407_v12 = vld [vmem:[#allocation5 + $0x1aac] sm:$0xf0] }
 0x1bb   :  { %7782 = vmatpush.bf16.msrb.mxu1 %v12690_v4  ;;  %7794 = vmatpush.bf16.msrb.mxu2 %v10650_v9  ;;  %v13281_v4 = vld [vmem:[#allocation5 + $0x2060] sm:$0xf]  ;;  %v9187_v9 = vld [vmem:[#allocation5 + $0x18c] sm:$0xf0]  ;;  %v10946_v17 = vor.u32 %v14239_v3, %v10945_v1  ;;  %9005 = vst [vmem:[#allocation7 + $0x88] sm:$0xff] %v7555_v16 }
 0x1bc   :  { %7807 = vmatpush.bf16.msrb.mxu3 %v12986_v10  ;;  %v14348_v10 = vld [vmem:[#allocation5 + $0x12ac] sm:$0xf]  ;;  %v13282_v20 = vor.u32 %v14823_v5, %v13281_v4  ;;  %v9190_v23 = vor.u32 %v13764_v8, %v9187_v9  ;;  %v9777_v1 = vld [vmem:[#allocation5 + $0x500] sm:$0xf]  ;;  %v14531_v5 = vld [vmem:[#allocation5 + $0x1860] sm:$0xf0] }
 0x1bd   :  { %v11526_v26 = vor.u32 %v14348_v10, %v11523_v13  ;;  %v7543_v40 = vpop.f32.mrf.mxu2  ;;  %v12113_v4 = vld [vmem:[#allocation5 + $0x1740] sm:$0xf]  ;;  %v13984_v8 = vld [vmem:[#allocation5 + $0x74c] sm:$0xf]  ;;  %v10071_v9 = vld [vmem:[#allocation5 + $0x86c] sm:$0xf0] }
 0x1be   :  { %7770 = vmatpush.bf16.msrb.mxu0 %v10062_v14  ;;  %v14276_v14 = vld [vmem:[#allocation5 + $0x106c] sm:$0xf]  ;;  %v12114_v13 = vor.u32 %v14531_v5, %v12113_v4  ;;  %v11821_v16 = vld [vmem:[#allocation5 + $0x14f8] sm:$0xf]  ;;  %v14167_v4 = vld [vmem:[#allocation5 + $0xd00] sm:$0xf0] }
 0x1bf   :  { %7783 = vmatpush.bf16.msrb.mxu1 %v12398_v18  ;;  %7795 = vmatpush.bf16.msrb.mxu2 %v10358_v24  ;;  %v14860_v18 = vld [vmem:[#allocation5 + $0x22ac] sm:$0xf]  ;;  %v12989_v24 = vld [vmem:[#allocation5 + $0x1e18] sm:$0xf]  ;;  %v11242_v27 = vor.u32 %v14276_v14, %v11239_v15  ;;  %v13874_v15 = vld [vmem:[#allocation5 + $0x3d8] sm:$0xf0] }
 0x1c0   :  { %7808 = vmatpush.bf16.msrb.mxu3 %v12694_v25  ;;  %v14750_v25 = vld [vmem:[#allocation5 + $0x1f38] sm:$0xf0]  ;;  %v9485_v14 = vld [vmem:[#allocation5 + $0x2b8] sm:$0xf] }
 0x1c1   :  { %v12990_v34 = vor.u32 %v14750_v25, %v12989_v24  ;;  %v9193_v24 = vld [vmem:[#allocation5 + $0x70] sm:$0xf]  ;;  %v14495_v25 = vld [vmem:[#allocation5 + $0x1744] sm:$0xf] }
 0x1c2   :  { %7771 = vmatpush.bf16.msrb.mxu0 %v9770_v28  ;;  %v13578_v28 = vor.u32 %v14860_v18, %v13575_v19  ;;  %v10074_v18 = vor.u32 %v13984_v8, %v10071_v9  ;;  %v12410_v19 = vor.u32 %v14568_v11, %v12407_v12  ;;  %v9194_v40 = vor.u32 %v13801_v29, %v9193_v24  ;;  %v14204_v11 = vld [vmem:[#allocation5 + $0xe2c] sm:$0xf]  ;;  %v10955_v12 = vld [vmem:[#allocation5 + $0xf4c] sm:$0xf0]  ;;  %v12999_v29 = vld [vmem:[#allocation5 + $0x1f44] sm:$0xf0] }
 0x1c3   :  { %7784 = vmatpush.bf16.msrb.mxu1 %v12106_v31  ;;  %7796 = vmatpush.bf16.msrb.mxu2 %v10066_v36  ;;  %v10654_v31 = vor.u32 %v14166_v22, %v10653_v21  ;;  %v14093_v36 = vld [vmem:[#allocation5 + $0xab0] sm:$0xf0]  ;;  %v9779_v21 = vld [vmem:[#allocation5 + $0x624] sm:$0xf0] }
 0x1c4   :  { %7809 = vmatpush.bf16.msrb.mxu3 %v12402_v37  ;;  %v12697_v37 = vld [vmem:[#allocation5 + $0x1bd0] sm:$0xf]  ;;  %v10362_v45 = vor.u32 %v14093_v36, %v10361_v35  ;;  %v14897_v36 = vld [vmem:[#allocation5 + $0x23d0] sm:$0xf0] }
 0x1c5   :  { %v12698_v48 = vor.u32 %v14677_v38, %v12697_v37  ;;  %v13838_v38 = vld [vmem:[#allocation5 + $0x2bc] sm:$0xf] }
 0x1c6   :  { %7772 = vmatpush.bf16.msrb.mxu0 %v9478_v41  ;;  %v7556_v41 = vpop.f32.mrf.mxu3 }
 0x1c7   :  { %7785 = vmatpush.bf16.msrb.mxu1 %v11814_v46  ;;  %7797 = vmatpush.bf16.msrb.mxu2 %v9774_v53  ;;  %v14714_v46 = vld [vmem:[#allocation5 + $0x1e1c] sm:$0xf]  ;;  %v10658_v53 = vor.u32 %v14130_v43, %v10655_v44  ;;  %v11246_v44 = vor.u32 %v14313_v33, %v11245_v32  ;;  %v14021_v32 = vld [vmem:[#allocation5 + $0x870] sm:$0xf0]  ;;  %v12413_v33 = vld [vmem:[#allocation5 + $0x1990] sm:$0xf] }
 0x1c8   :  { %7810 = vmatpush.bf16.msrb.mxu3 %v12110_v55  ;;  %v12994_v54 = vor.u32 %v14714_v46, %v12991_v47  ;;  %v14057_v55 = vld [vmem:[#allocation5 + $0x994] sm:$0xf]  ;;  %v14422_v41 = vld [vmem:[#allocation5 + $0x14fc] sm:$0xf]  ;;  %v14240_v47 = vld [vmem:[#allocation5 + $0xf48] sm:$0xf0] }
 0x1ca   :  { %7773 = vmatpush.bf16.msrb.mxu0 %v9186_v58  ;;  %v7567_v57 = vpop.f32.mrf.mxu0  ;;  %v10070_v58 = vor.u32 %v14020_v50, %v10069_v49  ;;  %v14824_v49 = vld [vmem:[#allocation5 + $0x2188] sm:$0xf0] }
 0x1cb   :  { %7786 = vmatpush.bf16.msrb.mxu1 %v11522_v62  ;;  %7798 = vmatpush.bf16.msrb.mxu2 %v9482_v6  ;;  %v7580_v62 = vpop.f32.mrf.mxu1  ;;  %v10366_v6 = vor.u32 %v14057_v55, %v10363_v56 }
 0x1cc   :  { %7811 = vmatpush.bf16.msrb.mxu3 %v11818_v7  ;;  %v7581_v3 = vadd.f32 %v7580_v62, %v7567_v57  ;;  %v12702_v7 = vor.u32 %v14641_v60, %v12699_v61  ;;  %v11531_v57 = vld [vmem:[#allocation5 + $0x13d4] sm:$0xf0] }
 0x1cd   :  { %7774 = vmatmul.bf16.vlgmr.msrb.gmra.mxu0 %v15028_v59  ;;  %v11247_v60 = vld [vmem:[#allocation5 + $0x1194] sm:$0xf0] }
 0x1ce   :  { %7818 = vmatpush.bf16.msra.mxu0 %v11238_v0  ;;  %7787 = vmatmul.bf16.vlgmr.msrb.gmra.mxu1 %v15030_v63  ;;  %v12406_v0 = vor.u32 %v14604_v52, %v12405_v51  ;;  %9006 = vst [vmem:[#allocation7 + $0x90] sm:$0xff] %v7581_v3  ;;  %v13765_v52 = vld [vmem:[#allocation5 + $0x74] sm:$0xf]  ;;  %v10661_v3 = vld [vmem:[#allocation5 + $0xbe0] sm:$0xf] }
 0x1cf   :  { %7831 = vmatpush.bf16.msra.mxu1 %v13574_v2  ;;  %7799 = vmatpush.bf16.msrb.mxu2 %v9190_v23  ;;  %v13947_v2 = vld [vmem:[#allocation5 + $0x620] sm:$0xf0]  ;;  %v9486_v23 = vor.u32 %v13874_v15, %v9485_v14  ;;  %v14788_v14 = vld [vmem:[#allocation5 + $0x206c] sm:$0xf]  ;;  %v13291_v15 = vld [vmem:[#allocation5 + $0x218c] sm:$0xf0] }
 0x1d0   :  { %7812 = vmatpush.bf16.msrb.mxu3 %v11526_v26  ;;  %v9778_v10 = vor.u32 %v13947_v2, %v9777_v1  ;;  %v12115_v26 = vld [vmem:[#allocation5 + $0x1864] sm:$0xf0]  ;;  %v13583_v1 = vld [vmem:[#allocation5 + $0x23d4] sm:$0xf0]  ;;  %v13294_v24 = vor.u32 %v14788_v14, %v13291_v15  ;;  %v14314_v15 = vld [vmem:[#allocation5 + $0x1198] sm:$0xf0] }
 0x1d1   :  { %v12118_v37 = vor.u32 %v14495_v25, %v12115_v26  ;;  %v14131_v25 = vld [vmem:[#allocation5 + $0xbe4] sm:$0xf]  ;;  %v10663_v26 = vld [vmem:[#allocation5 + $0xd04] sm:$0xf0]  ;;  %v11253_v14 = vld [vmem:[#allocation5 + $0x1078] sm:$0xf] }
 0x1d2   :  { %7819 = vmatpush.bf16.msra.mxu0 %v10946_v17  ;;  %7800 = vmatmul.bf16.vlgmr.msrb.gmra.mxu2 %v15028_v59  ;;  %v14458_v17 = vld [vmem:[#allocation5 + $0x1618] sm:$0xf0]  ;;  %v7569_v22 = vpop.f32.mrf.mxu0 }
 0x1d3   :  { %7832 = vmatpush.bf16.msra.mxu1 %v13282_v20  ;;  %7844 = vmatpush.bf16.msra.mxu2 %v11242_v27  ;;  %v13911_v20 = vld [vmem:[#allocation5 + $0x504] sm:$0xf]  ;;  %v7582_v27 = vpop.f32.mrf.mxu1 }
 0x1d4   :  { %7857 = vmatpush.bf16.msra.mxu3 %v13578_v28  ;;  %v11822_v28 = vor.u32 %v14458_v17, %v11821_v16  ;;  %v9782_v35 = vor.u32 %v13911_v20, %v9779_v21  ;;  %v10369_v17 = vld [vmem:[#allocation5 + $0x998] sm:$0xf]  ;;  %v14678_v20 = vld [vmem:[#allocation5 + $0x1cf8] sm:$0xf0]  ;;  %v10958_v21 = vor.u32 %v14204_v11, %v10955_v12 }
 0x1d5   :  { %7813 = vmatmul.bf16.vlgmr.msrb.gmra.mxu3 %v15030_v63  ;;  %v7593_v55 = vpop.f32.mrf.mxu2  ;;  %v13802_v11 = vld [vmem:[#allocation5 + $0x198] sm:$0xf0]  ;;  %v11537_v12 = vld [vmem:[#allocation5 + $0x12b8] sm:$0xf] }
 0x1d6   :  { %7820 = vmatpush.bf16.msra.mxu0 %v10654_v31  ;;  %v14385_v31 = vld [vmem:[#allocation5 + $0x13d0] sm:$0xf0] }
 0x1d7   :  { %7833 = vmatpush.bf16.msra.mxu1 %v12990_v34  ;;  %7845 = vmatpush.bf16.msra.mxu2 %v10950_v39  ;;  %v13581_v34 = vld [vmem:[#allocation5 + $0x22b0] sm:$0xf]  ;;  %v9487_v39 = vld [vmem:[#allocation5 + $0x3dc] sm:$0xf0]  ;;  %v11530_v43 = vor.u32 %v14385_v31, %v11529_v30 }
 0x1d8   :  { %7858 = vmatpush.bf16.msra.mxu3 %v13286_v42  ;;  %v11823_v42 = vld [vmem:[#allocation5 + $0x161c] sm:$0xf0]  ;;  %v13582_v46 = vor.u32 %v14897_v36, %v13581_v34  ;;  %v9490_v50 = vor.u32 %v13838_v38, %v9487_v39  ;;  %v7606_v56 = vpop.f32.mrf.mxu3  ;;  %v10077_v31 = vld [vmem:[#allocation5 + $0x750] sm:$0xf]  ;;  %v14605_v34 = vld [vmem:[#allocation5 + $0x1ab0] sm:$0xf0] }
 0x1d9   :  { %v11826_v51 = vor.u32 %v14422_v41, %v11823_v42  ;;  %v7607_v61 = vadd.f32 %v7606_v56, %v7593_v55  ;;  %v10371_v38 = vld [vmem:[#allocation5 + $0xabc] sm:$0xf0]  ;;  %v14642_v41 = vld [vmem:[#allocation5 + $0x1bdc] sm:$0xf]  ;;  %v14569_v55 = vld [vmem:[#allocation5 + $0x1994] sm:$0xf] }
 0x1da   :  { %7821 = vmatpush.bf16.msra.mxu0 %v10362_v45  ;;  %v10953_v45 = vld [vmem:[#allocation5 + $0xe28] sm:$0xf]  ;;  %v12707_v42 = vld [vmem:[#allocation5 + $0x1cfc] sm:$0xf0]  ;;  %v12415_v56 = vld [vmem:[#allocation5 + $0x1ab4] sm:$0xf0] }
 0x1db   :  { %7834 = vmatpush.bf16.msra.mxu1 %v12698_v48  ;;  %7846 = vmatpush.bf16.msra.mxu2 %v10658_v53  ;;  %v13289_v48 = vld [vmem:[#allocation5 + $0x2068] sm:$0xf]  ;;  %v9195_v53 = vld [vmem:[#allocation5 + $0x194] sm:$0xf0]  ;;  %v10954_v62 = vor.u32 %v14240_v47, %v10953_v45  ;;  %9007 = vst [vmem:[#allocation7 + $0x98] sm:$0xff] %v7607_v61 }
 0x1dc   :  { %7859 = vmatpush.bf16.msra.mxu3 %v12994_v54  ;;  %v14349_v54 = vld [vmem:[#allocation5 + $0x12b4] sm:$0xf]  ;;  %v13290_v2 = vor.u32 %v14824_v49, %v13289_v48  ;;  %v9198_v5 = vor.u32 %v13765_v52, %v9195_v53  ;;  %v9785_v45 = vld [vmem:[#allocation5 + $0x508] sm:$0xf]  ;;  %v14532_v49 = vld [vmem:[#allocation5 + $0x1868] sm:$0xf0] }
 0x1dd   :  { %v11534_v8 = vor.u32 %v14349_v54, %v11531_v57  ;;  %v7595_v22 = vpop.f32.mrf.mxu2  ;;  %v12121_v48 = vld [vmem:[#allocation5 + $0x1748] sm:$0xf]  ;;  %v13985_v52 = vld [vmem:[#allocation5 + $0x754] sm:$0xf]  ;;  %v10079_v53 = vld [vmem:[#allocation5 + $0x874] sm:$0xf0] }
 0x1de   :  { %7822 = vmatpush.bf16.msra.mxu0 %v10070_v58  ;;  %v14277_v58 = vld [vmem:[#allocation5 + $0x1074] sm:$0xf]  ;;  %v12122_v57 = vor.u32 %v14532_v49, %v12121_v48  ;;  %v11829_v61 = vld [vmem:[#allocation5 + $0x1500] sm:$0xf]  ;;  %v14168_v48 = vld [vmem:[#allocation5 + $0xd08] sm:$0xf0] }
 0x1df   :  { %7835 = vmatpush.bf16.msra.mxu1 %v12406_v0  ;;  %7847 = vmatpush.bf16.msra.mxu2 %v10366_v6  ;;  %v14861_v0 = vld [vmem:[#allocation5 + $0x22b4] sm:$0xf]  ;;  %v12997_v6 = vld [vmem:[#allocation5 + $0x1e20] sm:$0xf]  ;;  %v11250_v9 = vor.u32 %v14277_v58, %v11247_v60  ;;  %v13875_v60 = vld [vmem:[#allocation5 + $0x3e0] sm:$0xf0] }
 0x1e0   :  { %7860 = vmatpush.bf16.msra.mxu3 %v12702_v7  ;;  %v14751_v7 = vld [vmem:[#allocation5 + $0x1f40] sm:$0xf0]  ;;  %v9493_v58 = vld [vmem:[#allocation5 + $0x2c0] sm:$0xf] }
 0x1e1   :  { %v12998_v16 = vor.u32 %v14751_v7, %v12997_v6  ;;  %v9201_v6 = vld [vmem:[#allocation5 + $0x78] sm:$0xf]  ;;  %v14496_v7 = vld [vmem:[#allocation5 + $0x174c] sm:$0xf] }
 0x1e2   :  { %7823 = vmatpush.bf16.msra.mxu0 %v9778_v10  ;;  %v13586_v10 = vor.u32 %v14861_v0, %v13583_v1  ;;  %v10082_v0 = vor.u32 %v13985_v52, %v10079_v53  ;;  %v12418_v1 = vor.u32 %v14569_v55, %v12415_v56  ;;  %v9202_v22 = vor.u32 %v13802_v11, %v9201_v6  ;;  %v14205_v55 = vld [vmem:[#allocation5 + $0xe34] sm:$0xf]  ;;  %v10963_v56 = vld [vmem:[#allocation5 + $0xf54] sm:$0xf0]  ;;  %v13007_v11 = vld [vmem:[#allocation5 + $0x1f4c] sm:$0xf0] }
 0x1e3   :  { %7836 = vmatpush.bf16.msra.mxu1 %v12114_v13  ;;  %7848 = vmatpush.bf16.msra.mxu2 %v10074_v18  ;;  %v10662_v13 = vor.u32 %v14167_v4, %v10661_v3  ;;  %v14094_v18 = vld [vmem:[#allocation5 + $0xab8] sm:$0xf0]  ;;  %v9787_v3 = vld [vmem:[#allocation5 + $0x62c] sm:$0xf0] }
 0x1e4   :  { %7861 = vmatpush.bf16.msra.mxu3 %v12410_v19  ;;  %v12705_v19 = vld [vmem:[#allocation5 + $0x1bd8] sm:$0xf]  ;;  %v10370_v27 = vor.u32 %v14094_v18, %v10369_v17  ;;  %v14898_v18 = vld [vmem:[#allocation5 + $0x23d8] sm:$0xf0] }
 0x1e5   :  { %v12706_v30 = vor.u32 %v14678_v20, %v12705_v19  ;;  %v13839_v20 = vld [vmem:[#allocation5 + $0x2c4] sm:$0xf] }
 0x1e6   :  { %7824 = vmatpush.bf16.msra.mxu0 %v9486_v23  ;;  %v7608_v23 = vpop.f32.mrf.mxu3 }
 0x1e7   :  { %7837 = vmatpush.bf16.msra.mxu1 %v11822_v28  ;;  %7849 = vmatpush.bf16.msra.mxu2 %v9782_v35  ;;  %v14715_v28 = vld [vmem:[#allocation5 + $0x1e24] sm:$0xf]  ;;  %v10666_v35 = vor.u32 %v14131_v25, %v10663_v26  ;;  %v11254_v26 = vor.u32 %v14314_v15, %v11253_v14  ;;  %v14022_v14 = vld [vmem:[#allocation5 + $0x878] sm:$0xf0]  ;;  %v12421_v15 = vld [vmem:[#allocation5 + $0x1998] sm:$0xf] }
 0x1e8   :  { %7862 = vmatpush.bf16.msra.mxu3 %v12118_v37  ;;  %v13002_v36 = vor.u32 %v14715_v28, %v12999_v29  ;;  %v14058_v37 = vld [vmem:[#allocation5 + $0x99c] sm:$0xf]  ;;  %v14423_v23 = vld [vmem:[#allocation5 + $0x1504] sm:$0xf]  ;;  %v14241_v29 = vld [vmem:[#allocation5 + $0xf50] sm:$0xf0] }
 0x1ea   :  { %7825 = vmatpush.bf16.msra.mxu0 %v9194_v40  ;;  %v7619_v39 = vpop.f32.mrf.mxu0  ;;  %v10078_v40 = vor.u32 %v14021_v32, %v10077_v31  ;;  %v14825_v31 = vld [vmem:[#allocation5 + $0x2190] sm:$0xf0] }
 0x1eb   :  { %7838 = vmatpush.bf16.msra.mxu1 %v11530_v43  ;;  %7850 = vmatpush.bf16.msra.mxu2 %v9490_v50  ;;  %v7632_v43 = vpop.f32.mrf.mxu1  ;;  %v10374_v50 = vor.u32 %v14058_v37, %v10371_v38 }
 0x1ec   :  { %7863 = vmatpush.bf16.msra.mxu3 %v11826_v51  ;;  %v7633_v47 = vadd.f32 %v7632_v43, %v7619_v39  ;;  %v12710_v51 = vor.u32 %v14642_v41, %v12707_v42  ;;  %v11539_v39 = vld [vmem:[#allocation5 + $0x13dc] sm:$0xf0] }
 0x1ed   :  { %7826 = vmatmul.bf16.vlgmr.msra.gmra.mxu0 %v15028_v59  ;;  %v11255_v41 = vld [vmem:[#allocation5 + $0x119c] sm:$0xf0] }
 0x1ee   :  { %7870 = vmatpush.bf16.msrb.mxu0 %v11246_v44  ;;  %7839 = vmatmul.bf16.vlgmr.msra.gmra.mxu1 %v15030_v63  ;;  %v12414_v44 = vor.u32 %v14605_v34, %v12413_v33  ;;  %9008 = vst [vmem:[#allocation7 + $0xa0] sm:$0xff] %v7633_v47  ;;  %v13766_v34 = vld [vmem:[#allocation5 + $0x7c] sm:$0xf]  ;;  %v10669_v47 = vld [vmem:[#allocation5 + $0xbe8] sm:$0xf] }
 0x1ef   :  { %7883 = vmatpush.bf16.msrb.mxu1 %v13582_v46  ;;  %7851 = vmatpush.bf16.msra.mxu2 %v9198_v5  ;;  %v13948_v46 = vld [vmem:[#allocation5 + $0x628] sm:$0xf0]  ;;  %v9494_v5 = vor.u32 %v13875_v60, %v9493_v58  ;;  %v14789_v58 = vld [vmem:[#allocation5 + $0x2074] sm:$0xf]  ;;  %v13299_v60 = vld [vmem:[#allocation5 + $0x2194] sm:$0xf0] }
 0x1f0   :  { %7864 = vmatpush.bf16.msra.mxu3 %v11534_v8  ;;  %v9786_v54 = vor.u32 %v13948_v46, %v9785_v45  ;;  %v12123_v8 = vld [vmem:[#allocation5 + $0x186c] sm:$0xf0]  ;;  %v13591_v45 = vld [vmem:[#allocation5 + $0x23dc] sm:$0xf0]  ;;  %v13302_v6 = vor.u32 %v14789_v58, %v13299_v60  ;;  %v14315_v60 = vld [vmem:[#allocation5 + $0x11a0] sm:$0xf0] }
 0x1f1   :  { %v12126_v19 = vor.u32 %v14496_v7, %v12123_v8  ;;  %v14132_v7 = vld [vmem:[#allocation5 + $0xbec] sm:$0xf]  ;;  %v10671_v8 = vld [vmem:[#allocation5 + $0xd0c] sm:$0xf0]  ;;  %v11261_v58 = vld [vmem:[#allocation5 + $0x1080] sm:$0xf] }
 0x1f2   :  { %7871 = vmatpush.bf16.msrb.mxu0 %v10954_v62  ;;  %7852 = vmatmul.bf16.vlgmr.msra.gmra.mxu2 %v15028_v59  ;;  %v14459_v62 = vld [vmem:[#allocation5 + $0x1620] sm:$0xf0]  ;;  %v7621_v4 = vpop.f32.mrf.mxu0 }
 0x1f3   :  { %7884 = vmatpush.bf16.msrb.mxu1 %v13290_v2  ;;  %7896 = vmatpush.bf16.msrb.mxu2 %v11250_v9  ;;  %v13912_v2 = vld [vmem:[#allocation5 + $0x50c] sm:$0xf]  ;;  %v7634_v9 = vpop.f32.mrf.mxu1 }
 0x1f4   :  { %7909 = vmatpush.bf16.msrb.mxu3 %v13586_v10  ;;  %v11830_v10 = vor.u32 %v14459_v62, %v11829_v61  ;;  %v9790_v17 = vor.u32 %v13912_v2, %v9787_v3  ;;  %v10377_v62 = vld [vmem:[#allocation5 + $0x9a0] sm:$0xf]  ;;  %v14679_v2 = vld [vmem:[#allocation5 + $0x1d00] sm:$0xf0]  ;;  %v10966_v3 = vor.u32 %v14205_v55, %v10963_v56 }
 0x1f5   :  { %7865 = vmatmul.bf16.vlgmr.msra.gmra.mxu3 %v15030_v63  ;;  %v7645_v37 = vpop.f32.mrf.mxu2  ;;  %v13803_v55 = vld [vmem:[#allocation5 + $0x1a0] sm:$0xf0]  ;;  %v11545_v56 = vld [vmem:[#allocation5 + $0x12c0] sm:$0xf] }
 0x1f6   :  { %7872 = vmatpush.bf16.msrb.mxu0 %v10662_v13  ;;  %v14386_v13 = vld [vmem:[#allocation5 + $0x13d8] sm:$0xf0] }
 0x1f7   :  { %7885 = vmatpush.bf16.msrb.mxu1 %v12998_v16  ;;  %7897 = vmatpush.bf16.msrb.mxu2 %v10958_v21  ;;  %v13589_v16 = vld [vmem:[#allocation5 + $0x22b8] sm:$0xf]  ;;  %v9495_v21 = vld [vmem:[#allocation5 + $0x3e4] sm:$0xf0]  ;;  %v11538_v25 = vor.u32 %v14386_v13, %v11537_v12 }
 0x1f8   :  { %7910 = vmatpush.bf16.msrb.mxu3 %v13294_v24  ;;  %v11831_v24 = vld [vmem:[#allocation5 + $0x1624] sm:$0xf0]  ;;  %v13590_v28 = vor.u32 %v14898_v18, %v13589_v16  ;;  %v9498_v32 = vor.u32 %v13839_v20, %v9495_v21  ;;  %v7658_v38 = vpop.f32.mrf.mxu3  ;;  %v10085_v13 = vld [vmem:[#allocation5 + $0x758] sm:$0xf]  ;;  %v14606_v16 = vld [vmem:[#allocation5 + $0x1ab8] sm:$0xf0] }
 0x1f9   :  { %v11834_v33 = vor.u32 %v14423_v23, %v11831_v24  ;;  %v7659_v42 = vadd.f32 %v7658_v38, %v7645_v37  ;;  %v10379_v20 = vld [vmem:[#allocation5 + $0xac4] sm:$0xf0]  ;;  %v14643_v23 = vld [vmem:[#allocation5 + $0x1be4] sm:$0xf]  ;;  %v14570_v37 = vld [vmem:[#allocation5 + $0x199c] sm:$0xf] }
 0x1fa   :  { %7873 = vmatpush.bf16.msrb.mxu0 %v10370_v27  ;;  %v10961_v27 = vld [vmem:[#allocation5 + $0xe30] sm:$0xf]  ;;  %v12715_v24 = vld [vmem:[#allocation5 + $0x1d04] sm:$0xf0]  ;;  %v12423_v38 = vld [vmem:[#allocation5 + $0x1abc] sm:$0xf0] }
 0x1fb   :  { %7886 = vmatpush.bf16.msrb.mxu1 %v12706_v30  ;;  %7898 = vmatpush.bf16.msrb.mxu2 %v10666_v35  ;;  %v13297_v30 = vld [vmem:[#allocation5 + $0x2070] sm:$0xf]  ;;  %v9203_v35 = vld [vmem:[#allocation5 + $0x19c] sm:$0xf0]  ;;  %v10962_v43 = vor.u32 %v14241_v29, %v10961_v27  ;;  %9009 = vst [vmem:[#allocation7 + $0xa8] sm:$0xff] %v7659_v42 }
 0x1fc   :  { %7911 = vmatpush.bf16.msrb.mxu3 %v13002_v36  ;;  %v14350_v36 = vld [vmem:[#allocation5 + $0x12bc] sm:$0xf]  ;;  %v13298_v46 = vor.u32 %v14825_v31, %v13297_v30  ;;  %v9206_v49 = vor.u32 %v13766_v34, %v9203_v35  ;;  %v9793_v27 = vld [vmem:[#allocation5 + $0x510] sm:$0xf]  ;;  %v14533_v31 = vld [vmem:[#allocation5 + $0x1870] sm:$0xf0] }
 0x1fd   :  { %v11542_v52 = vor.u32 %v14350_v36, %v11539_v39  ;;  %v7647_v4 = vpop.f32.mrf.mxu2  ;;  %v12129_v30 = vld [vmem:[#allocation5 + $0x1750] sm:$0xf]  ;;  %v13986_v34 = vld [vmem:[#allocation5 + $0x75c] sm:$0xf]  ;;  %v10087_v35 = vld [vmem:[#allocation5 + $0x87c] sm:$0xf0] }
 0x1fe   :  { %7874 = vmatpush.bf16.msrb.mxu0 %v10078_v40  ;;  %v14278_v40 = vld [vmem:[#allocation5 + $0x107c] sm:$0xf]  ;;  %v12130_v39 = vor.u32 %v14533_v31, %v12129_v30  ;;  %v11837_v42 = vld [vmem:[#allocation5 + $0x1508] sm:$0xf]  ;;  %v14169_v30 = vld [vmem:[#allocation5 + $0xd10] sm:$0xf0] }
 0x1ff   :  { %7887 = vmatpush.bf16.msrb.mxu1 %v12414_v44  ;;  %7899 = vmatpush.bf16.msrb.mxu2 %v10374_v50  ;;  %v14862_v44 = vld [vmem:[#allocation5 + $0x22bc] sm:$0xf]  ;;  %v13005_v50 = vld [vmem:[#allocation5 + $0x1e28] sm:$0xf]  ;;  %v11258_v53 = vor.u32 %v14278_v40, %v11255_v41  ;;  %v13876_v41 = vld [vmem:[#allocation5 + $0x3e8] sm:$0xf0] }
 0x200   :  { %7912 = vmatpush.bf16.msrb.mxu3 %v12710_v51  ;;  %v14752_v51 = vld [vmem:[#allocation5 + $0x1f48] sm:$0xf0]  ;;  %v9501_v40 = vld [vmem:[#allocation5 + $0x2c8] sm:$0xf] }
 0x201   :  { %v13006_v61 = vor.u32 %v14752_v51, %v13005_v50  ;;  %v9209_v50 = vld [vmem:[#allocation5 + $0x80] sm:$0xf]  ;;  %v14497_v51 = vld [vmem:[#allocation5 + $0x1754] sm:$0xf] }
 0x202   :  { %7875 = vmatpush.bf16.msrb.mxu0 %v9786_v54  ;;  %v13594_v54 = vor.u32 %v14862_v44, %v13591_v45  ;;  %v10090_v44 = vor.u32 %v13986_v34, %v10087_v35  ;;  %v12426_v45 = vor.u32 %v14570_v37, %v12423_v38  ;;  %v9210_v4 = vor.u32 %v13803_v55, %v9209_v50  ;;  %v14206_v37 = vld [vmem:[#allocation5 + $0xe3c] sm:$0xf]  ;;  %v10971_v38 = vld [vmem:[#allocation5 + $0xf5c] sm:$0xf0]  ;;  %v13015_v55 = vld [vmem:[#allocation5 + $0x1f54] sm:$0xf0] }
 0x203   :  { %7888 = vmatpush.bf16.msrb.mxu1 %v12122_v57  ;;  %7900 = vmatpush.bf16.msrb.mxu2 %v10082_v0  ;;  %v10670_v57 = vor.u32 %v14168_v48, %v10669_v47  ;;  %v14095_v0 = vld [vmem:[#allocation5 + $0xac0] sm:$0xf0]  ;;  %v9795_v47 = vld [vmem:[#allocation5 + $0x634] sm:$0xf0] }
 0x204   :  { %7913 = vmatpush.bf16.msrb.mxu3 %v12418_v1  ;;  %v12713_v1 = vld [vmem:[#allocation5 + $0x1be0] sm:$0xf]  ;;  %v10378_v9 = vor.u32 %v14095_v0, %v10377_v62  ;;  %v14899_v0 = vld [vmem:[#allocation5 + $0x23e0] sm:$0xf0] }
 0x205   :  { %v12714_v12 = vor.u32 %v14679_v2, %v12713_v1  ;;  %v13840_v2 = vld [vmem:[#allocation5 + $0x2cc] sm:$0xf] }
 0x206   :  { %7876 = vmatpush.bf16.msrb.mxu0 %v9494_v5  ;;  %v7660_v5 = vpop.f32.mrf.mxu3 }
 0x207   :  { %7889 = vmatpush.bf16.msrb.mxu1 %v11830_v10  ;;  %7901 = vmatpush.bf16.msrb.mxu2 %v9790_v17  ;;  %v14716_v10 = vld [vmem:[#allocation5 + $0x1e2c] sm:$0xf]  ;;  %v10674_v17 = vor.u32 %v14132_v7, %v10671_v8  ;;  %v11262_v8 = vor.u32 %v14315_v60, %v11261_v58  ;;  %v14023_v58 = vld [vmem:[#allocation5 + $0x880] sm:$0xf0]  ;;  %v12429_v60 = vld [vmem:[#allocation5 + $0x19a0] sm:$0xf] }
 0x208   :  { %7914 = vmatpush.bf16.msrb.mxu3 %v12126_v19  ;;  %v13010_v18 = vor.u32 %v14716_v10, %v13007_v11  ;;  %v14059_v19 = vld [vmem:[#allocation5 + $0x9a4] sm:$0xf]  ;;  %v14424_v5 = vld [vmem:[#allocation5 + $0x150c] sm:$0xf]  ;;  %v14242_v11 = vld [vmem:[#allocation5 + $0xf58] sm:$0xf0] }
 0x20a   :  { %7877 = vmatpush.bf16.msrb.mxu0 %v9202_v22  ;;  %v7671_v21 = vpop.f32.mrf.mxu0  ;;  %v10086_v22 = vor.u32 %v14022_v14, %v10085_v13  ;;  %v14826_v13 = vld [vmem:[#allocation5 + $0x2198] sm:$0xf0] }
 0x20b   :  { %7890 = vmatpush.bf16.msrb.mxu1 %v11538_v25  ;;  %7902 = vmatpush.bf16.msrb.mxu2 %v9498_v32  ;;  %v7684_v25 = vpop.f32.mrf.mxu1  ;;  %v10382_v32 = vor.u32 %v14059_v19, %v10379_v20 }
 0x20c   :  { %7915 = vmatpush.bf16.msrb.mxu3 %v11834_v33  ;;  %v7685_v29 = vadd.f32 %v7684_v25, %v7671_v21  ;;  %v12718_v33 = vor.u32 %v14643_v23, %v12715_v24  ;;  %v11547_v21 = vld [vmem:[#allocation5 + $0x13e4] sm:$0xf0] }
 0x20d   :  { %7878 = vmatmul.bf16.vlgmr.msrb.gmra.mxu0 %v15028_v59  ;;  %v11263_v23 = vld [vmem:[#allocation5 + $0x11a4] sm:$0xf0] }
 0x20e   :  { %7922 = vmatpush.bf16.msra.mxu0 %v11254_v26  ;;  %7891 = vmatmul.bf16.vlgmr.msrb.gmra.mxu1 %v15030_v63  ;;  %v12422_v26 = vor.u32 %v14606_v16, %v12421_v15  ;;  %9010 = vst [vmem:[#allocation7 + $0xb0] sm:$0xff] %v7685_v29  ;;  %v13767_v16 = vld [vmem:[#allocation5 + $0x84] sm:$0xf]  ;;  %v10677_v29 = vld [vmem:[#allocation5 + $0xbf0] sm:$0xf] }
 0x20f   :  { %7935 = vmatpush.bf16.msra.mxu1 %v13590_v28  ;;  %7903 = vmatpush.bf16.msrb.mxu2 %v9206_v49  ;;  %v13949_v28 = vld [vmem:[#allocation5 + $0x630] sm:$0xf0]  ;;  %v9502_v49 = vor.u32 %v13876_v41, %v9501_v40  ;;  %v14790_v40 = vld [vmem:[#allocation5 + $0x207c] sm:$0xf]  ;;  %v13307_v41 = vld [vmem:[#allocation5 + $0x219c] sm:$0xf0] }
 0x210   :  { %7916 = vmatpush.bf16.msrb.mxu3 %v11542_v52  ;;  %v9794_v36 = vor.u32 %v13949_v28, %v9793_v27  ;;  %v12131_v52 = vld [vmem:[#allocation5 + $0x1874] sm:$0xf0]  ;;  %v13599_v27 = vld [vmem:[#allocation5 + $0x23e4] sm:$0xf0]  ;;  %v13310_v50 = vor.u32 %v14790_v40, %v13307_v41  ;;  %v14316_v41 = vld [vmem:[#allocation5 + $0x11a8] sm:$0xf0] }
 0x211   :  { %v12134_v1 = vor.u32 %v14497_v51, %v12131_v52  ;;  %v14133_v51 = vld [vmem:[#allocation5 + $0xbf4] sm:$0xf]  ;;  %v10679_v52 = vld [vmem:[#allocation5 + $0xd14] sm:$0xf0]  ;;  %v11269_v40 = vld [vmem:[#allocation5 + $0x1088] sm:$0xf] }
 0x212   :  { %7923 = vmatpush.bf16.msra.mxu0 %v10962_v43  ;;  %7904 = vmatmul.bf16.vlgmr.msrb.gmra.mxu2 %v15028_v59  ;;  %v14460_v43 = vld [vmem:[#allocation5 + $0x1628] sm:$0xf0]  ;;  %v7673_v48 = vpop.f32.mrf.mxu0 }
 0x213   :  { %7936 = vmatpush.bf16.msra.mxu1 %v13298_v46  ;;  %7948 = vmatpush.bf16.msra.mxu2 %v11258_v53  ;;  %v13913_v46 = vld [vmem:[#allocation5 + $0x514] sm:$0xf]  ;;  %v7686_v53 = vpop.f32.mrf.mxu1 }
 0x214   :  { %7961 = vmatpush.bf16.msra.mxu3 %v13594_v54  ;;  %v11838_v54 = vor.u32 %v14460_v43, %v11837_v42  ;;  %v9798_v62 = vor.u32 %v13913_v46, %v9795_v47  ;;  %v10385_v43 = vld [vmem:[#allocation5 + $0x9a8] sm:$0xf]  ;;  %v14680_v46 = vld [vmem:[#allocation5 + $0x1d08] sm:$0xf0]  ;;  %v10974_v47 = vor.u32 %v14206_v37, %v10971_v38 }
 0x215   :  { %7917 = vmatmul.bf16.vlgmr.msrb.gmra.mxu3 %v15030_v63  ;;  %v7697_v19 = vpop.f32.mrf.mxu2  ;;  %v13804_v37 = vld [vmem:[#allocation5 + $0x1a8] sm:$0xf0]  ;;  %v11553_v38 = vld [vmem:[#allocation5 + $0x12c8] sm:$0xf] }
 0x216   :  { %7924 = vmatpush.bf16.msra.mxu0 %v10670_v57  ;;  %v14387_v57 = vld [vmem:[#allocation5 + $0x13e0] sm:$0xf0] }
 0x217   :  { %7937 = vmatpush.bf16.msra.mxu1 %v13006_v61  ;;  %7949 = vmatpush.bf16.msra.mxu2 %v10966_v3  ;;  %v13597_v61 = vld [vmem:[#allocation5 + $0x22c0] sm:$0xf]  ;;  %v9503_v3 = vld [vmem:[#allocation5 + $0x3ec] sm:$0xf0]  ;;  %v11546_v7 = vor.u32 %v14387_v57, %v11545_v56 }
 0x218   :  { %7962 = vmatpush.bf16.msra.mxu3 %v13302_v6  ;;  %v11839_v6 = vld [vmem:[#allocation5 + $0x162c] sm:$0xf0]  ;;  %v13598_v10 = vor.u32 %v14899_v0, %v13597_v61  ;;  %v9506_v14 = vor.u32 %v13840_v2, %v9503_v3  ;;  %v7710_v20 = vpop.f32.mrf.mxu3  ;;  %v10093_v57 = vld [vmem:[#allocation5 + $0x760] sm:$0xf]  ;;  %v14607_v61 = vld [vmem:[#allocation5 + $0x1ac0] sm:$0xf0] }
 0x219   :  { %v11842_v15 = vor.u32 %v14424_v5, %v11839_v6  ;;  %v7711_v24 = vadd.f32 %v7710_v20, %v7697_v19  ;;  %v10387_v2 = vld [vmem:[#allocation5 + $0xacc] sm:$0xf0]  ;;  %v14644_v5 = vld [vmem:[#allocation5 + $0x1bec] sm:$0xf]  ;;  %v14571_v19 = vld [vmem:[#allocation5 + $0x19a4] sm:$0xf] }
 0x21a   :  { %7925 = vmatpush.bf16.msra.mxu0 %v10378_v9  ;;  %v10969_v9 = vld [vmem:[#allocation5 + $0xe38] sm:$0xf]  ;;  %v12723_v6 = vld [vmem:[#allocation5 + $0x1d0c] sm:$0xf0]  ;;  %v12431_v20 = vld [vmem:[#allocation5 + $0x1ac4] sm:$0xf0] }
 0x21b   :  { %7938 = vmatpush.bf16.msra.mxu1 %v12714_v12  ;;  %7950 = vmatpush.bf16.msra.mxu2 %v10674_v17  ;;  %v13305_v12 = vld [vmem:[#allocation5 + $0x2078] sm:$0xf]  ;;  %v9211_v17 = vld [vmem:[#allocation5 + $0x1a4] sm:$0xf0]  ;;  %v10970_v25 = vor.u32 %v14242_v11, %v10969_v9  ;;  %9011 = vst [vmem:[#allocation7 + $0xb8] sm:$0xff] %v7711_v24 }
 0x21c   :  { %7963 = vmatpush.bf16.msra.mxu3 %v13010_v18  ;;  %v14351_v18 = vld [vmem:[#allocation5 + $0x12c4] sm:$0xf]  ;;  %v13306_v28 = vor.u32 %v14826_v13, %v13305_v12  ;;  %v9214_v31 = vor.u32 %v13767_v16, %v9211_v17  ;;  %v9801_v9 = vld [vmem:[#allocation5 + $0x518] sm:$0xf]  ;;  %v14534_v13 = vld [vmem:[#allocation5 + $0x1878] sm:$0xf0] }
 0x21d   :  { %v11550_v34 = vor.u32 %v14351_v18, %v11547_v21  ;;  %v7699_v48 = vpop.f32.mrf.mxu2  ;;  %v12137_v12 = vld [vmem:[#allocation5 + $0x1758] sm:$0xf]  ;;  %v13987_v16 = vld [vmem:[#allocation5 + $0x764] sm:$0xf]  ;;  %v10095_v17 = vld [vmem:[#allocation5 + $0x884] sm:$0xf0] }
 0x21e   :  { %7926 = vmatpush.bf16.msra.mxu0 %v10086_v22  ;;  %v14279_v22 = vld [vmem:[#allocation5 + $0x1084] sm:$0xf]  ;;  %v12138_v21 = vor.u32 %v14534_v13, %v12137_v12  ;;  %v11845_v24 = vld [vmem:[#allocation5 + $0x1510] sm:$0xf]  ;;  %v14170_v12 = vld [vmem:[#allocation5 + $0xd18] sm:$0xf0] }
 0x21f   :  { %7939 = vmatpush.bf16.msra.mxu1 %v12422_v26  ;;  %7951 = vmatpush.bf16.msra.mxu2 %v10382_v32  ;;  %v14863_v26 = vld [vmem:[#allocation5 + $0x22c4] sm:$0xf]  ;;  %v13013_v32 = vld [vmem:[#allocation5 + $0x1e30] sm:$0xf]  ;;  %v11266_v35 = vor.u32 %v14279_v22, %v11263_v23  ;;  %v13877_v23 = vld [vmem:[#allocation5 + $0x3f0] sm:$0xf0] }
 0x220   :  { %7964 = vmatpush.bf16.msra.mxu3 %v12718_v33  ;;  %v14753_v33 = vld [vmem:[#allocation5 + $0x1f50] sm:$0xf0]  ;;  %v9509_v22 = vld [vmem:[#allocation5 + $0x2d0] sm:$0xf] }
 0x221   :  { %v13014_v42 = vor.u32 %v14753_v33, %v13013_v32  ;;  %v9217_v32 = vld [vmem:[#allocation5 + $0x88] sm:$0xf]  ;;  %v14498_v33 = vld [vmem:[#allocation5 + $0x175c] sm:$0xf] }
 0x222   :  { %7927 = vmatpush.bf16.msra.mxu0 %v9794_v36  ;;  %v13602_v36 = vor.u32 %v14863_v26, %v13599_v27  ;;  %v10098_v26 = vor.u32 %v13987_v16, %v10095_v17  ;;  %v12434_v27 = vor.u32 %v14571_v19, %v12431_v20  ;;  %v9218_v48 = vor.u32 %v13804_v37, %v9217_v32  ;;  %v14207_v19 = vld [vmem:[#allocation5 + $0xe44] sm:$0xf]  ;;  %v10979_v20 = vld [vmem:[#allocation5 + $0xf64] sm:$0xf0]  ;;  %v13023_v37 = vld [vmem:[#allocation5 + $0x1f5c] sm:$0xf0] }
 0x223   :  { %7940 = vmatpush.bf16.msra.mxu1 %v12130_v39  ;;  %7952 = vmatpush.bf16.msra.mxu2 %v10090_v44  ;;  %v10678_v39 = vor.u32 %v14169_v30, %v10677_v29  ;;  %v14096_v44 = vld [vmem:[#allocation5 + $0xac8] sm:$0xf0]  ;;  %v9803_v29 = vld [vmem:[#allocation5 + $0x63c] sm:$0xf0] }
 0x224   :  { %7965 = vmatpush.bf16.msra.mxu3 %v12426_v45  ;;  %v12721_v45 = vld [vmem:[#allocation5 + $0x1be8] sm:$0xf]  ;;  %v10386_v53 = vor.u32 %v14096_v44, %v10385_v43  ;;  %v14900_v44 = vld [vmem:[#allocation5 + $0x23e8] sm:$0xf0] }
 0x225   :  { %v12722_v56 = vor.u32 %v14680_v46, %v12721_v45  ;;  %v13841_v46 = vld [vmem:[#allocation5 + $0x2d4] sm:$0xf] }
 0x226   :  { %7928 = vmatpush.bf16.msra.mxu0 %v9502_v49  ;;  %v7712_v49 = vpop.f32.mrf.mxu3 }
 0x227   :  { %7941 = vmatpush.bf16.msra.mxu1 %v11838_v54  ;;  %7953 = vmatpush.bf16.msra.mxu2 %v9798_v62  ;;  %v14717_v54 = vld [vmem:[#allocation5 + $0x1e34] sm:$0xf]  ;;  %v10682_v62 = vor.u32 %v14133_v51, %v10679_v52  ;;  %v11270_v52 = vor.u32 %v14316_v41, %v11269_v40  ;;  %v14024_v40 = vld [vmem:[#allocation5 + $0x888] sm:$0xf0]  ;;  %v12437_v41 = vld [vmem:[#allocation5 + $0x19a8] sm:$0xf] }
 0x228   :  { %7966 = vmatpush.bf16.msra.mxu3 %v12134_v1  ;;  %v13018_v0 = vor.u32 %v14717_v54, %v13015_v55  ;;  %v14060_v1 = vld [vmem:[#allocation5 + $0x9ac] sm:$0xf]  ;;  %v14425_v49 = vld [vmem:[#allocation5 + $0x1514] sm:$0xf]  ;;  %v14243_v55 = vld [vmem:[#allocation5 + $0xf60] sm:$0xf0] }
 0x22a   :  { %7929 = vmatpush.bf16.msra.mxu0 %v9210_v4  ;;  %v7723_v3 = vpop.f32.mrf.mxu0  ;;  %v10094_v4 = vor.u32 %v14023_v58, %v10093_v57  ;;  %v14827_v57 = vld [vmem:[#allocation5 + $0x21a0] sm:$0xf0] }
 0x22b   :  { %7942 = vmatpush.bf16.msra.mxu1 %v11546_v7  ;;  %7954 = vmatpush.bf16.msra.mxu2 %v9506_v14  ;;  %v7736_v7 = vpop.f32.mrf.mxu1  ;;  %v10390_v14 = vor.u32 %v14060_v1, %v10387_v2 }
 0x22c   :  { %7967 = vmatpush.bf16.msra.mxu3 %v11842_v15  ;;  %v7737_v11 = vadd.f32 %v7736_v7, %v7723_v3  ;;  %v12726_v15 = vor.u32 %v14644_v5, %v12723_v6  ;;  %v11555_v3 = vld [vmem:[#allocation5 + $0x13ec] sm:$0xf0] }
 0x22d   :  { %7930 = vmatmul.bf16.vlgmr.msra.gmra.mxu0 %v15028_v59  ;;  %v11271_v5 = vld [vmem:[#allocation5 + $0x11ac] sm:$0xf0] }
 0x22e   :  { %7974 = vmatpush.bf16.msrb.mxu0 %v11262_v8  ;;  %7943 = vmatmul.bf16.vlgmr.msra.gmra.mxu1 %v15030_v63  ;;  %v12430_v8 = vor.u32 %v14607_v61, %v12429_v60  ;;  %9012 = vst [vmem:[#allocation7 + $0xc0] sm:$0xff] %v7737_v11  ;;  %v13768_v61 = vld [vmem:[#allocation5 + $0x8c] sm:$0xf]  ;;  %v10685_v11 = vld [vmem:[#allocation5 + $0xbf8] sm:$0xf] }
 0x22f   :  { %7987 = vmatpush.bf16.msrb.mxu1 %v13598_v10  ;;  %7955 = vmatpush.bf16.msra.mxu2 %v9214_v31  ;;  %v13950_v10 = vld [vmem:[#allocation5 + $0x638] sm:$0xf0]  ;;  %v9510_v31 = vor.u32 %v13877_v23, %v9509_v22  ;;  %v14791_v22 = vld [vmem:[#allocation5 + $0x2084] sm:$0xf]  ;;  %v13315_v23 = vld [vmem:[#allocation5 + $0x21a4] sm:$0xf0] }
 0x230   :  { %7968 = vmatpush.bf16.msra.mxu3 %v11550_v34  ;;  %v9802_v18 = vor.u32 %v13950_v10, %v9801_v9  ;;  %v12139_v34 = vld [vmem:[#allocation5 + $0x187c] sm:$0xf0]  ;;  %v13607_v9 = vld [vmem:[#allocation5 + $0x23ec] sm:$0xf0]  ;;  %v13318_v32 = vor.u32 %v14791_v22, %v13315_v23  ;;  %v14317_v23 = vld [vmem:[#allocation5 + $0x11b0] sm:$0xf0] }
 0x231   :  { %v12142_v45 = vor.u32 %v14498_v33, %v12139_v34  ;;  %v14134_v33 = vld [vmem:[#allocation5 + $0xbfc] sm:$0xf]  ;;  %v10687_v34 = vld [vmem:[#allocation5 + $0xd1c] sm:$0xf0]  ;;  %v11277_v22 = vld [vmem:[#allocation5 + $0x1090] sm:$0xf] }
 0x232   :  { %7975 = vmatpush.bf16.msrb.mxu0 %v10970_v25  ;;  %7956 = vmatmul.bf16.vlgmr.msra.gmra.mxu2 %v15028_v59  ;;  %v14461_v25 = vld [vmem:[#allocation5 + $0x1630] sm:$0xf0]  ;;  %v7725_v30 = vpop.f32.mrf.mxu0 }
 0x233   :  { %7988 = vmatpush.bf16.msrb.mxu1 %v13306_v28  ;;  %8000 = vmatpush.bf16.msrb.mxu2 %v11266_v35  ;;  %v13914_v28 = vld [vmem:[#allocation5 + $0x51c] sm:$0xf]  ;;  %v7738_v35 = vpop.f32.mrf.mxu1 }
 0x234   :  { %8013 = vmatpush.bf16.msrb.mxu3 %v13602_v36  ;;  %v11846_v36 = vor.u32 %v14461_v25, %v11845_v24  ;;  %v9806_v43 = vor.u32 %v13914_v28, %v9803_v29  ;;  %v10393_v25 = vld [vmem:[#allocation5 + $0x9b0] sm:$0xf]  ;;  %v14681_v28 = vld [vmem:[#allocation5 + $0x1d10] sm:$0xf0]  ;;  %v10982_v29 = vor.u32 %v14207_v19, %v10979_v20 }
 0x235   :  { %7969 = vmatmul.bf16.vlgmr.msra.gmra.mxu3 %v15030_v63  ;;  %v7749_v1 = vpop.f32.mrf.mxu2  ;;  %v13805_v19 = vld [vmem:[#allocation5 + $0x1b0] sm:$0xf0]  ;;  %v11561_v20 = vld [vmem:[#allocation5 + $0x12d0] sm:$0xf] }
 0x236   :  { %7976 = vmatpush.bf16.msrb.mxu0 %v10678_v39  ;;  %v14388_v39 = vld [vmem:[#allocation5 + $0x13e8] sm:$0xf0] }
 0x237   :  { %7989 = vmatpush.bf16.msrb.mxu1 %v13014_v42  ;;  %8001 = vmatpush.bf16.msrb.mxu2 %v10974_v47  ;;  %v13605_v42 = vld [vmem:[#allocation5 + $0x22c8] sm:$0xf]  ;;  %v9511_v47 = vld [vmem:[#allocation5 + $0x3f4] sm:$0xf0]  ;;  %v11554_v51 = vor.u32 %v14388_v39, %v11553_v38 }
 0x238   :  { %8014 = vmatpush.bf16.msrb.mxu3 %v13310_v50  ;;  %v11847_v50 = vld [vmem:[#allocation5 + $0x1634] sm:$0xf0]  ;;  %v13606_v54 = vor.u32 %v14900_v44, %v13605_v42  ;;  %v9514_v58 = vor.u32 %v13841_v46, %v9511_v47  ;;  %v7762_v2 = vpop.f32.mrf.mxu3  ;;  %v10101_v39 = vld [vmem:[#allocation5 + $0x768] sm:$0xf]  ;;  %v14608_v42 = vld [vmem:[#allocation5 + $0x1ac8] sm:$0xf0] }
 0x239   :  { %v11850_v60 = vor.u32 %v14425_v49, %v11847_v50  ;;  %v7763_v6 = vadd.f32 %v7762_v2, %v7749_v1  ;;  %v10395_v46 = vld [vmem:[#allocation5 + $0xad4] sm:$0xf0]  ;;  %v14645_v49 = vld [vmem:[#allocation5 + $0x1bf4] sm:$0xf]  ;;  %v14572_v1 = vld [vmem:[#allocation5 + $0x19ac] sm:$0xf] }
 0x23a   :  { %7977 = vmatpush.bf16.msrb.mxu0 %v10386_v53  ;;  %v10977_v53 = vld [vmem:[#allocation5 + $0xe40] sm:$0xf]  ;;  %v12731_v50 = vld [vmem:[#allocation5 + $0x1d14] sm:$0xf0]  ;;  %v12439_v2 = vld [vmem:[#allocation5 + $0x1acc] sm:$0xf0] }
 0x23b   :  { %7990 = vmatpush.bf16.msrb.mxu1 %v12722_v56  ;;  %8002 = vmatpush.bf16.msrb.mxu2 %v10682_v62  ;;  %v13313_v56 = vld [vmem:[#allocation5 + $0x2080] sm:$0xf]  ;;  %v9219_v62 = vld [vmem:[#allocation5 + $0x1ac] sm:$0xf0]  ;;  %v10978_v7 = vor.u32 %v14243_v55, %v10977_v53  ;;  %9013 = vst [vmem:[#allocation7 + $0xc8] sm:$0xff] %v7763_v6 }
 0x23c   :  { %8015 = vmatpush.bf16.msrb.mxu3 %v13018_v0  ;;  %v14352_v0 = vld [vmem:[#allocation5 + $0x12cc] sm:$0xf]  ;;  %v13314_v10 = vor.u32 %v14827_v57, %v13313_v56  ;;  %v9222_v13 = vor.u32 %v13768_v61, %v9219_v62  ;;  %v9809_v53 = vld [vmem:[#allocation5 + $0x520] sm:$0xf]  ;;  %v14535_v57 = vld [vmem:[#allocation5 + $0x1880] sm:$0xf0] }
 0x23d   :  { %v11558_v16 = vor.u32 %v14352_v0, %v11555_v3  ;;  %v7751_v30 = vpop.f32.mrf.mxu2  ;;  %v12145_v56 = vld [vmem:[#allocation5 + $0x1760] sm:$0xf]  ;;  %v13988_v61 = vld [vmem:[#allocation5 + $0x76c] sm:$0xf]  ;;  %v10103_v62 = vld [vmem:[#allocation5 + $0x88c] sm:$0xf0] }
 0x23e   :  { %7978 = vmatpush.bf16.msrb.mxu0 %v10094_v4  ;;  %v14280_v4 = vld [vmem:[#allocation5 + $0x108c] sm:$0xf]  ;;  %v12146_v3 = vor.u32 %v14535_v57, %v12145_v56  ;;  %v11853_v6 = vld [vmem:[#allocation5 + $0x1518] sm:$0xf]  ;;  %v14171_v56 = vld [vmem:[#allocation5 + $0xd20] sm:$0xf0] }
 0x23f   :  { %7991 = vmatpush.bf16.msrb.mxu1 %v12430_v8  ;;  %8003 = vmatpush.bf16.msrb.mxu2 %v10390_v14  ;;  %v14864_v8 = vld [vmem:[#allocation5 + $0x22cc] sm:$0xf]  ;;  %v13021_v14 = vld [vmem:[#allocation5 + $0x1e38] sm:$0xf]  ;;  %v11274_v17 = vor.u32 %v14280_v4, %v11271_v5  ;;  %v13878_v5 = vld [vmem:[#allocation5 + $0x3f8] sm:$0xf0] }
 0x240   :  { %8016 = vmatpush.bf16.msrb.mxu3 %v12726_v15  ;;  %v14754_v15 = vld [vmem:[#allocation5 + $0x1f58] sm:$0xf0]  ;;  %v9517_v4 = vld [vmem:[#allocation5 + $0x2d8] sm:$0xf] }
 0x241   :  { %v13022_v24 = vor.u32 %v14754_v15, %v13021_v14  ;;  %v9225_v14 = vld [vmem:[#allocation5 + $0x90] sm:$0xf]  ;;  %v14499_v15 = vld [vmem:[#allocation5 + $0x1764] sm:$0xf] }
 0x242   :  { %7979 = vmatpush.bf16.msrb.mxu0 %v9802_v18  ;;  %v13610_v18 = vor.u32 %v14864_v8, %v13607_v9  ;;  %v10106_v8 = vor.u32 %v13988_v61, %v10103_v62  ;;  %v12442_v9 = vor.u32 %v14572_v1, %v12439_v2  ;;  %v9226_v30 = vor.u32 %v13805_v19, %v9225_v14  ;;  %v14208_v1 = vld [vmem:[#allocation5 + $0xe4c] sm:$0xf]  ;;  %v10987_v2 = vld [vmem:[#allocation5 + $0xf6c] sm:$0xf0]  ;;  %v13031_v19 = vld [vmem:[#allocation5 + $0x1f64] sm:$0xf0] }
 0x243   :  { %7992 = vmatpush.bf16.msrb.mxu1 %v12138_v21  ;;  %8004 = vmatpush.bf16.msrb.mxu2 %v10098_v26  ;;  %v10686_v21 = vor.u32 %v14170_v12, %v10685_v11  ;;  %v14097_v26 = vld [vmem:[#allocation5 + $0xad0] sm:$0xf0]  ;;  %v9811_v11 = vld [vmem:[#allocation5 + $0x644] sm:$0xf0] }
 0x244   :  { %8017 = vmatpush.bf16.msrb.mxu3 %v12434_v27  ;;  %v12729_v27 = vld [vmem:[#allocation5 + $0x1bf0] sm:$0xf]  ;;  %v10394_v35 = vor.u32 %v14097_v26, %v10393_v25  ;;  %v14901_v26 = vld [vmem:[#allocation5 + $0x23f0] sm:$0xf0] }
 0x245   :  { %v12730_v38 = vor.u32 %v14681_v28, %v12729_v27  ;;  %v13842_v28 = vld [vmem:[#allocation5 + $0x2dc] sm:$0xf] }
 0x246   :  { %7980 = vmatpush.bf16.msrb.mxu0 %v9510_v31  ;;  %v7764_v31 = vpop.f32.mrf.mxu3 }
 0x247   :  { %7993 = vmatpush.bf16.msrb.mxu1 %v11846_v36  ;;  %8005 = vmatpush.bf16.msrb.mxu2 %v9806_v43  ;;  %v14718_v36 = vld [vmem:[#allocation5 + $0x1e3c] sm:$0xf]  ;;  %v10690_v43 = vor.u32 %v14134_v33, %v10687_v34  ;;  %v11278_v34 = vor.u32 %v14317_v23, %v11277_v22  ;;  %v14025_v22 = vld [vmem:[#allocation5 + $0x890] sm:$0xf0]  ;;  %v12445_v23 = vld [vmem:[#allocation5 + $0x19b0] sm:$0xf] }
 0x248   :  { %8018 = vmatpush.bf16.msrb.mxu3 %v12142_v45  ;;  %v13026_v44 = vor.u32 %v14718_v36, %v13023_v37  ;;  %v14061_v45 = vld [vmem:[#allocation5 + $0x9b4] sm:$0xf]  ;;  %v14426_v31 = vld [vmem:[#allocation5 + $0x151c] sm:$0xf]  ;;  %v14244_v37 = vld [vmem:[#allocation5 + $0xf68] sm:$0xf0] }
 0x24a   :  { %7981 = vmatpush.bf16.msrb.mxu0 %v9218_v48  ;;  %v7775_v47 = vpop.f32.mrf.mxu0  ;;  %v10102_v48 = vor.u32 %v14024_v40, %v10101_v39  ;;  %v14828_v39 = vld [vmem:[#allocation5 + $0x21a8] sm:$0xf0] }
 0x24b   :  { %7994 = vmatpush.bf16.msrb.mxu1 %v11554_v51  ;;  %8006 = vmatpush.bf16.msrb.mxu2 %v9514_v58  ;;  %v7788_v51 = vpop.f32.mrf.mxu1  ;;  %v10398_v58 = vor.u32 %v14061_v45, %v10395_v46 }
 0x24c   :  { %8019 = vmatpush.bf16.msrb.mxu3 %v11850_v60  ;;  %v7789_v55 = vadd.f32 %v7788_v51, %v7775_v47  ;;  %v12734_v60 = vor.u32 %v14645_v49, %v12731_v50  ;;  %v11563_v47 = vld [vmem:[#allocation5 + $0x13f4] sm:$0xf0] }
 0x24d   :  { %7982 = vmatmul.bf16.vlgmr.msrb.gmra.mxu0 %v15028_v59  ;;  %v11279_v49 = vld [vmem:[#allocation5 + $0x11b4] sm:$0xf0] }
 0x24e   :  { %8026 = vmatpush.bf16.msra.mxu0 %v11270_v52  ;;  %7995 = vmatmul.bf16.vlgmr.msrb.gmra.mxu1 %v15030_v63  ;;  %v12438_v52 = vor.u32 %v14608_v42, %v12437_v41  ;;  %9014 = vst [vmem:[#allocation7 + $0xd0] sm:$0xff] %v7789_v55  ;;  %v13769_v42 = vld [vmem:[#allocation5 + $0x94] sm:$0xf]  ;;  %v10693_v55 = vld [vmem:[#allocation5 + $0xc00] sm:$0xf] }
 0x24f   :  { %8039 = vmatpush.bf16.msra.mxu1 %v13606_v54  ;;  %8007 = vmatpush.bf16.msrb.mxu2 %v9222_v13  ;;  %v13951_v54 = vld [vmem:[#allocation5 + $0x640] sm:$0xf0]  ;;  %v9518_v13 = vor.u32 %v13878_v5, %v9517_v4  ;;  %v14792_v4 = vld [vmem:[#allocation5 + $0x208c] sm:$0xf]  ;;  %v13323_v5 = vld [vmem:[#allocation5 + $0x21ac] sm:$0xf0] }
 0x250   :  { %8020 = vmatpush.bf16.msrb.mxu3 %v11558_v16  ;;  %v9810_v0 = vor.u32 %v13951_v54, %v9809_v53  ;;  %v12147_v16 = vld [vmem:[#allocation5 + $0x1884] sm:$0xf0]  ;;  %v13615_v53 = vld [vmem:[#allocation5 + $0x23f4] sm:$0xf0]  ;;  %v13326_v14 = vor.u32 %v14792_v4, %v13323_v5  ;;  %v14318_v5 = vld [vmem:[#allocation5 + $0x11b8] sm:$0xf0] }
 0x251   :  { %v12150_v27 = vor.u32 %v14499_v15, %v12147_v16  ;;  %v14135_v15 = vld [vmem:[#allocation5 + $0xc04] sm:$0xf]  ;;  %v10695_v16 = vld [vmem:[#allocation5 + $0xd24] sm:$0xf0]  ;;  %v11285_v4 = vld [vmem:[#allocation5 + $0x1098] sm:$0xf] }
 0x252   :  { %8027 = vmatpush.bf16.msra.mxu0 %v10978_v7  ;;  %8008 = vmatmul.bf16.vlgmr.msrb.gmra.mxu2 %v15028_v59  ;;  %v14462_v7 = vld [vmem:[#allocation5 + $0x1638] sm:$0xf0]  ;;  %v7777_v12 = vpop.f32.mrf.mxu0 }
 0x253   :  { %8040 = vmatpush.bf16.msra.mxu1 %v13314_v10  ;;  %8052 = vmatpush.bf16.msra.mxu2 %v11274_v17  ;;  %v13915_v10 = vld [vmem:[#allocation5 + $0x524] sm:$0xf]  ;;  %v7790_v17 = vpop.f32.mrf.mxu1 }
 0x254   :  { %8065 = vmatpush.bf16.msra.mxu3 %v13610_v18  ;;  %v11854_v18 = vor.u32 %v14462_v7, %v11853_v6  ;;  %v9814_v25 = vor.u32 %v13915_v10, %v9811_v11  ;;  %v10401_v7 = vld [vmem:[#allocation5 + $0x9b8] sm:$0xf]  ;;  %v14682_v10 = vld [vmem:[#allocation5 + $0x1d18] sm:$0xf0]  ;;  %v10990_v11 = vor.u32 %v14208_v1, %v10987_v2 }
 0x255   :  { %8021 = vmatmul.bf16.vlgmr.msrb.gmra.mxu3 %v15030_v63  ;;  %v7801_v45 = vpop.f32.mrf.mxu2  ;;  %v13806_v1 = vld [vmem:[#allocation5 + $0x1b8] sm:$0xf0]  ;;  %v11569_v2 = vld [vmem:[#allocation5 + $0x12d8] sm:$0xf] }
 0x256   :  { %8028 = vmatpush.bf16.msra.mxu0 %v10686_v21  ;;  %v14389_v21 = vld [vmem:[#allocation5 + $0x13f0] sm:$0xf0] }
 0x257   :  { %8041 = vmatpush.bf16.msra.mxu1 %v13022_v24  ;;  %8053 = vmatpush.bf16.msra.mxu2 %v10982_v29  ;;  %v13613_v24 = vld [vmem:[#allocation5 + $0x22d0] sm:$0xf]  ;;  %v9519_v29 = vld [vmem:[#allocation5 + $0x3fc] sm:$0xf0]  ;;  %v11562_v33 = vor.u32 %v14389_v21, %v11561_v20 }
 0x258   :  { %8066 = vmatpush.bf16.msra.mxu3 %v13318_v32  ;;  %v11855_v32 = vld [vmem:[#allocation5 + $0x163c] sm:$0xf0]  ;;  %v13614_v36 = vor.u32 %v14901_v26, %v13613_v24  ;;  %v9522_v40 = vor.u32 %v13842_v28, %v9519_v29  ;;  %v7814_v46 = vpop.f32.mrf.mxu3  ;;  %v10109_v21 = vld [vmem:[#allocation5 + $0x770] sm:$0xf]  ;;  %v14609_v24 = vld [vmem:[#allocation5 + $0x1ad0] sm:$0xf0] }
 0x259   :  { %v11858_v41 = vor.u32 %v14426_v31, %v11855_v32  ;;  %v7815_v50 = vadd.f32 %v7814_v46, %v7801_v45  ;;  %v10403_v28 = vld [vmem:[#allocation5 + $0xadc] sm:$0xf0]  ;;  %v14646_v31 = vld [vmem:[#allocation5 + $0x1bfc] sm:$0xf]  ;;  %v14573_v45 = vld [vmem:[#allocation5 + $0x19b4] sm:$0xf] }
 0x25a   :  { %8029 = vmatpush.bf16.msra.mxu0 %v10394_v35  ;;  %v10985_v35 = vld [vmem:[#allocation5 + $0xe48] sm:$0xf]  ;;  %v12739_v32 = vld [vmem:[#allocation5 + $0x1d1c] sm:$0xf0]  ;;  %v12447_v46 = vld [vmem:[#allocation5 + $0x1ad4] sm:$0xf0] }
 0x25b   :  { %8042 = vmatpush.bf16.msra.mxu1 %v12730_v38  ;;  %8054 = vmatpush.bf16.msra.mxu2 %v10690_v43  ;;  %v13321_v38 = vld [vmem:[#allocation5 + $0x2088] sm:$0xf]  ;;  %v9227_v43 = vld [vmem:[#allocation5 + $0x1b4] sm:$0xf0]  ;;  %v10986_v51 = vor.u32 %v14244_v37, %v10985_v35  ;;  %9015 = vst [vmem:[#allocation7 + $0xd8] sm:$0xff] %v7815_v50 }
 0x25c   :  { %8067 = vmatpush.bf16.msra.mxu3 %v13026_v44  ;;  %v14353_v44 = vld [vmem:[#allocation5 + $0x12d4] sm:$0xf]  ;;  %v13322_v54 = vor.u32 %v14828_v39, %v13321_v38  ;;  %v9230_v57 = vor.u32 %v13769_v42, %v9227_v43  ;;  %v9817_v35 = vld [vmem:[#allocation5 + $0x528] sm:$0xf]  ;;  %v14536_v39 = vld [vmem:[#allocation5 + $0x1888] sm:$0xf0] }
 0x25d   :  { %v11566_v61 = vor.u32 %v14353_v44, %v11563_v47  ;;  %v7803_v12 = vpop.f32.mrf.mxu2  ;;  %v12153_v38 = vld [vmem:[#allocation5 + $0x1768] sm:$0xf]  ;;  %v13989_v42 = vld [vmem:[#allocation5 + $0x774] sm:$0xf]  ;;  %v10111_v43 = vld [vmem:[#allocation5 + $0x894] sm:$0xf0] }
 0x25e   :  { %8030 = vmatpush.bf16.msra.mxu0 %v10102_v48  ;;  %v14281_v48 = vld [vmem:[#allocation5 + $0x1094] sm:$0xf]  ;;  %v12154_v47 = vor.u32 %v14536_v39, %v12153_v38  ;;  %v11861_v50 = vld [vmem:[#allocation5 + $0x1520] sm:$0xf]  ;;  %v14172_v38 = vld [vmem:[#allocation5 + $0xd28] sm:$0xf0] }
 0x25f   :  { %8043 = vmatpush.bf16.msra.mxu1 %v12438_v52  ;;  %8055 = vmatpush.bf16.msra.mxu2 %v10398_v58  ;;  %v14865_v52 = vld [vmem:[#allocation5 + $0x22d4] sm:$0xf]  ;;  %v13029_v58 = vld [vmem:[#allocation5 + $0x1e40] sm:$0xf]  ;;  %v11282_v62 = vor.u32 %v14281_v48, %v11279_v49  ;;  %v13879_v49 = vld [vmem:[#allocation5 + $0x400] sm:$0xf0] }
 0x260   :  { %8068 = vmatpush.bf16.msra.mxu3 %v12734_v60  ;;  %v14755_v60 = vld [vmem:[#allocation5 + $0x1f60] sm:$0xf0]  ;;  %v9525_v48 = vld [vmem:[#allocation5 + $0x2e0] sm:$0xf] }
 0x261   :  { %v13030_v6 = vor.u32 %v14755_v60, %v13029_v58  ;;  %v9233_v58 = vld [vmem:[#allocation5 + $0x98] sm:$0xf]  ;;  %v14500_v60 = vld [vmem:[#allocation5 + $0x176c] sm:$0xf] }
 0x262   :  { %8031 = vmatpush.bf16.msra.mxu0 %v9810_v0  ;;  %v13618_v0 = vor.u32 %v14865_v52, %v13615_v53  ;;  %v10114_v52 = vor.u32 %v13989_v42, %v10111_v43  ;;  %v12450_v53 = vor.u32 %v14573_v45, %v12447_v46  ;;  %v9234_v12 = vor.u32 %v13806_v1, %v9233_v58  ;;  %v14209_v45 = vld [vmem:[#allocation5 + $0xe54] sm:$0xf]  ;;  %v10995_v46 = vld [vmem:[#allocation5 + $0xf74] sm:$0xf0]  ;;  %v13039_v1 = vld [vmem:[#allocation5 + $0x1f6c] sm:$0xf0] }
 0x263   :  { %8044 = vmatpush.bf16.msra.mxu1 %v12146_v3  ;;  %8056 = vmatpush.bf16.msra.mxu2 %v10106_v8  ;;  %v10694_v3 = vor.u32 %v14171_v56, %v10693_v55  ;;  %v14098_v8 = vld [vmem:[#allocation5 + $0xad8] sm:$0xf0]  ;;  %v9819_v55 = vld [vmem:[#allocation5 + $0x64c] sm:$0xf0] }
 0x264   :  { %8069 = vmatpush.bf16.msra.mxu3 %v12442_v9  ;;  %v12737_v9 = vld [vmem:[#allocation5 + $0x1bf8] sm:$0xf]  ;;  %v10402_v17 = vor.u32 %v14098_v8, %v10401_v7  ;;  %v14902_v8 = vld [vmem:[#allocation5 + $0x23f8] sm:$0xf0] }
 0x265   :  { %v12738_v20 = vor.u32 %v14682_v10, %v12737_v9  ;;  %v13843_v10 = vld [vmem:[#allocation5 + $0x2e4] sm:$0xf] }
 0x266   :  { %8032 = vmatpush.bf16.msra.mxu0 %v9518_v13  ;;  %v7816_v13 = vpop.f32.mrf.mxu3 }
 0x267   :  { %8045 = vmatpush.bf16.msra.mxu1 %v11854_v18  ;;  %8057 = vmatpush.bf16.msra.mxu2 %v9814_v25  ;;  %v14719_v18 = vld [vmem:[#allocation5 + $0x1e44] sm:$0xf]  ;;  %v10698_v25 = vor.u32 %v14135_v15, %v10695_v16  ;;  %v11286_v16 = vor.u32 %v14318_v5, %v11285_v4  ;;  %v14026_v4 = vld [vmem:[#allocation5 + $0x898] sm:$0xf0]  ;;  %v12453_v5 = vld [vmem:[#allocation5 + $0x19b8] sm:$0xf] }
 0x268   :  { %8070 = vmatpush.bf16.msra.mxu3 %v12150_v27  ;;  %v13034_v26 = vor.u32 %v14719_v18, %v13031_v19  ;;  %v14062_v27 = vld [vmem:[#allocation5 + $0x9bc] sm:$0xf]  ;;  %v14427_v13 = vld [vmem:[#allocation5 + $0x1524] sm:$0xf]  ;;  %v14245_v19 = vld [vmem:[#allocation5 + $0xf70] sm:$0xf0] }
 0x26a   :  { %8033 = vmatpush.bf16.msra.mxu0 %v9226_v30  ;;  %v7827_v29 = vpop.f32.mrf.mxu0  ;;  %v10110_v30 = vor.u32 %v14025_v22, %v10109_v21  ;;  %v14829_v21 = vld [vmem:[#allocation5 + $0x21b0] sm:$0xf0] }
 0x26b   :  { %8046 = vmatpush.bf16.msra.mxu1 %v11562_v33  ;;  %8058 = vmatpush.bf16.msra.mxu2 %v9522_v40  ;;  %v7840_v33 = vpop.f32.mrf.mxu1  ;;  %v10406_v40 = vor.u32 %v14062_v27, %v10403_v28 }
 0x26c   :  { %8071 = vmatpush.bf16.msra.mxu3 %v11858_v41  ;;  %v7841_v37 = vadd.f32 %v7840_v33, %v7827_v29  ;;  %v12742_v41 = vor.u32 %v14646_v31, %v12739_v32  ;;  %v11571_v29 = vld [vmem:[#allocation5 + $0x13fc] sm:$0xf0] }
 0x26d   :  { %8034 = vmatmul.bf16.vlgmr.msra.gmra.mxu0 %v15028_v59  ;;  %v11287_v31 = vld [vmem:[#allocation5 + $0x11bc] sm:$0xf0] }
 0x26e   :  { %8078 = vmatpush.bf16.msrb.mxu0 %v11278_v34  ;;  %8047 = vmatmul.bf16.vlgmr.msra.gmra.mxu1 %v15030_v63  ;;  %v12446_v34 = vor.u32 %v14609_v24, %v12445_v23  ;;  %9016 = vst [vmem:[#allocation7 + $0xe0] sm:$0xff] %v7841_v37  ;;  %v13770_v24 = vld [vmem:[#allocation5 + $0x9c] sm:$0xf]  ;;  %v10701_v37 = vld [vmem:[#allocation5 + $0xc08] sm:$0xf] }
 0x26f   :  { %8091 = vmatpush.bf16.msrb.mxu1 %v13614_v36  ;;  %8059 = vmatpush.bf16.msra.mxu2 %v9230_v57  ;;  %v13952_v36 = vld [vmem:[#allocation5 + $0x648] sm:$0xf0]  ;;  %v9526_v57 = vor.u32 %v13879_v49, %v9525_v48  ;;  %v14793_v48 = vld [vmem:[#allocation5 + $0x2094] sm:$0xf]  ;;  %v13331_v49 = vld [vmem:[#allocation5 + $0x21b4] sm:$0xf0] }
 0x270   :  { %8072 = vmatpush.bf16.msra.mxu3 %v11566_v61  ;;  %v9818_v44 = vor.u32 %v13952_v36, %v9817_v35  ;;  %v12155_v61 = vld [vmem:[#allocation5 + $0x188c] sm:$0xf0]  ;;  %v13623_v35 = vld [vmem:[#allocation5 + $0x23fc] sm:$0xf0]  ;;  %v13334_v58 = vor.u32 %v14793_v48, %v13331_v49  ;;  %v14319_v49 = vld [vmem:[#allocation5 + $0x11c0] sm:$0xf0] }
 0x271   :  { %v12158_v9 = vor.u32 %v14500_v60, %v12155_v61  ;;  %v14136_v60 = vld [vmem:[#allocation5 + $0xc0c] sm:$0xf]  ;;  %v10703_v61 = vld [vmem:[#allocation5 + $0xd2c] sm:$0xf0]  ;;  %v11293_v48 = vld [vmem:[#allocation5 + $0x10a0] sm:$0xf] }
 0x272   :  { %8079 = vmatpush.bf16.msrb.mxu0 %v10986_v51  ;;  %8060 = vmatmul.bf16.vlgmr.msra.gmra.mxu2 %v15028_v59  ;;  %v14463_v51 = vld [vmem:[#allocation5 + $0x1640] sm:$0xf0]  ;;  %v7829_v56 = vpop.f32.mrf.mxu0 }
 0x273   :  { %8092 = vmatpush.bf16.msrb.mxu1 %v13322_v54  ;;  %8104 = vmatpush.bf16.msrb.mxu2 %v11282_v62  ;;  %v13916_v54 = vld [vmem:[#allocation5 + $0x52c] sm:$0xf]  ;;  %v7842_v62 = vpop.f32.mrf.mxu1 }
 0x274   :  { %8117 = vmatpush.bf16.msrb.mxu3 %v13618_v0  ;;  %v11862_v0 = vor.u32 %v14463_v51, %v11861_v50  ;;  %v9822_v7 = vor.u32 %v13916_v54, %v9819_v55  ;;  %v10409_v51 = vld [vmem:[#allocation5 + $0x9c0] sm:$0xf]  ;;  %v14683_v54 = vld [vmem:[#allocation5 + $0x1d20] sm:$0xf0]  ;;  %v10998_v55 = vor.u32 %v14209_v45, %v10995_v46 }
 0x275   :  { %8073 = vmatmul.bf16.vlgmr.msra.gmra.mxu3 %v15030_v63  ;;  %v7853_v27 = vpop.f32.mrf.mxu2  ;;  %v13807_v45 = vld [vmem:[#allocation5 + $0x1c0] sm:$0xf0]  ;;  %v11577_v46 = vld [vmem:[#allocation5 + $0x12e0] sm:$0xf] }
 0x276   :  { %8080 = vmatpush.bf16.msrb.mxu0 %v10694_v3  ;;  %v14390_v3 = vld [vmem:[#allocation5 + $0x13f8] sm:$0xf0] }
 0x277   :  { %8093 = vmatpush.bf16.msrb.mxu1 %v13030_v6  ;;  %8105 = vmatpush.bf16.msrb.mxu2 %v10990_v11  ;;  %v13621_v6 = vld [vmem:[#allocation5 + $0x22d8] sm:$0xf]  ;;  %v9527_v11 = vld [vmem:[#allocation5 + $0x404] sm:$0xf0]  ;;  %v11570_v15 = vor.u32 %v14390_v3, %v11569_v2 }
 0x278   :  { %8118 = vmatpush.bf16.msrb.mxu3 %v13326_v14  ;;  %v11863_v14 = vld [vmem:[#allocation5 + $0x1644] sm:$0xf0]  ;;  %v13622_v18 = vor.u32 %v14902_v8, %v13621_v6  ;;  %v9530_v22 = vor.u32 %v13843_v10, %v9527_v11  ;;  %v7866_v28 = vpop.f32.mrf.mxu3  ;;  %v10117_v3 = vld [vmem:[#allocation5 + $0x778] sm:$0xf]  ;;  %v14610_v6 = vld [vmem:[#allocation5 + $0x1ad8] sm:$0xf0] }
 0x279   :  { %v11866_v23 = vor.u32 %v14427_v13, %v11863_v14  ;;  %v7867_v32 = vadd.f32 %v7866_v28, %v7853_v27  ;;  %v10411_v10 = vld [vmem:[#allocation5 + $0xae4] sm:$0xf0]  ;;  %v14647_v13 = vld [vmem:[#allocation5 + $0x1c04] sm:$0xf]  ;;  %v14574_v27 = vld [vmem:[#allocation5 + $0x19bc] sm:$0xf] }
 0x27a   :  { %8081 = vmatpush.bf16.msrb.mxu0 %v10402_v17  ;;  %v10993_v17 = vld [vmem:[#allocation5 + $0xe50] sm:$0xf]  ;;  %v12747_v14 = vld [vmem:[#allocation5 + $0x1d24] sm:$0xf0]  ;;  %v12455_v28 = vld [vmem:[#allocation5 + $0x1adc] sm:$0xf0] }
 0x27b   :  { %8094 = vmatpush.bf16.msrb.mxu1 %v12738_v20  ;;  %8106 = vmatpush.bf16.msrb.mxu2 %v10698_v25  ;;  %v13329_v20 = vld [vmem:[#allocation5 + $0x2090] sm:$0xf]  ;;  %v9235_v25 = vld [vmem:[#allocation5 + $0x1bc] sm:$0xf0]  ;;  %v10994_v33 = vor.u32 %v14245_v19, %v10993_v17  ;;  %9017 = vst [vmem:[#allocation7 + $0xe8] sm:$0xff] %v7867_v32 }
 0x27c   :  { %8119 = vmatpush.bf16.msrb.mxu3 %v13034_v26  ;;  %v14354_v26 = vld [vmem:[#allocation5 + $0x12dc] sm:$0xf]  ;;  %v13330_v36 = vor.u32 %v14829_v21, %v13329_v20  ;;  %v9238_v39 = vor.u32 %v13770_v24, %v9235_v25  ;;  %v9825_v17 = vld [vmem:[#allocation5 + $0x530] sm:$0xf]  ;;  %v14537_v21 = vld [vmem:[#allocation5 + $0x1890] sm:$0xf0] }
 0x27d   :  { %v11574_v42 = vor.u32 %v14354_v26, %v11571_v29  ;;  %v7855_v56 = vpop.f32.mrf.mxu2  ;;  %v12161_v20 = vld [vmem:[#allocation5 + $0x1770] sm:$0xf]  ;;  %v13990_v24 = vld [vmem:[#allocation5 + $0x77c] sm:$0xf]  ;;  %v10119_v25 = vld [vmem:[#allocation5 + $0x89c] sm:$0xf0] }
 0x27e   :  { %8082 = vmatpush.bf16.msrb.mxu0 %v10110_v30  ;;  %v14282_v30 = vld [vmem:[#allocation5 + $0x109c] sm:$0xf]  ;;  %v12162_v29 = vor.u32 %v14537_v21, %v12161_v20  ;;  %v11869_v32 = vld [vmem:[#allocation5 + $0x1528] sm:$0xf]  ;;  %v14173_v20 = vld [vmem:[#allocation5 + $0xd30] sm:$0xf0] }
 0x27f   :  { %8095 = vmatpush.bf16.msrb.mxu1 %v12446_v34  ;;  %8107 = vmatpush.bf16.msrb.mxu2 %v10406_v40  ;;  %v14866_v34 = vld [vmem:[#allocation5 + $0x22dc] sm:$0xf]  ;;  %v13037_v40 = vld [vmem:[#allocation5 + $0x1e48] sm:$0xf]  ;;  %v11290_v43 = vor.u32 %v14282_v30, %v11287_v31  ;;  %v13880_v31 = vld [vmem:[#allocation5 + $0x408] sm:$0xf0] }
 0x280   :  { %8120 = vmatpush.bf16.msrb.mxu3 %v12742_v41  ;;  %v14756_v41 = vld [vmem:[#allocation5 + $0x1f68] sm:$0xf0]  ;;  %v9533_v30 = vld [vmem:[#allocation5 + $0x2e8] sm:$0xf] }
 0x281   :  { %v13038_v50 = vor.u32 %v14756_v41, %v13037_v40  ;;  %v9241_v40 = vld [vmem:[#allocation5 + $0xa0] sm:$0xf]  ;;  %v14501_v41 = vld [vmem:[#allocation5 + $0x1774] sm:$0xf] }
 0x282   :  { %8083 = vmatpush.bf16.msrb.mxu0 %v9818_v44  ;;  %v13626_v44 = vor.u32 %v14866_v34, %v13623_v35  ;;  %v10122_v34 = vor.u32 %v13990_v24, %v10119_v25  ;;  %v12458_v35 = vor.u32 %v14574_v27, %v12455_v28  ;;  %v9242_v56 = vor.u32 %v13807_v45, %v9241_v40  ;;  %v14210_v27 = vld [vmem:[#allocation5 + $0xe5c] sm:$0xf]  ;;  %v11003_v28 = vld [vmem:[#allocation5 + $0xf7c] sm:$0xf0]  ;;  %v13047_v45 = vld [vmem:[#allocation5 + $0x1f74] sm:$0xf0] }
 0x283   :  { %8096 = vmatpush.bf16.msrb.mxu1 %v12154_v47  ;;  %8108 = vmatpush.bf16.msrb.mxu2 %v10114_v52  ;;  %v10702_v47 = vor.u32 %v14172_v38, %v10701_v37  ;;  %v14099_v52 = vld [vmem:[#allocation5 + $0xae0] sm:$0xf0]  ;;  %v9827_v37 = vld [vmem:[#allocation5 + $0x654] sm:$0xf0] }
 0x284   :  { %8121 = vmatpush.bf16.msrb.mxu3 %v12450_v53  ;;  %v12745_v53 = vld [vmem:[#allocation5 + $0x1c00] sm:$0xf]  ;;  %v10410_v62 = vor.u32 %v14099_v52, %v10409_v51  ;;  %v14903_v52 = vld [vmem:[#allocation5 + $0x2400] sm:$0xf0] }
 0x285   :  { %v12746_v2 = vor.u32 %v14683_v54, %v12745_v53  ;;  %v13844_v54 = vld [vmem:[#allocation5 + $0x2ec] sm:$0xf] }
 0x286   :  { %8084 = vmatpush.bf16.msrb.mxu0 %v9526_v57  ;;  %v7868_v57 = vpop.f32.mrf.mxu3 }
 0x287   :  { %8097 = vmatpush.bf16.msrb.mxu1 %v11862_v0  ;;  %8109 = vmatpush.bf16.msrb.mxu2 %v9822_v7  ;;  %v14720_v0 = vld [vmem:[#allocation5 + $0x1e4c] sm:$0xf]  ;;  %v10706_v7 = vor.u32 %v14136_v60, %v10703_v61  ;;  %v11294_v61 = vor.u32 %v14319_v49, %v11293_v48  ;;  %v14027_v48 = vld [vmem:[#allocation5 + $0x8a0] sm:$0xf0]  ;;  %v12461_v49 = vld [vmem:[#allocation5 + $0x19c0] sm:$0xf] }
 0x288   :  { %8122 = vmatpush.bf16.msrb.mxu3 %v12158_v9  ;;  %v13042_v8 = vor.u32 %v14720_v0, %v13039_v1  ;;  %v14063_v9 = vld [vmem:[#allocation5 + $0x9c4] sm:$0xf]  ;;  %v14428_v57 = vld [vmem:[#allocation5 + $0x152c] sm:$0xf]  ;;  %v14246_v1 = vld [vmem:[#allocation5 + $0xf78] sm:$0xf0] }
 0x28a   :  { %8085 = vmatpush.bf16.msrb.mxu0 %v9234_v12  ;;  %v7879_v11 = vpop.f32.mrf.mxu0  ;;  %v10118_v12 = vor.u32 %v14026_v4, %v10117_v3  ;;  %v14830_v3 = vld [vmem:[#allocation5 + $0x21b8] sm:$0xf0] }
 0x28b   :  { %8098 = vmatpush.bf16.msrb.mxu1 %v11570_v15  ;;  %8110 = vmatpush.bf16.msrb.mxu2 %v9530_v22  ;;  %v7892_v15 = vpop.f32.mrf.mxu1  ;;  %v10414_v22 = vor.u32 %v14063_v9, %v10411_v10 }
 0x28c   :  { %8123 = vmatpush.bf16.msrb.mxu3 %v11866_v23  ;;  %v7893_v19 = vadd.f32 %v7892_v15, %v7879_v11  ;;  %v12750_v23 = vor.u32 %v14647_v13, %v12747_v14  ;;  %v11579_v11 = vld [vmem:[#allocation5 + $0x1404] sm:$0xf0] }
 0x28d   :  { %8086 = vmatmul.bf16.vlgmr.msrb.gmra.mxu0 %v15028_v59  ;;  %v11295_v13 = vld [vmem:[#allocation5 + $0x11c4] sm:$0xf0] }
 0x28e   :  { %8130 = vmatpush.bf16.msra.mxu0 %v11286_v16  ;;  %8099 = vmatmul.bf16.vlgmr.msrb.gmra.mxu1 %v15030_v63  ;;  %v12454_v16 = vor.u32 %v14610_v6, %v12453_v5  ;;  %9018 = vst [vmem:[#allocation7 + $0xf0] sm:$0xff] %v7893_v19  ;;  %v13771_v6 = vld [vmem:[#allocation5 + $0xa4] sm:$0xf]  ;;  %v10709_v19 = vld [vmem:[#allocation5 + $0xc10] sm:$0xf] }
 0x28f   :  { %8143 = vmatpush.bf16.msra.mxu1 %v13622_v18  ;;  %8111 = vmatpush.bf16.msrb.mxu2 %v9238_v39  ;;  %v13953_v18 = vld [vmem:[#allocation5 + $0x650] sm:$0xf0]  ;;  %v9534_v39 = vor.u32 %v13880_v31, %v9533_v30  ;;  %v14794_v30 = vld [vmem:[#allocation5 + $0x209c] sm:$0xf]  ;;  %v13339_v31 = vld [vmem:[#allocation5 + $0x21bc] sm:$0xf0] }
 0x290   :  { %8124 = vmatpush.bf16.msrb.mxu3 %v11574_v42  ;;  %v9826_v26 = vor.u32 %v13953_v18, %v9825_v17  ;;  %v12163_v42 = vld [vmem:[#allocation5 + $0x1894] sm:$0xf0]  ;;  %v13631_v17 = vld [vmem:[#allocation5 + $0x2404] sm:$0xf0]  ;;  %v13342_v40 = vor.u32 %v14794_v30, %v13339_v31  ;;  %v14320_v31 = vld [vmem:[#allocation5 + $0x11c8] sm:$0xf0] }
 0x291   :  { %v12166_v53 = vor.u32 %v14501_v41, %v12163_v42  ;;  %v14137_v41 = vld [vmem:[#allocation5 + $0xc14] sm:$0xf]  ;;  %v10711_v42 = vld [vmem:[#allocation5 + $0xd34] sm:$0xf0]  ;;  %v11301_v30 = vld [vmem:[#allocation5 + $0x10a8] sm:$0xf] }
 0x292   :  { %8131 = vmatpush.bf16.msra.mxu0 %v10994_v33  ;;  %8112 = vmatmul.bf16.vlgmr.msrb.gmra.mxu2 %v15028_v59  ;;  %v14464_v33 = vld [vmem:[#allocation5 + $0x1648] sm:$0xf0]  ;;  %v7881_v38 = vpop.f32.mrf.mxu0 }
 0x293   :  { %8144 = vmatpush.bf16.msra.mxu1 %v13330_v36  ;;  %8156 = vmatpush.bf16.msra.mxu2 %v11290_v43  ;;  %v13917_v36 = vld [vmem:[#allocation5 + $0x534] sm:$0xf]  ;;  %v7894_v43 = vpop.f32.mrf.mxu1 }
 0x294   :  { %8169 = vmatpush.bf16.msra.mxu3 %v13626_v44  ;;  %v11870_v44 = vor.u32 %v14464_v33, %v11869_v32  ;;  %v9830_v51 = vor.u32 %v13917_v36, %v9827_v37  ;;  %v10417_v33 = vld [vmem:[#allocation5 + $0x9c8] sm:$0xf]  ;;  %v14684_v36 = vld [vmem:[#allocation5 + $0x1d28] sm:$0xf0]  ;;  %v11006_v37 = vor.u32 %v14210_v27, %v11003_v28 }
 0x295   :  { %8125 = vmatmul.bf16.vlgmr.msrb.gmra.mxu3 %v15030_v63  ;;  %v7905_v9 = vpop.f32.mrf.mxu2  ;;  %v13808_v27 = vld [vmem:[#allocation5 + $0x1c8] sm:$0xf0]  ;;  %v11585_v28 = vld [vmem:[#allocation5 + $0x12e8] sm:$0xf] }
 0x296   :  { %8132 = vmatpush.bf16.msra.mxu0 %v10702_v47  ;;  %v14391_v47 = vld [vmem:[#allocation5 + $0x1400] sm:$0xf0] }
 0x297   :  { %8145 = vmatpush.bf16.msra.mxu1 %v13038_v50  ;;  %8157 = vmatpush.bf16.msra.mxu2 %v10998_v55  ;;  %v13629_v50 = vld [vmem:[#allocation5 + $0x22e0] sm:$0xf]  ;;  %v9535_v55 = vld [vmem:[#allocation5 + $0x40c] sm:$0xf0]  ;;  %v11578_v60 = vor.u32 %v14391_v47, %v11577_v46 }
 0x298   :  { %8170 = vmatpush.bf16.msra.mxu3 %v13334_v58  ;;  %v11871_v58 = vld [vmem:[#allocation5 + $0x164c] sm:$0xf0]  ;;  %v13630_v0 = vor.u32 %v14903_v52, %v13629_v50  ;;  %v9538_v4 = vor.u32 %v13844_v54, %v9535_v55  ;;  %v7918_v10 = vpop.f32.mrf.mxu3  ;;  %v10125_v47 = vld [vmem:[#allocation5 + $0x780] sm:$0xf]  ;;  %v14611_v50 = vld [vmem:[#allocation5 + $0x1ae0] sm:$0xf0] }
 0x299   :  { %v11874_v5 = vor.u32 %v14428_v57, %v11871_v58  ;;  %v7919_v14 = vadd.f32 %v7918_v10, %v7905_v9  ;;  %v10419_v54 = vld [vmem:[#allocation5 + $0xaec] sm:$0xf0]  ;;  %v14648_v57 = vld [vmem:[#allocation5 + $0x1c0c] sm:$0xf]  ;;  %v14575_v9 = vld [vmem:[#allocation5 + $0x19c4] sm:$0xf] }
 0x29a   :  { %8133 = vmatpush.bf16.msra.mxu0 %v10410_v62  ;;  %v11001_v62 = vld [vmem:[#allocation5 + $0xe58] sm:$0xf]  ;;  %v12755_v58 = vld [vmem:[#allocation5 + $0x1d2c] sm:$0xf0]  ;;  %v12463_v10 = vld [vmem:[#allocation5 + $0x1ae4] sm:$0xf0] }
 0x29b   :  { %8146 = vmatpush.bf16.msra.mxu1 %v12746_v2  ;;  %8158 = vmatpush.bf16.msra.mxu2 %v10706_v7  ;;  %v13337_v2 = vld [vmem:[#allocation5 + $0x2098] sm:$0xf]  ;;  %v9243_v7 = vld [vmem:[#allocation5 + $0x1c4] sm:$0xf0]  ;;  %v11002_v15 = vor.u32 %v14246_v1, %v11001_v62  ;;  %9019 = vst [vmem:[#allocation7 + $0xf8] sm:$0xff] %v7919_v14 }
 0x29c   :  { %8171 = vmatpush.bf16.msra.mxu3 %v13042_v8  ;;  %v14355_v8 = vld [vmem:[#allocation5 + $0x12e4] sm:$0xf]  ;;  %v13338_v18 = vor.u32 %v14830_v3, %v13337_v2  ;;  %v9246_v21 = vor.u32 %v13771_v6, %v9243_v7  ;;  %v9833_v62 = vld [vmem:[#allocation5 + $0x538] sm:$0xf]  ;;  %v14538_v3 = vld [vmem:[#allocation5 + $0x1898] sm:$0xf0] }
 0x29d   :  { %v11582_v24 = vor.u32 %v14355_v8, %v11579_v11  ;;  %v7907_v38 = vpop.f32.mrf.mxu2  ;;  %v12169_v2 = vld [vmem:[#allocation5 + $0x1778] sm:$0xf]  ;;  %v13991_v6 = vld [vmem:[#allocation5 + $0x784] sm:$0xf]  ;;  %v10127_v7 = vld [vmem:[#allocation5 + $0x8a4] sm:$0xf0] }
 0x29e   :  { %8134 = vmatpush.bf16.msra.mxu0 %v10118_v12  ;;  %v14283_v12 = vld [vmem:[#allocation5 + $0x10a4] sm:$0xf]  ;;  %v12170_v11 = vor.u32 %v14538_v3, %v12169_v2  ;;  %v11877_v14 = vld [vmem:[#allocation5 + $0x1530] sm:$0xf]  ;;  %v14174_v2 = vld [vmem:[#allocation5 + $0xd38] sm:$0xf0] }
 0x29f   :  { %8147 = vmatpush.bf16.msra.mxu1 %v12454_v16  ;;  %8159 = vmatpush.bf16.msra.mxu2 %v10414_v22  ;;  %v14867_v16 = vld [vmem:[#allocation5 + $0x22e4] sm:$0xf]  ;;  %v13045_v22 = vld [vmem:[#allocation5 + $0x1e50] sm:$0xf]  ;;  %v11298_v25 = vor.u32 %v14283_v12, %v11295_v13  ;;  %v13881_v13 = vld [vmem:[#allocation5 + $0x410] sm:$0xf0] }
 0x2a0   :  { %8172 = vmatpush.bf16.msra.mxu3 %v12750_v23  ;;  %v14757_v23 = vld [vmem:[#allocation5 + $0x1f70] sm:$0xf0]  ;;  %v9541_v12 = vld [vmem:[#allocation5 + $0x2f0] sm:$0xf] }
 0x2a1   :  { %v13046_v32 = vor.u32 %v14757_v23, %v13045_v22  ;;  %v9249_v22 = vld [vmem:[#allocation5 + $0xa8] sm:$0xf]  ;;  %v14502_v23 = vld [vmem:[#allocation5 + $0x177c] sm:$0xf] }
 0x2a2   :  { %8135 = vmatpush.bf16.msra.mxu0 %v9826_v26  ;;  %v13634_v26 = vor.u32 %v14867_v16, %v13631_v17  ;;  %v10130_v16 = vor.u32 %v13991_v6, %v10127_v7  ;;  %v12466_v17 = vor.u32 %v14575_v9, %v12463_v10  ;;  %v9250_v38 = vor.u32 %v13808_v27, %v9249_v22  ;;  %v14211_v9 = vld [vmem:[#allocation5 + $0xe64] sm:$0xf]  ;;  %v11011_v10 = vld [vmem:[#allocation5 + $0xf84] sm:$0xf0]  ;;  %v13055_v27 = vld [vmem:[#allocation5 + $0x1f7c] sm:$0xf0] }
 0x2a3   :  { %8148 = vmatpush.bf16.msra.mxu1 %v12162_v29  ;;  %8160 = vmatpush.bf16.msra.mxu2 %v10122_v34  ;;  %v10710_v29 = vor.u32 %v14173_v20, %v10709_v19  ;;  %v14100_v34 = vld [vmem:[#allocation5 + $0xae8] sm:$0xf0]  ;;  %v9835_v19 = vld [vmem:[#allocation5 + $0x65c] sm:$0xf0] }
 0x2a4   :  { %8173 = vmatpush.bf16.msra.mxu3 %v12458_v35  ;;  %v12753_v35 = vld [vmem:[#allocation5 + $0x1c08] sm:$0xf]  ;;  %v10418_v43 = vor.u32 %v14100_v34, %v10417_v33  ;;  %v14904_v34 = vld [vmem:[#allocation5 + $0x2408] sm:$0xf0] }
 0x2a5   :  { %v12754_v46 = vor.u32 %v14684_v36, %v12753_v35  ;;  %v13845_v36 = vld [vmem:[#allocation5 + $0x2f4] sm:$0xf] }
 0x2a6   :  { %8136 = vmatpush.bf16.msra.mxu0 %v9534_v39  ;;  %v7920_v39 = vpop.f32.mrf.mxu3 }
 0x2a7   :  { %8149 = vmatpush.bf16.msra.mxu1 %v11870_v44  ;;  %8161 = vmatpush.bf16.msra.mxu2 %v9830_v51  ;;  %v14721_v44 = vld [vmem:[#allocation5 + $0x1e54] sm:$0xf]  ;;  %v10714_v51 = vor.u32 %v14137_v41, %v10711_v42  ;;  %v11302_v42 = vor.u32 %v14320_v31, %v11301_v30  ;;  %v14028_v30 = vld [vmem:[#allocation5 + $0x8a8] sm:$0xf0]  ;;  %v12469_v31 = vld [vmem:[#allocation5 + $0x19c8] sm:$0xf] }
 0x2a8   :  { %8174 = vmatpush.bf16.msra.mxu3 %v12166_v53  ;;  %v13050_v52 = vor.u32 %v14721_v44, %v13047_v45  ;;  %v14064_v53 = vld [vmem:[#allocation5 + $0x9cc] sm:$0xf]  ;;  %v14429_v39 = vld [vmem:[#allocation5 + $0x1534] sm:$0xf]  ;;  %v14247_v45 = vld [vmem:[#allocation5 + $0xf80] sm:$0xf0] }
 0x2aa   :  { %8137 = vmatpush.bf16.msra.mxu0 %v9242_v56  ;;  %v7931_v55 = vpop.f32.mrf.mxu0  ;;  %v10126_v56 = vor.u32 %v14027_v48, %v10125_v47  ;;  %v14831_v47 = vld [vmem:[#allocation5 + $0x21c0] sm:$0xf0] }
 0x2ab   :  { %8150 = vmatpush.bf16.msra.mxu1 %v11578_v60  ;;  %8162 = vmatpush.bf16.msra.mxu2 %v9538_v4  ;;  %v7944_v60 = vpop.f32.mrf.mxu1  ;;  %v10422_v4 = vor.u32 %v14064_v53, %v10419_v54 }
 0x2ac   :  { %8175 = vmatpush.bf16.msra.mxu3 %v11874_v5  ;;  %v7945_v1 = vadd.f32 %v7944_v60, %v7931_v55  ;;  %v12758_v5 = vor.u32 %v14648_v57, %v12755_v58  ;;  %v11587_v55 = vld [vmem:[#allocation5 + $0x140c] sm:$0xf0] }
 0x2ad   :  { %8138 = vmatmul.bf16.vlgmr.msra.gmra.mxu0 %v15028_v59  ;;  %v11303_v57 = vld [vmem:[#allocation5 + $0x11cc] sm:$0xf0] }
 0x2ae   :  { %8182 = vmatpush.bf16.msrb.mxu0 %v11294_v61  ;;  %8151 = vmatmul.bf16.vlgmr.msra.gmra.mxu1 %v15030_v63  ;;  %v12462_v61 = vor.u32 %v14611_v50, %v12461_v49  ;;  %9020 = vst [vmem:[#allocation7 + $0x100] sm:$0xff] %v7945_v1  ;;  %v13772_v50 = vld [vmem:[#allocation5 + $0xac] sm:$0xf]  ;;  %v10717_v1 = vld [vmem:[#allocation5 + $0xc18] sm:$0xf] }
 0x2af   :  { %8195 = vmatpush.bf16.msrb.mxu1 %v13630_v0  ;;  %8163 = vmatpush.bf16.msra.mxu2 %v9246_v21  ;;  %v13954_v0 = vld [vmem:[#allocation5 + $0x658] sm:$0xf0]  ;;  %v9542_v21 = vor.u32 %v13881_v13, %v9541_v12  ;;  %v14795_v12 = vld [vmem:[#allocation5 + $0x20a4] sm:$0xf]  ;;  %v13347_v13 = vld [vmem:[#allocation5 + $0x21c4] sm:$0xf0] }
 0x2b0   :  { %8176 = vmatpush.bf16.msra.mxu3 %v11582_v24  ;;  %v9834_v8 = vor.u32 %v13954_v0, %v9833_v62  ;;  %v12171_v24 = vld [vmem:[#allocation5 + $0x189c] sm:$0xf0]  ;;  %v13639_v62 = vld [vmem:[#allocation5 + $0x240c] sm:$0xf0]  ;;  %v13350_v22 = vor.u32 %v14795_v12, %v13347_v13  ;;  %v14321_v13 = vld [vmem:[#allocation5 + $0x11d0] sm:$0xf0] }
 0x2b1   :  { %v12174_v35 = vor.u32 %v14502_v23, %v12171_v24  ;;  %v14138_v23 = vld [vmem:[#allocation5 + $0xc1c] sm:$0xf]  ;;  %v10719_v24 = vld [vmem:[#allocation5 + $0xd3c] sm:$0xf0]  ;;  %v11309_v12 = vld [vmem:[#allocation5 + $0x10b0] sm:$0xf] }
 0x2b2   :  { %8183 = vmatpush.bf16.msrb.mxu0 %v11002_v15  ;;  %8164 = vmatmul.bf16.vlgmr.msra.gmra.mxu2 %v15028_v59  ;;  %v14465_v15 = vld [vmem:[#allocation5 + $0x1650] sm:$0xf0]  ;;  %v7933_v20 = vpop.f32.mrf.mxu0 }
 0x2b3   :  { %8196 = vmatpush.bf16.msrb.mxu1 %v13338_v18  ;;  %8208 = vmatpush.bf16.msrb.mxu2 %v11298_v25  ;;  %v13918_v18 = vld [vmem:[#allocation5 + $0x53c] sm:$0xf]  ;;  %v7946_v25 = vpop.f32.mrf.mxu1 }
 0x2b4   :  { %8221 = vmatpush.bf16.msrb.mxu3 %v13634_v26  ;;  %v11878_v26 = vor.u32 %v14465_v15, %v11877_v14  ;;  %v9838_v33 = vor.u32 %v13918_v18, %v9835_v19  ;;  %v10425_v15 = vld [vmem:[#allocation5 + $0x9d0] sm:$0xf]  ;;  %v14685_v18 = vld [vmem:[#allocation5 + $0x1d30] sm:$0xf0]  ;;  %v11014_v19 = vor.u32 %v14211_v9, %v11011_v10 }
 0x2b5   :  { %8177 = vmatmul.bf16.vlgmr.msra.gmra.mxu3 %v15030_v63  ;;  %v7957_v53 = vpop.f32.mrf.mxu2  ;;  %v13809_v9 = vld [vmem:[#allocation5 + $0x1d0] sm:$0xf0]  ;;  %v11593_v10 = vld [vmem:[#allocation5 + $0x12f0] sm:$0xf] }
 0x2b6   :  { %8184 = vmatpush.bf16.msrb.mxu0 %v10710_v29  ;;  %v14392_v29 = vld [vmem:[#allocation5 + $0x1408] sm:$0xf0] }
 0x2b7   :  { %8197 = vmatpush.bf16.msrb.mxu1 %v13046_v32  ;;  %8209 = vmatpush.bf16.msrb.mxu2 %v11006_v37  ;;  %v13637_v32 = vld [vmem:[#allocation5 + $0x22e8] sm:$0xf]  ;;  %v9543_v37 = vld [vmem:[#allocation5 + $0x414] sm:$0xf0]  ;;  %v11586_v41 = vor.u32 %v14392_v29, %v11585_v28 }
 0x2b8   :  { %8222 = vmatpush.bf16.msrb.mxu3 %v13342_v40  ;;  %v11879_v40 = vld [vmem:[#allocation5 + $0x1654] sm:$0xf0]  ;;  %v13638_v44 = vor.u32 %v14904_v34, %v13637_v32  ;;  %v9546_v48 = vor.u32 %v13845_v36, %v9543_v37  ;;  %v7970_v54 = vpop.f32.mrf.mxu3  ;;  %v10133_v29 = vld [vmem:[#allocation5 + $0x788] sm:$0xf]  ;;  %v14612_v32 = vld [vmem:[#allocation5 + $0x1ae8] sm:$0xf0] }
 0x2b9   :  { %v11882_v49 = vor.u32 %v14429_v39, %v11879_v40  ;;  %v7971_v58 = vadd.f32 %v7970_v54, %v7957_v53  ;;  %v10427_v36 = vld [vmem:[#allocation5 + $0xaf4] sm:$0xf0]  ;;  %v14649_v39 = vld [vmem:[#allocation5 + $0x1c14] sm:$0xf]  ;;  %v14576_v53 = vld [vmem:[#allocation5 + $0x19cc] sm:$0xf] }
 0x2ba   :  { %8185 = vmatpush.bf16.msrb.mxu0 %v10418_v43  ;;  %v11009_v43 = vld [vmem:[#allocation5 + $0xe60] sm:$0xf]  ;;  %v12763_v40 = vld [vmem:[#allocation5 + $0x1d34] sm:$0xf0]  ;;  %v12471_v54 = vld [vmem:[#allocation5 + $0x1aec] sm:$0xf0] }
 0x2bb   :  { %8198 = vmatpush.bf16.msrb.mxu1 %v12754_v46  ;;  %8210 = vmatpush.bf16.msrb.mxu2 %v10714_v51  ;;  %v13345_v46 = vld [vmem:[#allocation5 + $0x20a0] sm:$0xf]  ;;  %v9251_v51 = vld [vmem:[#allocation5 + $0x1cc] sm:$0xf0]  ;;  %v11010_v60 = vor.u32 %v14247_v45, %v11009_v43  ;;  %9021 = vst [vmem:[#allocation7 + $0x108] sm:$0xff] %v7971_v58 }
 0x2bc   :  { %8223 = vmatpush.bf16.msrb.mxu3 %v13050_v52  ;;  %v14356_v52 = vld [vmem:[#allocation5 + $0x12ec] sm:$0xf]  ;;  %v13346_v0 = vor.u32 %v14831_v47, %v13345_v46  ;;  %v9254_v3 = vor.u32 %v13772_v50, %v9251_v51  ;;  %v9841_v43 = vld [vmem:[#allocation5 + $0x540] sm:$0xf]  ;;  %v14539_v47 = vld [vmem:[#allocation5 + $0x18a0] sm:$0xf0] }
 0x2bd   :  { %v11590_v6 = vor.u32 %v14356_v52, %v11587_v55  ;;  %v7959_v20 = vpop.f32.mrf.mxu2  ;;  %v12177_v46 = vld [vmem:[#allocation5 + $0x1780] sm:$0xf]  ;;  %v13992_v50 = vld [vmem:[#allocation5 + $0x78c] sm:$0xf]  ;;  %v10135_v51 = vld [vmem:[#allocation5 + $0x8ac] sm:$0xf0] }
 0x2be   :  { %8186 = vmatpush.bf16.msrb.mxu0 %v10126_v56  ;;  %v14284_v56 = vld [vmem:[#allocation5 + $0x10ac] sm:$0xf]  ;;  %v12178_v55 = vor.u32 %v14539_v47, %v12177_v46  ;;  %v11885_v58 = vld [vmem:[#allocation5 + $0x1538] sm:$0xf]  ;;  %v14175_v46 = vld [vmem:[#allocation5 + $0xd40] sm:$0xf0] }
 0x2bf   :  { %8199 = vmatpush.bf16.msrb.mxu1 %v12462_v61  ;;  %8211 = vmatpush.bf16.msrb.mxu2 %v10422_v4  ;;  %v14868_v61 = vld [vmem:[#allocation5 + $0x22ec] sm:$0xf]  ;;  %v13053_v4 = vld [vmem:[#allocation5 + $0x1e58] sm:$0xf]  ;;  %v11306_v7 = vor.u32 %v14284_v56, %v11303_v57  ;;  %v13882_v57 = vld [vmem:[#allocation5 + $0x418] sm:$0xf0] }
 0x2c0   :  { %8224 = vmatpush.bf16.msrb.mxu3 %v12758_v5  ;;  %v14758_v5 = vld [vmem:[#allocation5 + $0x1f78] sm:$0xf0]  ;;  %v9549_v56 = vld [vmem:[#allocation5 + $0x2f8] sm:$0xf] }
 0x2c1   :  { %v13054_v14 = vor.u32 %v14758_v5, %v13053_v4  ;;  %v9257_v4 = vld [vmem:[#allocation5 + $0xb0] sm:$0xf]  ;;  %v14503_v5 = vld [vmem:[#allocation5 + $0x1784] sm:$0xf] }
 0x2c2   :  { %8187 = vmatpush.bf16.msrb.mxu0 %v9834_v8  ;;  %v13642_v8 = vor.u32 %v14868_v61, %v13639_v62  ;;  %v10138_v61 = vor.u32 %v13992_v50, %v10135_v51  ;;  %v12474_v62 = vor.u32 %v14576_v53, %v12471_v54  ;;  %v9258_v20 = vor.u32 %v13809_v9, %v9257_v4  ;;  %v14212_v53 = vld [vmem:[#allocation5 + $0xe6c] sm:$0xf]  ;;  %v11019_v54 = vld [vmem:[#allocation5 + $0xf8c] sm:$0xf0]  ;;  %v13063_v9 = vld [vmem:[#allocation5 + $0x1f84] sm:$0xf0] }
 0x2c3   :  { %8200 = vmatpush.bf16.msrb.mxu1 %v12170_v11  ;;  %8212 = vmatpush.bf16.msrb.mxu2 %v10130_v16  ;;  %v10718_v11 = vor.u32 %v14174_v2, %v10717_v1  ;;  %v14101_v16 = vld [vmem:[#allocation5 + $0xaf0] sm:$0xf0]  ;;  %v9843_v1 = vld [vmem:[#allocation5 + $0x664] sm:$0xf0] }
 0x2c4   :  { %8225 = vmatpush.bf16.msrb.mxu3 %v12466_v17  ;;  %v12761_v17 = vld [vmem:[#allocation5 + $0x1c10] sm:$0xf]  ;;  %v10426_v25 = vor.u32 %v14101_v16, %v10425_v15  ;;  %v14905_v16 = vld [vmem:[#allocation5 + $0x2410] sm:$0xf0] }
 0x2c5   :  { %v12762_v28 = vor.u32 %v14685_v18, %v12761_v17  ;;  %v13846_v18 = vld [vmem:[#allocation5 + $0x2fc] sm:$0xf] }
 0x2c6   :  { %8188 = vmatpush.bf16.msrb.mxu0 %v9542_v21  ;;  %v7972_v21 = vpop.f32.mrf.mxu3 }
 0x2c7   :  { %8201 = vmatpush.bf16.msrb.mxu1 %v11878_v26  ;;  %8213 = vmatpush.bf16.msrb.mxu2 %v9838_v33  ;;  %v14722_v26 = vld [vmem:[#allocation5 + $0x1e5c] sm:$0xf]  ;;  %v10722_v33 = vor.u32 %v14138_v23, %v10719_v24  ;;  %v11310_v24 = vor.u32 %v14321_v13, %v11309_v12  ;;  %v14029_v12 = vld [vmem:[#allocation5 + $0x8b0] sm:$0xf0]  ;;  %v12477_v13 = vld [vmem:[#allocation5 + $0x19d0] sm:$0xf] }
 0x2c8   :  { %8226 = vmatpush.bf16.msrb.mxu3 %v12174_v35  ;;  %v13058_v34 = vor.u32 %v14722_v26, %v13055_v27  ;;  %v14065_v35 = vld [vmem:[#allocation5 + $0x9d4] sm:$0xf]  ;;  %v14430_v21 = vld [vmem:[#allocation5 + $0x153c] sm:$0xf]  ;;  %v14248_v27 = vld [vmem:[#allocation5 + $0xf88] sm:$0xf0] }
 0x2ca   :  { %8189 = vmatpush.bf16.msrb.mxu0 %v9250_v38  ;;  %v7983_v37 = vpop.f32.mrf.mxu0  ;;  %v10134_v38 = vor.u32 %v14028_v30, %v10133_v29  ;;  %v14832_v29 = vld [vmem:[#allocation5 + $0x21c8] sm:$0xf0] }
 0x2cb   :  { %8202 = vmatpush.bf16.msrb.mxu1 %v11586_v41  ;;  %8214 = vmatpush.bf16.msrb.mxu2 %v9546_v48  ;;  %v7996_v41 = vpop.f32.mrf.mxu1  ;;  %v10430_v48 = vor.u32 %v14065_v35, %v10427_v36 }
 0x2cc   :  { %8227 = vmatpush.bf16.msrb.mxu3 %v11882_v49  ;;  %v7997_v45 = vadd.f32 %v7996_v41, %v7983_v37  ;;  %v12766_v49 = vor.u32 %v14649_v39, %v12763_v40  ;;  %v11595_v37 = vld [vmem:[#allocation5 + $0x1414] sm:$0xf0] }
 0x2cd   :  { %8190 = vmatmul.bf16.vlgmr.msrb.gmra.mxu0 %v15028_v59  ;;  %v11311_v39 = vld [vmem:[#allocation5 + $0x11d4] sm:$0xf0] }
 0x2ce   :  { %8234 = vmatpush.bf16.msra.mxu0 %v11302_v42  ;;  %8203 = vmatmul.bf16.vlgmr.msrb.gmra.mxu1 %v15030_v63  ;;  %v12470_v42 = vor.u32 %v14612_v32, %v12469_v31  ;;  %9022 = vst [vmem:[#allocation7 + $0x110] sm:$0xff] %v7997_v45  ;;  %v13773_v32 = vld [vmem:[#allocation5 + $0xb4] sm:$0xf]  ;;  %v10725_v45 = vld [vmem:[#allocation5 + $0xc20] sm:$0xf] }
 0x2cf   :  { %8247 = vmatpush.bf16.msra.mxu1 %v13638_v44  ;;  %8215 = vmatpush.bf16.msrb.mxu2 %v9254_v3  ;;  %v13955_v44 = vld [vmem:[#allocation5 + $0x660] sm:$0xf0]  ;;  %v9550_v3 = vor.u32 %v13882_v57, %v9549_v56  ;;  %v14796_v56 = vld [vmem:[#allocation5 + $0x20ac] sm:$0xf]  ;;  %v13355_v57 = vld [vmem:[#allocation5 + $0x21cc] sm:$0xf0] }
 0x2d0   :  { %8228 = vmatpush.bf16.msrb.mxu3 %v11590_v6  ;;  %v9842_v52 = vor.u32 %v13955_v44, %v9841_v43  ;;  %v12179_v6 = vld [vmem:[#allocation5 + $0x18a4] sm:$0xf0]  ;;  %v13647_v43 = vld [vmem:[#allocation5 + $0x2414] sm:$0xf0]  ;;  %v13358_v4 = vor.u32 %v14796_v56, %v13355_v57  ;;  %v14322_v57 = vld [vmem:[#allocation5 + $0x11d8] sm:$0xf0] }
 0x2d1   :  { %v12182_v17 = vor.u32 %v14503_v5, %v12179_v6  ;;  %v14139_v5 = vld [vmem:[#allocation5 + $0xc24] sm:$0xf]  ;;  %v10727_v6 = vld [vmem:[#allocation5 + $0xd44] sm:$0xf0]  ;;  %v11317_v56 = vld [vmem:[#allocation5 + $0x10b8] sm:$0xf] }
 0x2d2   :  { %8235 = vmatpush.bf16.msra.mxu0 %v11010_v60  ;;  %8216 = vmatmul.bf16.vlgmr.msrb.gmra.mxu2 %v15028_v59  ;;  %v14466_v60 = vld [vmem:[#allocation5 + $0x1658] sm:$0xf0]  ;;  %v7985_v2 = vpop.f32.mrf.mxu0 }
 0x2d3   :  { %8248 = vmatpush.bf16.msra.mxu1 %v13346_v0  ;;  %8260 = vmatpush.bf16.msra.mxu2 %v11306_v7  ;;  %v13919_v0 = vld [vmem:[#allocation5 + $0x544] sm:$0xf]  ;;  %v7998_v7 = vpop.f32.mrf.mxu1 }
 0x2d4   :  { %8273 = vmatpush.bf16.msra.mxu3 %v13642_v8  ;;  %v11886_v8 = vor.u32 %v14466_v60, %v11885_v58  ;;  %v9846_v15 = vor.u32 %v13919_v0, %v9843_v1  ;;  %v10433_v60 = vld [vmem:[#allocation5 + $0x9d8] sm:$0xf]  ;;  %v14686_v0 = vld [vmem:[#allocation5 + $0x1d38] sm:$0xf0]  ;;  %v11022_v1 = vor.u32 %v14212_v53, %v11019_v54 }
 0x2d5   :  { %8229 = vmatmul.bf16.vlgmr.msrb.gmra.mxu3 %v15030_v63  ;;  %v8009_v35 = vpop.f32.mrf.mxu2  ;;  %v13810_v53 = vld [vmem:[#allocation5 + $0x1d8] sm:$0xf0]  ;;  %v11601_v54 = vld [vmem:[#allocation5 + $0x12f8] sm:$0xf] }
 0x2d6   :  { %8236 = vmatpush.bf16.msra.mxu0 %v10718_v11  ;;  %v14393_v11 = vld [vmem:[#allocation5 + $0x1410] sm:$0xf0] }
 0x2d7   :  { %8249 = vmatpush.bf16.msra.mxu1 %v13054_v14  ;;  %8261 = vmatpush.bf16.msra.mxu2 %v11014_v19  ;;  %v13645_v14 = vld [vmem:[#allocation5 + $0x22f0] sm:$0xf]  ;;  %v9551_v19 = vld [vmem:[#allocation5 + $0x41c] sm:$0xf0]  ;;  %v11594_v23 = vor.u32 %v14393_v11, %v11593_v10 }
 0x2d8   :  { %8274 = vmatpush.bf16.msra.mxu3 %v13350_v22  ;;  %v11887_v22 = vld [vmem:[#allocation5 + $0x165c] sm:$0xf0]  ;;  %v13646_v26 = vor.u32 %v14905_v16, %v13645_v14  ;;  %v9554_v30 = vor.u32 %v13846_v18, %v9551_v19  ;;  %v8022_v36 = vpop.f32.mrf.mxu3  ;;  %v10141_v11 = vld [vmem:[#allocation5 + $0x790] sm:$0xf]  ;;  %v14613_v14 = vld [vmem:[#allocation5 + $0x1af0] sm:$0xf0] }
 0x2d9   :  { %v11890_v31 = vor.u32 %v14430_v21, %v11887_v22  ;;  %v8023_v40 = vadd.f32 %v8022_v36, %v8009_v35  ;;  %v10435_v18 = vld [vmem:[#allocation5 + $0xafc] sm:$0xf0]  ;;  %v14650_v21 = vld [vmem:[#allocation5 + $0x1c1c] sm:$0xf]  ;;  %v14577_v35 = vld [vmem:[#allocation5 + $0x19d4] sm:$0xf] }
 0x2da   :  { %8237 = vmatpush.bf16.msra.mxu0 %v10426_v25  ;;  %v11017_v25 = vld [vmem:[#allocation5 + $0xe68] sm:$0xf]  ;;  %v12771_v22 = vld [vmem:[#allocation5 + $0x1d3c] sm:$0xf0]  ;;  %v12479_v36 = vld [vmem:[#allocation5 + $0x1af4] sm:$0xf0] }
 0x2db   :  { %8250 = vmatpush.bf16.msra.mxu1 %v12762_v28  ;;  %8262 = vmatpush.bf16.msra.mxu2 %v10722_v33  ;;  %v13353_v28 = vld [vmem:[#allocation5 + $0x20a8] sm:$0xf]  ;;  %v9259_v33 = vld [vmem:[#allocation5 + $0x1d4] sm:$0xf0]  ;;  %v11018_v41 = vor.u32 %v14248_v27, %v11017_v25  ;;  %9023 = vst [vmem:[#allocation7 + $0x118] sm:$0xff] %v8023_v40 }
 0x2dc   :  { %8275 = vmatpush.bf16.msra.mxu3 %v13058_v34  ;;  %v14357_v34 = vld [vmem:[#allocation5 + $0x12f4] sm:$0xf]  ;;  %v13354_v44 = vor.u32 %v14832_v29, %v13353_v28  ;;  %v9262_v47 = vor.u32 %v13773_v32, %v9259_v33  ;;  %v9849_v25 = vld [vmem:[#allocation5 + $0x548] sm:$0xf]  ;;  %v14540_v29 = vld [vmem:[#allocation5 + $0x18a8] sm:$0xf0] }
 0x2dd   :  { %v11598_v50 = vor.u32 %v14357_v34, %v11595_v37  ;;  %v8011_v2 = vpop.f32.mrf.mxu2  ;;  %v12185_v28 = vld [vmem:[#allocation5 + $0x1788] sm:$0xf]  ;;  %v13993_v32 = vld [vmem:[#allocation5 + $0x794] sm:$0xf]  ;;  %v10143_v33 = vld [vmem:[#allocation5 + $0x8b4] sm:$0xf0] }
 0x2de   :  { %8238 = vmatpush.bf16.msra.mxu0 %v10134_v38  ;;  %v14285_v38 = vld [vmem:[#allocation5 + $0x10b4] sm:$0xf]  ;;  %v12186_v37 = vor.u32 %v14540_v29, %v12185_v28  ;;  %v11893_v40 = vld [vmem:[#allocation5 + $0x1540] sm:$0xf]  ;;  %v14176_v28 = vld [vmem:[#allocation5 + $0xd48] sm:$0xf0] }
 0x2df   :  { %8251 = vmatpush.bf16.msra.mxu1 %v12470_v42  ;;  %8263 = vmatpush.bf16.msra.mxu2 %v10430_v48  ;;  %v14869_v42 = vld [vmem:[#allocation5 + $0x22f4] sm:$0xf]  ;;  %v13061_v48 = vld [vmem:[#allocation5 + $0x1e60] sm:$0xf]  ;;  %v11314_v51 = vor.u32 %v14285_v38, %v11311_v39  ;;  %v13883_v39 = vld [vmem:[#allocation5 + $0x420] sm:$0xf0] }
 0x2e0   :  { %8276 = vmatpush.bf16.msra.mxu3 %v12766_v49  ;;  %v14759_v49 = vld [vmem:[#allocation5 + $0x1f80] sm:$0xf0]  ;;  %v9557_v38 = vld [vmem:[#allocation5 + $0x300] sm:$0xf] }
 0x2e1   :  { %v13062_v58 = vor.u32 %v14759_v49, %v13061_v48  ;;  %v9265_v48 = vld [vmem:[#allocation5 + $0xb8] sm:$0xf]  ;;  %v14504_v49 = vld [vmem:[#allocation5 + $0x178c] sm:$0xf] }
 0x2e2   :  { %8239 = vmatpush.bf16.msra.mxu0 %v9842_v52  ;;  %v13650_v52 = vor.u32 %v14869_v42, %v13647_v43  ;;  %v10146_v42 = vor.u32 %v13993_v32, %v10143_v33  ;;  %v12482_v43 = vor.u32 %v14577_v35, %v12479_v36  ;;  %v9266_v2 = vor.u32 %v13810_v53, %v9265_v48  ;;  %v14213_v35 = vld [vmem:[#allocation5 + $0xe74] sm:$0xf]  ;;  %v11027_v36 = vld [vmem:[#allocation5 + $0xf94] sm:$0xf0]  ;;  %v13071_v53 = vld [vmem:[#allocation5 + $0x1f8c] sm:$0xf0] }
 0x2e3   :  { %8252 = vmatpush.bf16.msra.mxu1 %v12178_v55  ;;  %8264 = vmatpush.bf16.msra.mxu2 %v10138_v61  ;;  %v10726_v55 = vor.u32 %v14175_v46, %v10725_v45  ;;  %v14102_v61 = vld [vmem:[#allocation5 + $0xaf8] sm:$0xf0]  ;;  %v9851_v45 = vld [vmem:[#allocation5 + $0x66c] sm:$0xf0] }
 0x2e4   :  { %8277 = vmatpush.bf16.msra.mxu3 %v12474_v62  ;;  %v12769_v62 = vld [vmem:[#allocation5 + $0x1c18] sm:$0xf]  ;;  %v10434_v7 = vor.u32 %v14102_v61, %v10433_v60  ;;  %v14906_v61 = vld [vmem:[#allocation5 + $0x2418] sm:$0xf0] }
 0x2e5   :  { %v12770_v10 = vor.u32 %v14686_v0, %v12769_v62  ;;  %v13847_v0 = vld [vmem:[#allocation5 + $0x304] sm:$0xf] }
 0x2e6   :  { %8240 = vmatpush.bf16.msra.mxu0 %v9550_v3  ;;  %v8024_v3 = vpop.f32.mrf.mxu3 }
 0x2e7   :  { %8253 = vmatpush.bf16.msra.mxu1 %v11886_v8  ;;  %8265 = vmatpush.bf16.msra.mxu2 %v9846_v15  ;;  %v14723_v8 = vld [vmem:[#allocation5 + $0x1e64] sm:$0xf]  ;;  %v10730_v15 = vor.u32 %v14139_v5, %v10727_v6  ;;  %v11318_v6 = vor.u32 %v14322_v57, %v11317_v56  ;;  %v14030_v56 = vld [vmem:[#allocation5 + $0x8b8] sm:$0xf0]  ;;  %v12485_v57 = vld [vmem:[#allocation5 + $0x19d8] sm:$0xf] }
 0x2e8   :  { %8278 = vmatpush.bf16.msra.mxu3 %v12182_v17  ;;  %v13066_v16 = vor.u32 %v14723_v8, %v13063_v9  ;;  %v14066_v17 = vld [vmem:[#allocation5 + $0x9dc] sm:$0xf]  ;;  %v14431_v3 = vld [vmem:[#allocation5 + $0x1544] sm:$0xf]  ;;  %v14249_v9 = vld [vmem:[#allocation5 + $0xf90] sm:$0xf0] }
 0x2ea   :  { %8241 = vmatpush.bf16.msra.mxu0 %v9258_v20  ;;  %v8035_v19 = vpop.f32.mrf.mxu0  ;;  %v10142_v20 = vor.u32 %v14029_v12, %v10141_v11  ;;  %v14833_v11 = vld [vmem:[#allocation5 + $0x21d0] sm:$0xf0] }
 0x2eb   :  { %8254 = vmatpush.bf16.msra.mxu1 %v11594_v23  ;;  %8266 = vmatpush.bf16.msra.mxu2 %v9554_v30  ;;  %v8048_v23 = vpop.f32.mrf.mxu1  ;;  %v10438_v30 = vor.u32 %v14066_v17, %v10435_v18 }
 0x2ec   :  { %8279 = vmatpush.bf16.msra.mxu3 %v11890_v31  ;;  %v8049_v27 = vadd.f32 %v8048_v23, %v8035_v19  ;;  %v12774_v31 = vor.u32 %v14650_v21, %v12771_v22  ;;  %v11603_v19 = vld [vmem:[#allocation5 + $0x141c] sm:$0xf0] }
 0x2ed   :  { %8242 = vmatmul.bf16.vlgmr.msra.gmra.mxu0 %v15028_v59  ;;  %v11319_v21 = vld [vmem:[#allocation5 + $0x11dc] sm:$0xf0] }
 0x2ee   :  { %8286 = vmatpush.bf16.msrb.mxu0 %v11310_v24  ;;  %8255 = vmatmul.bf16.vlgmr.msra.gmra.mxu1 %v15030_v63  ;;  %v12478_v24 = vor.u32 %v14613_v14, %v12477_v13  ;;  %9024 = vst [vmem:[#allocation7 + $0x120] sm:$0xff] %v8049_v27  ;;  %v13774_v14 = vld [vmem:[#allocation5 + $0xbc] sm:$0xf]  ;;  %v10733_v27 = vld [vmem:[#allocation5 + $0xc28] sm:$0xf] }
 0x2ef   :  { %8299 = vmatpush.bf16.msrb.mxu1 %v13646_v26  ;;  %8267 = vmatpush.bf16.msra.mxu2 %v9262_v47  ;;  %v13956_v26 = vld [vmem:[#allocation5 + $0x668] sm:$0xf0]  ;;  %v9558_v47 = vor.u32 %v13883_v39, %v9557_v38  ;;  %v14797_v38 = vld [vmem:[#allocation5 + $0x20b4] sm:$0xf]  ;;  %v13363_v39 = vld [vmem:[#allocation5 + $0x21d4] sm:$0xf0] }
 0x2f0   :  { %8280 = vmatpush.bf16.msra.mxu3 %v11598_v50  ;;  %v9850_v34 = vor.u32 %v13956_v26, %v9849_v25  ;;  %v12187_v50 = vld [vmem:[#allocation5 + $0x18ac] sm:$0xf0]  ;;  %v13655_v25 = vld [vmem:[#allocation5 + $0x241c] sm:$0xf0]  ;;  %v13366_v48 = vor.u32 %v14797_v38, %v13363_v39  ;;  %v14323_v39 = vld [vmem:[#allocation5 + $0x11e0] sm:$0xf0] }
 0x2f1   :  { %v12190_v62 = vor.u32 %v14504_v49, %v12187_v50  ;;  %v14140_v49 = vld [vmem:[#allocation5 + $0xc2c] sm:$0xf]  ;;  %v10735_v50 = vld [vmem:[#allocation5 + $0xd4c] sm:$0xf0]  ;;  %v11325_v38 = vld [vmem:[#allocation5 + $0x10c0] sm:$0xf] }
 0x2f2   :  { %8287 = vmatpush.bf16.msrb.mxu0 %v11018_v41  ;;  %8268 = vmatmul.bf16.vlgmr.msra.gmra.mxu2 %v15028_v59  ;;  %v14467_v41 = vld [vmem:[#allocation5 + $0x1660] sm:$0xf0]  ;;  %v8037_v46 = vpop.f32.mrf.mxu0 }
 0x2f3   :  { %8300 = vmatpush.bf16.msrb.mxu1 %v13354_v44  ;;  %8312 = vmatpush.bf16.msrb.mxu2 %v11314_v51  ;;  %v13920_v44 = vld [vmem:[#allocation5 + $0x54c] sm:$0xf]  ;;  %v8050_v51 = vpop.f32.mrf.mxu1 }
 0x2f4   :  { %8325 = vmatpush.bf16.msrb.mxu3 %v13650_v52  ;;  %v11894_v52 = vor.u32 %v14467_v41, %v11893_v40  ;;  %v9854_v60 = vor.u32 %v13920_v44, %v9851_v45  ;;  %v10441_v41 = vld [vmem:[#allocation5 + $0x9e0] sm:$0xf]  ;;  %v14687_v44 = vld [vmem:[#allocation5 + $0x1d40] sm:$0xf0]  ;;  %v11030_v45 = vor.u32 %v14213_v35, %v11027_v36 }
 0x2f5   :  { %8281 = vmatmul.bf16.vlgmr.msra.gmra.mxu3 %v15030_v63  ;;  %v8061_v17 = vpop.f32.mrf.mxu2  ;;  %v13811_v35 = vld [vmem:[#allocation5 + $0x1e0] sm:$0xf0]  ;;  %v11609_v36 = vld [vmem:[#allocation5 + $0x1300] sm:$0xf] }
 0x2f6   :  { %8288 = vmatpush.bf16.msrb.mxu0 %v10726_v55  ;;  %v14394_v55 = vld [vmem:[#allocation5 + $0x1418] sm:$0xf0] }
 0x2f7   :  { %8301 = vmatpush.bf16.msrb.mxu1 %v13062_v58  ;;  %8313 = vmatpush.bf16.msrb.mxu2 %v11022_v1  ;;  %v13653_v58 = vld [vmem:[#allocation5 + $0x22f8] sm:$0xf]  ;;  %v9559_v1 = vld [vmem:[#allocation5 + $0x424] sm:$0xf0]  ;;  %v11602_v5 = vor.u32 %v14394_v55, %v11601_v54 }
 0x2f8   :  { %8326 = vmatpush.bf16.msrb.mxu3 %v13358_v4  ;;  %v11895_v4 = vld [vmem:[#allocation5 + $0x1664] sm:$0xf0]  ;;  %v13654_v8 = vor.u32 %v14906_v61, %v13653_v58  ;;  %v9562_v12 = vor.u32 %v13847_v0, %v9559_v1  ;;  %v8074_v18 = vpop.f32.mrf.mxu3  ;;  %v10149_v55 = vld [vmem:[#allocation5 + $0x798] sm:$0xf]  ;;  %v14614_v58 = vld [vmem:[#allocation5 + $0x1af8] sm:$0xf0] }
 0x2f9   :  { %v11898_v13 = vor.u32 %v14431_v3, %v11895_v4  ;;  %v8075_v22 = vadd.f32 %v8074_v18, %v8061_v17  ;;  %v10443_v0 = vld [vmem:[#allocation5 + $0xb04] sm:$0xf0]  ;;  %v14651_v3 = vld [vmem:[#allocation5 + $0x1c24] sm:$0xf]  ;;  %v14578_v17 = vld [vmem:[#allocation5 + $0x19dc] sm:$0xf] }
 0x2fa   :  { %8289 = vmatpush.bf16.msrb.mxu0 %v10434_v7  ;;  %v11025_v7 = vld [vmem:[#allocation5 + $0xe70] sm:$0xf]  ;;  %v12779_v4 = vld [vmem:[#allocation5 + $0x1d44] sm:$0xf0]  ;;  %v12487_v18 = vld [vmem:[#allocation5 + $0x1afc] sm:$0xf0] }
 0x2fb   :  { %8302 = vmatpush.bf16.msrb.mxu1 %v12770_v10  ;;  %8314 = vmatpush.bf16.msrb.mxu2 %v10730_v15  ;;  %v13361_v10 = vld [vmem:[#allocation5 + $0x20b0] sm:$0xf]  ;;  %v9267_v15 = vld [vmem:[#allocation5 + $0x1dc] sm:$0xf0]  ;;  %v11026_v23 = vor.u32 %v14249_v9, %v11025_v7  ;;  %9025 = vst [vmem:[#allocation7 + $0x128] sm:$0xff] %v8075_v22 }
 0x2fc   :  { %8327 = vmatpush.bf16.msrb.mxu3 %v13066_v16  ;;  %v14358_v16 = vld [vmem:[#allocation5 + $0x12fc] sm:$0xf]  ;;  %v13362_v26 = vor.u32 %v14833_v11, %v13361_v10  ;;  %v9270_v29 = vor.u32 %v13774_v14, %v9267_v15  ;;  %v9857_v7 = vld [vmem:[#allocation5 + $0x550] sm:$0xf]  ;;  %v14541_v11 = vld [vmem:[#allocation5 + $0x18b0] sm:$0xf0] }
 0x2fd   :  { %v11606_v32 = vor.u32 %v14358_v16, %v11603_v19  ;;  %v8063_v46 = vpop.f32.mrf.mxu2  ;;  %v12193_v10 = vld [vmem:[#allocation5 + $0x1790] sm:$0xf]  ;;  %v13994_v14 = vld [vmem:[#allocation5 + $0x79c] sm:$0xf]  ;;  %v10151_v15 = vld [vmem:[#allocation5 + $0x8bc] sm:$0xf0] }
 0x2fe   :  { %8290 = vmatpush.bf16.msrb.mxu0 %v10142_v20  ;;  %v14286_v20 = vld [vmem:[#allocation5 + $0x10bc] sm:$0xf]  ;;  %v12194_v19 = vor.u32 %v14541_v11, %v12193_v10  ;;  %v11901_v22 = vld [vmem:[#allocation5 + $0x1548] sm:$0xf]  ;;  %v14177_v10 = vld [vmem:[#allocation5 + $0xd50] sm:$0xf0] }
 0x2ff   :  { %8303 = vmatpush.bf16.msrb.mxu1 %v12478_v24  ;;  %8315 = vmatpush.bf16.msrb.mxu2 %v10438_v30  ;;  %v14870_v24 = vld [vmem:[#allocation5 + $0x22fc] sm:$0xf]  ;;  %v13069_v30 = vld [vmem:[#allocation5 + $0x1e68] sm:$0xf]  ;;  %v11322_v33 = vor.u32 %v14286_v20, %v11319_v21  ;;  %v13884_v21 = vld [vmem:[#allocation5 + $0x428] sm:$0xf0] }
 0x300   :  { %8328 = vmatpush.bf16.msrb.mxu3 %v12774_v31  ;;  %v14760_v31 = vld [vmem:[#allocation5 + $0x1f88] sm:$0xf0]  ;;  %v9565_v20 = vld [vmem:[#allocation5 + $0x308] sm:$0xf] }
 0x301   :  { %v13070_v40 = vor.u32 %v14760_v31, %v13069_v30  ;;  %v9273_v30 = vld [vmem:[#allocation5 + $0xc0] sm:$0xf]  ;;  %v14505_v31 = vld [vmem:[#allocation5 + $0x1794] sm:$0xf] }
 0x302   :  { %8291 = vmatpush.bf16.msrb.mxu0 %v9850_v34  ;;  %v13658_v34 = vor.u32 %v14870_v24, %v13655_v25  ;;  %v10154_v24 = vor.u32 %v13994_v14, %v10151_v15  ;;  %v12490_v25 = vor.u32 %v14578_v17, %v12487_v18  ;;  %v9274_v46 = vor.u32 %v13811_v35, %v9273_v30  ;;  %v14214_v17 = vld [vmem:[#allocation5 + $0xe7c] sm:$0xf]  ;;  %v11035_v18 = vld [vmem:[#allocation5 + $0xf9c] sm:$0xf0]  ;;  %v13079_v35 = vld [vmem:[#allocation5 + $0x1f94] sm:$0xf0] }
 0x303   :  { %8304 = vmatpush.bf16.msrb.mxu1 %v12186_v37  ;;  %8316 = vmatpush.bf16.msrb.mxu2 %v10146_v42  ;;  %v10734_v37 = vor.u32 %v14176_v28, %v10733_v27  ;;  %v14103_v42 = vld [vmem:[#allocation5 + $0xb00] sm:$0xf0]  ;;  %v9859_v27 = vld [vmem:[#allocation5 + $0x674] sm:$0xf0] }
 0x304   :  { %8329 = vmatpush.bf16.msrb.mxu3 %v12482_v43  ;;  %v12777_v43 = vld [vmem:[#allocation5 + $0x1c20] sm:$0xf]  ;;  %v10442_v51 = vor.u32 %v14103_v42, %v10441_v41  ;;  %v14907_v42 = vld [vmem:[#allocation5 + $0x2420] sm:$0xf0] }
 0x305   :  { %v12778_v54 = vor.u32 %v14687_v44, %v12777_v43  ;;  %v13848_v44 = vld [vmem:[#allocation5 + $0x30c] sm:$0xf] }
 0x306   :  { %8292 = vmatpush.bf16.msrb.mxu0 %v9558_v47  ;;  %v8076_v47 = vpop.f32.mrf.mxu3 }
 0x307   :  { %8305 = vmatpush.bf16.msrb.mxu1 %v11894_v52  ;;  %8317 = vmatpush.bf16.msrb.mxu2 %v9854_v60  ;;  %v14724_v52 = vld [vmem:[#allocation5 + $0x1e6c] sm:$0xf]  ;;  %v10738_v60 = vor.u32 %v14140_v49, %v10735_v50  ;;  %v11326_v50 = vor.u32 %v14323_v39, %v11325_v38  ;;  %v14031_v38 = vld [vmem:[#allocation5 + $0x8c0] sm:$0xf0]  ;;  %v12493_v39 = vld [vmem:[#allocation5 + $0x19e0] sm:$0xf] }
 0x308   :  { %8330 = vmatpush.bf16.msrb.mxu3 %v12190_v62  ;;  %v13074_v61 = vor.u32 %v14724_v52, %v13071_v53  ;;  %v14067_v62 = vld [vmem:[#allocation5 + $0x9e4] sm:$0xf]  ;;  %v14432_v47 = vld [vmem:[#allocation5 + $0x154c] sm:$0xf]  ;;  %v14250_v53 = vld [vmem:[#allocation5 + $0xf98] sm:$0xf0] }
 0x30a   :  { %8293 = vmatpush.bf16.msrb.mxu0 %v9266_v2  ;;  %v8087_v1 = vpop.f32.mrf.mxu0  ;;  %v10150_v2 = vor.u32 %v14030_v56, %v10149_v55  ;;  %v14834_v55 = vld [vmem:[#allocation5 + $0x21d8] sm:$0xf0] }
 0x30b   :  { %8306 = vmatpush.bf16.msrb.mxu1 %v11602_v5  ;;  %8318 = vmatpush.bf16.msrb.mxu2 %v9562_v12  ;;  %v8100_v5 = vpop.f32.mrf.mxu1  ;;  %v10446_v12 = vor.u32 %v14067_v62, %v10443_v0 }
 0x30c   :  { %8331 = vmatpush.bf16.msrb.mxu3 %v11898_v13  ;;  %v8101_v9 = vadd.f32 %v8100_v5, %v8087_v1  ;;  %v12782_v13 = vor.u32 %v14651_v3, %v12779_v4  ;;  %v11611_v1 = vld [vmem:[#allocation5 + $0x1424] sm:$0xf0] }
 0x30d   :  { %8294 = vmatmul.bf16.vlgmr.msrb.gmra.mxu0 %v15028_v59  ;;  %v11327_v3 = vld [vmem:[#allocation5 + $0x11e4] sm:$0xf0] }
 0x30e   :  { %8338 = vmatpush.bf16.msra.mxu0 %v11318_v6  ;;  %8307 = vmatmul.bf16.vlgmr.msrb.gmra.mxu1 %v15030_v63  ;;  %v12486_v6 = vor.u32 %v14614_v58, %v12485_v57  ;;  %9026 = vst [vmem:[#allocation7 + $0x130] sm:$0xff] %v8101_v9  ;;  %v13775_v58 = vld [vmem:[#allocation5 + $0xc4] sm:$0xf]  ;;  %v10741_v9 = vld [vmem:[#allocation5 + $0xc30] sm:$0xf] }
 0x30f   :  { %8351 = vmatpush.bf16.msra.mxu1 %v13654_v8  ;;  %8319 = vmatpush.bf16.msrb.mxu2 %v9270_v29  ;;  %v13957_v8 = vld [vmem:[#allocation5 + $0x670] sm:$0xf0]  ;;  %v9566_v29 = vor.u32 %v13884_v21, %v9565_v20  ;;  %v14798_v20 = vld [vmem:[#allocation5 + $0x20bc] sm:$0xf]  ;;  %v13371_v21 = vld [vmem:[#allocation5 + $0x21dc] sm:$0xf0] }
 0x310   :  { %8332 = vmatpush.bf16.msrb.mxu3 %v11606_v32  ;;  %v9858_v16 = vor.u32 %v13957_v8, %v9857_v7  ;;  %v12195_v32 = vld [vmem:[#allocation5 + $0x18b4] sm:$0xf0]  ;;  %v13663_v7 = vld [vmem:[#allocation5 + $0x2424] sm:$0xf0]  ;;  %v13374_v30 = vor.u32 %v14798_v20, %v13371_v21  ;;  %v14324_v21 = vld [vmem:[#allocation5 + $0x11e8] sm:$0xf0] }
 0x311   :  { %v12198_v43 = vor.u32 %v14505_v31, %v12195_v32  ;;  %v14141_v31 = vld [vmem:[#allocation5 + $0xc34] sm:$0xf]  ;;  %v10743_v32 = vld [vmem:[#allocation5 + $0xd54] sm:$0xf0]  ;;  %v11333_v20 = vld [vmem:[#allocation5 + $0x10c8] sm:$0xf] }
 0x312   :  { %8339 = vmatpush.bf16.msra.mxu0 %v11026_v23  ;;  %8320 = vmatmul.bf16.vlgmr.msrb.gmra.mxu2 %v15028_v59  ;;  %v14468_v23 = vld [vmem:[#allocation5 + $0x1668] sm:$0xf0]  ;;  %v8089_v28 = vpop.f32.mrf.mxu0 }
 0x313   :  { %8352 = vmatpush.bf16.msra.mxu1 %v13362_v26  ;;  %8364 = vmatpush.bf16.msra.mxu2 %v11322_v33  ;;  %v13921_v26 = vld [vmem:[#allocation5 + $0x554] sm:$0xf]  ;;  %v8102_v33 = vpop.f32.mrf.mxu1 }
 0x314   :  { %8377 = vmatpush.bf16.msra.mxu3 %v13658_v34  ;;  %v11902_v34 = vor.u32 %v14468_v23, %v11901_v22  ;;  %v9862_v41 = vor.u32 %v13921_v26, %v9859_v27  ;;  %v10449_v23 = vld [vmem:[#allocation5 + $0x9e8] sm:$0xf]  ;;  %v14688_v26 = vld [vmem:[#allocation5 + $0x1d48] sm:$0xf0]  ;;  %v11038_v27 = vor.u32 %v14214_v17, %v11035_v18 }
 0x315   :  { %8333 = vmatmul.bf16.vlgmr.msrb.gmra.mxu3 %v15030_v63  ;;  %v8113_v62 = vpop.f32.mrf.mxu2  ;;  %v13812_v17 = vld [vmem:[#allocation5 + $0x1e8] sm:$0xf0]  ;;  %v11617_v18 = vld [vmem:[#allocation5 + $0x1308] sm:$0xf] }
 0x316   :  { %8340 = vmatpush.bf16.msra.mxu0 %v10734_v37  ;;  %v14395_v37 = vld [vmem:[#allocation5 + $0x1420] sm:$0xf0] }
 0x317   :  { %8353 = vmatpush.bf16.msra.mxu1 %v13070_v40  ;;  %8365 = vmatpush.bf16.msra.mxu2 %v11030_v45  ;;  %v13661_v40 = vld [vmem:[#allocation5 + $0x2300] sm:$0xf]  ;;  %v9567_v45 = vld [vmem:[#allocation5 + $0x42c] sm:$0xf0]  ;;  %v11610_v49 = vor.u32 %v14395_v37, %v11609_v36 }
 0x318   :  { %8378 = vmatpush.bf16.msra.mxu3 %v13366_v48  ;;  %v11903_v48 = vld [vmem:[#allocation5 + $0x166c] sm:$0xf0]  ;;  %v13662_v52 = vor.u32 %v14907_v42, %v13661_v40  ;;  %v9570_v56 = vor.u32 %v13848_v44, %v9567_v45  ;;  %v8126_v0 = vpop.f32.mrf.mxu3  ;;  %v10157_v37 = vld [vmem:[#allocation5 + $0x7a0] sm:$0xf]  ;;  %v14615_v40 = vld [vmem:[#allocation5 + $0x1b00] sm:$0xf0] }
 0x319   :  { %v11906_v57 = vor.u32 %v14432_v47, %v11903_v48  ;;  %v8127_v4 = vadd.f32 %v8126_v0, %v8113_v62  ;;  %v10451_v44 = vld [vmem:[#allocation5 + $0xb0c] sm:$0xf0]  ;;  %v14652_v47 = vld [vmem:[#allocation5 + $0x1c2c] sm:$0xf]  ;;  %v14579_v62 = vld [vmem:[#allocation5 + $0x19e4] sm:$0xf] }
 0x31a   :  { %8341 = vmatpush.bf16.msra.mxu0 %v10442_v51  ;;  %v11033_v51 = vld [vmem:[#allocation5 + $0xe78] sm:$0xf]  ;;  %v12787_v48 = vld [vmem:[#allocation5 + $0x1d4c] sm:$0xf0]  ;;  %v12495_v0 = vld [vmem:[#allocation5 + $0x1b04] sm:$0xf0] }
 0x31b   :  { %8354 = vmatpush.bf16.msra.mxu1 %v12778_v54  ;;  %8366 = vmatpush.bf16.msra.mxu2 %v10738_v60  ;;  %v13369_v54 = vld [vmem:[#allocation5 + $0x20b8] sm:$0xf]  ;;  %v9275_v60 = vld [vmem:[#allocation5 + $0x1e4] sm:$0xf0]  ;;  %v11034_v5 = vor.u32 %v14250_v53, %v11033_v51  ;;  %9027 = vst [vmem:[#allocation7 + $0x138] sm:$0xff] %v8127_v4 }
 0x31c   :  { %8379 = vmatpush.bf16.msra.mxu3 %v13074_v61  ;;  %v14359_v61 = vld [vmem:[#allocation5 + $0x1304] sm:$0xf]  ;;  %v13370_v8 = vor.u32 %v14834_v55, %v13369_v54  ;;  %v9278_v11 = vor.u32 %v13775_v58, %v9275_v60  ;;  %v9865_v51 = vld [vmem:[#allocation5 + $0x558] sm:$0xf]  ;;  %v14542_v55 = vld [vmem:[#allocation5 + $0x18b8] sm:$0xf0] }
 0x31d   :  { %v11614_v14 = vor.u32 %v14359_v61, %v11611_v1  ;;  %v8115_v28 = vpop.f32.mrf.mxu2  ;;  %v12201_v54 = vld [vmem:[#allocation5 + $0x1798] sm:$0xf]  ;;  %v13995_v58 = vld [vmem:[#allocation5 + $0x7a4] sm:$0xf]  ;;  %v10159_v60 = vld [vmem:[#allocation5 + $0x8c4] sm:$0xf0] }
 0x31e   :  { %8342 = vmatpush.bf16.msra.mxu0 %v10150_v2  ;;  %v14287_v2 = vld [vmem:[#allocation5 + $0x10c4] sm:$0xf]  ;;  %v12202_v1 = vor.u32 %v14542_v55, %v12201_v54  ;;  %v11909_v4 = vld [vmem:[#allocation5 + $0x1550] sm:$0xf]  ;;  %v14178_v54 = vld [vmem:[#allocation5 + $0xd58] sm:$0xf0] }
 0x31f   :  { %8355 = vmatpush.bf16.msra.mxu1 %v12486_v6  ;;  %8367 = vmatpush.bf16.msra.mxu2 %v10446_v12  ;;  %v14871_v6 = vld [vmem:[#allocation5 + $0x2304] sm:$0xf]  ;;  %v13077_v12 = vld [vmem:[#allocation5 + $0x1e70] sm:$0xf]  ;;  %v11330_v15 = vor.u32 %v14287_v2, %v11327_v3  ;;  %v13885_v3 = vld [vmem:[#allocation5 + $0x430] sm:$0xf0] }
 0x320   :  { %8380 = vmatpush.bf16.msra.mxu3 %v12782_v13  ;;  %v14761_v13 = vld [vmem:[#allocation5 + $0x1f90] sm:$0xf0]  ;;  %v9573_v2 = vld [vmem:[#allocation5 + $0x310] sm:$0xf] }
 0x321   :  { %v13078_v22 = vor.u32 %v14761_v13, %v13077_v12  ;;  %v9281_v12 = vld [vmem:[#allocation5 + $0xc8] sm:$0xf]  ;;  %v14506_v13 = vld [vmem:[#allocation5 + $0x179c] sm:$0xf] }
 0x322   :  { %8343 = vmatpush.bf16.msra.mxu0 %v9858_v16  ;;  %v13666_v16 = vor.u32 %v14871_v6, %v13663_v7  ;;  %v10162_v6 = vor.u32 %v13995_v58, %v10159_v60  ;;  %v12498_v7 = vor.u32 %v14579_v62, %v12495_v0  ;;  %v9282_v28 = vor.u32 %v13812_v17, %v9281_v12  ;;  %v14215_v62 = vld [vmem:[#allocation5 + $0xe84] sm:$0xf]  ;;  %v11043_v0 = vld [vmem:[#allocation5 + $0xfa4] sm:$0xf0]  ;;  %v13087_v17 = vld [vmem:[#allocation5 + $0x1f9c] sm:$0xf0] }
 0x323   :  { %8356 = vmatpush.bf16.msra.mxu1 %v12194_v19  ;;  %8368 = vmatpush.bf16.msra.mxu2 %v10154_v24  ;;  %v10742_v19 = vor.u32 %v14177_v10, %v10741_v9  ;;  %v14104_v24 = vld [vmem:[#allocation5 + $0xb08] sm:$0xf0]  ;;  %v9867_v9 = vld [vmem:[#allocation5 + $0x67c] sm:$0xf0] }
 0x324   :  { %8381 = vmatpush.bf16.msra.mxu3 %v12490_v25  ;;  %v12785_v25 = vld [vmem:[#allocation5 + $0x1c28] sm:$0xf]  ;;  %v10450_v33 = vor.u32 %v14104_v24, %v10449_v23  ;;  %v14908_v24 = vld [vmem:[#allocation5 + $0x2428] sm:$0xf0] }
 0x325   :  { %v12786_v36 = vor.u32 %v14688_v26, %v12785_v25  ;;  %v13849_v26 = vld [vmem:[#allocation5 + $0x314] sm:$0xf] }
 0x326   :  { %8344 = vmatpush.bf16.msra.mxu0 %v9566_v29  ;;  %v8128_v29 = vpop.f32.mrf.mxu3 }
 0x327   :  { %8357 = vmatpush.bf16.msra.mxu1 %v11902_v34  ;;  %8369 = vmatpush.bf16.msra.mxu2 %v9862_v41  ;;  %v14725_v34 = vld [vmem:[#allocation5 + $0x1e74] sm:$0xf]  ;;  %v10746_v41 = vor.u32 %v14141_v31, %v10743_v32  ;;  %v11334_v32 = vor.u32 %v14324_v21, %v11333_v20  ;;  %v14032_v20 = vld [vmem:[#allocation5 + $0x8c8] sm:$0xf0]  ;;  %v12501_v21 = vld [vmem:[#allocation5 + $0x19e8] sm:$0xf] }
 0x328   :  { %8382 = vmatpush.bf16.msra.mxu3 %v12198_v43  ;;  %v13082_v42 = vor.u32 %v14725_v34, %v13079_v35  ;;  %v14068_v43 = vld [vmem:[#allocation5 + $0x9ec] sm:$0xf]  ;;  %v14433_v29 = vld [vmem:[#allocation5 + $0x1554] sm:$0xf]  ;;  %v14251_v35 = vld [vmem:[#allocation5 + $0xfa0] sm:$0xf0] }
 0x32a   :  { %8345 = vmatpush.bf16.msra.mxu0 %v9274_v46  ;;  %v8139_v45 = vpop.f32.mrf.mxu0  ;;  %v10158_v46 = vor.u32 %v14031_v38, %v10157_v37  ;;  %v14835_v37 = vld [vmem:[#allocation5 + $0x21e0] sm:$0xf0] }
 0x32b   :  { %8358 = vmatpush.bf16.msra.mxu1 %v11610_v49  ;;  %8370 = vmatpush.bf16.msra.mxu2 %v9570_v56  ;;  %v8152_v49 = vpop.f32.mrf.mxu1  ;;  %v10454_v56 = vor.u32 %v14068_v43, %v10451_v44 }
 0x32c   :  { %8383 = vmatpush.bf16.msra.mxu3 %v11906_v57  ;;  %v8153_v53 = vadd.f32 %v8152_v49, %v8139_v45  ;;  %v12790_v57 = vor.u32 %v14652_v47, %v12787_v48  ;;  %v11619_v45 = vld [vmem:[#allocation5 + $0x142c] sm:$0xf0] }
 0x32d   :  { %8346 = vmatmul.bf16.vlgmr.msra.gmra.mxu0 %v15028_v59  ;;  %v11335_v47 = vld [vmem:[#allocation5 + $0x11ec] sm:$0xf0] }
 0x32e   :  { %8390 = vmatpush.bf16.msrb.mxu0 %v11326_v50  ;;  %8359 = vmatmul.bf16.vlgmr.msra.gmra.mxu1 %v15030_v63  ;;  %v12494_v50 = vor.u32 %v14615_v40, %v12493_v39  ;;  %9028 = vst [vmem:[#allocation7 + $0x140] sm:$0xff] %v8153_v53  ;;  %v13776_v40 = vld [vmem:[#allocation5 + $0xcc] sm:$0xf]  ;;  %v10749_v53 = vld [vmem:[#allocation5 + $0xc38] sm:$0xf] }
 0x32f   :  { %8403 = vmatpush.bf16.msrb.mxu1 %v13662_v52  ;;  %8371 = vmatpush.bf16.msra.mxu2 %v9278_v11  ;;  %v13958_v52 = vld [vmem:[#allocation5 + $0x678] sm:$0xf0]  ;;  %v9574_v11 = vor.u32 %v13885_v3, %v9573_v2  ;;  %v14799_v2 = vld [vmem:[#allocation5 + $0x20c4] sm:$0xf]  ;;  %v13379_v3 = vld [vmem:[#allocation5 + $0x21e4] sm:$0xf0] }
 0x330   :  { %8384 = vmatpush.bf16.msra.mxu3 %v11614_v14  ;;  %v9866_v61 = vor.u32 %v13958_v52, %v9865_v51  ;;  %v12203_v14 = vld [vmem:[#allocation5 + $0x18bc] sm:$0xf0]  ;;  %v13671_v51 = vld [vmem:[#allocation5 + $0x242c] sm:$0xf0]  ;;  %v13382_v12 = vor.u32 %v14799_v2, %v13379_v3  ;;  %v14325_v3 = vld [vmem:[#allocation5 + $0x11f0] sm:$0xf0] }
 0x331   :  { %v12206_v25 = vor.u32 %v14506_v13, %v12203_v14  ;;  %v14142_v13 = vld [vmem:[#allocation5 + $0xc3c] sm:$0xf]  ;;  %v10751_v14 = vld [vmem:[#allocation5 + $0xd5c] sm:$0xf0]  ;;  %v11341_v2 = vld [vmem:[#allocation5 + $0x10d0] sm:$0xf] }
 0x332   :  { %8391 = vmatpush.bf16.msrb.mxu0 %v11034_v5  ;;  %8372 = vmatmul.bf16.vlgmr.msra.gmra.mxu2 %v15028_v59  ;;  %v14469_v5 = vld [vmem:[#allocation5 + $0x1670] sm:$0xf0]  ;;  %v8141_v10 = vpop.f32.mrf.mxu0 }
 0x333   :  { %8404 = vmatpush.bf16.msrb.mxu1 %v13370_v8  ;;  %8416 = vmatpush.bf16.msrb.mxu2 %v11330_v15  ;;  %v13922_v8 = vld [vmem:[#allocation5 + $0x55c] sm:$0xf]  ;;  %v8154_v15 = vpop.f32.mrf.mxu1 }
 0x334   :  { %8429 = vmatpush.bf16.msrb.mxu3 %v13666_v16  ;;  %v11910_v16 = vor.u32 %v14469_v5, %v11909_v4  ;;  %v9870_v23 = vor.u32 %v13922_v8, %v9867_v9  ;;  %v10457_v5 = vld [vmem:[#allocation5 + $0x9f0] sm:$0xf]  ;;  %v14689_v8 = vld [vmem:[#allocation5 + $0x1d50] sm:$0xf0]  ;;  %v11046_v9 = vor.u32 %v14215_v62, %v11043_v0 }
 0x335   :  { %8385 = vmatmul.bf16.vlgmr.msra.gmra.mxu3 %v15030_v63  ;;  %v8165_v43 = vpop.f32.mrf.mxu2  ;;  %v13813_v62 = vld [vmem:[#allocation5 + $0x1f0] sm:$0xf0]  ;;  %v11625_v0 = vld [vmem:[#allocation5 + $0x1310] sm:$0xf] }
 0x336   :  { %8392 = vmatpush.bf16.msrb.mxu0 %v10742_v19  ;;  %v14396_v19 = vld [vmem:[#allocation5 + $0x1428] sm:$0xf0] }
 0x337   :  { %8405 = vmatpush.bf16.msrb.mxu1 %v13078_v22  ;;  %8417 = vmatpush.bf16.msrb.mxu2 %v11038_v27  ;;  %v13669_v22 = vld [vmem:[#allocation5 + $0x2308] sm:$0xf]  ;;  %v9575_v27 = vld [vmem:[#allocation5 + $0x434] sm:$0xf0]  ;;  %v11618_v31 = vor.u32 %v14396_v19, %v11617_v18 }
 0x338   :  { %8430 = vmatpush.bf16.msrb.mxu3 %v13374_v30  ;;  %v11911_v30 = vld [vmem:[#allocation5 + $0x1674] sm:$0xf0]  ;;  %v13670_v34 = vor.u32 %v14908_v24, %v13669_v22  ;;  %v9578_v38 = vor.u32 %v13849_v26, %v9575_v27  ;;  %v8178_v44 = vpop.f32.mrf.mxu3  ;;  %v10165_v19 = vld [vmem:[#allocation5 + $0x7a8] sm:$0xf]  ;;  %v14616_v22 = vld [vmem:[#allocation5 + $0x1b08] sm:$0xf0] }
 0x339   :  { %v11914_v39 = vor.u32 %v14433_v29, %v11911_v30  ;;  %v8179_v48 = vadd.f32 %v8178_v44, %v8165_v43  ;;  %v10459_v26 = vld [vmem:[#allocation5 + $0xb14] sm:$0xf0]  ;;  %v14653_v29 = vld [vmem:[#allocation5 + $0x1c34] sm:$0xf]  ;;  %v14580_v43 = vld [vmem:[#allocation5 + $0x19ec] sm:$0xf] }
 0x33a   :  { %8393 = vmatpush.bf16.msrb.mxu0 %v10450_v33  ;;  %v11041_v33 = vld [vmem:[#allocation5 + $0xe80] sm:$0xf]  ;;  %v12795_v30 = vld [vmem:[#allocation5 + $0x1d54] sm:$0xf0]  ;;  %v12503_v44 = vld [vmem:[#allocation5 + $0x1b0c] sm:$0xf0] }
 0x33b   :  { %8406 = vmatpush.bf16.msrb.mxu1 %v12786_v36  ;;  %8418 = vmatpush.bf16.msrb.mxu2 %v10746_v41  ;;  %v13377_v36 = vld [vmem:[#allocation5 + $0x20c0] sm:$0xf]  ;;  %v9283_v41 = vld [vmem:[#allocation5 + $0x1ec] sm:$0xf0]  ;;  %v11042_v49 = vor.u32 %v14251_v35, %v11041_v33  ;;  %9029 = vst [vmem:[#allocation7 + $0x148] sm:$0xff] %v8179_v48 }
 0x33c   :  { %8431 = vmatpush.bf16.msrb.mxu3 %v13082_v42  ;;  %v14360_v42 = vld [vmem:[#allocation5 + $0x130c] sm:$0xf]  ;;  %v13378_v52 = vor.u32 %v14835_v37, %v13377_v36  ;;  %v9286_v55 = vor.u32 %v13776_v40, %v9283_v41  ;;  %v9873_v33 = vld [vmem:[#allocation5 + $0x560] sm:$0xf]  ;;  %v14543_v37 = vld [vmem:[#allocation5 + $0x18c0] sm:$0xf0] }
 0x33d   :  { %v11622_v58 = vor.u32 %v14360_v42, %v11619_v45  ;;  %v8167_v10 = vpop.f32.mrf.mxu2  ;;  %v12209_v36 = vld [vmem:[#allocation5 + $0x17a0] sm:$0xf]  ;;  %v13996_v40 = vld [vmem:[#allocation5 + $0x7ac] sm:$0xf]  ;;  %v10167_v41 = vld [vmem:[#allocation5 + $0x8cc] sm:$0xf0] }
 0x33e   :  { %8394 = vmatpush.bf16.msrb.mxu0 %v10158_v46  ;;  %v14288_v46 = vld [vmem:[#allocation5 + $0x10cc] sm:$0xf]  ;;  %v12210_v45 = vor.u32 %v14543_v37, %v12209_v36  ;;  %v11917_v48 = vld [vmem:[#allocation5 + $0x1558] sm:$0xf]  ;;  %v14179_v36 = vld [vmem:[#allocation5 + $0xd60] sm:$0xf0] }
 0x33f   :  { %8407 = vmatpush.bf16.msrb.mxu1 %v12494_v50  ;;  %8419 = vmatpush.bf16.msrb.mxu2 %v10454_v56  ;;  %v14872_v50 = vld [vmem:[#allocation5 + $0x230c] sm:$0xf]  ;;  %v13085_v56 = vld [vmem:[#allocation5 + $0x1e78] sm:$0xf]  ;;  %v11338_v60 = vor.u32 %v14288_v46, %v11335_v47  ;;  %v13886_v47 = vld [vmem:[#allocation5 + $0x438] sm:$0xf0] }
 0x340   :  { %8432 = vmatpush.bf16.msrb.mxu3 %v12790_v57  ;;  %v14762_v57 = vld [vmem:[#allocation5 + $0x1f98] sm:$0xf0]  ;;  %v9581_v46 = vld [vmem:[#allocation5 + $0x318] sm:$0xf] }
 0x341   :  { %v13086_v4 = vor.u32 %v14762_v57, %v13085_v56  ;;  %v9289_v56 = vld [vmem:[#allocation5 + $0xd0] sm:$0xf]  ;;  %v14507_v57 = vld [vmem:[#allocation5 + $0x17a4] sm:$0xf] }
 0x342   :  { %8395 = vmatpush.bf16.msrb.mxu0 %v9866_v61  ;;  %v13674_v61 = vor.u32 %v14872_v50, %v13671_v51  ;;  %v10170_v50 = vor.u32 %v13996_v40, %v10167_v41  ;;  %v12506_v51 = vor.u32 %v14580_v43, %v12503_v44  ;;  %v9290_v10 = vor.u32 %v13813_v62, %v9289_v56  ;;  %v14216_v43 = vld [vmem:[#allocation5 + $0xe8c] sm:$0xf]  ;;  %v11051_v44 = vld [vmem:[#allocation5 + $0xfac] sm:$0xf0]  ;;  %v13095_v62 = vld [vmem:[#allocation5 + $0x1fa4] sm:$0xf0] }
 0x343   :  { %8408 = vmatpush.bf16.msrb.mxu1 %v12202_v1  ;;  %8420 = vmatpush.bf16.msrb.mxu2 %v10162_v6  ;;  %v10750_v1 = vor.u32 %v14178_v54, %v10749_v53  ;;  %v14105_v6 = vld [vmem:[#allocation5 + $0xb10] sm:$0xf0]  ;;  %v9875_v53 = vld [vmem:[#allocation5 + $0x684] sm:$0xf0] }
 0x344   :  { %8433 = vmatpush.bf16.msrb.mxu3 %v12498_v7  ;;  %v12793_v7 = vld [vmem:[#allocation5 + $0x1c30] sm:$0xf]  ;;  %v10458_v15 = vor.u32 %v14105_v6, %v10457_v5  ;;  %v14909_v6 = vld [vmem:[#allocation5 + $0x2430] sm:$0xf0] }
 0x345   :  { %v12794_v18 = vor.u32 %v14689_v8, %v12793_v7  ;;  %v13850_v8 = vld [vmem:[#allocation5 + $0x31c] sm:$0xf] }
 0x346   :  { %8396 = vmatpush.bf16.msrb.mxu0 %v9574_v11  ;;  %v8180_v11 = vpop.f32.mrf.mxu3 }
 0x347   :  { %8409 = vmatpush.bf16.msrb.mxu1 %v11910_v16  ;;  %8421 = vmatpush.bf16.msrb.mxu2 %v9870_v23  ;;  %v14726_v16 = vld [vmem:[#allocation5 + $0x1e7c] sm:$0xf]  ;;  %v10754_v23 = vor.u32 %v14142_v13, %v10751_v14  ;;  %v11342_v14 = vor.u32 %v14325_v3, %v11341_v2  ;;  %v14033_v2 = vld [vmem:[#allocation5 + $0x8d0] sm:$0xf0]  ;;  %v12509_v3 = vld [vmem:[#allocation5 + $0x19f0] sm:$0xf] }
 0x348   :  { %8434 = vmatpush.bf16.msrb.mxu3 %v12206_v25  ;;  %v13090_v24 = vor.u32 %v14726_v16, %v13087_v17  ;;  %v14069_v25 = vld [vmem:[#allocation5 + $0x9f4] sm:$0xf]  ;;  %v14434_v11 = vld [vmem:[#allocation5 + $0x155c] sm:$0xf]  ;;  %v14252_v17 = vld [vmem:[#allocation5 + $0xfa8] sm:$0xf0] }
 0x34a   :  { %8397 = vmatpush.bf16.msrb.mxu0 %v9282_v28  ;;  %v8191_v27 = vpop.f32.mrf.mxu0  ;;  %v10166_v28 = vor.u32 %v14032_v20, %v10165_v19  ;;  %v14836_v19 = vld [vmem:[#allocation5 + $0x21e8] sm:$0xf0] }
 0x34b   :  { %8410 = vmatpush.bf16.msrb.mxu1 %v11618_v31  ;;  %8422 = vmatpush.bf16.msrb.mxu2 %v9578_v38  ;;  %v8204_v31 = vpop.f32.mrf.mxu1  ;;  %v10462_v38 = vor.u32 %v14069_v25, %v10459_v26 }
 0x34c   :  { %8435 = vmatpush.bf16.msrb.mxu3 %v11914_v39  ;;  %v8205_v35 = vadd.f32 %v8204_v31, %v8191_v27  ;;  %v12798_v39 = vor.u32 %v14653_v29, %v12795_v30  ;;  %v11627_v27 = vld [vmem:[#allocation5 + $0x1434] sm:$0xf0] }
 0x34d   :  { %8398 = vmatmul.bf16.vlgmr.msrb.gmra.mxu0 %v15028_v59  ;;  %v11343_v29 = vld [vmem:[#allocation5 + $0x11f4] sm:$0xf0] }
 0x34e   :  { %8442 = vmatpush.bf16.msra.mxu0 %v11334_v32  ;;  %8411 = vmatmul.bf16.vlgmr.msrb.gmra.mxu1 %v15030_v63  ;;  %v12502_v32 = vor.u32 %v14616_v22, %v12501_v21  ;;  %9030 = vst [vmem:[#allocation7 + $0x150] sm:$0xff] %v8205_v35  ;;  %v13777_v22 = vld [vmem:[#allocation5 + $0xd4] sm:$0xf]  ;;  %v10757_v35 = vld [vmem:[#allocation5 + $0xc40] sm:$0xf] }
 0x34f   :  { %8455 = vmatpush.bf16.msra.mxu1 %v13670_v34  ;;  %8423 = vmatpush.bf16.msrb.mxu2 %v9286_v55  ;;  %v13959_v34 = vld [vmem:[#allocation5 + $0x680] sm:$0xf0]  ;;  %v9582_v55 = vor.u32 %v13886_v47, %v9581_v46  ;;  %v14800_v46 = vld [vmem:[#allocation5 + $0x20cc] sm:$0xf]  ;;  %v13387_v47 = vld [vmem:[#allocation5 + $0x21ec] sm:$0xf0] }
 0x350   :  { %8436 = vmatpush.bf16.msrb.mxu3 %v11622_v58  ;;  %v9874_v42 = vor.u32 %v13959_v34, %v9873_v33  ;;  %v12211_v58 = vld [vmem:[#allocation5 + $0x18c4] sm:$0xf0]  ;;  %v13679_v33 = vld [vmem:[#allocation5 + $0x2434] sm:$0xf0]  ;;  %v13390_v56 = vor.u32 %v14800_v46, %v13387_v47  ;;  %v14326_v47 = vld [vmem:[#allocation5 + $0x11f8] sm:$0xf0] }
 0x351   :  { %v12214_v7 = vor.u32 %v14507_v57, %v12211_v58  ;;  %v14143_v57 = vld [vmem:[#allocation5 + $0xc44] sm:$0xf]  ;;  %v10759_v58 = vld [vmem:[#allocation5 + $0xd64] sm:$0xf0]  ;;  %v11349_v46 = vld [vmem:[#allocation5 + $0x10d8] sm:$0xf] }
 0x352   :  { %8443 = vmatpush.bf16.msra.mxu0 %v11042_v49  ;;  %8424 = vmatmul.bf16.vlgmr.msrb.gmra.mxu2 %v15028_v59  ;;  %v14470_v49 = vld [vmem:[#allocation5 + $0x1678] sm:$0xf0]  ;;  %v8193_v54 = vpop.f32.mrf.mxu0 }
 0x353   :  { %8456 = vmatpush.bf16.msra.mxu1 %v13378_v52  ;;  %8468 = vmatpush.bf16.msra.mxu2 %v11338_v60  ;;  %v13923_v52 = vld [vmem:[#allocation5 + $0x564] sm:$0xf]  ;;  %v8206_v60 = vpop.f32.mrf.mxu1 }
 0x354   :  { %8481 = vmatpush.bf16.msra.mxu3 %v13674_v61  ;;  %v11918_v61 = vor.u32 %v14470_v49, %v11917_v48  ;;  %v9878_v5 = vor.u32 %v13923_v52, %v9875_v53  ;;  %v10465_v49 = vld [vmem:[#allocation5 + $0x9f8] sm:$0xf]  ;;  %v14690_v52 = vld [vmem:[#allocation5 + $0x1d58] sm:$0xf0]  ;;  %v11054_v53 = vor.u32 %v14216_v43, %v11051_v44 }
 0x355   :  { %8437 = vmatmul.bf16.vlgmr.msrb.gmra.mxu3 %v15030_v63  ;;  %v8217_v25 = vpop.f32.mrf.mxu2  ;;  %v13814_v43 = vld [vmem:[#allocation5 + $0x1f8] sm:$0xf0]  ;;  %v11633_v44 = vld [vmem:[#allocation5 + $0x1318] sm:$0xf] }
 0x356   :  { %8444 = vmatpush.bf16.msra.mxu0 %v10750_v1  ;;  %v14397_v1 = vld [vmem:[#allocation5 + $0x1430] sm:$0xf0] }
 0x357   :  { %8457 = vmatpush.bf16.msra.mxu1 %v13086_v4  ;;  %8469 = vmatpush.bf16.msra.mxu2 %v11046_v9  ;;  %v13677_v4 = vld [vmem:[#allocation5 + $0x2310] sm:$0xf]  ;;  %v9583_v9 = vld [vmem:[#allocation5 + $0x43c] sm:$0xf0]  ;;  %v11626_v13 = vor.u32 %v14397_v1, %v11625_v0 }
 0x358   :  { %8482 = vmatpush.bf16.msra.mxu3 %v13382_v12  ;;  %v11919_v12 = vld [vmem:[#allocation5 + $0x167c] sm:$0xf0]  ;;  %v13678_v16 = vor.u32 %v14909_v6, %v13677_v4  ;;  %v9586_v20 = vor.u32 %v13850_v8, %v9583_v9  ;;  %v8230_v26 = vpop.f32.mrf.mxu3  ;;  %v10173_v1 = vld [vmem:[#allocation5 + $0x7b0] sm:$0xf]  ;;  %v14617_v4 = vld [vmem:[#allocation5 + $0x1b10] sm:$0xf0] }
 0x359   :  { %v11922_v21 = vor.u32 %v14434_v11, %v11919_v12  ;;  %v8231_v30 = vadd.f32 %v8230_v26, %v8217_v25  ;;  %v10467_v8 = vld [vmem:[#allocation5 + $0xb1c] sm:$0xf0]  ;;  %v14654_v11 = vld [vmem:[#allocation5 + $0x1c3c] sm:$0xf]  ;;  %v14581_v25 = vld [vmem:[#allocation5 + $0x19f4] sm:$0xf] }
 0x35a   :  { %8445 = vmatpush.bf16.msra.mxu0 %v10458_v15  ;;  %v11049_v15 = vld [vmem:[#allocation5 + $0xe88] sm:$0xf]  ;;  %v12803_v12 = vld [vmem:[#allocation5 + $0x1d5c] sm:$0xf0]  ;;  %v12511_v26 = vld [vmem:[#allocation5 + $0x1b14] sm:$0xf0] }
 0x35b   :  { %8458 = vmatpush.bf16.msra.mxu1 %v12794_v18  ;;  %8470 = vmatpush.bf16.msra.mxu2 %v10754_v23  ;;  %v13385_v18 = vld [vmem:[#allocation5 + $0x20c8] sm:$0xf]  ;;  %v9291_v23 = vld [vmem:[#allocation5 + $0x1f4] sm:$0xf0]  ;;  %v11050_v31 = vor.u32 %v14252_v17, %v11049_v15  ;;  %9031 = vst [vmem:[#allocation7 + $0x158] sm:$0xff] %v8231_v30 }
 0x35c   :  { %8483 = vmatpush.bf16.msra.mxu3 %v13090_v24  ;;  %v14361_v24 = vld [vmem:[#allocation5 + $0x1314] sm:$0xf]  ;;  %v13386_v34 = vor.u32 %v14836_v19, %v13385_v18  ;;  %v9294_v37 = vor.u32 %v13777_v22, %v9291_v23  ;;  %v9881_v15 = vld [vmem:[#allocation5 + $0x568] sm:$0xf]  ;;  %v14544_v19 = vld [vmem:[#allocation5 + $0x18c8] sm:$0xf0] }
 0x35d   :  { %v11630_v40 = vor.u32 %v14361_v24, %v11627_v27  ;;  %v8219_v54 = vpop.f32.mrf.mxu2  ;;  %v12217_v18 = vld [vmem:[#allocation5 + $0x17a8] sm:$0xf]  ;;  %v13997_v22 = vld [vmem:[#allocation5 + $0x7b4] sm:$0xf]  ;;  %v10175_v23 = vld [vmem:[#allocation5 + $0x8d4] sm:$0xf0] }
 0x35e   :  { %8446 = vmatpush.bf16.msra.mxu0 %v10166_v28  ;;  %v14289_v28 = vld [vmem:[#allocation5 + $0x10d4] sm:$0xf]  ;;  %v12218_v27 = vor.u32 %v14544_v19, %v12217_v18  ;;  %v11925_v30 = vld [vmem:[#allocation5 + $0x1560] sm:$0xf]  ;;  %v14180_v18 = vld [vmem:[#allocation5 + $0xd68] sm:$0xf0] }
 0x35f   :  { %8459 = vmatpush.bf16.msra.mxu1 %v12502_v32  ;;  %8471 = vmatpush.bf16.msra.mxu2 %v10462_v38  ;;  %v14873_v32 = vld [vmem:[#allocation5 + $0x2314] sm:$0xf]  ;;  %v13093_v38 = vld [vmem:[#allocation5 + $0x1e80] sm:$0xf]  ;;  %v11346_v41 = vor.u32 %v14289_v28, %v11343_v29  ;;  %v13887_v29 = vld [vmem:[#allocation5 + $0x440] sm:$0xf0] }
 0x360   :  { %8484 = vmatpush.bf16.msra.mxu3 %v12798_v39  ;;  %v14763_v39 = vld [vmem:[#allocation5 + $0x1fa0] sm:$0xf0]  ;;  %v9589_v28 = vld [vmem:[#allocation5 + $0x320] sm:$0xf] }
 0x361   :  { %v13094_v48 = vor.u32 %v14763_v39, %v13093_v38  ;;  %v9297_v38 = vld [vmem:[#allocation5 + $0xd8] sm:$0xf]  ;;  %v14508_v39 = vld [vmem:[#allocation5 + $0x17ac] sm:$0xf] }
 0x362   :  { %8447 = vmatpush.bf16.msra.mxu0 %v9874_v42  ;;  %v13682_v42 = vor.u32 %v14873_v32, %v13679_v33  ;;  %v10178_v32 = vor.u32 %v13997_v22, %v10175_v23  ;;  %v12514_v33 = vor.u32 %v14581_v25, %v12511_v26  ;;  %v9298_v54 = vor.u32 %v13814_v43, %v9297_v38  ;;  %v14217_v25 = vld [vmem:[#allocation5 + $0xe94] sm:$0xf]  ;;  %v11059_v26 = vld [vmem:[#allocation5 + $0xfb4] sm:$0xf0]  ;;  %v13103_v43 = vld [vmem:[#allocation5 + $0x1fac] sm:$0xf0] }
 0x363   :  { %8460 = vmatpush.bf16.msra.mxu1 %v12210_v45  ;;  %8472 = vmatpush.bf16.msra.mxu2 %v10170_v50  ;;  %v10758_v45 = vor.u32 %v14179_v36, %v10757_v35  ;;  %v14106_v50 = vld [vmem:[#allocation5 + $0xb18] sm:$0xf0]  ;;  %v9883_v35 = vld [vmem:[#allocation5 + $0x68c] sm:$0xf0] }
 0x364   :  { %8485 = vmatpush.bf16.msra.mxu3 %v12506_v51  ;;  %v12801_v51 = vld [vmem:[#allocation5 + $0x1c38] sm:$0xf]  ;;  %v10466_v60 = vor.u32 %v14106_v50, %v10465_v49  ;;  %v14910_v50 = vld [vmem:[#allocation5 + $0x2438] sm:$0xf0] }
 0x365   :  { %v12802_v0 = vor.u32 %v14690_v52, %v12801_v51  ;;  %v13851_v52 = vld [vmem:[#allocation5 + $0x324] sm:$0xf] }
 0x366   :  { %8448 = vmatpush.bf16.msra.mxu0 %v9582_v55  ;;  %v8232_v55 = vpop.f32.mrf.mxu3 }
 0x367   :  { %8461 = vmatpush.bf16.msra.mxu1 %v11918_v61  ;;  %8473 = vmatpush.bf16.msra.mxu2 %v9878_v5  ;;  %v14727_v61 = vld [vmem:[#allocation5 + $0x1e84] sm:$0xf]  ;;  %v10762_v5 = vor.u32 %v14143_v57, %v10759_v58  ;;  %v11350_v58 = vor.u32 %v14326_v47, %v11349_v46  ;;  %v14034_v46 = vld [vmem:[#allocation5 + $0x8d8] sm:$0xf0]  ;;  %v12517_v47 = vld [vmem:[#allocation5 + $0x19f8] sm:$0xf] }
 0x368   :  { %8486 = vmatpush.bf16.msra.mxu3 %v12214_v7  ;;  %v13098_v6 = vor.u32 %v14727_v61, %v13095_v62  ;;  %v14070_v7 = vld [vmem:[#allocation5 + $0x9fc] sm:$0xf]  ;;  %v14435_v55 = vld [vmem:[#allocation5 + $0x1564] sm:$0xf]  ;;  %v14253_v62 = vld [vmem:[#allocation5 + $0xfb0] sm:$0xf0] }
 0x36a   :  { %8449 = vmatpush.bf16.msra.mxu0 %v9290_v10  ;;  %v8243_v9 = vpop.f32.mrf.mxu0  ;;  %v10174_v10 = vor.u32 %v14033_v2, %v10173_v1  ;;  %v14837_v1 = vld [vmem:[#allocation5 + $0x21f0] sm:$0xf0] }
 0x36b   :  { %8462 = vmatpush.bf16.msra.mxu1 %v11626_v13  ;;  %8474 = vmatpush.bf16.msra.mxu2 %v9586_v20  ;;  %v8256_v13 = vpop.f32.mrf.mxu1  ;;  %v10470_v20 = vor.u32 %v14070_v7, %v10467_v8 }
 0x36c   :  { %8487 = vmatpush.bf16.msra.mxu3 %v11922_v21  ;;  %v8257_v17 = vadd.f32 %v8256_v13, %v8243_v9  ;;  %v12806_v21 = vor.u32 %v14654_v11, %v12803_v12  ;;  %v11635_v9 = vld [vmem:[#allocation5 + $0x143c] sm:$0xf0] }
 0x36d   :  { %8450 = vmatmul.bf16.vlgmr.msra.gmra.mxu0 %v15028_v59  ;;  %v11351_v11 = vld [vmem:[#allocation5 + $0x11fc] sm:$0xf0] }
 0x36e   :  { %8494 = vmatpush.bf16.msrb.mxu0 %v11342_v14  ;;  %8463 = vmatmul.bf16.vlgmr.msra.gmra.mxu1 %v15030_v63  ;;  %v12510_v14 = vor.u32 %v14617_v4, %v12509_v3  ;;  %9032 = vst [vmem:[#allocation7 + $0x160] sm:$0xff] %v8257_v17  ;;  %v13778_v4 = vld [vmem:[#allocation5 + $0xdc] sm:$0xf]  ;;  %v10765_v17 = vld [vmem:[#allocation5 + $0xc48] sm:$0xf] }
 0x36f   :  { %8507 = vmatpush.bf16.msrb.mxu1 %v13678_v16  ;;  %8475 = vmatpush.bf16.msra.mxu2 %v9294_v37  ;;  %v13960_v16 = vld [vmem:[#allocation5 + $0x688] sm:$0xf0]  ;;  %v9590_v37 = vor.u32 %v13887_v29, %v9589_v28  ;;  %v14801_v28 = vld [vmem:[#allocation5 + $0x20d4] sm:$0xf]  ;;  %v13395_v29 = vld [vmem:[#allocation5 + $0x21f4] sm:$0xf0] }
 0x370   :  { %8488 = vmatpush.bf16.msra.mxu3 %v11630_v40  ;;  %v9882_v24 = vor.u32 %v13960_v16, %v9881_v15  ;;  %v12219_v40 = vld [vmem:[#allocation5 + $0x18cc] sm:$0xf0]  ;;  %v13687_v15 = vld [vmem:[#allocation5 + $0x243c] sm:$0xf0]  ;;  %v13398_v38 = vor.u32 %v14801_v28, %v13395_v29  ;;  %v14327_v29 = vld [vmem:[#allocation5 + $0x1200] sm:$0xf0] }
 0x371   :  { %v12222_v51 = vor.u32 %v14508_v39, %v12219_v40  ;;  %v14144_v39 = vld [vmem:[#allocation5 + $0xc4c] sm:$0xf]  ;;  %v10767_v40 = vld [vmem:[#allocation5 + $0xd6c] sm:$0xf0]  ;;  %v11357_v28 = vld [vmem:[#allocation5 + $0x10e0] sm:$0xf] }
 0x372   :  { %8495 = vmatpush.bf16.msrb.mxu0 %v11050_v31  ;;  %8476 = vmatmul.bf16.vlgmr.msra.gmra.mxu2 %v15028_v59  ;;  %v14471_v31 = vld [vmem:[#allocation5 + $0x1680] sm:$0xf0]  ;;  %v8245_v36 = vpop.f32.mrf.mxu0 }
 0x373   :  { %8508 = vmatpush.bf16.msrb.mxu1 %v13386_v34  ;;  %8520 = vmatpush.bf16.msrb.mxu2 %v11346_v41  ;;  %v13924_v34 = vld [vmem:[#allocation5 + $0x56c] sm:$0xf]  ;;  %v8258_v41 = vpop.f32.mrf.mxu1 }
 0x374   :  { %8533 = vmatpush.bf16.msrb.mxu3 %v13682_v42  ;;  %v11926_v42 = vor.u32 %v14471_v31, %v11925_v30  ;;  %v9886_v49 = vor.u32 %v13924_v34, %v9883_v35  ;;  %v10473_v31 = vld [vmem:[#allocation5 + $0xa00] sm:$0xf]  ;;  %v14691_v34 = vld [vmem:[#allocation5 + $0x1d60] sm:$0xf0]  ;;  %v11062_v35 = vor.u32 %v14217_v25, %v11059_v26 }
 0x375   :  { %8489 = vmatmul.bf16.vlgmr.msra.gmra.mxu3 %v15030_v63  ;;  %v8269_v7 = vpop.f32.mrf.mxu2  ;;  %v13815_v25 = vld [vmem:[#allocation5 + $0x200] sm:$0xf0]  ;;  %v11641_v26 = vld [vmem:[#allocation5 + $0x1320] sm:$0xf] }
 0x376   :  { %8496 = vmatpush.bf16.msrb.mxu0 %v10758_v45  ;;  %v14398_v45 = vld [vmem:[#allocation5 + $0x1438] sm:$0xf0] }
 0x377   :  { %8509 = vmatpush.bf16.msrb.mxu1 %v13094_v48  ;;  %8521 = vmatpush.bf16.msrb.mxu2 %v11054_v53  ;;  %v13685_v48 = vld [vmem:[#allocation5 + $0x2318] sm:$0xf]  ;;  %v9591_v53 = vld [vmem:[#allocation5 + $0x444] sm:$0xf0]  ;;  %v11634_v57 = vor.u32 %v14398_v45, %v11633_v44 }
 0x378   :  { %8534 = vmatpush.bf16.msrb.mxu3 %v13390_v56  ;;  %v11927_v56 = vld [vmem:[#allocation5 + $0x1684] sm:$0xf0]  ;;  %v13686_v61 = vor.u32 %v14910_v50, %v13685_v48  ;;  %v9594_v2 = vor.u32 %v13851_v52, %v9591_v53  ;;  %v8282_v8 = vpop.f32.mrf.mxu3  ;;  %v10181_v45 = vld [vmem:[#allocation5 + $0x7b8] sm:$0xf]  ;;  %v14618_v48 = vld [vmem:[#allocation5 + $0x1b18] sm:$0xf0] }
 0x379   :  { %v11930_v3 = vor.u32 %v14435_v55, %v11927_v56  ;;  %v8283_v12 = vadd.f32 %v8282_v8, %v8269_v7  ;;  %v10475_v52 = vld [vmem:[#allocation5 + $0xb24] sm:$0xf0]  ;;  %v14655_v55 = vld [vmem:[#allocation5 + $0x1c44] sm:$0xf]  ;;  %v14582_v7 = vld [vmem:[#allocation5 + $0x19fc] sm:$0xf] }
 0x37a   :  { %8497 = vmatpush.bf16.msrb.mxu0 %v10466_v60  ;;  %v11057_v60 = vld [vmem:[#allocation5 + $0xe90] sm:$0xf]  ;;  %v12811_v56 = vld [vmem:[#allocation5 + $0x1d64] sm:$0xf0]  ;;  %v12519_v8 = vld [vmem:[#allocation5 + $0x1b1c] sm:$0xf0] }
 0x37b   :  { %8510 = vmatpush.bf16.msrb.mxu1 %v12802_v0  ;;  %8522 = vmatpush.bf16.msrb.mxu2 %v10762_v5  ;;  %v13393_v0 = vld [vmem:[#allocation5 + $0x20d0] sm:$0xf]  ;;  %v9299_v5 = vld [vmem:[#allocation5 + $0x1fc] sm:$0xf0]  ;;  %v11058_v13 = vor.u32 %v14253_v62, %v11057_v60  ;;  %9033 = vst [vmem:[#allocation7 + $0x168] sm:$0xff] %v8283_v12 }
 0x37c   :  { %8535 = vmatpush.bf16.msrb.mxu3 %v13098_v6  ;;  %v14362_v6 = vld [vmem:[#allocation5 + $0x131c] sm:$0xf]  ;;  %v13394_v16 = vor.u32 %v14837_v1, %v13393_v0  ;;  %v9302_v19 = vor.u32 %v13778_v4, %v9299_v5  ;;  %v9889_v60 = vld [vmem:[#allocation5 + $0x570] sm:$0xf]  ;;  %v14545_v1 = vld [vmem:[#allocation5 + $0x18d0] sm:$0xf0] }
 0x37d   :  { %v11638_v22 = vor.u32 %v14362_v6, %v11635_v9  ;;  %v8271_v36 = vpop.f32.mrf.mxu2  ;;  %v12225_v0 = vld [vmem:[#allocation5 + $0x17b0] sm:$0xf]  ;;  %v13998_v4 = vld [vmem:[#allocation5 + $0x7bc] sm:$0xf]  ;;  %v10183_v5 = vld [vmem:[#allocation5 + $0x8dc] sm:$0xf0] }
 0x37e   :  { %8498 = vmatpush.bf16.msrb.mxu0 %v10174_v10  ;;  %v14290_v10 = vld [vmem:[#allocation5 + $0x10dc] sm:$0xf]  ;;  %v12226_v9 = vor.u32 %v14545_v1, %v12225_v0  ;;  %v11933_v12 = vld [vmem:[#allocation5 + $0x1568] sm:$0xf]  ;;  %v14181_v0 = vld [vmem:[#allocation5 + $0xd70] sm:$0xf0] }
 0x37f   :  { %8511 = vmatpush.bf16.msrb.mxu1 %v12510_v14  ;;  %8523 = vmatpush.bf16.msrb.mxu2 %v10470_v20  ;;  %v14874_v14 = vld [vmem:[#allocation5 + $0x231c] sm:$0xf]  ;;  %v13101_v20 = vld [vmem:[#allocation5 + $0x1e88] sm:$0xf]  ;;  %v11354_v23 = vor.u32 %v14290_v10, %v11351_v11  ;;  %v13888_v11 = vld [vmem:[#allocation5 + $0x448] sm:$0xf0] }
 0x380   :  { %8536 = vmatpush.bf16.msrb.mxu3 %v12806_v21  ;;  %v14764_v21 = vld [vmem:[#allocation5 + $0x1fa8] sm:$0xf0]  ;;  %v9597_v10 = vld [vmem:[#allocation5 + $0x328] sm:$0xf] }
 0x381   :  { %v13102_v30 = vor.u32 %v14764_v21, %v13101_v20  ;;  %v9305_v20 = vld [vmem:[#allocation5 + $0xe0] sm:$0xf]  ;;  %v14509_v21 = vld [vmem:[#allocation5 + $0x17b4] sm:$0xf] }
 0x382   :  { %8499 = vmatpush.bf16.msrb.mxu0 %v9882_v24  ;;  %v13690_v24 = vor.u32 %v14874_v14, %v13687_v15  ;;  %v10186_v14 = vor.u32 %v13998_v4, %v10183_v5  ;;  %v12522_v15 = vor.u32 %v14582_v7, %v12519_v8  ;;  %v9306_v36 = vor.u32 %v13815_v25, %v9305_v20  ;;  %v14218_v7 = vld [vmem:[#allocation5 + $0xe9c] sm:$0xf]  ;;  %v11067_v8 = vld [vmem:[#allocation5 + $0xfbc] sm:$0xf0]  ;;  %v13111_v25 = vld [vmem:[#allocation5 + $0x1fb4] sm:$0xf0] }
 0x383   :  { %8512 = vmatpush.bf16.msrb.mxu1 %v12218_v27  ;;  %8524 = vmatpush.bf16.msrb.mxu2 %v10178_v32  ;;  %v10766_v27 = vor.u32 %v14180_v18, %v10765_v17  ;;  %v14107_v32 = vld [vmem:[#allocation5 + $0xb20] sm:$0xf0]  ;;  %v9891_v17 = vld [vmem:[#allocation5 + $0x694] sm:$0xf0] }
 0x384   :  { %8537 = vmatpush.bf16.msrb.mxu3 %v12514_v33  ;;  %v12809_v33 = vld [vmem:[#allocation5 + $0x1c40] sm:$0xf]  ;;  %v10474_v41 = vor.u32 %v14107_v32, %v10473_v31  ;;  %v14911_v32 = vld [vmem:[#allocation5 + $0x2440] sm:$0xf0] }
 0x385   :  { %v12810_v44 = vor.u32 %v14691_v34, %v12809_v33  ;;  %v13852_v34 = vld [vmem:[#allocation5 + $0x32c] sm:$0xf] }
 0x386   :  { %8500 = vmatpush.bf16.msrb.mxu0 %v9590_v37  ;;  %v8284_v37 = vpop.f32.mrf.mxu3 }
 0x387   :  { %8513 = vmatpush.bf16.msrb.mxu1 %v11926_v42  ;;  %8525 = vmatpush.bf16.msrb.mxu2 %v9886_v49  ;;  %v14728_v42 = vld [vmem:[#allocation5 + $0x1e8c] sm:$0xf]  ;;  %v10770_v49 = vor.u32 %v14144_v39, %v10767_v40  ;;  %v11358_v40 = vor.u32 %v14327_v29, %v11357_v28  ;;  %v14035_v28 = vld [vmem:[#allocation5 + $0x8e0] sm:$0xf0]  ;;  %v12525_v29 = vld [vmem:[#allocation5 + $0x1a00] sm:$0xf] }
 0x388   :  { %8538 = vmatpush.bf16.msrb.mxu3 %v12222_v51  ;;  %v13106_v50 = vor.u32 %v14728_v42, %v13103_v43  ;;  %v14071_v51 = vld [vmem:[#allocation5 + $0xa04] sm:$0xf]  ;;  %v14436_v37 = vld [vmem:[#allocation5 + $0x156c] sm:$0xf]  ;;  %v14254_v43 = vld [vmem:[#allocation5 + $0xfb8] sm:$0xf0] }
 0x38a   :  { %8501 = vmatpush.bf16.msrb.mxu0 %v9298_v54  ;;  %v8295_v53 = vpop.f32.mrf.mxu0  ;;  %v10182_v54 = vor.u32 %v14034_v46, %v10181_v45  ;;  %v14838_v45 = vld [vmem:[#allocation5 + $0x21f8] sm:$0xf0] }
 0x38b   :  { %8514 = vmatpush.bf16.msrb.mxu1 %v11634_v57  ;;  %8526 = vmatpush.bf16.msrb.mxu2 %v9594_v2  ;;  %v8308_v57 = vpop.f32.mrf.mxu1  ;;  %v10478_v2 = vor.u32 %v14071_v51, %v10475_v52 }
 0x38c   :  { %8539 = vmatpush.bf16.msrb.mxu3 %v11930_v3  ;;  %v8309_v62 = vadd.f32 %v8308_v57, %v8295_v53  ;;  %v12814_v3 = vor.u32 %v14655_v55, %v12811_v56  ;;  %v11643_v53 = vld [vmem:[#allocation5 + $0x1444] sm:$0xf0] }
 0x38d   :  { %8502 = vmatmul.bf16.vlgmr.msrb.gmra.mxu0 %v15028_v59  ;;  %v11359_v55 = vld [vmem:[#allocation5 + $0x1204] sm:$0xf0] }
 0x38e   :  { %8546 = vmatpush.bf16.msra.mxu0 %v11350_v58  ;;  %8515 = vmatmul.bf16.vlgmr.msrb.gmra.mxu1 %v15030_v63  ;;  %v12518_v58 = vor.u32 %v14618_v48, %v12517_v47  ;;  %9034 = vst [vmem:[#allocation7 + $0x170] sm:$0xff] %v8309_v62  ;;  %v13779_v48 = vld [vmem:[#allocation5 + $0xe4] sm:$0xf]  ;;  %v10773_v62 = vld [vmem:[#allocation5 + $0xc50] sm:$0xf] }
 0x38f   :  { %8559 = vmatpush.bf16.msra.mxu1 %v13686_v61  ;;  %8527 = vmatpush.bf16.msrb.mxu2 %v9302_v19  ;;  %v13961_v61 = vld [vmem:[#allocation5 + $0x690] sm:$0xf0]  ;;  %v9598_v19 = vor.u32 %v13888_v11, %v9597_v10  ;;  %v14802_v10 = vld [vmem:[#allocation5 + $0x20dc] sm:$0xf]  ;;  %v13403_v11 = vld [vmem:[#allocation5 + $0x21fc] sm:$0xf0] }
 0x390   :  { %8540 = vmatpush.bf16.msrb.mxu3 %v11638_v22  ;;  %v9890_v6 = vor.u32 %v13961_v61, %v9889_v60  ;;  %v12227_v22 = vld [vmem:[#allocation5 + $0x18d4] sm:$0xf0]  ;;  %v13695_v60 = vld [vmem:[#allocation5 + $0x2444] sm:$0xf0]  ;;  %v13406_v20 = vor.u32 %v14802_v10, %v13403_v11  ;;  %v14328_v11 = vld [vmem:[#allocation5 + $0x1208] sm:$0xf0] }
 0x391   :  { %v12230_v33 = vor.u32 %v14509_v21, %v12227_v22  ;;  %v14145_v21 = vld [vmem:[#allocation5 + $0xc54] sm:$0xf]  ;;  %v10775_v22 = vld [vmem:[#allocation5 + $0xd74] sm:$0xf0]  ;;  %v11365_v10 = vld [vmem:[#allocation5 + $0x10e8] sm:$0xf] }
 0x392   :  { %8547 = vmatpush.bf16.msra.mxu0 %v11058_v13  ;;  %8528 = vmatmul.bf16.vlgmr.msrb.gmra.mxu2 %v15028_v59  ;;  %v14472_v13 = vld [vmem:[#allocation5 + $0x1688] sm:$0xf0]  ;;  %v8297_v18 = vpop.f32.mrf.mxu0 }
 0x393   :  { %8560 = vmatpush.bf16.msra.mxu1 %v13394_v16  ;;  %8572 = vmatpush.bf16.msra.mxu2 %v11354_v23  ;;  %v13925_v16 = vld [vmem:[#allocation5 + $0x574] sm:$0xf]  ;;  %v8310_v23 = vpop.f32.mrf.mxu1 }
 0x394   :  { %8585 = vmatpush.bf16.msra.mxu3 %v13690_v24  ;;  %v11934_v24 = vor.u32 %v14472_v13, %v11933_v12  ;;  %v9894_v31 = vor.u32 %v13925_v16, %v9891_v17  ;;  %v10481_v13 = vld [vmem:[#allocation5 + $0xa08] sm:$0xf]  ;;  %v14692_v16 = vld [vmem:[#allocation5 + $0x1d68] sm:$0xf0]  ;;  %v11070_v17 = vor.u32 %v14218_v7, %v11067_v8 }
 0x395   :  { %8541 = vmatmul.bf16.vlgmr.msrb.gmra.mxu3 %v15030_v63  ;;  %v8321_v51 = vpop.f32.mrf.mxu2  ;;  %v13816_v7 = vld [vmem:[#allocation5 + $0x208] sm:$0xf0]  ;;  %v11649_v8 = vld [vmem:[#allocation5 + $0x1328] sm:$0xf] }
 0x396   :  { %8548 = vmatpush.bf16.msra.mxu0 %v10766_v27  ;;  %v14399_v27 = vld [vmem:[#allocation5 + $0x1440] sm:$0xf0] }
 0x397   :  { %8561 = vmatpush.bf16.msra.mxu1 %v13102_v30  ;;  %8573 = vmatpush.bf16.msra.mxu2 %v11062_v35  ;;  %v13693_v30 = vld [vmem:[#allocation5 + $0x2320] sm:$0xf]  ;;  %v9599_v35 = vld [vmem:[#allocation5 + $0x44c] sm:$0xf0]  ;;  %v11642_v39 = vor.u32 %v14399_v27, %v11641_v26 }
 0x398   :  { %8586 = vmatpush.bf16.msra.mxu3 %v13398_v38  ;;  %v11935_v38 = vld [vmem:[#allocation5 + $0x168c] sm:$0xf0]  ;;  %v13694_v42 = vor.u32 %v14911_v32, %v13693_v30  ;;  %v9602_v46 = vor.u32 %v13852_v34, %v9599_v35  ;;  %v8334_v52 = vpop.f32.mrf.mxu3  ;;  %v10189_v27 = vld [vmem:[#allocation5 + $0x7c0] sm:$0xf]  ;;  %v14619_v30 = vld [vmem:[#allocation5 + $0x1b20] sm:$0xf0] }
 0x399   :  { %v11938_v47 = vor.u32 %v14436_v37, %v11935_v38  ;;  %v8335_v56 = vadd.f32 %v8334_v52, %v8321_v51  ;;  %v10483_v34 = vld [vmem:[#allocation5 + $0xb2c] sm:$0xf0]  ;;  %v14656_v37 = vld [vmem:[#allocation5 + $0x1c4c] sm:$0xf]  ;;  %v14583_v51 = vld [vmem:[#allocation5 + $0x1a04] sm:$0xf] }
 0x39a   :  { %8549 = vmatpush.bf16.msra.mxu0 %v10474_v41  ;;  %v11065_v41 = vld [vmem:[#allocation5 + $0xe98] sm:$0xf]  ;;  %v12819_v38 = vld [vmem:[#allocation5 + $0x1d6c] sm:$0xf0]  ;;  %v12527_v52 = vld [vmem:[#allocation5 + $0x1b24] sm:$0xf0] }
 0x39b   :  { %8562 = vmatpush.bf16.msra.mxu1 %v12810_v44  ;;  %8574 = vmatpush.bf16.msra.mxu2 %v10770_v49  ;;  %v13401_v44 = vld [vmem:[#allocation5 + $0x20d8] sm:$0xf]  ;;  %v9307_v49 = vld [vmem:[#allocation5 + $0x204] sm:$0xf0]  ;;  %v11066_v57 = vor.u32 %v14254_v43, %v11065_v41  ;;  %9035 = vst [vmem:[#allocation7 + $0x178] sm:$0xff] %v8335_v56 }
 0x39c   :  { %8587 = vmatpush.bf16.msra.mxu3 %v13106_v50  ;;  %v14363_v50 = vld [vmem:[#allocation5 + $0x1324] sm:$0xf]  ;;  %v13402_v61 = vor.u32 %v14838_v45, %v13401_v44  ;;  %v9310_v1 = vor.u32 %v13779_v48, %v9307_v49  ;;  %v9897_v41 = vld [vmem:[#allocation5 + $0x578] sm:$0xf]  ;;  %v14546_v45 = vld [vmem:[#allocation5 + $0x18d8] sm:$0xf0] }
 0x39d   :  { %v11646_v4 = vor.u32 %v14363_v50, %v11643_v53  ;;  %v8323_v18 = vpop.f32.mrf.mxu2  ;;  %v12233_v44 = vld [vmem:[#allocation5 + $0x17b8] sm:$0xf]  ;;  %v13999_v48 = vld [vmem:[#allocation5 + $0x7c4] sm:$0xf]  ;;  %v10191_v49 = vld [vmem:[#allocation5 + $0x8e4] sm:$0xf0] }
 0x39e   :  { %8550 = vmatpush.bf16.msra.mxu0 %v10182_v54  ;;  %v14291_v54 = vld [vmem:[#allocation5 + $0x10e4] sm:$0xf]  ;;  %v12234_v53 = vor.u32 %v14546_v45, %v12233_v44  ;;  %v11941_v56 = vld [vmem:[#allocation5 + $0x1570] sm:$0xf]  ;;  %v14182_v44 = vld [vmem:[#allocation5 + $0xd78] sm:$0xf0] }
 0x39f   :  { %8563 = vmatpush.bf16.msra.mxu1 %v12518_v58  ;;  %8575 = vmatpush.bf16.msra.mxu2 %v10478_v2  ;;  %v14875_v58 = vld [vmem:[#allocation5 + $0x2324] sm:$0xf]  ;;  %v13109_v2 = vld [vmem:[#allocation5 + $0x1e90] sm:$0xf]  ;;  %v11362_v5 = vor.u32 %v14291_v54, %v11359_v55  ;;  %v13889_v55 = vld [vmem:[#allocation5 + $0x450] sm:$0xf0] }
 0x3a0   :  { %8588 = vmatpush.bf16.msra.mxu3 %v12814_v3  ;;  %v14765_v3 = vld [vmem:[#allocation5 + $0x1fb0] sm:$0xf0]  ;;  %v9605_v54 = vld [vmem:[#allocation5 + $0x330] sm:$0xf] }
 0x3a1   :  { %v13110_v12 = vor.u32 %v14765_v3, %v13109_v2  ;;  %v9313_v2 = vld [vmem:[#allocation5 + $0xe8] sm:$0xf]  ;;  %v14510_v3 = vld [vmem:[#allocation5 + $0x17bc] sm:$0xf] }
 0x3a2   :  { %8551 = vmatpush.bf16.msra.mxu0 %v9890_v6  ;;  %v13698_v6 = vor.u32 %v14875_v58, %v13695_v60  ;;  %v10194_v58 = vor.u32 %v13999_v48, %v10191_v49  ;;  %v12530_v60 = vor.u32 %v14583_v51, %v12527_v52  ;;  %v9314_v18 = vor.u32 %v13816_v7, %v9313_v2  ;;  %v14219_v51 = vld [vmem:[#allocation5 + $0xea4] sm:$0xf]  ;;  %v11075_v52 = vld [vmem:[#allocation5 + $0xfc4] sm:$0xf0]  ;;  %v13119_v7 = vld [vmem:[#allocation5 + $0x1fbc] sm:$0xf0] }
 0x3a3   :  { %8564 = vmatpush.bf16.msra.mxu1 %v12226_v9  ;;  %8576 = vmatpush.bf16.msra.mxu2 %v10186_v14  ;;  %v10774_v9 = vor.u32 %v14181_v0, %v10773_v62  ;;  %v14108_v14 = vld [vmem:[#allocation5 + $0xb28] sm:$0xf0]  ;;  %v9899_v62 = vld [vmem:[#allocation5 + $0x69c] sm:$0xf0] }
 0x3a4   :  { %8589 = vmatpush.bf16.msra.mxu3 %v12522_v15  ;;  %v12817_v15 = vld [vmem:[#allocation5 + $0x1c48] sm:$0xf]  ;;  %v10482_v23 = vor.u32 %v14108_v14, %v10481_v13  ;;  %v14912_v14 = vld [vmem:[#allocation5 + $0x2448] sm:$0xf0] }
 0x3a5   :  { %v12818_v26 = vor.u32 %v14692_v16, %v12817_v15  ;;  %v13853_v16 = vld [vmem:[#allocation5 + $0x334] sm:$0xf] }
 0x3a6   :  { %8552 = vmatpush.bf16.msra.mxu0 %v9598_v19  ;;  %v8336_v19 = vpop.f32.mrf.mxu3 }
 0x3a7   :  { %8565 = vmatpush.bf16.msra.mxu1 %v11934_v24  ;;  %8577 = vmatpush.bf16.msra.mxu2 %v9894_v31  ;;  %v14729_v24 = vld [vmem:[#allocation5 + $0x1e94] sm:$0xf]  ;;  %v10778_v31 = vor.u32 %v14145_v21, %v10775_v22  ;;  %v11366_v22 = vor.u32 %v14328_v11, %v11365_v10  ;;  %v14036_v10 = vld [vmem:[#allocation5 + $0x8e8] sm:$0xf0]  ;;  %v12533_v11 = vld [vmem:[#allocation5 + $0x1a08] sm:$0xf] }
 0x3a8   :  { %8590 = vmatpush.bf16.msra.mxu3 %v12230_v33  ;;  %v13114_v32 = vor.u32 %v14729_v24, %v13111_v25  ;;  %v14072_v33 = vld [vmem:[#allocation5 + $0xa0c] sm:$0xf]  ;;  %v14437_v19 = vld [vmem:[#allocation5 + $0x1574] sm:$0xf]  ;;  %v14255_v25 = vld [vmem:[#allocation5 + $0xfc0] sm:$0xf0] }
 0x3aa   :  { %8553 = vmatpush.bf16.msra.mxu0 %v9306_v36  ;;  %v8347_v35 = vpop.f32.mrf.mxu0  ;;  %v10190_v36 = vor.u32 %v14035_v28, %v10189_v27  ;;  %v14839_v27 = vld [vmem:[#allocation5 + $0x2200] sm:$0xf0] }
 0x3ab   :  { %8566 = vmatpush.bf16.msra.mxu1 %v11642_v39  ;;  %8578 = vmatpush.bf16.msra.mxu2 %v9602_v46  ;;  %v8360_v39 = vpop.f32.mrf.mxu1  ;;  %v10486_v46 = vor.u32 %v14072_v33, %v10483_v34 }
 0x3ac   :  { %8591 = vmatpush.bf16.msra.mxu3 %v11938_v47  ;;  %v8361_v43 = vadd.f32 %v8360_v39, %v8347_v35  ;;  %v12822_v47 = vor.u32 %v14656_v37, %v12819_v38  ;;  %v11651_v35 = vld [vmem:[#allocation5 + $0x144c] sm:$0xf0] }
 0x3ad   :  { %8554 = vmatmul.bf16.vlgmr.msra.gmra.mxu0 %v15028_v59  ;;  %v11367_v37 = vld [vmem:[#allocation5 + $0x120c] sm:$0xf0] }
 0x3ae   :  { %8598 = vmatpush.bf16.msrb.mxu0 %v11358_v40  ;;  %8567 = vmatmul.bf16.vlgmr.msra.gmra.mxu1 %v15030_v63  ;;  %v12526_v40 = vor.u32 %v14619_v30, %v12525_v29  ;;  %9036 = vst [vmem:[#allocation7 + $0x180] sm:$0xff] %v8361_v43  ;;  %v13780_v30 = vld [vmem:[#allocation5 + $0xec] sm:$0xf]  ;;  %v10781_v43 = vld [vmem:[#allocation5 + $0xc58] sm:$0xf] }
 0x3af   :  { %8611 = vmatpush.bf16.msrb.mxu1 %v13694_v42  ;;  %8579 = vmatpush.bf16.msra.mxu2 %v9310_v1  ;;  %v13962_v42 = vld [vmem:[#allocation5 + $0x698] sm:$0xf0]  ;;  %v9606_v1 = vor.u32 %v13889_v55, %v9605_v54  ;;  %v14803_v54 = vld [vmem:[#allocation5 + $0x20e4] sm:$0xf]  ;;  %v13411_v55 = vld [vmem:[#allocation5 + $0x2204] sm:$0xf0] }
 0x3b0   :  { %8592 = vmatpush.bf16.msra.mxu3 %v11646_v4  ;;  %v9898_v50 = vor.u32 %v13962_v42, %v9897_v41  ;;  %v12235_v4 = vld [vmem:[#allocation5 + $0x18dc] sm:$0xf0]  ;;  %v13703_v41 = vld [vmem:[#allocation5 + $0x244c] sm:$0xf0]  ;;  %v13414_v2 = vor.u32 %v14803_v54, %v13411_v55  ;;  %v14329_v55 = vld [vmem:[#allocation5 + $0x1210] sm:$0xf0] }
 0x3b1   :  { %v12238_v15 = vor.u32 %v14510_v3, %v12235_v4  ;;  %v14146_v3 = vld [vmem:[#allocation5 + $0xc5c] sm:$0xf]  ;;  %v10783_v4 = vld [vmem:[#allocation5 + $0xd7c] sm:$0xf0]  ;;  %v11373_v54 = vld [vmem:[#allocation5 + $0x10f0] sm:$0xf] }
 0x3b2   :  { %8599 = vmatpush.bf16.msrb.mxu0 %v11066_v57  ;;  %8580 = vmatmul.bf16.vlgmr.msra.gmra.mxu2 %v15028_v59  ;;  %v14473_v57 = vld [vmem:[#allocation5 + $0x1690] sm:$0xf0]  ;;  %v8349_v0 = vpop.f32.mrf.mxu0 }
 0x3b3   :  { %8612 = vmatpush.bf16.msrb.mxu1 %v13402_v61  ;;  %8624 = vmatpush.bf16.msrb.mxu2 %v11362_v5  ;;  %v13926_v61 = vld [vmem:[#allocation5 + $0x57c] sm:$0xf]  ;;  %v8362_v5 = vpop.f32.mrf.mxu1 }
 0x3b4   :  { %8637 = vmatpush.bf16.msrb.mxu3 %v13698_v6  ;;  %v11942_v6 = vor.u32 %v14473_v57, %v11941_v56  ;;  %v9902_v13 = vor.u32 %v13926_v61, %v9899_v62  ;;  %v10489_v57 = vld [vmem:[#allocation5 + $0xa10] sm:$0xf]  ;;  %v14693_v61 = vld [vmem:[#allocation5 + $0x1d70] sm:$0xf0]  ;;  %v11078_v62 = vor.u32 %v14219_v51, %v11075_v52 }
 0x3b5   :  { %8593 = vmatmul.bf16.vlgmr.msra.gmra.mxu3 %v15030_v63  ;;  %v8373_v33 = vpop.f32.mrf.mxu2  ;;  %v13817_v51 = vld [vmem:[#allocation5 + $0x210] sm:$0xf0]  ;;  %v11657_v52 = vld [vmem:[#allocation5 + $0x1330] sm:$0xf] }
 0x3b6   :  { %8600 = vmatpush.bf16.msrb.mxu0 %v10774_v9  ;;  %v14400_v9 = vld [vmem:[#allocation5 + $0x1448] sm:$0xf0] }
 0x3b7   :  { %8613 = vmatpush.bf16.msrb.mxu1 %v13110_v12  ;;  %8625 = vmatpush.bf16.msrb.mxu2 %v11070_v17  ;;  %v13701_v12 = vld [vmem:[#allocation5 + $0x2328] sm:$0xf]  ;;  %v9607_v17 = vld [vmem:[#allocation5 + $0x454] sm:$0xf0]  ;;  %v11650_v21 = vor.u32 %v14400_v9, %v11649_v8 }
 0x3b8   :  { %8638 = vmatpush.bf16.msrb.mxu3 %v13406_v20  ;;  %v11943_v20 = vld [vmem:[#allocation5 + $0x1694] sm:$0xf0]  ;;  %v13702_v24 = vor.u32 %v14912_v14, %v13701_v12  ;;  %v9610_v28 = vor.u32 %v13853_v16, %v9607_v17  ;;  %v8386_v34 = vpop.f32.mrf.mxu3  ;;  %v10197_v9 = vld [vmem:[#allocation5 + $0x7c8] sm:$0xf]  ;;  %v14620_v12 = vld [vmem:[#allocation5 + $0x1b28] sm:$0xf0] }
 0x3b9   :  { %v11946_v29 = vor.u32 %v14437_v19, %v11943_v20  ;;  %v8387_v38 = vadd.f32 %v8386_v34, %v8373_v33  ;;  %v10491_v16 = vld [vmem:[#allocation5 + $0xb34] sm:$0xf0]  ;;  %v14657_v19 = vld [vmem:[#allocation5 + $0x1c54] sm:$0xf]  ;;  %v14584_v33 = vld [vmem:[#allocation5 + $0x1a0c] sm:$0xf] }
 0x3ba   :  { %8601 = vmatpush.bf16.msrb.mxu0 %v10482_v23  ;;  %v11073_v23 = vld [vmem:[#allocation5 + $0xea0] sm:$0xf]  ;;  %v12827_v20 = vld [vmem:[#allocation5 + $0x1d74] sm:$0xf0]  ;;  %v12535_v34 = vld [vmem:[#allocation5 + $0x1b2c] sm:$0xf0] }
 0x3bb   :  { %8614 = vmatpush.bf16.msrb.mxu1 %v12818_v26  ;;  %8626 = vmatpush.bf16.msrb.mxu2 %v10778_v31  ;;  %v13409_v26 = vld [vmem:[#allocation5 + $0x20e0] sm:$0xf]  ;;  %v9315_v31 = vld [vmem:[#allocation5 + $0x20c] sm:$0xf0]  ;;  %v11074_v39 = vor.u32 %v14255_v25, %v11073_v23  ;;  %9037 = vst [vmem:[#allocation7 + $0x188] sm:$0xff] %v8387_v38 }
 0x3bc   :  { %8639 = vmatpush.bf16.msrb.mxu3 %v13114_v32  ;;  %v14364_v32 = vld [vmem:[#allocation5 + $0x132c] sm:$0xf]  ;;  %v13410_v42 = vor.u32 %v14839_v27, %v13409_v26  ;;  %v9318_v45 = vor.u32 %v13780_v30, %v9315_v31  ;;  %v9905_v23 = vld [vmem:[#allocation5 + $0x580] sm:$0xf]  ;;  %v14547_v27 = vld [vmem:[#allocation5 + $0x18e0] sm:$0xf0] }
 0x3bd   :  { %v11654_v48 = vor.u32 %v14364_v32, %v11651_v35  ;;  %v8375_v0 = vpop.f32.mrf.mxu2  ;;  %v12241_v26 = vld [vmem:[#allocation5 + $0x17c0] sm:$0xf]  ;;  %v14000_v30 = vld [vmem:[#allocation5 + $0x7cc] sm:$0xf]  ;;  %v10199_v31 = vld [vmem:[#allocation5 + $0x8ec] sm:$0xf0] }
 0x3be   :  { %8602 = vmatpush.bf16.msrb.mxu0 %v10190_v36  ;;  %v14292_v36 = vld [vmem:[#allocation5 + $0x10ec] sm:$0xf]  ;;  %v12242_v35 = vor.u32 %v14547_v27, %v12241_v26  ;;  %v11949_v38 = vld [vmem:[#allocation5 + $0x1578] sm:$0xf]  ;;  %v14183_v26 = vld [vmem:[#allocation5 + $0xd80] sm:$0xf0] }
 0x3bf   :  { %8615 = vmatpush.bf16.msrb.mxu1 %v12526_v40  ;;  %8627 = vmatpush.bf16.msrb.mxu2 %v10486_v46  ;;  %v14876_v40 = vld [vmem:[#allocation5 + $0x232c] sm:$0xf]  ;;  %v13117_v46 = vld [vmem:[#allocation5 + $0x1e98] sm:$0xf]  ;;  %v11370_v49 = vor.u32 %v14292_v36, %v11367_v37  ;;  %v13890_v37 = vld [vmem:[#allocation5 + $0x458] sm:$0xf0] }
 0x3c0   :  { %8640 = vmatpush.bf16.msrb.mxu3 %v12822_v47  ;;  %v14766_v47 = vld [vmem:[#allocation5 + $0x1fb8] sm:$0xf0]  ;;  %v9613_v36 = vld [vmem:[#allocation5 + $0x338] sm:$0xf] }
 0x3c1   :  { %v13118_v56 = vor.u32 %v14766_v47, %v13117_v46  ;;  %v9321_v46 = vld [vmem:[#allocation5 + $0xf0] sm:$0xf]  ;;  %v14511_v47 = vld [vmem:[#allocation5 + $0x17c4] sm:$0xf] }
 0x3c2   :  { %8603 = vmatpush.bf16.msrb.mxu0 %v9898_v50  ;;  %v13706_v50 = vor.u32 %v14876_v40, %v13703_v41  ;;  %v10202_v40 = vor.u32 %v14000_v30, %v10199_v31  ;;  %v12538_v41 = vor.u32 %v14584_v33, %v12535_v34  ;;  %v9322_v0 = vor.u32 %v13817_v51, %v9321_v46  ;;  %v14220_v33 = vld [vmem:[#allocation5 + $0xeac] sm:$0xf]  ;;  %v11083_v34 = vld [vmem:[#allocation5 + $0xfcc] sm:$0xf0]  ;;  %v13127_v51 = vld [vmem:[#allocation5 + $0x1fc4] sm:$0xf0] }
 0x3c3   :  { %8616 = vmatpush.bf16.msrb.mxu1 %v12234_v53  ;;  %8628 = vmatpush.bf16.msrb.mxu2 %v10194_v58  ;;  %v10782_v53 = vor.u32 %v14182_v44, %v10781_v43  ;;  %v14109_v58 = vld [vmem:[#allocation5 + $0xb30] sm:$0xf0]  ;;  %v9907_v43 = vld [vmem:[#allocation5 + $0x6a4] sm:$0xf0] }
 0x3c4   :  { %8641 = vmatpush.bf16.msrb.mxu3 %v12530_v60  ;;  %v12825_v60 = vld [vmem:[#allocation5 + $0x1c50] sm:$0xf]  ;;  %v10490_v5 = vor.u32 %v14109_v58, %v10489_v57  ;;  %v14913_v58 = vld [vmem:[#allocation5 + $0x2450] sm:$0xf0] }
 0x3c5   :  { %v12826_v8 = vor.u32 %v14693_v61, %v12825_v60  ;;  %v13854_v61 = vld [vmem:[#allocation5 + $0x33c] sm:$0xf] }
 0x3c6   :  { %8604 = vmatpush.bf16.msrb.mxu0 %v9606_v1  ;;  %v8388_v1 = vpop.f32.mrf.mxu3 }
 0x3c7   :  { %8617 = vmatpush.bf16.msrb.mxu1 %v11942_v6  ;;  %8629 = vmatpush.bf16.msrb.mxu2 %v9902_v13  ;;  %v14730_v6 = vld [vmem:[#allocation5 + $0x1e9c] sm:$0xf]  ;;  %v10786_v13 = vor.u32 %v14146_v3, %v10783_v4  ;;  %v11374_v4 = vor.u32 %v14329_v55, %v11373_v54  ;;  %v14037_v54 = vld [vmem:[#allocation5 + $0x8f0] sm:$0xf0]  ;;  %v12541_v55 = vld [vmem:[#allocation5 + $0x1a10] sm:$0xf] }
 0x3c8   :  { %8642 = vmatpush.bf16.msrb.mxu3 %v12238_v15  ;;  %v13122_v14 = vor.u32 %v14730_v6, %v13119_v7  ;;  %v14073_v15 = vld [vmem:[#allocation5 + $0xa14] sm:$0xf]  ;;  %v14438_v1 = vld [vmem:[#allocation5 + $0x157c] sm:$0xf]  ;;  %v14256_v7 = vld [vmem:[#allocation5 + $0xfc8] sm:$0xf0] }
 0x3ca   :  { %8605 = vmatpush.bf16.msrb.mxu0 %v9314_v18  ;;  %v8399_v17 = vpop.f32.mrf.mxu0  ;;  %v10198_v18 = vor.u32 %v14036_v10, %v10197_v9  ;;  %v14840_v9 = vld [vmem:[#allocation5 + $0x2208] sm:$0xf0] }
 0x3cb   :  { %8618 = vmatpush.bf16.msrb.mxu1 %v11650_v21  ;;  %8630 = vmatpush.bf16.msrb.mxu2 %v9610_v28  ;;  %v8412_v21 = vpop.f32.mrf.mxu1  ;;  %v10494_v28 = vor.u32 %v14073_v15, %v10491_v16 }
 0x3cc   :  { %8643 = vmatpush.bf16.msrb.mxu3 %v11946_v29  ;;  %v8413_v25 = vadd.f32 %v8412_v21, %v8399_v17  ;;  %v12830_v29 = vor.u32 %v14657_v19, %v12827_v20  ;;  %v11659_v17 = vld [vmem:[#allocation5 + $0x1454] sm:$0xf0] }
 0x3cd   :  { %8606 = vmatmul.bf16.vlgmr.msrb.gmra.mxu0 %v15028_v59  ;;  %v11375_v19 = vld [vmem:[#allocation5 + $0x1214] sm:$0xf0] }
 0x3ce   :  { %8650 = vmatpush.bf16.msra.mxu0 %v11366_v22  ;;  %8619 = vmatmul.bf16.vlgmr.msrb.gmra.mxu1 %v15030_v63  ;;  %v12534_v22 = vor.u32 %v14620_v12, %v12533_v11  ;;  %9038 = vst [vmem:[#allocation7 + $0x190] sm:$0xff] %v8413_v25  ;;  %v13781_v12 = vld [vmem:[#allocation5 + $0xf4] sm:$0xf]  ;;  %v10789_v25 = vld [vmem:[#allocation5 + $0xc60] sm:$0xf] }
 0x3cf   :  { %8663 = vmatpush.bf16.msra.mxu1 %v13702_v24  ;;  %8631 = vmatpush.bf16.msrb.mxu2 %v9318_v45  ;;  %v13963_v24 = vld [vmem:[#allocation5 + $0x6a0] sm:$0xf0]  ;;  %v9614_v45 = vor.u32 %v13890_v37, %v9613_v36  ;;  %v14804_v36 = vld [vmem:[#allocation5 + $0x20ec] sm:$0xf]  ;;  %v13419_v37 = vld [vmem:[#allocation5 + $0x220c] sm:$0xf0] }
 0x3d0   :  { %8644 = vmatpush.bf16.msrb.mxu3 %v11654_v48  ;;  %v9906_v32 = vor.u32 %v13963_v24, %v9905_v23  ;;  %v12243_v48 = vld [vmem:[#allocation5 + $0x18e4] sm:$0xf0]  ;;  %v13711_v23 = vld [vmem:[#allocation5 + $0x2454] sm:$0xf0]  ;;  %v13422_v46 = vor.u32 %v14804_v36, %v13419_v37  ;;  %v14330_v37 = vld [vmem:[#allocation5 + $0x1218] sm:$0xf0] }
 0x3d1   :  { %v12246_v60 = vor.u32 %v14511_v47, %v12243_v48  ;;  %v14147_v47 = vld [vmem:[#allocation5 + $0xc64] sm:$0xf]  ;;  %v10791_v48 = vld [vmem:[#allocation5 + $0xd84] sm:$0xf0]  ;;  %v11381_v36 = vld [vmem:[#allocation5 + $0x10f8] sm:$0xf] }
 0x3d2   :  { %8651 = vmatpush.bf16.msra.mxu0 %v11074_v39  ;;  %8632 = vmatmul.bf16.vlgmr.msrb.gmra.mxu2 %v15028_v59  ;;  %v14474_v39 = vld [vmem:[#allocation5 + $0x1698] sm:$0xf0]  ;;  %v8401_v44 = vpop.f32.mrf.mxu0 }
 0x3d3   :  { %8664 = vmatpush.bf16.msra.mxu1 %v13410_v42  ;;  %8676 = vmatpush.bf16.msra.mxu2 %v11370_v49  ;;  %v13927_v42 = vld [vmem:[#allocation5 + $0x584] sm:$0xf]  ;;  %v8414_v49 = vpop.f32.mrf.mxu1 }
 0x3d4   :  { %8689 = vmatpush.bf16.msra.mxu3 %v13706_v50  ;;  %v11950_v50 = vor.u32 %v14474_v39, %v11949_v38  ;;  %v9910_v57 = vor.u32 %v13927_v42, %v9907_v43  ;;  %v10497_v39 = vld [vmem:[#allocation5 + $0xa18] sm:$0xf]  ;;  %v14694_v42 = vld [vmem:[#allocation5 + $0x1d78] sm:$0xf0]  ;;  %v11086_v43 = vor.u32 %v14220_v33, %v11083_v34 }
 0x3d5   :  { %8645 = vmatmul.bf16.vlgmr.msrb.gmra.mxu3 %v15030_v63  ;;  %v8425_v15 = vpop.f32.mrf.mxu2  ;;  %v13818_v33 = vld [vmem:[#allocation5 + $0x218] sm:$0xf0]  ;;  %v11665_v34 = vld [vmem:[#allocation5 + $0x1338] sm:$0xf] }
 0x3d6   :  { %8652 = vmatpush.bf16.msra.mxu0 %v10782_v53  ;;  %v14401_v53 = vld [vmem:[#allocation5 + $0x1450] sm:$0xf0] }
 0x3d7   :  { %8665 = vmatpush.bf16.msra.mxu1 %v13118_v56  ;;  %8677 = vmatpush.bf16.msra.mxu2 %v11078_v62  ;;  %v13709_v56 = vld [vmem:[#allocation5 + $0x2330] sm:$0xf]  ;;  %v9615_v62 = vld [vmem:[#allocation5 + $0x45c] sm:$0xf0]  ;;  %v11658_v3 = vor.u32 %v14401_v53, %v11657_v52 }
 0x3d8   :  { %8690 = vmatpush.bf16.msra.mxu3 %v13414_v2  ;;  %v11951_v2 = vld [vmem:[#allocation5 + $0x169c] sm:$0xf0]  ;;  %v13710_v6 = vor.u32 %v14913_v58, %v13709_v56  ;;  %v9618_v10 = vor.u32 %v13854_v61, %v9615_v62  ;;  %v8438_v16 = vpop.f32.mrf.mxu3  ;;  %v10205_v53 = vld [vmem:[#allocation5 + $0x7d0] sm:$0xf]  ;;  %v14621_v56 = vld [vmem:[#allocation5 + $0x1b30] sm:$0xf0] }
 0x3d9   :  { %v11954_v11 = vor.u32 %v14438_v1, %v11951_v2  ;;  %v8439_v20 = vadd.f32 %v8438_v16, %v8425_v15  ;;  %v10499_v61 = vld [vmem:[#allocation5 + $0xb3c] sm:$0xf0]  ;;  %v14658_v1 = vld [vmem:[#allocation5 + $0x1c5c] sm:$0xf]  ;;  %v14585_v15 = vld [vmem:[#allocation5 + $0x1a14] sm:$0xf] }
 0x3da   :  { %8653 = vmatpush.bf16.msra.mxu0 %v10490_v5  ;;  %v11081_v5 = vld [vmem:[#allocation5 + $0xea8] sm:$0xf]  ;;  %v12835_v2 = vld [vmem:[#allocation5 + $0x1d7c] sm:$0xf0]  ;;  %v12543_v16 = vld [vmem:[#allocation5 + $0x1b34] sm:$0xf0] }
 0x3db   :  { %8666 = vmatpush.bf16.msra.mxu1 %v12826_v8  ;;  %8678 = vmatpush.bf16.msra.mxu2 %v10786_v13  ;;  %v13417_v8 = vld [vmem:[#allocation5 + $0x20e8] sm:$0xf]  ;;  %v9323_v13 = vld [vmem:[#allocation5 + $0x214] sm:$0xf0]  ;;  %v11082_v21 = vor.u32 %v14256_v7, %v11081_v5  ;;  %9039 = vst [vmem:[#allocation7 + $0x198] sm:$0xff] %v8439_v20 }
 0x3dc   :  { %8691 = vmatpush.bf16.msra.mxu3 %v13122_v14  ;;  %v14365_v14 = vld [vmem:[#allocation5 + $0x1334] sm:$0xf]  ;;  %v13418_v24 = vor.u32 %v14840_v9, %v13417_v8  ;;  %v9326_v27 = vor.u32 %v13781_v12, %v9323_v13  ;;  %v9913_v5 = vld [vmem:[#allocation5 + $0x588] sm:$0xf]  ;;  %v14548_v9 = vld [vmem:[#allocation5 + $0x18e8] sm:$0xf0] }
 0x3dd   :  { %v11662_v30 = vor.u32 %v14365_v14, %v11659_v17  ;;  %v8427_v44 = vpop.f32.mrf.mxu2  ;;  %v12249_v8 = vld [vmem:[#allocation5 + $0x17c8] sm:$0xf]  ;;  %v14001_v12 = vld [vmem:[#allocation5 + $0x7d4] sm:$0xf]  ;;  %v10207_v13 = vld [vmem:[#allocation5 + $0x8f4] sm:$0xf0] }
 0x3de   :  { %8654 = vmatpush.bf16.msra.mxu0 %v10198_v18  ;;  %v14293_v18 = vld [vmem:[#allocation5 + $0x10f4] sm:$0xf]  ;;  %v12250_v17 = vor.u32 %v14548_v9, %v12249_v8  ;;  %v11957_v20 = vld [vmem:[#allocation5 + $0x1580] sm:$0xf]  ;;  %v14184_v8 = vld [vmem:[#allocation5 + $0xd88] sm:$0xf0] }
 0x3df   :  { %8667 = vmatpush.bf16.msra.mxu1 %v12534_v22  ;;  %8679 = vmatpush.bf16.msra.mxu2 %v10494_v28  ;;  %v14877_v22 = vld [vmem:[#allocation5 + $0x2334] sm:$0xf]  ;;  %v13125_v28 = vld [vmem:[#allocation5 + $0x1ea0] sm:$0xf]  ;;  %v11378_v31 = vor.u32 %v14293_v18, %v11375_v19  ;;  %v13891_v19 = vld [vmem:[#allocation5 + $0x460] sm:$0xf0] }
 0x3e0   :  { %8692 = vmatpush.bf16.msra.mxu3 %v12830_v29  ;;  %v14767_v29 = vld [vmem:[#allocation5 + $0x1fc0] sm:$0xf0]  ;;  %v9621_v18 = vld [vmem:[#allocation5 + $0x340] sm:$0xf] }
 0x3e1   :  { %v13126_v38 = vor.u32 %v14767_v29, %v13125_v28  ;;  %v9329_v28 = vld [vmem:[#allocation5 + $0xf8] sm:$0xf]  ;;  %v14512_v29 = vld [vmem:[#allocation5 + $0x17cc] sm:$0xf] }
 0x3e2   :  { %8655 = vmatpush.bf16.msra.mxu0 %v9906_v32  ;;  %v13714_v32 = vor.u32 %v14877_v22, %v13711_v23  ;;  %v10210_v22 = vor.u32 %v14001_v12, %v10207_v13  ;;  %v12546_v23 = vor.u32 %v14585_v15, %v12543_v16  ;;  %v9330_v44 = vor.u32 %v13818_v33, %v9329_v28  ;;  %v14221_v15 = vld [vmem:[#allocation5 + $0xeb4] sm:$0xf]  ;;  %v11091_v16 = vld [vmem:[#allocation5 + $0xfd4] sm:$0xf0]  ;;  %v13135_v33 = vld [vmem:[#allocation5 + $0x1fcc] sm:$0xf0] }
 0x3e3   :  { %8668 = vmatpush.bf16.msra.mxu1 %v12242_v35  ;;  %8680 = vmatpush.bf16.msra.mxu2 %v10202_v40  ;;  %v10790_v35 = vor.u32 %v14183_v26, %v10789_v25  ;;  %v14110_v40 = vld [vmem:[#allocation5 + $0xb38] sm:$0xf0]  ;;  %v9915_v25 = vld [vmem:[#allocation5 + $0x6ac] sm:$0xf0] }
 0x3e4   :  { %8693 = vmatpush.bf16.msra.mxu3 %v12538_v41  ;;  %v12833_v41 = vld [vmem:[#allocation5 + $0x1c58] sm:$0xf]  ;;  %v10498_v49 = vor.u32 %v14110_v40, %v10497_v39  ;;  %v14914_v40 = vld [vmem:[#allocation5 + $0x2458] sm:$0xf0] }
 0x3e5   :  { %v12834_v52 = vor.u32 %v14694_v42, %v12833_v41  ;;  %v13855_v42 = vld [vmem:[#allocation5 + $0x344] sm:$0xf] }
 0x3e6   :  { %8656 = vmatpush.bf16.msra.mxu0 %v9614_v45  ;;  %v8440_v45 = vpop.f32.mrf.mxu3 }
 0x3e7   :  { %8669 = vmatpush.bf16.msra.mxu1 %v11950_v50  ;;  %8681 = vmatpush.bf16.msra.mxu2 %v9910_v57  ;;  %v14731_v50 = vld [vmem:[#allocation5 + $0x1ea4] sm:$0xf]  ;;  %v10794_v57 = vor.u32 %v14147_v47, %v10791_v48  ;;  %v11382_v48 = vor.u32 %v14330_v37, %v11381_v36  ;;  %v14038_v36 = vld [vmem:[#allocation5 + $0x8f8] sm:$0xf0]  ;;  %v12549_v37 = vld [vmem:[#allocation5 + $0x1a18] sm:$0xf] }
 0x3e8   :  { %8694 = vmatpush.bf16.msra.mxu3 %v12246_v60  ;;  %v13130_v58 = vor.u32 %v14731_v50, %v13127_v51  ;;  %v14074_v60 = vld [vmem:[#allocation5 + $0xa1c] sm:$0xf]  ;;  %v14439_v45 = vld [vmem:[#allocation5 + $0x1584] sm:$0xf]  ;;  %v14257_v51 = vld [vmem:[#allocation5 + $0xfd0] sm:$0xf0] }
 0x3ea   :  { %8657 = vmatpush.bf16.msra.mxu0 %v9322_v0  ;;  %v8451_v62 = vpop.f32.mrf.mxu0  ;;  %v10206_v0 = vor.u32 %v14037_v54, %v10205_v53  ;;  %v14841_v53 = vld [vmem:[#allocation5 + $0x2210] sm:$0xf0] }
 0x3eb   :  { %8670 = vmatpush.bf16.msra.mxu1 %v11658_v3  ;;  %8682 = vmatpush.bf16.msra.mxu2 %v9618_v10  ;;  %v8464_v3 = vpop.f32.mrf.mxu1  ;;  %v10502_v10 = vor.u32 %v14074_v60, %v10499_v61 }
 0x3ec   :  { %8695 = vmatpush.bf16.msra.mxu3 %v11954_v11  ;;  %v8465_v7 = vadd.f32 %v8464_v3, %v8451_v62  ;;  %v12838_v11 = vor.u32 %v14658_v1, %v12835_v2  ;;  %v11667_v62 = vld [vmem:[#allocation5 + $0x145c] sm:$0xf0] }
 0x3ed   :  { %8658 = vmatmul.bf16.vlgmr.msra.gmra.mxu0 %v15028_v59  ;;  %v11383_v1 = vld [vmem:[#allocation5 + $0x121c] sm:$0xf0] }
 0x3ee   :  { %8702 = vmatpush.bf16.msrb.mxu0 %v11374_v4  ;;  %8671 = vmatmul.bf16.vlgmr.msra.gmra.mxu1 %v15030_v63  ;;  %v12542_v4 = vor.u32 %v14621_v56, %v12541_v55  ;;  %9040 = vst [vmem:[#allocation7 + $0x1a0] sm:$0xff] %v8465_v7  ;;  %v13782_v56 = vld [vmem:[#allocation5 + $0xfc] sm:$0xf]  ;;  %v10797_v7 = vld [vmem:[#allocation5 + $0xc68] sm:$0xf] }
 0x3ef   :  { %8715 = vmatpush.bf16.msrb.mxu1 %v13710_v6  ;;  %8683 = vmatpush.bf16.msra.mxu2 %v9326_v27  ;;  %v13964_v6 = vld [vmem:[#allocation5 + $0x6a8] sm:$0xf0]  ;;  %v9622_v27 = vor.u32 %v13891_v19, %v9621_v18  ;;  %v14805_v18 = vld [vmem:[#allocation5 + $0x20f4] sm:$0xf]  ;;  %v13427_v19 = vld [vmem:[#allocation5 + $0x2214] sm:$0xf0] }
 0x3f0   :  { %8696 = vmatpush.bf16.msra.mxu3 %v11662_v30  ;;  %v9914_v14 = vor.u32 %v13964_v6, %v9913_v5  ;;  %v12251_v30 = vld [vmem:[#allocation5 + $0x18ec] sm:$0xf0]  ;;  %v13719_v5 = vld [vmem:[#allocation5 + $0x245c] sm:$0xf0]  ;;  %v13430_v28 = vor.u32 %v14805_v18, %v13427_v19  ;;  %v14331_v19 = vld [vmem:[#allocation5 + $0x1220] sm:$0xf0] }
 0x3f1   :  { %v12254_v41 = vor.u32 %v14512_v29, %v12251_v30  ;;  %v14148_v29 = vld [vmem:[#allocation5 + $0xc6c] sm:$0xf]  ;;  %v10799_v30 = vld [vmem:[#allocation5 + $0xd8c] sm:$0xf0]  ;;  %v11389_v18 = vld [vmem:[#allocation5 + $0x1100] sm:$0xf] }
 0x3f2   :  { %8703 = vmatpush.bf16.msrb.mxu0 %v11082_v21  ;;  %8684 = vmatmul.bf16.vlgmr.msra.gmra.mxu2 %v15028_v59  ;;  %v14475_v21 = vld [vmem:[#allocation5 + $0x16a0] sm:$0xf0]  ;;  %v8453_v26 = vpop.f32.mrf.mxu0 }
 0x3f3   :  { %8716 = vmatpush.bf16.msrb.mxu1 %v13418_v24  ;;  %8728 = vmatpush.bf16.msrb.mxu2 %v11378_v31  ;;  %v13928_v24 = vld [vmem:[#allocation5 + $0x58c] sm:$0xf]  ;;  %v8466_v31 = vpop.f32.mrf.mxu1 }
 0x3f4   :  { %8741 = vmatpush.bf16.msrb.mxu3 %v13714_v32  ;;  %v11958_v32 = vor.u32 %v14475_v21, %v11957_v20  ;;  %v9918_v39 = vor.u32 %v13928_v24, %v9915_v25  ;;  %v10505_v21 = vld [vmem:[#allocation5 + $0xa20] sm:$0xf]  ;;  %v14695_v24 = vld [vmem:[#allocation5 + $0x1d80] sm:$0xf0]  ;;  %v11094_v25 = vor.u32 %v14221_v15, %v11091_v16 }
 0x3f5   :  { %8697 = vmatmul.bf16.vlgmr.msra.gmra.mxu3 %v15030_v63  ;;  %v8477_v60 = vpop.f32.mrf.mxu2  ;;  %v13819_v15 = vld [vmem:[#allocation5 + $0x220] sm:$0xf0]  ;;  %v11673_v16 = vld [vmem:[#allocation5 + $0x1340] sm:$0xf] }
 0x3f6   :  { %8704 = vmatpush.bf16.msrb.mxu0 %v10790_v35  ;;  %v14402_v35 = vld [vmem:[#allocation5 + $0x1458] sm:$0xf0] }
 0x3f7   :  { %8717 = vmatpush.bf16.msrb.mxu1 %v13126_v38  ;;  %8729 = vmatpush.bf16.msrb.mxu2 %v11086_v43  ;;  %v13717_v38 = vld [vmem:[#allocation5 + $0x2338] sm:$0xf]  ;;  %v9623_v43 = vld [vmem:[#allocation5 + $0x464] sm:$0xf0]  ;;  %v11666_v47 = vor.u32 %v14402_v35, %v11665_v34 }
 0x3f8   :  { %8742 = vmatpush.bf16.msrb.mxu3 %v13422_v46  ;;  %v11959_v46 = vld [vmem:[#allocation5 + $0x16a4] sm:$0xf0]  ;;  %v13718_v50 = vor.u32 %v14914_v40, %v13717_v38  ;;  %v9626_v54 = vor.u32 %v13855_v42, %v9623_v43  ;;  %v8490_v61 = vpop.f32.mrf.mxu3  ;;  %v10213_v35 = vld [vmem:[#allocation5 + $0x7d8] sm:$0xf]  ;;  %v14622_v38 = vld [vmem:[#allocation5 + $0x1b38] sm:$0xf0] }
 0x3f9   :  { %v11962_v55 = vor.u32 %v14439_v45, %v11959_v46  ;;  %v8491_v2 = vadd.f32 %v8490_v61, %v8477_v60  ;;  %v10507_v42 = vld [vmem:[#allocation5 + $0xb44] sm:$0xf0]  ;;  %v14659_v45 = vld [vmem:[#allocation5 + $0x1c64] sm:$0xf]  ;;  %v14586_v60 = vld [vmem:[#allocation5 + $0x1a1c] sm:$0xf] }
 0x3fa   :  { %8705 = vmatpush.bf16.msrb.mxu0 %v10498_v49  ;;  %v11089_v49 = vld [vmem:[#allocation5 + $0xeb0] sm:$0xf]  ;;  %v12843_v46 = vld [vmem:[#allocation5 + $0x1d84] sm:$0xf0]  ;;  %v12551_v61 = vld [vmem:[#allocation5 + $0x1b3c] sm:$0xf0] }
 0x3fb   :  { %8718 = vmatpush.bf16.msrb.mxu1 %v12834_v52  ;;  %8730 = vmatpush.bf16.msrb.mxu2 %v10794_v57  ;;  %v13425_v52 = vld [vmem:[#allocation5 + $0x20f0] sm:$0xf]  ;;  %v9331_v57 = vld [vmem:[#allocation5 + $0x21c] sm:$0xf0]  ;;  %v11090_v3 = vor.u32 %v14257_v51, %v11089_v49  ;;  %9041 = vst [vmem:[#allocation7 + $0x1a8] sm:$0xff] %v8491_v2 }
 0x3fc   :  { %8743 = vmatpush.bf16.msrb.mxu3 %v13130_v58  ;;  %v14366_v58 = vld [vmem:[#allocation5 + $0x133c] sm:$0xf]  ;;  %v13426_v6 = vor.u32 %v14841_v53, %v13425_v52  ;;  %v9334_v9 = vor.u32 %v13782_v56, %v9331_v57  ;;  %v9921_v49 = vld [vmem:[#allocation5 + $0x590] sm:$0xf]  ;;  %v14549_v53 = vld [vmem:[#allocation5 + $0x18f0] sm:$0xf0] }
 0x3fd   :  { %v11670_v12 = vor.u32 %v14366_v58, %v11667_v62  ;;  %v8479_v26 = vpop.f32.mrf.mxu2  ;;  %v12257_v52 = vld [vmem:[#allocation5 + $0x17d0] sm:$0xf]  ;;  %v14002_v56 = vld [vmem:[#allocation5 + $0x7dc] sm:$0xf]  ;;  %v10215_v57 = vld [vmem:[#allocation5 + $0x8fc] sm:$0xf0] }
 0x3fe   :  { %8706 = vmatpush.bf16.msrb.mxu0 %v10206_v0  ;;  %v14294_v0 = vld [vmem:[#allocation5 + $0x10fc] sm:$0xf]  ;;  %v12258_v62 = vor.u32 %v14549_v53, %v12257_v52  ;;  %v11965_v2 = vld [vmem:[#allocation5 + $0x1588] sm:$0xf]  ;;  %v14185_v52 = vld [vmem:[#allocation5 + $0xd90] sm:$0xf0] }
 0x3ff   :  { %8719 = vmatpush.bf16.msrb.mxu1 %v12542_v4  ;;  %8731 = vmatpush.bf16.msrb.mxu2 %v10502_v10  ;;  %v14878_v4 = vld [vmem:[#allocation5 + $0x233c] sm:$0xf]  ;;  %v13133_v10 = vld [vmem:[#allocation5 + $0x1ea8] sm:$0xf]  ;;  %v11386_v13 = vor.u32 %v14294_v0, %v11383_v1  ;;  %v13892_v1 = vld [vmem:[#allocation5 + $0x468] sm:$0xf0] }
 0x400   :  { %8744 = vmatpush.bf16.msrb.mxu3 %v12838_v11  ;;  %v14768_v11 = vld [vmem:[#allocation5 + $0x1fc8] sm:$0xf0]  ;;  %v9629_v0 = vld [vmem:[#allocation5 + $0x348] sm:$0xf] }
 0x401   :  { %v13134_v20 = vor.u32 %v14768_v11, %v13133_v10  ;;  %v9337_v10 = vld [vmem:[#allocation5 + $0x100] sm:$0xf]  ;;  %v14513_v11 = vld [vmem:[#allocation5 + $0x17d4] sm:$0xf] }
 0x402   :  { %8707 = vmatpush.bf16.msrb.mxu0 %v9914_v14  ;;  %v13722_v14 = vor.u32 %v14878_v4, %v13719_v5  ;;  %v10218_v4 = vor.u32 %v14002_v56, %v10215_v57  ;;  %v12554_v5 = vor.u32 %v14586_v60, %v12551_v61  ;;  %v9338_v26 = vor.u32 %v13819_v15, %v9337_v10  ;;  %v14222_v60 = vld [vmem:[#allocation5 + $0xebc] sm:$0xf]  ;;  %v11099_v61 = vld [vmem:[#allocation5 + $0xfdc] sm:$0xf0]  ;;  %v13143_v15 = vld [vmem:[#allocation5 + $0x1fd4] sm:$0xf0] }
 0x403   :  { %8720 = vmatpush.bf16.msrb.mxu1 %v12250_v17  ;;  %8732 = vmatpush.bf16.msrb.mxu2 %v10210_v22  ;;  %v10798_v17 = vor.u32 %v14184_v8, %v10797_v7  ;;  %v14111_v22 = vld [vmem:[#allocation5 + $0xb40] sm:$0xf0]  ;;  %v9923_v7 = vld [vmem:[#allocation5 + $0x6b4] sm:$0xf0] }
 0x404   :  { %8745 = vmatpush.bf16.msrb.mxu3 %v12546_v23  ;;  %v12841_v23 = vld [vmem:[#allocation5 + $0x1c60] sm:$0xf]  ;;  %v10506_v31 = vor.u32 %v14111_v22, %v10505_v21  ;;  %v14915_v22 = vld [vmem:[#allocation5 + $0x2460] sm:$0xf0] }
 0x405   :  { %v12842_v34 = vor.u32 %v14695_v24, %v12841_v23  ;;  %v13856_v24 = vld [vmem:[#allocation5 + $0x34c] sm:$0xf] }
 0x406   :  { %8708 = vmatpush.bf16.msrb.mxu0 %v9622_v27  ;;  %v8492_v27 = vpop.f32.mrf.mxu3 }
 0x407   :  { %8721 = vmatpush.bf16.msrb.mxu1 %v11958_v32  ;;  %8733 = vmatpush.bf16.msrb.mxu2 %v9918_v39  ;;  %v14732_v32 = vld [vmem:[#allocation5 + $0x1eac] sm:$0xf]  ;;  %v10802_v39 = vor.u32 %v14148_v29, %v10799_v30  ;;  %v11390_v30 = vor.u32 %v14331_v19, %v11389_v18  ;;  %v14039_v18 = vld [vmem:[#allocation5 + $0x900] sm:$0xf0]  ;;  %v12557_v19 = vld [vmem:[#allocation5 + $0x1a20] sm:$0xf] }
 0x408   :  { %8746 = vmatpush.bf16.msrb.mxu3 %v12254_v41  ;;  %v13138_v40 = vor.u32 %v14732_v32, %v13135_v33  ;;  %v14075_v41 = vld [vmem:[#allocation5 + $0xa24] sm:$0xf]  ;;  %v14440_v27 = vld [vmem:[#allocation5 + $0x158c] sm:$0xf]  ;;  %v14258_v33 = vld [vmem:[#allocation5 + $0xfd8] sm:$0xf0] }
 0x40a   :  { %8709 = vmatpush.bf16.msrb.mxu0 %v9330_v44  ;;  %v8503_v43 = vpop.f32.mrf.mxu0  ;;  %v10214_v44 = vor.u32 %v14038_v36, %v10213_v35  ;;  %v14842_v35 = vld [vmem:[#allocation5 + $0x2218] sm:$0xf0] }
 0x40b   :  { %8722 = vmatpush.bf16.msrb.mxu1 %v11666_v47  ;;  %8734 = vmatpush.bf16.msrb.mxu2 %v9626_v54  ;;  %v8516_v47 = vpop.f32.mrf.mxu1  ;;  %v10510_v54 = vor.u32 %v14075_v41, %v10507_v42 }
 0x40c   :  { %8747 = vmatpush.bf16.msrb.mxu3 %v11962_v55  ;;  %v8517_v51 = vadd.f32 %v8516_v47, %v8503_v43  ;;  %v12846_v55 = vor.u32 %v14659_v45, %v12843_v46  ;;  %v11675_v43 = vld [vmem:[#allocation5 + $0x1464] sm:$0xf0] }
 0x40d   :  { %8710 = vmatmul.bf16.vlgmr.msrb.gmra.mxu0 %v15028_v59  ;;  %v11391_v45 = vld [vmem:[#allocation5 + $0x1224] sm:$0xf0] }
 0x40e   :  { %8754 = vmatpush.bf16.msra.mxu0 %v11382_v48  ;;  %8723 = vmatmul.bf16.vlgmr.msrb.gmra.mxu1 %v15030_v63  ;;  %v12550_v48 = vor.u32 %v14622_v38, %v12549_v37  ;;  %9042 = vst [vmem:[#allocation7 + $0x1b0] sm:$0xff] %v8517_v51  ;;  %v13783_v38 = vld [vmem:[#allocation5 + $0x104] sm:$0xf]  ;;  %v10805_v51 = vld [vmem:[#allocation5 + $0xc70] sm:$0xf] }
 0x40f   :  { %8767 = vmatpush.bf16.msra.mxu1 %v13718_v50  ;;  %8735 = vmatpush.bf16.msrb.mxu2 %v9334_v9  ;;  %v13965_v50 = vld [vmem:[#allocation5 + $0x6b0] sm:$0xf0]  ;;  %v9630_v9 = vor.u32 %v13892_v1, %v9629_v0  ;;  %v14806_v0 = vld [vmem:[#allocation5 + $0x20fc] sm:$0xf]  ;;  %v13435_v1 = vld [vmem:[#allocation5 + $0x221c] sm:$0xf0] }
 0x410   :  { %8748 = vmatpush.bf16.msrb.mxu3 %v11670_v12  ;;  %v9922_v58 = vor.u32 %v13965_v50, %v9921_v49  ;;  %v12259_v12 = vld [vmem:[#allocation5 + $0x18f4] sm:$0xf0]  ;;  %v13727_v49 = vld [vmem:[#allocation5 + $0x2464] sm:$0xf0]  ;;  %v13438_v10 = vor.u32 %v14806_v0, %v13435_v1  ;;  %v14332_v1 = vld [vmem:[#allocation5 + $0x1228] sm:$0xf0] }
 0x411   :  { %v12262_v23 = vor.u32 %v14513_v11, %v12259_v12  ;;  %v14149_v11 = vld [vmem:[#allocation5 + $0xc74] sm:$0xf]  ;;  %v10807_v12 = vld [vmem:[#allocation5 + $0xd94] sm:$0xf0]  ;;  %v11397_v0 = vld [vmem:[#allocation5 + $0x1108] sm:$0xf] }
 0x412   :  { %8755 = vmatpush.bf16.msra.mxu0 %v11090_v3  ;;  %8736 = vmatmul.bf16.vlgmr.msrb.gmra.mxu2 %v15028_v59  ;;  %v14476_v3 = vld [vmem:[#allocation5 + $0x16a8] sm:$0xf0]  ;;  %v8505_v8 = vpop.f32.mrf.mxu0 }
 0x413   :  { %8768 = vmatpush.bf16.msra.mxu1 %v13426_v6  ;;  %8780 = vmatpush.bf16.msra.mxu2 %v11386_v13  ;;  %v13929_v6 = vld [vmem:[#allocation5 + $0x594] sm:$0xf]  ;;  %v8518_v13 = vpop.f32.mrf.mxu1 }
 0x414   :  { %8793 = vmatpush.bf16.msra.mxu3 %v13722_v14  ;;  %v11966_v14 = vor.u32 %v14476_v3, %v11965_v2  ;;  %v9926_v21 = vor.u32 %v13929_v6, %v9923_v7  ;;  %v10513_v3 = vld [vmem:[#allocation5 + $0xa28] sm:$0xf]  ;;  %v14696_v6 = vld [vmem:[#allocation5 + $0x1d88] sm:$0xf0]  ;;  %v11102_v7 = vor.u32 %v14222_v60, %v11099_v61 }
 0x415   :  { %8749 = vmatmul.bf16.vlgmr.msrb.gmra.mxu3 %v15030_v63  ;;  %v8529_v41 = vpop.f32.mrf.mxu2  ;;  %v13820_v60 = vld [vmem:[#allocation5 + $0x228] sm:$0xf0]  ;;  %v11681_v61 = vld [vmem:[#allocation5 + $0x1348] sm:$0xf] }
 0x416   :  { %8756 = vmatpush.bf16.msra.mxu0 %v10798_v17  ;;  %v14403_v17 = vld [vmem:[#allocation5 + $0x1460] sm:$0xf0] }
 0x417   :  { %8769 = vmatpush.bf16.msra.mxu1 %v13134_v20  ;;  %8781 = vmatpush.bf16.msra.mxu2 %v11094_v25  ;;  %v13725_v20 = vld [vmem:[#allocation5 + $0x2340] sm:$0xf]  ;;  %v9631_v25 = vld [vmem:[#allocation5 + $0x46c] sm:$0xf0]  ;;  %v11674_v29 = vor.u32 %v14403_v17, %v11673_v16 }
 0x418   :  { %8794 = vmatpush.bf16.msra.mxu3 %v13430_v28  ;;  %v11967_v28 = vld [vmem:[#allocation5 + $0x16ac] sm:$0xf0]  ;;  %v13726_v32 = vor.u32 %v14915_v22, %v13725_v20  ;;  %v9634_v36 = vor.u32 %v13856_v24, %v9631_v25  ;;  %v8542_v42 = vpop.f32.mrf.mxu3  ;;  %v10221_v17 = vld [vmem:[#allocation5 + $0x7e0] sm:$0xf]  ;;  %v14623_v20 = vld [vmem:[#allocation5 + $0x1b40] sm:$0xf0] }
 0x419   :  { %v11970_v37 = vor.u32 %v14440_v27, %v11967_v28  ;;  %v8543_v46 = vadd.f32 %v8542_v42, %v8529_v41  ;;  %v10515_v24 = vld [vmem:[#allocation5 + $0xb4c] sm:$0xf0]  ;;  %v14660_v27 = vld [vmem:[#allocation5 + $0x1c6c] sm:$0xf]  ;;  %v14587_v41 = vld [vmem:[#allocation5 + $0x1a24] sm:$0xf] }
 0x41a   :  { %8757 = vmatpush.bf16.msra.mxu0 %v10506_v31  ;;  %v11097_v31 = vld [vmem:[#allocation5 + $0xeb8] sm:$0xf]  ;;  %v12851_v28 = vld [vmem:[#allocation5 + $0x1d8c] sm:$0xf0]  ;;  %v12559_v42 = vld [vmem:[#allocation5 + $0x1b44] sm:$0xf0] }
 0x41b   :  { %8770 = vmatpush.bf16.msra.mxu1 %v12842_v34  ;;  %8782 = vmatpush.bf16.msra.mxu2 %v10802_v39  ;;  %v13433_v34 = vld [vmem:[#allocation5 + $0x20f8] sm:$0xf]  ;;  %v9339_v39 = vld [vmem:[#allocation5 + $0x224] sm:$0xf0]  ;;  %v11098_v47 = vor.u32 %v14258_v33, %v11097_v31  ;;  %9043 = vst [vmem:[#allocation7 + $0x1b8] sm:$0xff] %v8543_v46 }
 0x41c   :  { %8795 = vmatpush.bf16.msra.mxu3 %v13138_v40  ;;  %v14367_v40 = vld [vmem:[#allocation5 + $0x1344] sm:$0xf]  ;;  %v13434_v50 = vor.u32 %v14842_v35, %v13433_v34  ;;  %v9342_v53 = vor.u32 %v13783_v38, %v9339_v39  ;;  %v9929_v31 = vld [vmem:[#allocation5 + $0x598] sm:$0xf]  ;;  %v14550_v35 = vld [vmem:[#allocation5 + $0x18f8] sm:$0xf0] }
 0x41d   :  { %v11678_v56 = vor.u32 %v14367_v40, %v11675_v43  ;;  %v8531_v8 = vpop.f32.mrf.mxu2  ;;  %v12265_v34 = vld [vmem:[#allocation5 + $0x17d8] sm:$0xf]  ;;  %v14003_v38 = vld [vmem:[#allocation5 + $0x7e4] sm:$0xf]  ;;  %v10223_v39 = vld [vmem:[#allocation5 + $0x904] sm:$0xf0] }
 0x41e   :  { %8758 = vmatpush.bf16.msra.mxu0 %v10214_v44  ;;  %v14295_v44 = vld [vmem:[#allocation5 + $0x1104] sm:$0xf]  ;;  %v12266_v43 = vor.u32 %v14550_v35, %v12265_v34  ;;  %v11973_v46 = vld [vmem:[#allocation5 + $0x1590] sm:$0xf]  ;;  %v14186_v34 = vld [vmem:[#allocation5 + $0xd98] sm:$0xf0] }
 0x41f   :  { %8771 = vmatpush.bf16.msra.mxu1 %v12550_v48  ;;  %8783 = vmatpush.bf16.msra.mxu2 %v10510_v54  ;;  %v14879_v48 = vld [vmem:[#allocation5 + $0x2344] sm:$0xf]  ;;  %v13141_v54 = vld [vmem:[#allocation5 + $0x1eb0] sm:$0xf]  ;;  %v11394_v57 = vor.u32 %v14295_v44, %v11391_v45  ;;  %v13893_v45 = vld [vmem:[#allocation5 + $0x470] sm:$0xf0] }
 0x420   :  { %8796 = vmatpush.bf16.msra.mxu3 %v12846_v55  ;;  %v14769_v55 = vld [vmem:[#allocation5 + $0x1fd0] sm:$0xf0]  ;;  %v9637_v44 = vld [vmem:[#allocation5 + $0x350] sm:$0xf] }
 0x421   :  { %v13142_v2 = vor.u32 %v14769_v55, %v13141_v54  ;;  %v9345_v54 = vld [vmem:[#allocation5 + $0x108] sm:$0xf]  ;;  %v14514_v55 = vld [vmem:[#allocation5 + $0x17dc] sm:$0xf] }
 0x422   :  { %8759 = vmatpush.bf16.msra.mxu0 %v9922_v58  ;;  %v13730_v58 = vor.u32 %v14879_v48, %v13727_v49  ;;  %v10226_v48 = vor.u32 %v14003_v38, %v10223_v39  ;;  %v12562_v49 = vor.u32 %v14587_v41, %v12559_v42  ;;  %v9346_v8 = vor.u32 %v13820_v60, %v9345_v54  ;;  %v14223_v41 = vld [vmem:[#allocation5 + $0xec4] sm:$0xf]  ;;  %v11107_v42 = vld [vmem:[#allocation5 + $0xfe4] sm:$0xf0]  ;;  %v13151_v60 = vld [vmem:[#allocation5 + $0x1fdc] sm:$0xf0] }
 0x423   :  { %8772 = vmatpush.bf16.msra.mxu1 %v12258_v62  ;;  %8784 = vmatpush.bf16.msra.mxu2 %v10218_v4  ;;  %v10806_v62 = vor.u32 %v14185_v52, %v10805_v51  ;;  %v14112_v4 = vld [vmem:[#allocation5 + $0xb48] sm:$0xf0]  ;;  %v9931_v51 = vld [vmem:[#allocation5 + $0x6bc] sm:$0xf0] }
 0x424   :  { %8797 = vmatpush.bf16.msra.mxu3 %v12554_v5  ;;  %v12849_v5 = vld [vmem:[#allocation5 + $0x1c68] sm:$0xf]  ;;  %v10514_v13 = vor.u32 %v14112_v4, %v10513_v3  ;;  %v14916_v4 = vld [vmem:[#allocation5 + $0x2468] sm:$0xf0] }
 0x425   :  { %v12850_v16 = vor.u32 %v14696_v6, %v12849_v5  ;;  %v13857_v6 = vld [vmem:[#allocation5 + $0x354] sm:$0xf] }
 0x426   :  { %8760 = vmatpush.bf16.msra.mxu0 %v9630_v9  ;;  %v8544_v9 = vpop.f32.mrf.mxu3 }
 0x427   :  { %8773 = vmatpush.bf16.msra.mxu1 %v11966_v14  ;;  %8785 = vmatpush.bf16.msra.mxu2 %v9926_v21  ;;  %v14733_v14 = vld [vmem:[#allocation5 + $0x1eb4] sm:$0xf]  ;;  %v10810_v21 = vor.u32 %v14149_v11, %v10807_v12  ;;  %v11398_v12 = vor.u32 %v14332_v1, %v11397_v0  ;;  %v14040_v0 = vld [vmem:[#allocation5 + $0x908] sm:$0xf0]  ;;  %v12565_v1 = vld [vmem:[#allocation5 + $0x1a28] sm:$0xf] }
 0x428   :  { %8798 = vmatpush.bf16.msra.mxu3 %v12262_v23  ;;  %v13146_v22 = vor.u32 %v14733_v14, %v13143_v15  ;;  %v14076_v23 = vld [vmem:[#allocation5 + $0xa2c] sm:$0xf]  ;;  %v14441_v9 = vld [vmem:[#allocation5 + $0x1594] sm:$0xf]  ;;  %v14259_v15 = vld [vmem:[#allocation5 + $0xfe0] sm:$0xf0] }
 0x42a   :  { %8761 = vmatpush.bf16.msra.mxu0 %v9338_v26  ;;  %v8555_v25 = vpop.f32.mrf.mxu0  ;;  %v10222_v26 = vor.u32 %v14039_v18, %v10221_v17  ;;  %v14843_v17 = vld [vmem:[#allocation5 + $0x2220] sm:$0xf0] }
 0x42b   :  { %8774 = vmatpush.bf16.msra.mxu1 %v11674_v29  ;;  %8786 = vmatpush.bf16.msra.mxu2 %v9634_v36  ;;  %v8568_v29 = vpop.f32.mrf.mxu1  ;;  %v10518_v36 = vor.u32 %v14076_v23, %v10515_v24 }
 0x42c   :  { %8799 = vmatpush.bf16.msra.mxu3 %v11970_v37  ;;  %v8569_v33 = vadd.f32 %v8568_v29, %v8555_v25  ;;  %v12854_v37 = vor.u32 %v14660_v27, %v12851_v28  ;;  %v11683_v25 = vld [vmem:[#allocation5 + $0x146c] sm:$0xf0] }
 0x42d   :  { %8762 = vmatmul.bf16.vlgmr.msra.gmra.mxu0 %v15028_v59  ;;  %v11399_v27 = vld [vmem:[#allocation5 + $0x122c] sm:$0xf0] }
 0x42e   :  { %8806 = vmatpush.bf16.msrb.mxu0 %v11390_v30  ;;  %8775 = vmatmul.bf16.vlgmr.msra.gmra.mxu1 %v15030_v63  ;;  %v12558_v30 = vor.u32 %v14623_v20, %v12557_v19  ;;  %9044 = vst [vmem:[#allocation7 + $0x1c0] sm:$0xff] %v8569_v33  ;;  %v13784_v20 = vld [vmem:[#allocation5 + $0x10c] sm:$0xf]  ;;  %v10813_v33 = vld [vmem:[#allocation5 + $0xc78] sm:$0xf] }
 0x42f   :  { %8819 = vmatpush.bf16.msrb.mxu1 %v13726_v32  ;;  %8787 = vmatpush.bf16.msra.mxu2 %v9342_v53  ;;  %v13966_v32 = vld [vmem:[#allocation5 + $0x6b8] sm:$0xf0]  ;;  %v9638_v53 = vor.u32 %v13893_v45, %v9637_v44  ;;  %v14807_v44 = vld [vmem:[#allocation5 + $0x2104] sm:$0xf]  ;;  %v13443_v45 = vld [vmem:[#allocation5 + $0x2224] sm:$0xf0] }
 0x430   :  { %8800 = vmatpush.bf16.msra.mxu3 %v11678_v56  ;;  %v9930_v40 = vor.u32 %v13966_v32, %v9929_v31  ;;  %v12267_v56 = vld [vmem:[#allocation5 + $0x18fc] sm:$0xf0]  ;;  %v13735_v31 = vld [vmem:[#allocation5 + $0x246c] sm:$0xf0]  ;;  %v13446_v54 = vor.u32 %v14807_v44, %v13443_v45  ;;  %v14333_v45 = vld [vmem:[#allocation5 + $0x1230] sm:$0xf0] }
 0x431   :  { %v12270_v5 = vor.u32 %v14514_v55, %v12267_v56  ;;  %v14150_v55 = vld [vmem:[#allocation5 + $0xc7c] sm:$0xf]  ;;  %v10815_v56 = vld [vmem:[#allocation5 + $0xd9c] sm:$0xf0]  ;;  %v11405_v44 = vld [vmem:[#allocation5 + $0x1110] sm:$0xf] }
 0x432   :  { %8807 = vmatpush.bf16.msrb.mxu0 %v11098_v47  ;;  %8788 = vmatmul.bf16.vlgmr.msra.gmra.mxu2 %v15028_v59  ;;  %v14477_v47 = vld [vmem:[#allocation5 + $0x16b0] sm:$0xf0]  ;;  %v8557_v52 = vpop.f32.mrf.mxu0 }
 0x433   :  { %8820 = vmatpush.bf16.msrb.mxu1 %v13434_v50  ;;  %8832 = vmatpush.bf16.msrb.mxu2 %v11394_v57  ;;  %v13930_v50 = vld [vmem:[#allocation5 + $0x59c] sm:$0xf]  ;;  %v8570_v57 = vpop.f32.mrf.mxu1 }
 0x434   :  { %8845 = vmatpush.bf16.msrb.mxu3 %v13730_v58  ;;  %v11974_v58 = vor.u32 %v14477_v47, %v11973_v46  ;;  %v9934_v3 = vor.u32 %v13930_v50, %v9931_v51  ;;  %v10521_v47 = vld [vmem:[#allocation5 + $0xa30] sm:$0xf]  ;;  %v14697_v50 = vld [vmem:[#allocation5 + $0x1d90] sm:$0xf0]  ;;  %v11110_v51 = vor.u32 %v14223_v41, %v11107_v42 }
 0x435   :  { %8801 = vmatmul.bf16.vlgmr.msra.gmra.mxu3 %v15030_v63  ;;  %v8581_v23 = vpop.f32.mrf.mxu2  ;;  %v13821_v41 = vld [vmem:[#allocation5 + $0x230] sm:$0xf0]  ;;  %v11689_v42 = vld [vmem:[#allocation5 + $0x1350] sm:$0xf] }
 0x436   :  { %8808 = vmatpush.bf16.msrb.mxu0 %v10806_v62  ;;  %v14404_v62 = vld [vmem:[#allocation5 + $0x1468] sm:$0xf0] }
 0x437   :  { %8821 = vmatpush.bf16.msrb.mxu1 %v13142_v2  ;;  %8833 = vmatpush.bf16.msrb.mxu2 %v11102_v7  ;;  %v13733_v2 = vld [vmem:[#allocation5 + $0x2348] sm:$0xf]  ;;  %v9639_v7 = vld [vmem:[#allocation5 + $0x474] sm:$0xf0]  ;;  %v11682_v11 = vor.u32 %v14404_v62, %v11681_v61 }
 0x438   :  { %8846 = vmatpush.bf16.msrb.mxu3 %v13438_v10  ;;  %v11975_v10 = vld [vmem:[#allocation5 + $0x16b4] sm:$0xf0]  ;;  %v13734_v14 = vor.u32 %v14916_v4, %v13733_v2  ;;  %v9642_v18 = vor.u32 %v13857_v6, %v9639_v7  ;;  %v8594_v24 = vpop.f32.mrf.mxu3  ;;  %v10229_v62 = vld [vmem:[#allocation5 + $0x7e8] sm:$0xf]  ;;  %v14624_v2 = vld [vmem:[#allocation5 + $0x1b48] sm:$0xf0] }
 0x439   :  { %v11978_v19 = vor.u32 %v14441_v9, %v11975_v10  ;;  %v8595_v28 = vadd.f32 %v8594_v24, %v8581_v23  ;;  %v10523_v6 = vld [vmem:[#allocation5 + $0xb54] sm:$0xf0]  ;;  %v14661_v9 = vld [vmem:[#allocation5 + $0x1c74] sm:$0xf]  ;;  %v14588_v23 = vld [vmem:[#allocation5 + $0x1a2c] sm:$0xf] }
 0x43a   :  { %8809 = vmatpush.bf16.msrb.mxu0 %v10514_v13  ;;  %v11105_v13 = vld [vmem:[#allocation5 + $0xec0] sm:$0xf]  ;;  %v12859_v10 = vld [vmem:[#allocation5 + $0x1d94] sm:$0xf0]  ;;  %v12567_v24 = vld [vmem:[#allocation5 + $0x1b4c] sm:$0xf0] }
 0x43b   :  { %8822 = vmatpush.bf16.msrb.mxu1 %v12850_v16  ;;  %8834 = vmatpush.bf16.msrb.mxu2 %v10810_v21  ;;  %v13441_v16 = vld [vmem:[#allocation5 + $0x2100] sm:$0xf]  ;;  %v9347_v21 = vld [vmem:[#allocation5 + $0x22c] sm:$0xf0]  ;;  %v11106_v29 = vor.u32 %v14259_v15, %v11105_v13  ;;  %9045 = vst [vmem:[#allocation7 + $0x1c8] sm:$0xff] %v8595_v28 }
 0x43c   :  { %8847 = vmatpush.bf16.msrb.mxu3 %v13146_v22  ;;  %v14368_v22 = vld [vmem:[#allocation5 + $0x134c] sm:$0xf]  ;;  %v13442_v32 = vor.u32 %v14843_v17, %v13441_v16  ;;  %v9350_v35 = vor.u32 %v13784_v20, %v9347_v21  ;;  %v9937_v13 = vld [vmem:[#allocation5 + $0x5a0] sm:$0xf]  ;;  %v14551_v17 = vld [vmem:[#allocation5 + $0x1900] sm:$0xf0] }
 0x43d   :  { %v11686_v38 = vor.u32 %v14368_v22, %v11683_v25  ;;  %v8583_v52 = vpop.f32.mrf.mxu2  ;;  %v12273_v16 = vld [vmem:[#allocation5 + $0x17e0] sm:$0xf]  ;;  %v14004_v20 = vld [vmem:[#allocation5 + $0x7ec] sm:$0xf]  ;;  %v10231_v21 = vld [vmem:[#allocation5 + $0x90c] sm:$0xf0] }
 0x43e   :  { %8810 = vmatpush.bf16.msrb.mxu0 %v10222_v26  ;;  %v14296_v26 = vld [vmem:[#allocation5 + $0x110c] sm:$0xf]  ;;  %v12274_v25 = vor.u32 %v14551_v17, %v12273_v16  ;;  %v11981_v28 = vld [vmem:[#allocation5 + $0x1598] sm:$0xf]  ;;  %v14187_v16 = vld [vmem:[#allocation5 + $0xda0] sm:$0xf0] }
 0x43f   :  { %8823 = vmatpush.bf16.msrb.mxu1 %v12558_v30  ;;  %8835 = vmatpush.bf16.msrb.mxu2 %v10518_v36  ;;  %v14880_v30 = vld [vmem:[#allocation5 + $0x234c] sm:$0xf]  ;;  %v13149_v36 = vld [vmem:[#allocation5 + $0x1eb8] sm:$0xf]  ;;  %v11402_v39 = vor.u32 %v14296_v26, %v11399_v27  ;;  %v13894_v27 = vld [vmem:[#allocation5 + $0x478] sm:$0xf0] }
 0x440   :  { %8848 = vmatpush.bf16.msrb.mxu3 %v12854_v37  ;;  %v14770_v37 = vld [vmem:[#allocation5 + $0x1fd8] sm:$0xf0]  ;;  %v9645_v26 = vld [vmem:[#allocation5 + $0x358] sm:$0xf] }
 0x441   :  { %v13150_v46 = vor.u32 %v14770_v37, %v13149_v36  ;;  %v9353_v36 = vld [vmem:[#allocation5 + $0x110] sm:$0xf]  ;;  %v14515_v37 = vld [vmem:[#allocation5 + $0x17e4] sm:$0xf] }
 0x442   :  { %8811 = vmatpush.bf16.msrb.mxu0 %v9930_v40  ;;  %v13738_v40 = vor.u32 %v14880_v30, %v13735_v31  ;;  %v10234_v30 = vor.u32 %v14004_v20, %v10231_v21  ;;  %v12570_v31 = vor.u32 %v14588_v23, %v12567_v24  ;;  %v9354_v52 = vor.u32 %v13821_v41, %v9353_v36  ;;  %v14224_v23 = vld [vmem:[#allocation5 + $0xecc] sm:$0xf]  ;;  %v11115_v24 = vld [vmem:[#allocation5 + $0xfec] sm:$0xf0]  ;;  %v13159_v41 = vld [vmem:[#allocation5 + $0x1fe4] sm:$0xf0] }
 0x443   :  { %8824 = vmatpush.bf16.msrb.mxu1 %v12266_v43  ;;  %8836 = vmatpush.bf16.msrb.mxu2 %v10226_v48  ;;  %v10814_v43 = vor.u32 %v14186_v34, %v10813_v33  ;;  %v14113_v48 = vld [vmem:[#allocation5 + $0xb50] sm:$0xf0]  ;;  %v9939_v33 = vld [vmem:[#allocation5 + $0x6c4] sm:$0xf0] }
 0x444   :  { %8849 = vmatpush.bf16.msrb.mxu3 %v12562_v49  ;;  %v12857_v49 = vld [vmem:[#allocation5 + $0x1c70] sm:$0xf]  ;;  %v10522_v57 = vor.u32 %v14113_v48, %v10521_v47  ;;  %v14917_v48 = vld [vmem:[#allocation5 + $0x2470] sm:$0xf0] }
 0x445   :  { %v12858_v61 = vor.u32 %v14697_v50, %v12857_v49  ;;  %v13858_v50 = vld [vmem:[#allocation5 + $0x35c] sm:$0xf] }
 0x446   :  { %8812 = vmatpush.bf16.msrb.mxu0 %v9638_v53  ;;  %v8596_v53 = vpop.f32.mrf.mxu3 }
 0x447   :  { %8825 = vmatpush.bf16.msrb.mxu1 %v11974_v58  ;;  %8837 = vmatpush.bf16.msrb.mxu2 %v9934_v3  ;;  %v14734_v58 = vld [vmem:[#allocation5 + $0x1ebc] sm:$0xf]  ;;  %v10818_v3 = vor.u32 %v14150_v55, %v10815_v56  ;;  %v11406_v56 = vor.u32 %v14333_v45, %v11405_v44  ;;  %v14041_v44 = vld [vmem:[#allocation5 + $0x910] sm:$0xf0]  ;;  %v12573_v45 = vld [vmem:[#allocation5 + $0x1a30] sm:$0xf] }
 0x448   :  { %8850 = vmatpush.bf16.msrb.mxu3 %v12270_v5  ;;  %v13154_v4 = vor.u32 %v14734_v58, %v13151_v60  ;;  %v14077_v5 = vld [vmem:[#allocation5 + $0xa34] sm:$0xf]  ;;  %v14442_v53 = vld [vmem:[#allocation5 + $0x159c] sm:$0xf]  ;;  %v14260_v60 = vld [vmem:[#allocation5 + $0xfe8] sm:$0xf0] }
 0x44a   :  { %8813 = vmatpush.bf16.msrb.mxu0 %v9346_v8  ;;  %v8607_v7 = vpop.f32.mrf.mxu0  ;;  %v10230_v8 = vor.u32 %v14040_v0, %v10229_v62  ;;  %v14844_v62 = vld [vmem:[#allocation5 + $0x2228] sm:$0xf0] }
 0x44b   :  { %8826 = vmatpush.bf16.msrb.mxu1 %v11682_v11  ;;  %8838 = vmatpush.bf16.msrb.mxu2 %v9642_v18  ;;  %v8620_v11 = vpop.f32.mrf.mxu1  ;;  %v10526_v18 = vor.u32 %v14077_v5, %v10523_v6 }
 0x44c   :  { %8851 = vmatpush.bf16.msrb.mxu3 %v11978_v19  ;;  %v8621_v15 = vadd.f32 %v8620_v11, %v8607_v7  ;;  %v12862_v19 = vor.u32 %v14661_v9, %v12859_v10  ;;  %v11691_v7 = vld [vmem:[#allocation5 + $0x1474] sm:$0xf0] }
 0x44d   :  { %8814 = vmatmul.bf16.vlgmr.msrb.gmra.mxu0 %v15028_v59  ;;  %v11407_v9 = vld [vmem:[#allocation5 + $0x1234] sm:$0xf0] }
 0x44e   :  { %8858 = vmatpush.bf16.msra.mxu0 %v11398_v12  ;;  %8827 = vmatmul.bf16.vlgmr.msrb.gmra.mxu1 %v15030_v63  ;;  %v12566_v12 = vor.u32 %v14624_v2, %v12565_v1  ;;  %9046 = vst [vmem:[#allocation7 + $0x1d0] sm:$0xff] %v8621_v15  ;;  %v13785_v2 = vld [vmem:[#allocation5 + $0x114] sm:$0xf]  ;;  %v10821_v15 = vld [vmem:[#allocation5 + $0xc80] sm:$0xf] }
 0x44f   :  { %8871 = vmatpush.bf16.msra.mxu1 %v13734_v14  ;;  %8839 = vmatpush.bf16.msrb.mxu2 %v9350_v35  ;;  %v13967_v14 = vld [vmem:[#allocation5 + $0x6c0] sm:$0xf0]  ;;  %v9646_v35 = vor.u32 %v13894_v27, %v9645_v26  ;;  %v14808_v26 = vld [vmem:[#allocation5 + $0x210c] sm:$0xf]  ;;  %v13451_v27 = vld [vmem:[#allocation5 + $0x222c] sm:$0xf0] }
 0x450   :  { %8852 = vmatpush.bf16.msrb.mxu3 %v11686_v38  ;;  %v9938_v22 = vor.u32 %v13967_v14, %v9937_v13  ;;  %v12275_v38 = vld [vmem:[#allocation5 + $0x1904] sm:$0xf0]  ;;  %v13743_v13 = vld [vmem:[#allocation5 + $0x2474] sm:$0xf0]  ;;  %v13454_v36 = vor.u32 %v14808_v26, %v13451_v27  ;;  %v14334_v27 = vld [vmem:[#allocation5 + $0x1238] sm:$0xf0] }
 0x451   :  { %v12278_v49 = vor.u32 %v14515_v37, %v12275_v38  ;;  %v14151_v37 = vld [vmem:[#allocation5 + $0xc84] sm:$0xf]  ;;  %v10823_v38 = vld [vmem:[#allocation5 + $0xda4] sm:$0xf0]  ;;  %v11413_v26 = vld [vmem:[#allocation5 + $0x1118] sm:$0xf] }
 0x452   :  { %8859 = vmatpush.bf16.msra.mxu0 %v11106_v29  ;;  %8840 = vmatmul.bf16.vlgmr.msrb.gmra.mxu2 %v15028_v59  ;;  %v14478_v29 = vld [vmem:[#allocation5 + $0x16b8] sm:$0xf0]  ;;  %v8609_v34 = vpop.f32.mrf.mxu0 }
 0x453   :  { %8872 = vmatpush.bf16.msra.mxu1 %v13442_v32  ;;  %8884 = vmatpush.bf16.msra.mxu2 %v11402_v39  ;;  %v13931_v32 = vld [vmem:[#allocation5 + $0x5a4] sm:$0xf]  ;;  %v8622_v39 = vpop.f32.mrf.mxu1 }
 0x454   :  { %8897 = vmatpush.bf16.msra.mxu3 %v13738_v40  ;;  %v11982_v40 = vor.u32 %v14478_v29, %v11981_v28  ;;  %v9942_v47 = vor.u32 %v13931_v32, %v9939_v33  ;;  %v10529_v29 = vld [vmem:[#allocation5 + $0xa38] sm:$0xf]  ;;  %v14698_v32 = vld [vmem:[#allocation5 + $0x1d98] sm:$0xf0]  ;;  %v11118_v33 = vor.u32 %v14224_v23, %v11115_v24 }
 0x455   :  { %8853 = vmatmul.bf16.vlgmr.msrb.gmra.mxu3 %v15030_v63  ;;  %v8633_v5 = vpop.f32.mrf.mxu2  ;;  %v13822_v23 = vld [vmem:[#allocation5 + $0x238] sm:$0xf0]  ;;  %v11697_v24 = vld [vmem:[#allocation5 + $0x1358] sm:$0xf] }
 0x456   :  { %8860 = vmatpush.bf16.msra.mxu0 %v10814_v43  ;;  %v14405_v43 = vld [vmem:[#allocation5 + $0x1470] sm:$0xf0] }
 0x457   :  { %8873 = vmatpush.bf16.msra.mxu1 %v13150_v46  ;;  %8885 = vmatpush.bf16.msra.mxu2 %v11110_v51  ;;  %v13741_v46 = vld [vmem:[#allocation5 + $0x2350] sm:$0xf]  ;;  %v9647_v51 = vld [vmem:[#allocation5 + $0x47c] sm:$0xf0]  ;;  %v11690_v55 = vor.u32 %v14405_v43, %v11689_v42 }
 0x458   :  { %8898 = vmatpush.bf16.msra.mxu3 %v13446_v54  ;;  %v11983_v54 = vld [vmem:[#allocation5 + $0x16bc] sm:$0xf0]  ;;  %v13742_v58 = vor.u32 %v14917_v48, %v13741_v46  ;;  %v9650_v0 = vor.u32 %v13858_v50, %v9647_v51  ;;  %v8646_v6 = vpop.f32.mrf.mxu3  ;;  %v10237_v43 = vld [vmem:[#allocation5 + $0x7f0] sm:$0xf]  ;;  %v14625_v46 = vld [vmem:[#allocation5 + $0x1b50] sm:$0xf0] }
 0x459   :  { %v11986_v1 = vor.u32 %v14442_v53, %v11983_v54  ;;  %v8647_v10 = vadd.f32 %v8646_v6, %v8633_v5  ;;  %v10531_v50 = vld [vmem:[#allocation5 + $0xb5c] sm:$0xf0]  ;;  %v14662_v53 = vld [vmem:[#allocation5 + $0x1c7c] sm:$0xf]  ;;  %v14589_v5 = vld [vmem:[#allocation5 + $0x1a34] sm:$0xf] }
 0x45a   :  { %8861 = vmatpush.bf16.msra.mxu0 %v10522_v57  ;;  %v11113_v57 = vld [vmem:[#allocation5 + $0xec8] sm:$0xf]  ;;  %v12867_v54 = vld [vmem:[#allocation5 + $0x1d9c] sm:$0xf0]  ;;  %v12575_v6 = vld [vmem:[#allocation5 + $0x1b54] sm:$0xf0] }
 0x45b   :  { %8874 = vmatpush.bf16.msra.mxu1 %v12858_v61  ;;  %8886 = vmatpush.bf16.msra.mxu2 %v10818_v3  ;;  %v13449_v61 = vld [vmem:[#allocation5 + $0x2108] sm:$0xf]  ;;  %v9355_v3 = vld [vmem:[#allocation5 + $0x234] sm:$0xf0]  ;;  %v11114_v11 = vor.u32 %v14260_v60, %v11113_v57  ;;  %9047 = vst [vmem:[#allocation7 + $0x1d8] sm:$0xff] %v8647_v10 }
 0x45c   :  { %8899 = vmatpush.bf16.msra.mxu3 %v13154_v4  ;;  %v14369_v4 = vld [vmem:[#allocation5 + $0x1354] sm:$0xf]  ;;  %v13450_v14 = vor.u32 %v14844_v62, %v13449_v61  ;;  %v9358_v17 = vor.u32 %v13785_v2, %v9355_v3  ;;  %v9945_v57 = vld [vmem:[#allocation5 + $0x5a8] sm:$0xf]  ;;  %v14552_v62 = vld [vmem:[#allocation5 + $0x1908] sm:$0xf0] }
 0x45d   :  { %v11694_v20 = vor.u32 %v14369_v4, %v11691_v7  ;;  %v8635_v34 = vpop.f32.mrf.mxu2  ;;  %v12281_v61 = vld [vmem:[#allocation5 + $0x17e8] sm:$0xf]  ;;  %v14005_v2 = vld [vmem:[#allocation5 + $0x7f4] sm:$0xf]  ;;  %v10239_v3 = vld [vmem:[#allocation5 + $0x914] sm:$0xf0] }
 0x45e   :  { %8862 = vmatpush.bf16.msra.mxu0 %v10230_v8  ;;  %v14297_v8 = vld [vmem:[#allocation5 + $0x1114] sm:$0xf]  ;;  %v12282_v7 = vor.u32 %v14552_v62, %v12281_v61  ;;  %v11989_v10 = vld [vmem:[#allocation5 + $0x15a0] sm:$0xf] }
 0x45f   :  { %8875 = vmatpush.bf16.msra.mxu1 %v12566_v12  ;;  %8887 = vmatpush.bf16.msra.mxu2 %v10526_v18  ;;  %v14881_v12 = vld [vmem:[#allocation5 + $0x2354] sm:$0xf]  ;;  %v13157_v18 = vld [vmem:[#allocation5 + $0x1ec0] sm:$0xf]  ;;  %v11410_v21 = vor.u32 %v14297_v8, %v11407_v9  ;;  %v13895_v9 = vld [vmem:[#allocation5 + $0x480] sm:$0xf0] }
 0x460   :  { %8900 = vmatpush.bf16.msra.mxu3 %v12862_v19  ;;  %v14771_v19 = vld [vmem:[#allocation5 + $0x1fe0] sm:$0xf0]  ;;  %v9653_v8 = vld [vmem:[#allocation5 + $0x360] sm:$0xf] }
 0x461   :  { %v13158_v28 = vor.u32 %v14771_v19, %v13157_v18  ;;  %v9361_v18 = vld [vmem:[#allocation5 + $0x118] sm:$0xf]  ;;  %v14516_v19 = vld [vmem:[#allocation5 + $0x17ec] sm:$0xf] }
 0x462   :  { %8863 = vmatpush.bf16.msra.mxu0 %v9938_v22  ;;  %v13746_v22 = vor.u32 %v14881_v12, %v13743_v13  ;;  %v10242_v12 = vor.u32 %v14005_v2, %v10239_v3  ;;  %v12578_v13 = vor.u32 %v14589_v5, %v12575_v6  ;;  %v9362_v34 = vor.u32 %v13822_v23, %v9361_v18  ;;  %v14115_v2 = vld [vmem:[#allocation5 + $0xb60] sm:$0xf0]  ;;  %v12873_v5 = vld [vmem:[#allocation5 + $0x1c80] sm:$0xf]  ;;  %v13969_v18 = vld [vmem:[#allocation5 + $0x6d0] sm:$0xf0] }
 0x463   :  { %8876 = vmatpush.bf16.msra.mxu1 %v12274_v25  ;;  %8888 = vmatpush.bf16.msra.mxu2 %v10234_v30  ;;  %v10822_v25 = vor.u32 %v14187_v16, %v10821_v15  ;;  %v14114_v30 = vld [vmem:[#allocation5 + $0xb58] sm:$0xf0]  ;;  %v9947_v15 = vld [vmem:[#allocation5 + $0x6cc] sm:$0xf0]  ;;  %v14699_v6 = vld [vmem:[#allocation5 + $0x1da0] sm:$0xf0] }
 0x464   :  { %8901 = vmatpush.bf16.msra.mxu3 %v12570_v31  ;;  %v12865_v31 = vld [vmem:[#allocation5 + $0x1c78] sm:$0xf]  ;;  %v10530_v39 = vor.u32 %v14114_v30, %v10529_v29  ;;  %v14918_v30 = vld [vmem:[#allocation5 + $0x2478] sm:$0xf0] }
 0x465   :  { %v12866_v42 = vor.u32 %v14698_v32, %v12865_v31  ;;  %v13859_v32 = vld [vmem:[#allocation5 + $0x364] sm:$0xf] }
 0x466   :  { %8864 = vmatpush.bf16.msra.mxu0 %v9646_v35  ;;  %v8648_v35 = vpop.f32.mrf.mxu3 }
 0x467   :  { %8877 = vmatpush.bf16.msra.mxu1 %v11982_v40  ;;  %8889 = vmatpush.bf16.msra.mxu2 %v9942_v47  ;;  %v14735_v40 = vld [vmem:[#allocation5 + $0x1ec4] sm:$0xf]  ;;  %v10826_v47 = vor.u32 %v14151_v37, %v10823_v38  ;;  %v11414_v38 = vor.u32 %v14334_v27, %v11413_v26  ;;  %v11997_v26 = vld [vmem:[#allocation5 + $0x15a8] sm:$0xf]  ;;  %v14480_v27 = vld [vmem:[#allocation5 + $0x16c8] sm:$0xf0] }
 0x468   :  { %8902 = vmatpush.bf16.msra.mxu3 %v12278_v49  ;;  %v13162_v48 = vor.u32 %v14735_v40, %v13159_v41  ;;  %v14078_v49 = vld [vmem:[#allocation5 + $0xa3c] sm:$0xf]  ;;  %v14443_v35 = vld [vmem:[#allocation5 + $0x15a4] sm:$0xf]  ;;  %v11121_v40 = vld [vmem:[#allocation5 + $0xed0] sm:$0xf] }
 0x469   :  { %v14261_v41 = vld [vmem:[#allocation5 + $0xff0] sm:$0xf0] }
 0x46a   :  { %8865 = vmatpush.bf16.msra.mxu0 %v9354_v52  ;;  %v8659_v51 = vpop.f32.mrf.mxu0  ;;  %v10238_v52 = vor.u32 %v14041_v44, %v10237_v43 }
 0x46b   :  { %8878 = vmatpush.bf16.msra.mxu1 %v11690_v55  ;;  %8890 = vmatpush.bf16.msra.mxu2 %v9650_v0  ;;  %v8672_v55 = vpop.f32.mrf.mxu1  ;;  %v10534_v0 = vor.u32 %v14078_v49, %v10531_v50  ;;  %v9363_v49 = vld [vmem:[#allocation5 + $0x23c] sm:$0xf0] }
 0x46c   :  { %8903 = vmatpush.bf16.msra.mxu3 %v11986_v1  ;;  %v8673_v60 = vadd.f32 %v8672_v55, %v8659_v51  ;;  %v12870_v1 = vor.u32 %v14662_v53, %v12867_v54  ;;  %v14370_v51 = vld [vmem:[#allocation5 + $0x135c] sm:$0xf]  ;;  %v11122_v53 = vor.u32 %v14261_v41, %v11121_v40  ;;  %v10829_v55 = vld [vmem:[#allocation5 + $0xc88] sm:$0xf] }
 0x46d   :  { %8866 = vmatmul.bf16.vlgmr.msra.gmra.mxu0 %v15028_v59 }
 0x46e   :  { %8910 = vmatpush.bf16.msrb.mxu0 %v11406_v56  ;;  %8879 = vmatmul.bf16.vlgmr.msra.gmra.mxu1 %v15030_v63  ;;  %v12574_v56 = vor.u32 %v14625_v46, %v12573_v45  ;;  %9048 = vst [vmem:[#allocation7 + $0x1e0] sm:$0xff] %v8673_v60  ;;  %v14845_v46 = vld [vmem:[#allocation5 + $0x2230] sm:$0xf0]  ;;  %v14772_v60 = vld [vmem:[#allocation5 + $0x1fe8] sm:$0xf0] }
 0x46f   :  { %8923 = vmatpush.bf16.msrb.mxu1 %v13742_v58  ;;  %8891 = vmatpush.bf16.msra.mxu2 %v9358_v17  ;;  %v13968_v58 = vld [vmem:[#allocation5 + $0x6c8] sm:$0xf0]  ;;  %v9654_v17 = vor.u32 %v13895_v9, %v9653_v8  ;;  %v12874_v8 = vor.u32 %v14699_v6, %v12873_v5  ;;  %v10245_v9 = vld [vmem:[#allocation5 + $0x7f8] sm:$0xf] }
 0x470   :  { %8904 = vmatpush.bf16.msra.mxu3 %v11694_v20  ;;  %v9946_v4 = vor.u32 %v13968_v58, %v9945_v57  ;;  %v12283_v20 = vld [vmem:[#allocation5 + $0x190c] sm:$0xf0]  ;;  %v13165_v58 = vld [vmem:[#allocation5 + $0x1ec8] sm:$0xf] }
 0x471   :  { %v12286_v31 = vor.u32 %v14516_v19, %v12283_v20  ;;  %v12289_v20 = vld [vmem:[#allocation5 + $0x17f0] sm:$0xf] }
 0x472   :  { %8911 = vmatpush.bf16.msrb.mxu0 %v11114_v11  ;;  %8892 = vmatmul.bf16.vlgmr.msra.gmra.mxu2 %v15028_v59  ;;  %v14479_v11 = vld [vmem:[#allocation5 + $0x16c0] sm:$0xf0]  ;;  %v8661_v16 = vpop.f32.mrf.mxu0 }
 0x473   :  { %8924 = vmatpush.bf16.msrb.mxu1 %v13450_v14  ;;  %8936 = vmatpush.bf16.msrb.mxu2 %v11410_v21  ;;  %v13932_v14 = vld [vmem:[#allocation5 + $0x5ac] sm:$0xf]  ;;  %v8674_v21 = vpop.f32.mrf.mxu1 }
 0x474   :  { %8949 = vmatpush.bf16.msrb.mxu3 %v13746_v22  ;;  %v11990_v22 = vor.u32 %v14479_v11, %v11989_v10  ;;  %v9950_v29 = vor.u32 %v13932_v14, %v9947_v15  ;;  %v14042_v10 = vld [vmem:[#allocation5 + $0x918] sm:$0xf0]  ;;  %v12581_v11 = vld [vmem:[#allocation5 + $0x1a38] sm:$0xf]  ;;  %v14553_v21 = vld [vmem:[#allocation5 + $0x1910] sm:$0xf0] }
 0x475   :  { %8905 = vmatmul.bf16.vlgmr.msra.gmra.mxu3 %v15030_v63  ;;  %v8685_v44 = vpop.f32.mrf.mxu2  ;;  %v10246_v14 = vor.u32 %v14042_v10, %v10245_v9  ;;  %v12290_v23 = vor.u32 %v14553_v21, %v12289_v20 }
 0x476   :  { %8912 = vmatpush.bf16.msrb.mxu0 %v10822_v25  ;;  %v14406_v25 = vld [vmem:[#allocation5 + $0x1478] sm:$0xf0] }
 0x477   :  { %8925 = vmatpush.bf16.msrb.mxu1 %v13158_v28  ;;  %8937 = vmatpush.bf16.msrb.mxu2 %v11118_v33  ;;  %v13749_v28 = vld [vmem:[#allocation5 + $0x2358] sm:$0xf]  ;;  %v9655_v33 = vld [vmem:[#allocation5 + $0x484] sm:$0xf0]  ;;  %v11698_v37 = vor.u32 %v14406_v25, %v11697_v24  ;;  %v13896_v25 = vld [vmem:[#allocation5 + $0x488] sm:$0xf0] }
 0x478   :  { %8950 = vmatpush.bf16.msrb.mxu3 %v13454_v36  ;;  %v11991_v36 = vld [vmem:[#allocation5 + $0x16c4] sm:$0xf0]  ;;  %v9658_v43 = vor.u32 %v13859_v32, %v9655_v33  ;;  %v8698_v45 = vpop.f32.mrf.mxu3  ;;  %v9369_v32 = vld [vmem:[#allocation5 + $0x120] sm:$0xf]  ;;  %v13823_v33 = vld [vmem:[#allocation5 + $0x240] sm:$0xf0] }
 0x479   :  { %v8699_v50 = vadd.f32 %v8698_v45, %v8685_v44  ;;  %v9661_v24 = vld [vmem:[#allocation5 + $0x368] sm:$0xf] }
 0x47a   :  { %8913 = vmatpush.bf16.msrb.mxu0 %v10530_v39  ;;  %v13750_v39 = vor.u32 %v14918_v30, %v13749_v28 }
 0x47b   :  { %8926 = vmatpush.bf16.msrb.mxu1 %v12866_v42  ;;  %8938 = vmatpush.bf16.msrb.mxu2 %v10826_v47  ;;  %v13457_v42 = vld [vmem:[#allocation5 + $0x2110] sm:$0xf]  ;;  %v11994_v47 = vor.u32 %v14443_v35, %v11991_v36  ;;  %9049 = vst [vmem:[#allocation7 + $0x1e8] sm:$0xff] %v8699_v50  ;;  %v14407_v35 = vld [vmem:[#allocation5 + $0x1480] sm:$0xf0] }
 0x47c   :  { %8951 = vmatpush.bf16.msrb.mxu3 %v13162_v48  ;;  %v13786_v48 = vld [vmem:[#allocation5 + $0x11c] sm:$0xf]  ;;  %v13458_v54 = vor.u32 %v14845_v46, %v13457_v42 }
 0x47d   :  { %v9366_v57 = vor.u32 %v13786_v48, %v9363_v49  ;;  %v8687_v3 = vpop.f32.mrf.mxu2 }
 0x47e   :  { %8914 = vmatpush.bf16.msrb.mxu0 %v10238_v52  ;;  %v11699_v52 = vld [vmem:[#allocation5 + $0x147c] sm:$0xf0] }
 0x47f   :  { %8927 = vmatpush.bf16.msrb.mxu1 %v12574_v56  ;;  %8939 = vmatpush.bf16.msrb.mxu2 %v10534_v0  ;;  %v14188_v56 = vld [vmem:[#allocation5 + $0xda8] sm:$0xf0]  ;;  %v11702_v61 = vor.u32 %v14370_v51, %v11699_v52  ;;  %v13166_v0 = vor.u32 %v14772_v60, %v13165_v58 }
 0x480   :  { %8952 = vmatpush.bf16.msrb.mxu3 %v12870_v1  ;;  %v10830_v62 = vor.u32 %v14188_v56, %v10829_v55  ;;  %v10537_v1 = vld [vmem:[#allocation5 + $0xa40] sm:$0xf] }
 0x482   :  { %8915 = vmatpush.bf16.msrb.mxu0 %v9946_v4  ;;  %v8700_v4 = vpop.f32.mrf.mxu3 }
 0x483   :  { %8928 = vmatpush.bf16.msrb.mxu1 %v12282_v7  ;;  %8940 = vmatpush.bf16.msrb.mxu2 %v10242_v12  ;;  %v10538_v7 = vor.u32 %v14115_v2, %v10537_v1  ;;  %v14626_v12 = vld [vmem:[#allocation5 + $0x1b58] sm:$0xf0] }
 0x484   :  { %8953 = vmatpush.bf16.msrb.mxu3 %v12578_v13  ;;  %v12582_v16 = vor.u32 %v14626_v12, %v12581_v11 }
 0x486   :  { %8916 = vmatpush.bf16.msrb.mxu0 %v9654_v17  ;;  %v9953_v17 = vld [vmem:[#allocation5 + $0x5b0] sm:$0xf] }
 0x487   :  { %8929 = vmatpush.bf16.msrb.mxu1 %v11990_v22  ;;  %8941 = vmatpush.bf16.msrb.mxu2 %v9950_v29  ;;  %v9954_v22 = vor.u32 %v13969_v18, %v9953_v17  ;;  %v9662_v29 = vor.u32 %v13896_v25, %v9661_v24 }
 0x488   :  { %8954 = vmatpush.bf16.msrb.mxu3 %v12286_v31  ;;  %v11998_v31 = vor.u32 %v14480_v27, %v11997_v26 }
 0x48a   :  { %8917 = vmatpush.bf16.msrb.mxu0 %v9362_v34  ;;  %v8711_v13 = vpop.f32.mrf.mxu0  ;;  %v11705_v34 = vld [vmem:[#allocation5 + $0x1360] sm:$0xf] }
 0x48b   :  { %8930 = vmatpush.bf16.msrb.mxu1 %v11698_v37  ;;  %8942 = vmatpush.bf16.msrb.mxu2 %v9658_v43  ;;  %v8724_v15 = vpop.f32.mrf.mxu1  ;;  %v9370_v37 = vor.u32 %v13823_v33, %v9369_v32 }
 0x48c   :  { %8955 = vmatpush.bf16.msrb.mxu3 %v11994_v47  ;;  %v8725_v19 = vadd.f32 %v8724_v15, %v8711_v13 }
 0x48d   :  { %8918 = vmatmul.bf16.vlgmr.msrb.gmra.mxu0 %v15028_v59 }
 0x48e   :  { %8962 = vmatpush.bf16.msra.mxu0 %v11414_v38  ;;  %8931 = vmatmul.bf16.vlgmr.msrb.gmra.mxu1 %v15030_v63  ;;  %9050 = vst [vmem:[#allocation7 + $0x1f0] sm:$0xff] %v8725_v19 }
 0x48f   :  { %8975 = vmatpush.bf16.msra.mxu1 %v13750_v39  ;;  %8943 = vmatpush.bf16.msrb.mxu2 %v9366_v57  ;;  %v11706_v39 = vor.u32 %v14407_v35, %v11705_v34 }
 0x490   :  { %8956 = vmatpush.bf16.msrb.mxu3 %v11702_v61 }
 0x492   :  { %8963 = vmatpush.bf16.msra.mxu0 %v11122_v53  ;;  %8944 = vmatmul.bf16.vlgmr.msrb.gmra.mxu2 %v15028_v59  ;;  %v8713_v28 = vpop.f32.mrf.mxu0 }
 0x493   :  { %8976 = vmatpush.bf16.msra.mxu1 %v13458_v54  ;;  %8957 = vmatmul.bf16.vlgmr.msrb.gmra.mxu3 %v15030_v63  ;;  %v8726_v30 = vpop.f32.mrf.mxu1 }
 0x495   :  { %v8737_v36 = vpop.f32.mrf.mxu2 }
 0x496   :  { %8964 = vmatpush.bf16.msra.mxu0 %v10830_v62 }
 0x497   :  { %8977 = vmatpush.bf16.msra.mxu1 %v13166_v0 }
 0x498   :  { %v8750_v38 = vpop.f32.mrf.mxu3 }
 0x499   :  { %v8751_v40 = vadd.f32 %v8750_v38, %v8737_v36 }
 0x49a   :  { %8965 = vmatpush.bf16.msra.mxu0 %v10538_v7 }
 0x49b   :  { %8978 = vmatpush.bf16.msra.mxu1 %v12874_v8  ;;  %9051 = vst [vmem:[#allocation7 + $0x1f8] sm:$0xff] %v8751_v40 }
 0x49d   :  { %v8739_v41 = vpop.f32.mrf.mxu2 }
 0x49e   :  { %8966 = vmatpush.bf16.msra.mxu0 %v10246_v14 }
 0x49f   :  { %8979 = vmatpush.bf16.msra.mxu1 %v12582_v16 }
 0x4a0   :  { %v8752_v42 = vpop.f32.mrf.mxu3 }
 0x4a2   :  { %8967 = vmatpush.bf16.msra.mxu0 %v9954_v22 }
 0x4a3   :  { %8980 = vmatpush.bf16.msra.mxu1 %v12290_v23 }
 0x4a6   :  { %8968 = vmatpush.bf16.msra.mxu0 %v9662_v29 }
 0x4a7   :  { %8981 = vmatpush.bf16.msra.mxu1 %v11998_v31 }
 0x4aa   :  { %8969 = vmatpush.bf16.msra.mxu0 %v9370_v37  ;;  %v8763_v43 = vpop.f32.mrf.mxu0 }
 0x4ab   :  { %8982 = vmatpush.bf16.msra.mxu1 %v11706_v39  ;;  %v8776_v44 = vpop.f32.mrf.mxu1 }
 0x4ac   :  { %v8777_v45 = vadd.f32 %v8776_v44, %v8763_v43 }
 0x4ad   :  { %8970 = vmatmul.bf16.vlgmr.msra.gmra.mxu0 %v15028_v59 }
 0x4ae   :  { %8983 = vmatmul.bf16.vlgmr.msra.gmra.mxu1 %v15030_v63  ;;  %9052 = vst [vmem:[#allocation7 + $0x200] sm:$0xff] %v8777_v45 }
 0x4b2   :  { %v8765_v46 = vpop.f32.mrf.mxu0 }
 0x4b3   :  { %v8778_v47 = vpop.f32.mrf.mxu1 }
 0x4b5   :  { %v8789_v48 = vpop.f32.mrf.mxu2 }
 0x4b8   :  { %v8802_v49 = vpop.f32.mrf.mxu3 }
 0x4b9   :  { %v8803_v50 = vadd.f32 %v8802_v49, %v8789_v48 }
 0x4bb   :  { %9053 = vst [vmem:[#allocation7 + $0x208] sm:$0xff] %v8803_v50 }
 0x4bd   :  { %v8791_v51 = vpop.f32.mrf.mxu2 }
 0x4c0   :  { %v8804_v52 = vpop.f32.mrf.mxu3 }
 0x4ca   :  { %v8815_v53 = vpop.f32.mrf.mxu0 }
 0x4cb   :  { %v8828_v54 = vpop.f32.mrf.mxu1 }
 0x4cc   :  { %v8829_v55 = vadd.f32 %v8828_v54, %v8815_v53 }
 0x4ce   :  { %9054 = vst [vmem:[#allocation7 + $0x210] sm:$0xff] %v8829_v55 }
 0x4d2   :  { %v8817_v59 = vpop.f32.mrf.mxu0 }
 0x4d3   :  { %v8830_v56 = vpop.f32.mrf.mxu1 }
 0x4d5   :  { %v8841_v63 = vpop.f32.mrf.mxu2 }
 0x4d8   :  { %v8854_v57 = vpop.f32.mrf.mxu3 }
 0x4d9   :  { %v8855_v58 = vadd.f32 %v8854_v57, %v8841_v63 }
 0x4db   :  { %9055 = vst [vmem:[#allocation7 + $0x218] sm:$0xff] %v8855_v58 }
 0x4dd   :  { %v8843_v60 = vpop.f32.mrf.mxu2 }
 0x4e0   :  { %v8856_v61 = vpop.f32.mrf.mxu3 }
 0x4ea   :  { %v8867_v62 = vpop.f32.mrf.mxu0 }
 0x4eb   :  { %v8880_v0 = vpop.f32.mrf.mxu1 }
 0x4ec   :  { %v8881_v1 = vadd.f32 %v8880_v0, %v8867_v62 }
 0x4ee   :  { %9056 = vst [vmem:[#allocation7 + $0x220] sm:$0xff] %v8881_v1 }
 0x4f2   :  { %v8869_v2 = vpop.f32.mrf.mxu0 }
 0x4f3   :  { %v8882_v3 = vpop.f32.mrf.mxu1 }
 0x4f5   :  { %v8893_v4 = vpop.f32.mrf.mxu2 }
 0x4f8   :  { %v8906_v5 = vpop.f32.mrf.mxu3 }
 0x4f9   :  { %v8907_v6 = vadd.f32 %v8906_v5, %v8893_v4 }
 0x4fb   :  { %9057 = vst [vmem:[#allocation7 + $0x228] sm:$0xff] %v8907_v6 }
 0x4fd   :  { %v8895_v7 = vpop.f32.mrf.mxu2 }
 0x500   :  { %v8908_v8 = vpop.f32.mrf.mxu3 }
 0x50a   :  { %v8919_v9 = vpop.f32.mrf.mxu0 }
 0x50b   :  { %v8932_v10 = vpop.f32.mrf.mxu1 }
 0x50c   :  { %v8933_v11 = vadd.f32 %v8932_v10, %v8919_v9 }
 0x50e   :  { %9058 = vst [vmem:[#allocation7 + $0x230] sm:$0xff] %v8933_v11 }
 0x512   :  { %v8921_v12 = vpop.f32.mrf.mxu0 }
 0x513   :  { %v8934_v13 = vpop.f32.mrf.mxu1 }
 0x515   :  { %v8945_v14 = vpop.f32.mrf.mxu2 }
 0x516   :  { %v8958_v15 = vpop.f32.mrf.mxu3 }
 0x517   :  { %v8959_v16 = vadd.f32 %v8958_v15, %v8945_v14 }
 0x519   :  { %9059 = vst [vmem:[#allocation7 + $0x238] sm:$0xff] %v8959_v16 }
 0x51d   :  { %v8947_v17 = vpop.f32.mrf.mxu2 }
 0x51e   :  { %v8960_v18 = vpop.f32.mrf.mxu3 }
 0x52a   :  { %v8971_v19 = vpop.f32.mrf.mxu0 }
 0x52b   :  { %v8984_v20 = vpop.f32.mrf.mxu1 }
 0x52c   :  { %v8985_v21 = vadd.f32 %v8984_v20, %v8971_v19 }
 0x52e   :  { %9060 = vst [vmem:[#allocation7 + $0x240] sm:$0xff] %v8985_v21 }
 0x52f   :  { %9071 = dma.vmem_to_hbm [thread:$0]  %s9067_s1, 9344, %s9069_s23, [#allocation4]  }
 0x532   :  { %v8973_v22 = vpop.f32.mrf.mxu0 }
 0x533   :  { %v8986_v23 = vpop.f32.mrf.mxu1 }
 0x534   :  { %15000 = dma.done.wait [#allocation4], 9344  }
 0x535   :  { %15001 = vsyncadd [#allocation4], 4294957952 }
 0x536   :  { %9076 = vsyncpa [#allocation3], 1 }
 0x537   :  { %9077 = vsyncpa [#allocation6], 1 }
 0x538   :  { %9078 = vsyncpa [#allocation4], 1 }

</bundles_post_ra>
